<compile_context>
chip_gen: v5e
topology: v5e:2x2
jax: 0.10.0
libtpu: 0.0.40
codegen_flags: <defaults>
</compile_context>

<pallas_src>
import functools

import jax
import jax.numpy as jnp
from jax.experimental import pallas as pl
from jax.experimental.pallas import tpu as pltpu


def _mlp_kernel(x_ref, w1_ref, w2_ref, o_ref, acc_ref, *, precision):
    k = pl.program_id(1)

    @pl.when(k == 0)
    def _init():
        acc_ref[...] = jnp.zeros_like(acc_ref)

    # t = x · W1[k-tile]^T   (contract d_in; W1 stays in nn.Linear (out, in) layout)
    t = jax.lax.dot_general(
        x_ref[...], w1_ref[...],
        dimension_numbers=(((1,), (1,)), ((), ())),
        preferred_element_type=jnp.float32,
        precision=precision,
    )
    # Exact GELU (torch.nn.GELU default, approximate='none'), in f32.
    t = 0.5 * t * (1.0 + jax.lax.erf(t * 0.7071067811865476))
    # acc += gelu(t) · W2[:, k-tile]^T   (contract the d_mid tile)
    acc_ref[...] += jax.lax.dot_general(
        t.astype(w2_ref.dtype), w2_ref[...],
        dimension_numbers=(((1,), (1,)), ((), ())),
        preferred_element_type=jnp.float32,
        precision=precision,
    )

    @pl.when(k == pl.num_programs(1) - 1)
    def _finalize():
        o_ref[...] = acc_ref[...].astype(o_ref.dtype)


def _round_up(a: int, b: int) -> int:
    return (a + b - 1) // b * b


def mlp_forward(x, w1, w2, *, tm=None, tn_mid=None, precision=None):
    """Fused fc1 -> GELU -> fc2 (both bias=False).

    x:  (M, d_in)
    w1: (d_mid, d_in)  -- PyTorch nn.Linear layout (out_features, in_features)
    w2: (d_out, d_mid)
    """
    M, d_in = x.shape
    d_mid, d_in_w = w1.shape
    d_out, d_mid_w = w2.shape
    assert d_in == d_in_w and d_mid == d_mid_w, "shape mismatch"

    if precision is None:
        # f32 inputs: near-f32 matmul accuracy; bf16 inputs: native MXU rate.
        precision = (jax.lax.Precision.HIGHEST
                     if x.dtype == jnp.float32 else jax.lax.Precision.DEFAULT)

    # MXU/roofline-sized tiles, clamped to the (padded) problem size.
    if tm is None:
        tm = min(256, _round_up(M, 8))
    if tn_mid is None:
        tn_mid = min(512, _round_up(d_mid, 128))

    m_pad = _round_up(M, tm)
    mid_pad = _round_up(d_mid, tn_mid)
    out_pad = _round_up(d_out, 128)   # lane-dense output stores (unmasked vst)

    # Zero-pad only when not already tile-aligned (no-op for typical transformer
    # shapes). In production, pre-pad weights once outside the hot path.
    if m_pad != M:
        x = jnp.pad(x, ((0, m_pad - M), (0, 0)))
    if mid_pad != d_mid:
        w1 = jnp.pad(w1, ((0, mid_pad - d_mid), (0, 0)))
        w2 = jnp.pad(w2, ((0, 0), (0, mid_pad - d_mid)))
    if out_pad != d_out:
        w2 = jnp.pad(w2, ((0, out_pad - d_out), (0, 0)))

    grid = (m_pad // tm, mid_pad // tn_mid)

    # Rough per-step VMEM footprint: double-buffered I/O tiles + f32 accumulator.
    blk_bytes = (tm * d_in * x.dtype.itemsize
                 + tn_mid * d_in * w1.dtype.itemsize
                 + out_pad * tn_mid * w2.dtype.itemsize
                 + tm * out_pad * x.dtype.itemsize)
    vmem_limit = int(min(max(2 * blk_bytes + 4 * tm * out_pad + (8 << 20),
                             32 << 20),
                         100 << 20))

    kernel = functools.partial(_mlp_kernel, precision=precision)

    out = pl.pallas_call(
        kernel,
        out_shape=jax.ShapeDtypeStruct((m_pad, out_pad), x.dtype),
        grid_spec=pltpu.PrefetchScalarGridSpec(
            num_scalar_prefetch=0,
            grid=grid,
            in_specs=[
                pl.BlockSpec((tm, d_in), lambda i, k: (i, 0)),         # x row tile
                pl.BlockSpec((tn_mid, d_in), lambda i, k: (k, 0)),     # W1 mid tile
                pl.BlockSpec((out_pad, tn_mid), lambda i, k: (0, k)),  # W2 mid tile
            ],
            out_specs=pl.BlockSpec((tm, out_pad), lambda i, k: (i, 0)),
            scratch_shapes=[pltpu.VMEM((tm, out_pad), jnp.float32)],
        ),
        compiler_params=pltpu.CompilerParams(
            dimension_semantics=("parallel", "arbitrary"),
            vmem_limit_bytes=vmem_limit,
        ),
    )(x, w1, w2)

    if m_pad != M or out_pad != d_out:
        out = out[:M, :d_out]
    return out


def _mlp_reference(x, w1, w2):
    """Plain-JAX reference (exact GELU), near-f32 matmul precision."""
    hp = jax.lax.Precision.HIGHEST
    xf = x.astype(jnp.float32)
    w1f = w1.astype(jnp.float32)
    w2f = w2.astype(jnp.float32)
    t = jax.lax.dot_general(xf, w1f, (((1,), (1,)), ((), ())), precision=hp)
    t = 0.5 * t * (1.0 + jax.lax.erf(t * 0.7071067811865476))
    return jax.lax.dot_general(t, w2f, (((1,), (1,)), ((), ())), precision=hp)


if __name__ == "__main__":
    key = jax.random.PRNGKey(0)
    k_x, k_w1, k_w2 = jax.random.split(key, 3)

    # Case 1: tile-aligned shapes — 2 parallel M tiles x 2 d_mid tiles, exercises
    # the f32 accumulation across the "arbitrary" axis.
    M, d_in, d_mid, d_out = 512, 128, 512, 128
    x = jax.random.normal(k_x, (M, d_in), dtype=jnp.float32)
    w1 = jax.random.normal(k_w1, (d_mid, d_in), dtype=jnp.float32) * 0.05
    w2 = jax.random.normal(k_w2, (d_out, d_mid), dtype=jnp.float32) * 0.05

    out = mlp_forward(x, w1, w2, tm=256, tn_mid=256)
    jax.block_until_ready(out)
    ref = _mlp_reference(x, w1, w2)
    assert out.shape == ref.shape
    assert jnp.allclose(out, ref, atol=1e-4, rtol=1e-4), "f32 mismatch vs reference"

    # Case 2: unaligned toy shapes from the original test — exercises M / d_mid /
    # d_out padding and the trailing slice.
    M2, d_in2, d_mid2, d_out2 = 8, 32, 64, 32
    x2 = jax.random.normal(k_x, (M2, d_in2), dtype=jnp.float32)
    w1b = jax.random.normal(k_w1, (d_mid2, d_in2), dtype=jnp.float32) * 0.1
    w2b = jax.random.normal(k_w2, (d_out2, d_mid2), dtype=jnp.float32) * 0.1
    out2 = mlp_forward(x2, w1b, w2b)
    jax.block_until_ready(out2)
    ref2 = _mlp_reference(x2, w1b, w2b)
    assert out2.shape == ref2.shape
    assert jnp.allclose(out2, ref2, atol=1e-4, rtol=1e-4), "padded-case mismatch"

    # Case 3: bf16 inputs/weights -> native bf16 MXU rate (f32 accumulate).
    out3 = mlp_forward(x.astype(jnp.bfloat16), w1.astype(jnp.bfloat16),
                       w2.astype(jnp.bfloat16), tm=256, tn_mid=256)
    jax.block_until_ready(out3)
    assert jnp.allclose(out3.astype(jnp.float32), ref, atol=5e-2, rtol=5e-2), \
        "bf16 mismatch vs f32 reference"

    print("KERNEL_OK")
</pallas_src>

<mosaic_0001>
module attributes {stable_mosaic.version = 11 : i64} {
  func.func @_mlp_kernel(%arg0: i32, %arg1: i32, %arg2: memref<256x128xf32, #tpu.memory_space<vmem>>, %arg3: memref<256x128xf32, #tpu.memory_space<vmem>>, %arg4: memref<128x256xf32, #tpu.memory_space<vmem>>, %arg5: memref<256x128xf32, #tpu.memory_space<vmem>>, %arg6: memref<256x128xf32, #tpu.memory_space<vmem>>) attributes {dimension_semantics = [#tpu.dimension_semantics<parallel>, #tpu.dimension_semantics<arbitrary>], iteration_bounds = array<i64: 2, 2>, scalar_prefetch = 0 : i64, scratch_operands = 1 : i64, tpu.core_type = #tpu.core_type<tc>, window_params = [{transform_indices = @transform_0, window_bounds = array<i64: 256, 128>}, {transform_indices = @transform_1, window_bounds = array<i64: 256, 128>}, {transform_indices = @transform_2, window_bounds = array<i64: 128, 256>}, {transform_indices = @transform_3, window_bounds = array<i64: 256, 128>}]} {
    %c0_i32 = arith.constant 0 : i32
    %0 = arith.cmpi eq, %arg1, %c0_i32 : i32
    %1 = arith.extui %0 : i1 to i32
    %c0_i32_0 = arith.constant 0 : i32
    %2 = arith.cmpi ne, %1, %c0_i32_0 : i32
    scf.if %2 {
      %cst_15 = arith.constant 0.000000e+00 : f32
      %22 = vector.broadcast %cst_15 : f32 to vector<256x128xf32>
      %c0_16 = arith.constant 0 : index
      %c0_17 = arith.constant 0 : index
      %23 = vector.load %arg6[%c0_16, %c0_17] : memref<256x128xf32, #tpu.memory_space<vmem>>, vector<256x128xf32>
      tpu.vector_store %arg6[%c0_16, %c0_17], %22 {strides = array<i32>} : memref<256x128xf32, #tpu.memory_space<vmem>>, vector<256x128xf32>,
    } else {
    }
    %c0 = arith.constant 0 : index
    %c0_1 = arith.constant 0 : index
    %3 = vector.load %arg2[%c0, %c0_1] : memref<256x128xf32, #tpu.memory_space<vmem>>, vector<256x128xf32>
    %c0_2 = arith.constant 0 : index
    %c0_3 = arith.constant 0 : index
    %4 = vector.load %arg3[%c0_2, %c0_3] : memref<256x128xf32, #tpu.memory_space<vmem>>, vector<256x128xf32>
    %cst = arith.constant dense<0.000000e+00> : vector<256x256xf32>
    %5 = tpu.matmul %3, %4, %cst {dimension_numbers = #tpu.dot_dimension_numbers<[1], [1], [0], [0], [0, 0, 1, 0], [], []>, precision = #tpu.contract_precision<fp32>} : vector<256x128xf32>, vector<256x128xf32>, vector<256x256xf32> -> vector<256x256xf32>
    %cst_4 = arith.constant 5.000000e-01 : f32
    %6 = vector.broadcast %cst_4 : f32 to vector<256x256xf32>
    %7 = arith.mulf %6, %5 : vector<256x256xf32>
    %cst_5 = arith.constant 0.707106769 : f32
    %8 = vector.broadcast %cst_5 : f32 to vector<256x256xf32>
    %9 = arith.mulf %5, %8 : vector<256x256xf32>
    %10 = math.erf %9 : vector<256x256xf32>
    %cst_6 = arith.constant 1.000000e+00 : f32
    %11 = vector.broadcast %cst_6 : f32 to vector<256x256xf32>
    %12 = arith.addf %11, %10 : vector<256x256xf32>
    %13 = arith.mulf %7, %12 : vector<256x256xf32>
    %c0_7 = arith.constant 0 : index
    %c0_8 = arith.constant 0 : index
    %14 = vector.load %arg6[%c0_7, %c0_8] : memref<256x128xf32, #tpu.memory_space<vmem>>, vector<256x128xf32>
    %c0_9 = arith.constant 0 : index
    %c0_10 = arith.constant 0 : index
    %15 = vector.load %arg4[%c0_9, %c0_10] : memref<128x256xf32, #tpu.memory_space<vmem>>, vector<128x256xf32>
    %cst_11 = arith.constant dense<0.000000e+00> : vector<256x128xf32>
    %16 = tpu.matmul %13, %15, %cst_11 {dimension_numbers = #tpu.dot_dimension_numbers<[1], [1], [0], [0], [0, 0, 1, 0], [], []>, precision = #tpu.contract_precision<fp32>} : vector<256x256xf32>, vector<128x256xf32>, vector<256x128xf32> -> vector<256x128xf32>
    %17 = arith.addf %14, %16 : vector<256x128xf32>
    %c0_12 = arith.constant 0 : index
    %c0_13 = arith.constant 0 : index
    %18 = vector.load %arg6[%c0_12, %c0_13] : memref<256x128xf32, #tpu.memory_space<vmem>>, vector<256x128xf32>
    tpu.vector_store %arg6[%c0_12, %c0_13], %17 {strides = array<i32>} : memref<256x128xf32, #tpu.memory_space<vmem>>, vector<256x128xf32>,
    %c1_i32 = arith.constant 1 : i32
    %19 = arith.cmpi eq, %arg1, %c1_i32 : i32
    %20 = arith.extui %19 : i1 to i32
    %c0_i32_14 = arith.constant 0 : i32
    %21 = arith.cmpi ne, %20, %c0_i32_14 : i32
    scf.if %21 {
      %c0_15 = arith.constant 0 : index
      %c0_16 = arith.constant 0 : index
      %22 = vector.load %arg6[%c0_15, %c0_16] : memref<256x128xf32, #tpu.memory_space<vmem>>, vector<256x128xf32>
      %c0_17 = arith.constant 0 : index
      %c0_18 = arith.constant 0 : index
      %23 = vector.load %arg5[%c0_17, %c0_18] : memref<256x128xf32, #tpu.memory_space<vmem>>, vector<256x128xf32>
      tpu.vector_store %arg5[%c0_17, %c0_18], %22 {strides = array<i32>} : memref<256x128xf32, #tpu.memory_space<vmem>>, vector<256x128xf32>,
    } else {
    }
    return
  }
  func.func @transform_0(%arg0: i32, %arg1: i32) -> (i32, i32) {
    %c0_i32 = arith.constant 0 : i32
    %c0_i32_0 = arith.constant 0 : i32
    return %arg0, %c0_i32 : i32, i32
  }
  func.func @transform_1(%arg0: i32, %arg1: i32) -> (i32, i32) {
    %c0_i32 = arith.constant 0 : i32
    %c0_i32_0 = arith.constant 0 : i32
    return %arg1, %c0_i32 : i32, i32
  }
  func.func @transform_2(%arg0: i32, %arg1: i32) -> (i32, i32) {
    %c0_i32 = arith.constant 0 : i32
    %c0_i32_0 = arith.constant 0 : i32
    return %c0_i32, %arg1 : i32, i32
  }
  func.func @transform_3(%arg0: i32, %arg1: i32) -> (i32, i32) {
    %c0_i32 = arith.constant 0 : i32
    %c0_i32_0 = arith.constant 0 : i32
    return %arg0, %c0_i32 : i32, i32
  }
}

</mosaic_0001>

<bundles_post_ra>
// kernel: tpu_custom_call.1
= control target key start
LH: loop header
LB: loop body
LE: loop exit
PB: predicated region body
PF: predicated region fallthrough
CT: control target
= control target key end

     0   :  { %s16699_s0 = inlined_call_operand.hbm [shape: f32[512,128], index: 0, kind: input, shape index: {}]   ;;  %s16700_s1 = inlined_call_operand.hbm [shape: f32[512,128], index: 1, kind: input, shape index: {}]   ;;  %s16701_s2 = inlined_call_operand.hbm [shape: f32[128,512], index: 2, kind: input, shape index: {}]   ;;  %s16702_s3 = inlined_call_operand.hbm [shape: f32[512,128], index: 3, kind: output, shape index: {}]  }
   0x1   :  { %17222 = sst [smem:[#allocation157_spill]] %s16700_s1 }
   0x2   :  { %17223 = sst [smem:[#allocation158_spill]] %s16702_s3 }
   0x3   :  { %8 = vsyncpa [#allocation4], 0 }
   0x4   :  { %10 = vsyncpa [#allocation4 + $0x1], 0 }
   0x5   :  { %11 = vsyncpa [#allocation7], 0 }
   0x6   :  { %13 = vsyncpa [#allocation7 + $0x1], 0 }
   0x7   :  { %14 = vsyncpa [#allocation5], 0 }
   0x8   :  { %16 = vsyncpa [#allocation5 + $0x1], 0  ;;  %s9338_s12 = smov 0   ;;  %s9340_s13 = smov 0  }
   0x9   :  { %s9342_s14 = smov 0   ;;  %s9344_s15 = smov 0  }
   0xa   :  { %s9346_s16 = smov 0   ;;  %s9348_s17 = smov 0  }
   0xb   :  { %s9350_s18 = smov 0   ;;  %s9352_s19 = smov 0  }
   0xc   :  { %s9354_s20 = smov 0   ;;  %s9356_s21 = smov 0  }
   0xd   :  { %s9358_s22 = smov 0  }
   0xe LB: > { %17224 = sst [smem:[#allocation13_spill]] %s9276_s14  ;;  %s9392_s23 = sadd.s32 4294967295, %s9308_s22   ;;  %s9308_s22 = sphi %s9358_s22, %s22_s22   ;;  %s9304_s21 = sphi %s9356_s21, %s18653_s21   ;;  %s9300_s20 = sphi %s9354_s20, %s18659_s20   ;;  %s9296_s19 = sphi %s9352_s19, %s18651_s19   ;;  %s9292_s18 = sphi %s9350_s18, %s18658_s18   ;;  %s9288_s17 = sphi %s9348_s17, %s18650_s17   ;;  %s9284_s16 = sphi %s9346_s16, %s18657_s16   ;;  %s9280_s15 = sphi %s9344_s15, %s18656_s15   ;;  %s9276_s14 = sphi %s9342_s14, %s18648_s14   ;;  %s9272_s13 = sphi %s9340_s13, %s18655_s13   ;;  %s9268_s12 = sphi %s9338_s12, %s18654_s12  }
   0xf   : > { %17225 = sst [smem:[#allocation14_spill]] %s9280_s15  ;;  %s31_s24 = sadd.s32 1, %s9300_s20 }
  0x10   : > { %17226 = sst [smem:[#allocation15_spill]] %s9288_s17  ;;  %p9395_p0 = scmp.ge.s32.totalorder %s31_s24, 2 }
  0x11   : > { %17227 = sst [smem:[#allocation16_spill]] %s9304_s21  ;;  %p49_p1 = scmp.eq.s32.totalorder %s9308_s22, 0 }
  0x12   : > { %p55_p2 = scmp.eq.s32.totalorder %s9392_s23, 0  ;;  %s67_s26 = sadd.s32 1, %s9276_s14 }
  0x13   : > { %s18661_s24 = smov (%p9395_p0, %s31_s24), 0  ;;  %p74_p3 = scmp.ne.s32.totalorder %s9276_s14, %s9272_s13 }
  0x14   : > { %17229 = sst [smem:[#allocation17_spill]] %s18661_s24  ;;  %p80_p4 = scmp.ne.s32.totalorder %s9272_s13, %s9268_s12 }
  0x15   : > { %s64_s27 = ssub.s32 %s9300_s20, %s18661_s24  ;;  %p9413_p6 = por %p74_p3, %p49_p1 }
  0x16   : > { %p65_p5 = scmp.eq.s32.totalorder %s64_s27, 0  ;;  %p9419_p7 = por %p80_p4, %p55_p2 }
  0x17   : > { %p16704_p8 = scmp.lt.s32.totalorder %s9308_s22, 4  ;;  %s178_s4 = sand.u32 1, %s9308_s22  }
  0x18   : > { %s9425_s30 = scalar_select %p65_p5, %s9276_s14, %s67_s26  }
  0x19   : > { %s180_s5 = sand.u32 1, %s9276_s14   ;;  %s8841_s7 = sshll.u32 %s9300_s20, 8 }
  0x1a   : > { %17232 = sst [smem:[#allocation18_spill]] %s9425_s30  ;;  %s8758_s6 = sshll.u32 %s180_s5, 8 }
  0x1b   : > { %s17233_s1 = sld [smem:[#allocation157_spill]]  ;;  %s182_s11 = scalar_lea.vmem [#allocation6], %s8758_s6 }
  0x1c   : > { %s190_s12 = sshll.u32 %s182_s11, 4  ;;  %p9437_p9 = pnand %p16704_p8, %p9413_p6  ;;  %s191_s12 = int_to_ptr.vmem [resolvable:$true] %s190_s12 }
  0x1d   : > { %p8764_p10 = scmp.ge.s32.totalorder %s9308_s22, 1  ;;  %s204_s5 = scalar_lea.vmem [#allocation8], %s8758_s6 }
  0x1e   : > { %s9444_s8 = scalar_lea.sflag [#allocation7], %s178_s4  ;;  %s16703_s28 = smov 128  }
  0x1f   : > { %s16705_s9 = smov 8   ;;  %p220_p11 = scmp.lt.s32.totalorder %s9308_s22, 5 }
  0x20   : > { %s34_s4 = sadd.s32 1, %s9304_s21  ;;  %s41_s11 = sadd.s32 1, %s9288_s17 }
  0x21   : > { %s187_s10 = scalar_lea.hbm %s17233_s1, %s8841_s7  ;;  %s9442_s7 = sshll.u32 %s204_s5, 4 }
  0x22   : > { %s188_s27 = sshll.u32 %s187_s10, 4  ;;  %17235 = sst [smem:[#allocation19_spill]] %s9442_s7  ;;  %s189_s27 = int_to_ptr.hbm [resolvable:$true] %s188_s27 }
  0x23   : > { %8858 = dma.hbm_to_vmem [thread:$0]  (!%p9437_p9), %s189_s27, 4096, %s191_s12, %s9444_s8, %s16703_s28, %s16703_s28, %s16705_s9  }
  0x24   : > { %p9454_p12 = pnand %p8764_p10, %p220_p11  ;;  %s8752_s10 = sadd.s32 4294967294, %s9308_s22  }
  0x25   : > { %s18663_s4 = smov (!%p9395_p0, %s34_s4), %s9304_s21  ;;  %p48_p13 = scmp.ne.s32.totalorder %s9288_s17, %s9284_s16 }
  0x26   : > { %p54_p3 = scmp.ne.s32.totalorder %s9284_s16, %s9280_s15  ;;  %p36_p4 = scmp.ge.s32.totalorder %s18663_s4, 2 }
  0x27   : > { %p130_p5 = scmp.eq.s32.totalorder %s9392_s23, 3  ;;  %p9471_p6 = por %p49_p1, %p48_p13 }
  0x28   : > { %p9477_p10 = por %p55_p2, %p54_p3  ;;  %s18665_s4 = smov (%p36_p4, %s18663_s4), 0 }
  0x29   : > { %17239 = sst [smem:[#allocation20_spill]] %s18665_s4  ;;  %p9483_p0 = por %p130_p5, %p48_p13 }
  0x2a   : > { %p136_p11 = scmp.eq.s32.totalorder %s8752_s10, 3  ;;  %s38_s5 = ssub.s32 %s9304_s21, %s18665_s4 }
  0x2b   : > { %s17240_s25 = scalar_select %p9483_p0, 1, 0 }
  0x2c   : > { %s156_s28 = sand.u32 1, %s9288_s17   ;;  %p39_p1 = scmp.eq.s32.totalorder %s38_s5, 0 }
  0x2d   : > { %17241 = sst [smem:[#allocation21_spill]] %s17240_s25  ;;  %p9490_p8 = por %p136_p11, %p54_p3 }
  0x2e   : > { %s8755_s7 = sshll.u32 %s156_s28, 8  ;;  %s8840_s24 = sshll.u32 %s9304_s21, 8 }
  0x2f   : > { %s17242_s9 = scalar_select %p9490_p8, 1, 0 }
  0x30   : > { %s9495_s1 = scalar_select %p39_p1, %s9288_s17, %s41_s11  }
  0x31   : > { %17243 = sst [smem:[#allocation22_spill]] %s17242_s9  ;;  %s165_s15 = scalar_lea.hbm %s16699_s0, %s8840_s24 }
  0x32   : > { %17244 = sst [smem:[#allocation23_spill]] %s9495_s1  ;;  %s160_s25 = scalar_lea.vmem [#allocation3], %s8755_s7 }
  0x33   : > { %s17245_s3 = sld [smem:[#allocation19_spill]]  ;;  %s168_s10 = sshll.u32 %s160_s25, 4  ;;  %s169_s10 = int_to_ptr.vmem [resolvable:$true] %s168_s10 }
  0x34   : > { %s166_s4 = sshll.u32 %s165_s15, 4  ;;  %p17246_p2 = scmp.lt.s32.totalorder %s9308_s22, 4  ;;  %s167_s4 = int_to_ptr.hbm [resolvable:$true] %s166_s4 }
  0x35   : > { %s8842_s5 = sshll.u32 %s9300_s20, 4  ;;  %s157_s1 = scalar_lea.sflag [#allocation4], %s156_s28 }
  0x36   : > { %p8853_p13 = pnand %p17246_p2, %p9471_p6  ;;  %s209_s21 = scalar_lea.hbm %s16701_s2, %s8842_s5 }
  0x37   : > { %s17247_s17 = smov 8   ;;  %s17248_s14 = smov 128  }
  0x38   : > { %8855 = dma.hbm_to_vmem [thread:$0]  (!%p8853_p13), %s167_s4, 4096, %s169_s10, %s157_s1, %s17248_s14, %s17248_s14, %s17247_s17  }
  0x39   : > { %s210_s24 = sshll.u32 %s209_s21, 4  ;;  %s9312_s30 = smov 512   ;;  %s211_s24 = int_to_ptr.hbm [resolvable:$true] %s210_s24 }
  0x3a   : > { %s9313_s7 = smov 256   ;;  %s9314_s15 = smov 16  }
  0x3b   : > { %s17249_s25 = int_to_ptr.vmem [resolvable:$true] %s17245_s3  ;;  %224 = sbr.rel (%p9454_p12) target bundleno = 2224 (0x8b0), region = 32 }
  0x3c   : > { %8861 = dma.hbm_to_vmem [thread:$0]  (!%p9437_p9), %s211_s24, 4096, %s17249_s25, %s9444_s8, %s9312_s30, %s9313_s7, %s9314_s15  }
  0x40   : > { %s9520_s9 = sand.u32 1, %s9284_s16  }
  0x41   : > { %s8765_s28 = sshll.u32 %s9520_s9, 8  ;;  %s227_s12 = scalar_lea.sflag [#allocation4], %s9520_s9 }
  0x42   : > { %s9524_s1 = scalar_lea.vmem [#allocation3], %s8765_s28 }
  0x43   : > { %9255 = dma.done.wait (%p9477_p10), %s227_s12, 4096  }
  0x44   : > { %9257 = vsyncadd (%p9477_p10), %s227_s12, 4294963200  ;;  %s236_s3 = sand.u32 1, %s9392_s23   ;;  %s238_s17 = sand.u32 1, %s9272_s13  }
  0x45   : > { %s8766_s21 = sshll.u32 %s238_s17, 8  ;;  %s237_s26 = scalar_lea.sflag [#allocation7], %s236_s3 }
  0x46   : > { %s9532_s8 = scalar_lea.vmem [#allocation6], %s8766_s21 }
  0x47   : > { %9259 = dma.done.wait (%p9419_p7), %s237_s26, 8192  }
  0x48   : > { %9261 = vsyncadd (%p9419_p7), %s237_s26, 4294959104  ;;  %s9538_s6 = scalar_lea.vmem [#allocation8], %s8766_s21  ;;  %s9540_s4 = scalar_lea.vmem [#allocation9], %s8765_s28 }
  0x49   : > { %p8769_p9 = scmp.ne.s32.totalorder %s9292_s18, 0 }
  0x4b   : > { %291 = sbr.rel (%p8769_p9) target bundleno = 113 (0x71), region = 48 }
  0x50   : > { %v9315_v0 = vmov 0.0  }
  0x51   : > { %292 = vst [vmem:[#allocation2 + $0xb0] sm:$0xff] %v9315_v0 }
  0x52   : > { %293 = vst [vmem:[#allocation2] sm:$0xff] %v9315_v0 }
  0x53   : > { %294 = vst [vmem:[#allocation2 + $0xd8] sm:$0xff] %v9315_v0 }
  0x54   : > { %295 = vst [vmem:[#allocation2 + $0x18] sm:$0xff] %v9315_v0 }
  0x55   : > { %296 = vst [vmem:[#allocation2 + $0x50] sm:$0xff] %v9315_v0 }
  0x56   : > { %297 = vst [vmem:[#allocation2 + $0x68] sm:$0xff] %v9315_v0 }
  0x57   : > { %298 = vst [vmem:[#allocation2 + $0x30] sm:$0xff] %v9315_v0 }
  0x58   : > { %299 = vst [vmem:[#allocation2 + $0x48] sm:$0xff] %v9315_v0 }
  0x59   : > { %300 = vst [vmem:[#allocation2 + $0x80] sm:$0xff] %v9315_v0 }
  0x5a   : > { %301 = vst [vmem:[#allocation2 + $0x88] sm:$0xff] %v9315_v0 }
  0x5b   : > { %302 = vst [vmem:[#allocation2 + $0xe8] sm:$0xff] %v9315_v0 }
  0x5c   : > { %303 = vst [vmem:[#allocation2 + $0xb8] sm:$0xff] %v9315_v0 }
  0x5d   : > { %304 = vst [vmem:[#allocation2 + $0x60] sm:$0xff] %v9315_v0 }
  0x5e   : > { %305 = vst [vmem:[#allocation2 + $0xf0] sm:$0xff] %v9315_v0 }
  0x5f   : > { %306 = vst [vmem:[#allocation2 + $0x8] sm:$0xff] %v9315_v0 }
  0x60   : > { %307 = vst [vmem:[#allocation2 + $0x78] sm:$0xff] %v9315_v0 }
  0x61   : > { %308 = vst [vmem:[#allocation2 + $0x38] sm:$0xff] %v9315_v0 }
  0x62   : > { %309 = vst [vmem:[#allocation2 + $0x58] sm:$0xff] %v9315_v0 }
  0x63   : > { %310 = vst [vmem:[#allocation2 + $0x40] sm:$0xff] %v9315_v0 }
  0x64   : > { %311 = vst [vmem:[#allocation2 + $0xc8] sm:$0xff] %v9315_v0 }
  0x65   : > { %312 = vst [vmem:[#allocation2 + $0xe0] sm:$0xff] %v9315_v0 }
  0x66   : > { %313 = vst [vmem:[#allocation2 + $0x90] sm:$0xff] %v9315_v0 }
  0x67   : > { %314 = vst [vmem:[#allocation2 + $0x70] sm:$0xff] %v9315_v0 }
  0x68   : > { %315 = vst [vmem:[#allocation2 + $0xc0] sm:$0xff] %v9315_v0 }
  0x69   : > { %316 = vst [vmem:[#allocation2 + $0xa8] sm:$0xff] %v9315_v0 }
  0x6a   : > { %317 = vst [vmem:[#allocation2 + $0xd0] sm:$0xff] %v9315_v0 }
  0x6b   : > { %318 = vst [vmem:[#allocation2 + $0x10] sm:$0xff] %v9315_v0 }
  0x6c   : > { %319 = vst [vmem:[#allocation2 + $0x28] sm:$0xff] %v9315_v0 }
  0x6d   : > { %320 = vst [vmem:[#allocation2 + $0xa0] sm:$0xff] %v9315_v0 }
  0x6e   : > { %321 = vst [vmem:[#allocation2 + $0xf8] sm:$0xff] %v9315_v0 }
  0x6f   : > { %322 = vst [vmem:[#allocation2 + $0x20] sm:$0xff] %v9315_v0 }
  0x70   : > { %323 = vst [vmem:[#allocation2 + $0x98] sm:$0xff] %v9315_v0 }
  0x71 PF: > { %v371_v1 = vld [vmem:[%s9532_s8 + $0x78] sm:$0xff]  ;;  %v370_v2 = vld [vmem:[%s9532_s8 + $0x70] sm:$0xff]  ;;  %v369_v3 = vld [vmem:[%s9532_s8 + $0x68] sm:$0xff]  ;;  %p8834_p7 = scmp.ne.s32.totalorder %s9292_s18, 1 }
  0x72   : > { %v9546_v4 = vand.u32 4294901760, %v371_v1  ;;  %v9548_v5 = vand.u32 4294901760, %v370_v2  ;;  %v9550_v6 = vand.u32 4294901760, %v369_v3  ;;  %v368_v7 = vld [vmem:[%s9532_s8 + $0x60] sm:$0xff]  ;;  %v367_v12 = vld [vmem:[%s9532_s8 + $0x58] sm:$0xff]  ;;  %v366_v20 = vld [vmem:[%s9532_s8 + $0x50] sm:$0xff] }
  0x73   : > { %v9564_v11 = vand.u32 4294901760, %v368_v7  ;;  %v9570_v15 = vand.u32 4294901760, %v367_v12  ;;  %v9586_v22 = vand.u32 4294901760, %v366_v20  ;;  %v365_v27 = vld [vmem:[%s9532_s8 + $0x48] sm:$0xff]  ;;  %v364_v33 = vld [vmem:[%s9532_s8 + $0x40] sm:$0xff]  ;;  %v363_v39 = vld [vmem:[%s9532_s8 + $0x38] sm:$0xff] }
  0x74   : > { %389 = vmatpush.xpose.msra.mxu0 %v9546_v4  ;;  %1112 = vmatpush.xpose.msra.mxu3 %v9546_v4  ;;  %v9556_v8 = vsub.f32 %v371_v1, %v9546_v4  ;;  %v9559_v9 = vsub.f32 %v370_v2, %v9548_v5  ;;  %v9562_v10 = vsub.f32 %v369_v3, %v9550_v6  ;;  %v9599_v28 = vand.u32 4294901760, %v365_v27  ;;  %v362_v45 = vld [vmem:[%s9532_s8 + $0x30] sm:$0xff]  ;;  %v361_v51 = vld [vmem:[%s9532_s8 + $0x28] sm:$0xff]  ;;  %v360_v57 = vld [vmem:[%s9532_s8 + $0x20] sm:$0xff] }
  0x75   : > { %v9581_v18 = vsub.f32 %v368_v7, %v9564_v11  ;;  %v9593_v25 = vsub.f32 %v367_v12, %v9570_v15  ;;  %v9606_v31 = vsub.f32 %v366_v20, %v9586_v22  ;;  %v9612_v34 = vand.u32 4294901760, %v364_v33  ;;  %v359_v63 = vld [vmem:[%s9532_s8 + $0x18] sm:$0xff]  ;;  %v358_v12 = vld [vmem:[%s9532_s8 + $0x10] sm:$0xff] }
  0x76   : > { %904 = vmatpush.xpose.msra.mxu2 %v9556_v8  ;;  %v679_v13 = vand.u32 4294901760, %v9556_v8  ;;  %v685_v14 = vand.u32 4294901760, %v9559_v9  ;;  %v691_v19 = vand.u32 4294901760, %v9562_v10  ;;  %v9619_v37 = vsub.f32 %v365_v27, %v9599_v28  ;;  %v324_v27 = vld [vmem:[%s9524_s1] sm:$0xff] }
  0x77   : > { %v697_v26 = vand.u32 4294901760, %v9581_v18  ;;  %v703_v32 = vand.u32 4294901760, %v9593_v25  ;;  %v709_v38 = vand.u32 4294901760, %v9606_v31  ;;  %v9625_v40 = vand.u32 4294901760, %v363_v39 }
  0x78   : > { %391 = vmatpush.xpose.msra.mxu0 %v9548_v5  ;;  %1114 = vmatpush.xpose.msra.mxu3 %v9548_v5  ;;  %v680_v16 = vsub.f32 %v9556_v8, %v679_v13  ;;  %v686_v17 = vsub.f32 %v9559_v9, %v685_v14  ;;  %v692_v24 = vsub.f32 %v9562_v10, %v691_v19  ;;  %v715_v44 = vand.u32 4294901760, %v9619_v37  ;;  %v327_v8 = vld [vmem:[%s9524_s1 + $0x18] sm:$0xff] }
  0x79   : > { %v698_v30 = vsub.f32 %v9581_v18, %v697_v26  ;;  %v704_v36 = vsub.f32 %v9593_v25, %v703_v32  ;;  %v710_v42 = vsub.f32 %v9606_v31, %v709_v38  ;;  %v9632_v43 = vsub.f32 %v364_v33, %v9612_v34 }
  0x7a   : > { %907 = vmatpush.xpose.msra.mxu2 %v9559_v9  ;;  %v681_v21 = vand.u32 4294901760, %v680_v16  ;;  %v687_v23 = vand.u32 4294901760, %v686_v17  ;;  %v693_v29 = vand.u32 4294901760, %v692_v24  ;;  %v9639_v46 = vsub.f32 %v363_v39, %v9625_v40  ;;  %v387_v17 = vld [vmem:[%s9532_s8 + $0xf8] sm:$0xff] }
  0x7b   : > { %v699_v35 = vand.u32 4294901760, %v698_v30  ;;  %v705_v41 = vand.u32 4294901760, %v704_v36  ;;  %v711_v47 = vand.u32 4294901760, %v710_v42  ;;  %v716_v48 = vsub.f32 %v9619_v37, %v715_v44 }
  0x7c   : > { %393 = vmatpush.xpose.msra.mxu0 %v9550_v6  ;;  %682 = vmatpush.xpose.msra.mxu1 %v681_v21  ;;  %v9645_v49 = vand.u32 4294901760, %v362_v45  ;;  %v721_v50 = vand.u32 4294901760, %v9632_v43  ;;  %v727_v52 = vand.u32 4294901760, %v9639_v46  ;;  %v9659_v56 = vand.u32 4294901760, %v361_v51 }
  0x7d   : > { %1116 = vmatpush.xpose.msra.mxu3 %v9550_v6  ;;  %v717_v53 = vand.u32 4294901760, %v716_v48  ;;  %v9671_v61 = vand.u32 4294901760, %v360_v57  ;;  %v9677_v0 = vand.u32 4294901760, %v359_v63  ;;  %v9705_v30 = vand.u32 4294901760, %v387_v17 }
  0x7e   : > { %910 = vmatpush.xpose.msra.mxu2 %v9562_v10  ;;  %v722_v54 = vsub.f32 %v9632_v43, %v721_v50  ;;  %v9657_v55 = vsub.f32 %v362_v45, %v9645_v49  ;;  %v728_v58 = vsub.f32 %v9639_v46, %v727_v52  ;;  %v9669_v60 = vsub.f32 %v361_v51, %v9659_v56  ;;  %v356_v45 = vld [vmem:[%s9532_s8] sm:$0xff] }
  0x7f   : > { %v9684_v3 = vsub.f32 %v360_v57, %v9671_v61  ;;  %v9691_v16 = vsub.f32 %v359_v63, %v9677_v0  ;;  %v9735_v57 = vand.u32 4294901760, %v356_v45  ;;  %v386_v63 = vld [vmem:[%s9532_s8 + $0xf0] sm:$0xff] }
  0x80   : > { %395 = vmatpush.xpose.msra.mxu0 %v9564_v11  ;;  %688 = vmatpush.xpose.msra.mxu1 %v687_v23  ;;  %v723_v59 = vand.u32 4294901760, %v722_v54  ;;  %v733_v62 = vand.u32 4294901760, %v9657_v55  ;;  %v729_v1 = vand.u32 4294901760, %v728_v58  ;;  %v16721_v7 = vand.u32 4294901760, %v9669_v60 }
  0x81   : > { %1118 = vmatpush.xpose.msra.mxu3 %v9564_v11  ;;  %v9698_v23 = vand.u32 4294901760, %v358_v12  ;;  %v16719_v24 = vand.u32 4294901760, %v9684_v3  ;;  %v16718_v33 = vand.u32 4294901760, %v9691_v16 }
  0x82   : > { %913 = vmatpush.xpose.msra.mxu2 %v9581_v18  ;;  %v734_v2 = vsub.f32 %v9657_v55, %v733_v62  ;;  %v740_v21 = vsub.f32 %v9669_v60, %v16721_v7 }
  0x83   : > { %v746_v39 = vsub.f32 %v9684_v3, %v16719_v24  ;;  %v752_v48 = vsub.f32 %v9691_v16, %v16718_v33  ;;  %v326_v24 = vld [vmem:[%s9524_s1 + $0x10] sm:$0xff] }
  0x84   : > { %397 = vmatpush.xpose.msra.mxu0 %v9570_v15  ;;  %694 = vmatpush.xpose.msra.mxu1 %v693_v29  ;;  %v735_v20 = vand.u32 4294901760, %v734_v2  ;;  %v357_v29 = vld [vmem:[%s9532_s8 + $0x8] sm:$0xff]  ;;  %v741_v36 = vand.u32 4294901760, %v740_v21  ;;  %v9743_v2 = vand.u32 4294901760, %v386_v63 }
  0x85   : > { %1120 = vmatpush.xpose.msra.mxu3 %v9570_v15  ;;  %v9717_v42 = vand.u32 4294901760, %v357_v29 }
  0x86   : > { %916 = vmatpush.xpose.msra.mxu2 %v9593_v25 }
  0x87   : > { %v9733_v54 = vsub.f32 %v357_v29, %v9717_v42 }
  0x88   : > { %399 = vmatpush.xpose.msra.mxu0 %v9586_v22  ;;  %700 = vmatpush.xpose.msra.mxu1 %v699_v35  ;;  %v9708_v35 = vand.u32 4294901760, %v324_v27 }
  0x89   : > { %1122 = vmatpush.xpose.msra.mxu3 %v9586_v22  ;;  %v16722_v29 = vand.u32 4294901760, %v9733_v54 }
  0x8a   : > { %919 = vmatpush.xpose.msra.mxu2 %v9606_v31  ;;  %v9729_v51 = vsub.f32 %v324_v27, %v9708_v35  ;;  %v9755_v27 = vsub.f32 %v356_v45, %v9735_v57 }
  0x8c   : > { %401 = vmatpush.xpose.msra.mxu0 %v9599_v28  ;;  %706 = vmatpush.xpose.msra.mxu1 %v705_v41  ;;  %v9715_v41 = vsub.f32 %v358_v12, %v9698_v23  ;;  %17250 = vst [vmem:[#allocation24_spill] sm:$0xff] %v9729_v51  ;;  %v753_v12 = vand.u32 4294901760, %v752_v48  ;;  %v769_v33 = vand.u32 4294901760, %v9755_v27 }
  0x8d   : > { %1124 = vmatpush.xpose.msra.mxu3 %v9599_v28 }
  0x8e   : > { %922 = vmatpush.xpose.msra.mxu2 %v9619_v37  ;;  %v16717_v58 = vand.u32 4294901760, %v9715_v41 }
  0x90   : > { %403 = vmatpush.xpose.msra.mxu0 %v9612_v34  ;;  %712 = vmatpush.xpose.msra.mxu1 %v711_v47  ;;  %v9723_v47 = vsub.f32 %v387_v17, %v9705_v30  ;;  %v9746_v17 = vand.u32 4294901760, %v9729_v51  ;;  %v758_v21 = vsub.f32 %v9715_v41, %v16717_v58  ;;  %v764_v58 = vsub.f32 %v9733_v54, %v16722_v29 }
  0x91   : > { %1126 = vmatpush.xpose.msra.mxu3 %v9612_v34 }
  0x92   : > { %925 = vmatpush.xpose.msra.mxu2 %v9632_v43  ;;  %17251 = vst [vmem:[#allocation25_spill] sm:$0xff] %v9746_v17  ;;  %v765_v29 = vand.u32 4294901760, %v764_v58 }
  0x94   : > { %405 = vmatpush.xpose.msra.mxu0 %v9625_v40  ;;  %718 = vmatpush.xpose.msra.mxu1 %v717_v53  ;;  %v747_v53 = vand.u32 4294901760, %v746_v39 }
  0x95   : > { %1128 = vmatpush.xpose.msra.mxu3 %v9625_v40 }
  0x96   : > { %928 = vmatpush.xpose.msra.mxu2 %v9639_v46 }
  0x98   : > { %407 = vmatpush.xpose.msra.mxu0 %v9645_v49  ;;  %724 = vmatpush.xpose.msra.mxu1 %v723_v59  ;;  %v325_v59 = vld [vmem:[%s9524_s1 + $0x8] sm:$0xff] }
  0x99   : > { %1130 = vmatpush.xpose.msra.mxu3 %v9645_v49 }
  0x9a   : > { %931 = vmatpush.xpose.msra.mxu2 %v9657_v55 }
  0x9c   : > { %409 = vmatpush.xpose.msra.mxu0 %v9659_v56  ;;  %730 = vmatpush.xpose.msra.mxu1 %v729_v1  ;;  %v16720_v1 = vand.u32 4294901760, %v9723_v47 }
  0x9d   : > { %1132 = vmatpush.xpose.msra.mxu3 %v9659_v56 }
  0x9e   : > { %934 = vmatpush.xpose.msra.mxu2 %v9669_v60  ;;  %v1982_v39 = vsub.f32 %v9723_v47, %v16720_v1 }
  0xa0   : > { %411 = vmatpush.xpose.msra.mxu0 %v9671_v61  ;;  %736 = vmatpush.xpose.msra.mxu1 %v735_v20  ;;  %v9748_v20 = vand.u32 4294901760, %v325_v59  ;;  %v1983_v1 = vand.u32 4294901760, %v1982_v39  ;;  %v770_v39 = vsub.f32 %v9755_v27, %v769_v33 }
  0xa1   : > { %1134 = vmatpush.xpose.msra.mxu3 %v9671_v61 }
  0xa2   : > { %937 = vmatpush.xpose.msra.mxu2 %v9684_v3  ;;  %v9770_v45 = vsub.f32 %v325_v59, %v9748_v20 }
  0xa4   : > { %413 = vmatpush.xpose.msra.mxu0 %v9677_v0  ;;  %742 = vmatpush.xpose.msra.mxu1 %v741_v36  ;;  %v9759_v36 = vsub.f32 %v386_v63, %v9743_v2  ;;  %17252 = vst [vmem:[#allocation26_spill] sm:$0xff] %v9770_v45  ;;  %v759_v63 = vand.u32 4294901760, %v758_v21  ;;  %v9788_v21 = vand.u32 4294901760, %v326_v24 }
  0xa5   : > { %1136 = vmatpush.xpose.msra.mxu3 %v9677_v0 }
  0xa6   : > { %940 = vmatpush.xpose.msra.mxu2 %v9691_v16  ;;  %v16723_v48 = vand.u32 4294901760, %v9759_v36 }
  0xa8   : > { %415 = vmatpush.xpose.msra.mxu0 %v9698_v23  ;;  %748 = vmatpush.xpose.msra.mxu1 %v747_v53  ;;  %v423_v53 = vsub.f32 %v9729_v51, %v9746_v17  ;;  %v1988_v59 = vsub.f32 %v9759_v36, %v16723_v48  ;;  %v771_v48 = vand.u32 4294901760, %v770_v39 }
  0xa9   : > { %1138 = vmatpush.xpose.msra.mxu3 %v9698_v23 }
  0xaa   : > { %943 = vmatpush.xpose.msra.mxu2 %v9715_v41  ;;  %v9783_v7 = vand.u32 4294901760, %v423_v53  ;;  %v1989_v53 = vand.u32 4294901760, %v1988_v59 }
  0xac   : > { %417 = vmatpush.xpose.msra.mxu0 %v9717_v42  ;;  %754 = vmatpush.xpose.msra.mxu1 %v753_v12  ;;  %v9786_v12 = vand.u32 4294901760, %v9770_v45 }
  0xad   : > { %1140 = vmatpush.xpose.msra.mxu3 %v9717_v42 }
  0xae   : > { %946 = vmatpush.xpose.msra.mxu2 %v9733_v54  ;;  %17253 = vst [vmem:[#allocation27_spill] sm:$0xff] %v9786_v12  ;;  %v431_v58 = vsub.f32 %v9770_v45, %v9786_v12 }
  0xb0   : > { %419 = vmatpush.xpose.msra.mxu0 %v9735_v57  ;;  %760 = vmatpush.xpose.msra.mxu1 %v759_v63  ;;  %v9803_v63 = vsub.f32 %v326_v24, %v9788_v21  ;;  %v9813_v59 = vand.u32 4294901760, %v431_v58 }
  0xb1   : > { %1142 = vmatpush.xpose.msra.mxu3 %v9735_v57 }
  0xb2   : > { %949 = vmatpush.xpose.msra.mxu2 %v9755_v27  ;;  %17254 = vst [vmem:[#allocation28_spill] sm:$0xff] %v9803_v63  ;;  %v9816_v24 = vand.u32 4294901760, %v9803_v63  ;;  %v335_v27 = vld [vmem:[%s9524_s1 + $0x58] sm:$0xff] }
  0xb3   : > { %425 = vmatmul.f32.vlgmr.msra.gmra.mxu0 %v9783_v7 }
  0xb4   : > { %1339 = vmatpush.xpose.msrb.mxu0 %v679_v13  ;;  %1146 = vmatmul.f32.vlgmr.msra.gmra.mxu3 %v9746_v17  ;;  %v385_v13 = vld [vmem:[%s9532_s8 + $0xe8] sm:$0xff]  ;;  %17255 = vst [vmem:[#allocation29_spill] sm:$0xff] %v9816_v24 }
  0xb5   : > { %1984 = vmatpush.xpose.msrb.mxu3 %v1983_v1  ;;  %766 = vmatpush.xpose.msra.mxu1 %v765_v29  ;;  %v9811_v1 = vand.u32 4294901760, %v385_v13  ;;  %v9819_v29 = vand.u32 4294901760, %v327_v8 }
  0xb6   : > { %1691 = vmatpush.xpose.msrb.mxu2 %v9705_v30 }
  0xb7   : > { %952 = vmatmul.f32.vlgmr.msra.gmra.mxu2 %v9729_v51  ;;  %v9822_v39 = vsub.f32 %v385_v13, %v9811_v1  ;;  %v384_v13 = vld [vmem:[%s9532_s8 + $0xe0] sm:$0xff] }
  0xb8   : > { %1343 = vmatpush.xpose.msrb.mxu0 %v685_v14  ;;  %v439_v14 = vsub.f32 %v9803_v63, %v9816_v24 }
  0xb9   : > { %1990 = vmatpush.xpose.msrb.mxu3 %v1989_v53  ;;  %772 = vmatpush.xpose.msra.mxu1 %v771_v48  ;;  %v16727_v9 = vand.u32 4294901760, %v9822_v39  ;;  %v9833_v53 = vsub.f32 %v327_v8, %v9819_v29  ;;  %v328_v48 = vld [vmem:[%s9524_s1 + $0x20] sm:$0xff] }
  0xba   : > { %1693 = vmatpush.xpose.msrb.mxu2 %v9743_v2  ;;  %v9850_v8 = vand.u32 4294901760, %v328_v48 }
  0xbb   : > { %433 = vmatmul.f32.gmra.mxu0 %v9813_v59  ;;  %17256 = vst [vmem:[#allocation30_spill] sm:$0xff] %v9833_v53  ;;  %v9848_v58 = vand.u32 4294901760, %v9833_v53 }
  0xbc   : > { %1347 = vmatpush.xpose.msrb.mxu0 %v691_v19  ;;  %774 = vmatmul.f32.vlgmr.msra.gmra.mxu1 %v9708_v35  ;;  %v9845_v19 = vand.u32 4294901760, %v439_v14  ;;  %v9860_v18 = vsub.f32 %v328_v48, %v9850_v8 }
  0xbd   : > { %1530 = vmatpush.xpose.msrb.mxu1 %v9546_v4  ;;  %1152 = vmatmul.f32.gmra.mxu3 %v9786_v12  ;;  %v1994_v4 = vsub.f32 %v9822_v39, %v16727_v9  ;;  %17257 = vst [vmem:[#allocation31_spill] sm:$0xff] %v9848_v58 }
  0xbe   : > { %1695 = vmatpush.xpose.msrb.mxu2 %v9811_v1  ;;  %17258 = vst [vmem:[#allocation32_spill] sm:$0xff] %v9860_v18 }
  0xbf   : > { %957 = vmatmul.f32.gmra.mxu2 %v9770_v45  ;;  %v1995_v10 = vand.u32 4294901760, %v1994_v4  ;;  %v330_v4 = vld [vmem:[%s9524_s1 + $0x30] sm:$0xff] }
  0xc0   : > { %1351 = vmatpush.xpose.msrb.mxu0 %v697_v26  ;;  %v329_v26 = vld [vmem:[%s9524_s1 + $0x28] sm:$0xff]  ;;  %v378_v45 = vld [vmem:[%s9532_s8 + $0xb0] sm:$0xff] }
  0xc1   : > { %1532 = vmatpush.xpose.msrb.mxu1 %v9548_v5  ;;  %1996 = vmatpush.xpose.msrb.mxu3 %v1995_v10  ;;  %v447_v5 = vsub.f32 %v9833_v53, %v9848_v58  ;;  %v9876_v14 = vand.u32 4294901760, %v329_v26  ;;  %v10196_v51 = vand.u32 4294901760, %v378_v45 }
  0xc3   : > { %441 = vmatmul.f32.gmra.mxu0 %v9845_v19  ;;  %v9871_v25 = vand.u32 4294901760, %v447_v5  ;;  %17260 = vst [vmem:[#allocation34_spill] sm:$0xff] %v9876_v14  ;;  %v9907_v5 = vand.u32 4294901760, %v330_v4 }
  0xc4   : > { %1355 = vmatpush.xpose.msrb.mxu0 %v703_v32  ;;  %778 = vmatmul.f32.gmra.mxu1 %v9748_v20  ;;  %v9874_v32 = vand.u32 4294901760, %v9860_v18 }
  0xc5   : > { %1534 = vmatpush.xpose.msrb.mxu1 %v9550_v6  ;;  %1158 = vmatmul.f32.gmra.mxu3 %v9816_v24  ;;  %v9867_v6 = vand.u32 4294901760, %v384_v13  ;;  %17264 = vst [vmem:[#allocation38_spill] sm:$0xff] %v9907_v5  ;;  %v9917_v43 = vsub.f32 %v330_v4, %v9907_v5  ;;  %v17269_v4 = vand.u32 4294901760, %v9669_v60 }
  0xc6   : > { %17259 = vst [vmem:[#allocation33_spill] sm:$0xff] %v9874_v32  ;;  %v455_v31 = vsub.f32 %v9860_v18, %v9874_v32 }
  0xc7   : > { %962 = vmatmul.f32.gmra.mxu2 %v9803_v63  ;;  %v9880_v48 = vsub.f32 %v384_v13, %v9867_v6  ;;  %17265 = vst [vmem:[#allocation39_spill] sm:$0xff] %v9917_v43  ;;  %v341_v63 = vld [vmem:[%s9524_s1 + $0x88] sm:$0xff] }
  0xc8   : > { %1359 = vmatpush.xpose.msrb.mxu0 %v709_v38  ;;  %1697 = vmatpush.xpose.msrb.mxu2 %v9867_v6  ;;  %v9891_v38 = vsub.f32 %v329_v26, %v9876_v14  ;;  %v383_v26 = vld [vmem:[%s9532_s8 + $0xd8] sm:$0xff] }
  0xc9   : > { %1536 = vmatpush.xpose.msrb.mxu1 %v9564_v11  ;;  %v16726_v11 = vand.u32 4294901760, %v9880_v48 }
  0xca   : > { %17261 = vst [vmem:[#allocation35_spill] sm:$0xff] %v9891_v38  ;;  %v9905_v10 = vand.u32 4294901760, %v9891_v38 }
  0xcb   : > { %449 = vmatmul.f32.gmra.mxu0 %v9871_v25 }
  0xcc   : > { %1363 = vmatpush.xpose.msrb.mxu0 %v715_v44  ;;  %782 = vmatmul.f32.gmra.mxu1 %v9788_v21  ;;  %v9902_v44 = vand.u32 4294901760, %v455_v31  ;;  %17263 = vst [vmem:[#allocation37_spill] sm:$0xff] %v9905_v10 }
  0xcd   : > { %1538 = vmatpush.xpose.msrb.mxu1 %v9570_v15  ;;  %1164 = vmatmul.f32.gmra.mxu3 %v9848_v58  ;;  %v2000_v15 = vsub.f32 %v9880_v48, %v16726_v11  ;;  %v379_v58 = vld [vmem:[%s9532_s8 + $0xb8] sm:$0xff] }
  0xce   : > { %17262 = vst [vmem:[#allocation36_spill] sm:$0xff] %v9902_v44 }
  0xcf   : > { %967 = vmatmul.f32.gmra.mxu2 %v9833_v53  ;;  %v2001_v37 = vand.u32 4294901760, %v2000_v15  ;;  %v332_v15 = vld [vmem:[%s9524_s1 + $0x40] sm:$0xff] }
  0xd0   : > { %1367 = vmatpush.xpose.msrb.mxu0 %v721_v50  ;;  %v331_v50 = vld [vmem:[%s9524_s1 + $0x38] sm:$0xff] }
  0xd1   : > { %1540 = vmatpush.xpose.msrb.mxu1 %v9586_v22  ;;  %2002 = vmatpush.xpose.msrb.mxu3 %v2001_v37  ;;  %v463_v22 = vsub.f32 %v9891_v38, %v9905_v10  ;;  %v9933_v13 = vand.u32 4294901760, %v331_v50  ;;  %v17271_v37 = vand.u32 4294901760, %v9684_v3 }
  0xd3   : > { %457 = vmatmul.f32.gmra.mxu0 %v9902_v44  ;;  %v9928_v46 = vand.u32 4294901760, %v463_v22  ;;  %17268 = vst [vmem:[#allocation42_spill] sm:$0xff] %v9933_v13 }
  0xd4   : > { %1371 = vmatpush.xpose.msrb.mxu0 %v727_v52  ;;  %786 = vmatmul.f32.gmra.mxu1 %v9819_v29  ;;  %v9931_v52 = vand.u32 4294901760, %v9917_v43 }
  0xd5   : > { %1542 = vmatpush.xpose.msrb.mxu1 %v9599_v28  ;;  %1170 = vmatmul.f32.gmra.mxu3 %v9874_v32  ;;  %v9924_v28 = vand.u32 4294901760, %v383_v26  ;;  %17266 = vst [vmem:[#allocation40_spill] sm:$0xff] %v9928_v46 }
  0xd6   : > { %17267 = vst [vmem:[#allocation41_spill] sm:$0xff] %v9931_v52  ;;  %v471_v55 = vsub.f32 %v9917_v43, %v9931_v52 }
  0xd7   : > { %972 = vmatmul.f32.gmra.mxu2 %v9860_v18  ;;  %v9937_v31 = vsub.f32 %v383_v26, %v9924_v28  ;;  %v9964_v26 = vand.u32 4294901760, %v332_v15  ;;  %v10149_v18 = vand.u32 4294901760, %v379_v58 }
  0xd8   : > { %1375 = vmatpush.xpose.msrb.mxu0 %v733_v62  ;;  %1699 = vmatpush.xpose.msrb.mxu2 %v9924_v28  ;;  %v9948_v62 = vsub.f32 %v331_v50, %v9933_v13  ;;  %v9959_v22 = vand.u32 4294901760, %v471_v55  ;;  %v333_v55 = vld [vmem:[%s9524_s1 + $0x48] sm:$0xff] }
  0xd9   : > { %1544 = vmatpush.xpose.msrb.mxu1 %v9612_v34  ;;  %v16724_v34 = vand.u32 4294901760, %v9937_v31  ;;  %17274 = vst [vmem:[#allocation46_spill] sm:$0xff] %v9964_v26  ;;  %v9974_v3 = vsub.f32 %v332_v15, %v9964_v26  ;;  %v9990_v15 = vand.u32 4294901760, %v333_v55 }
  0xda   : > { %17270 = vst [vmem:[#allocation43_spill] sm:$0xff] %v9948_v62  ;;  %v9962_v50 = vand.u32 4294901760, %v9948_v62 }
  0xdb   : > { %465 = vmatmul.f32.gmra.mxu0 %v9928_v46  ;;  %17272 = vst [vmem:[#allocation44_spill] sm:$0xff] %v9959_v22 }
  0xdc   : > { %1379 = vmatpush.xpose.msrb.mxu0 %v17269_v4  ;;  %790 = vmatmul.f32.gmra.mxu1 %v9850_v8  ;;  %17273 = vst [vmem:[#allocation45_spill] sm:$0xff] %v9962_v50  ;;  %v17275_v4 = vand.u32 4294901760, %v9691_v16  ;;  %v17277_v16 = vand.u32 4294901760, %v9715_v41 }
  0xdd   : > { %1546 = vmatpush.xpose.msrb.mxu1 %v9625_v40  ;;  %1176 = vmatmul.f32.gmra.mxu3 %v9905_v10  ;;  %v2006_v40 = vsub.f32 %v9937_v31, %v16724_v34  ;;  %17276 = vst [vmem:[#allocation47_spill] sm:$0xff] %v9974_v3  ;;  %v17281_v34 = vand.u32 4294901760, %v9733_v54 }
  0xde   : > { %17280 = vst [vmem:[#allocation50_spill] sm:$0xff] %v9990_v15 }
  0xdf   : > { %977 = vmatmul.f32.gmra.mxu2 %v9891_v38  ;;  %v2007_v60 = vand.u32 4294901760, %v2006_v40  ;;  %v382_v40 = vld [vmem:[%s9532_s8 + $0xd0] sm:$0xff] }
  0xe0   : > { %1383 = vmatpush.xpose.msrb.mxu0 %v17271_v37  ;;  %v9988_v37 = vand.u32 4294901760, %v9974_v3 }
  0xe1   : > { %1548 = vmatpush.xpose.msrb.mxu1 %v9645_v49  ;;  %2008 = vmatpush.xpose.msrb.mxu3 %v2007_v60  ;;  %v479_v49 = vsub.f32 %v9948_v62, %v9962_v50 }
  0xe2   : > { %17279 = vst [vmem:[#allocation49_spill] sm:$0xff] %v9988_v37  ;;  %v487_v41 = vsub.f32 %v9974_v3, %v9988_v37 }
  0xe3   : > { %473 = vmatmul.f32.gmra.mxu0 %v9959_v22  ;;  %v9985_v60 = vand.u32 4294901760, %v479_v49  ;;  %v10005_v49 = vsub.f32 %v333_v55, %v9990_v15 }
  0xe4   : > { %1387 = vmatpush.xpose.msrb.mxu0 %v17275_v4  ;;  %794 = vmatmul.f32.gmra.mxu1 %v9876_v14 }
  0xe5   : > { %1550 = vmatpush.xpose.msrb.mxu1 %v9659_v56  ;;  %1182 = vmatmul.f32.gmra.mxu3 %v9931_v52  ;;  %v9981_v56 = vand.u32 4294901760, %v382_v40  ;;  %17278 = vst [vmem:[#allocation48_spill] sm:$0xff] %v9985_v60  ;;  %v10019_v55 = vand.u32 4294901760, %v10005_v49 }
  0xe6   : > { %17282 = vst [vmem:[#allocation51_spill] sm:$0xff] %v10005_v49 }
  0xe7   : > { %982 = vmatmul.f32.gmra.mxu2 %v9917_v43  ;;  %v9994_v4 = vsub.f32 %v382_v40, %v9981_v56  ;;  %v334_v40 = vld [vmem:[%s9524_s1 + $0x50] sm:$0xff]  ;;  %17284 = vst [vmem:[#allocation53_spill] sm:$0xff] %v10019_v55 }
  0xe8   : > { %1391 = vmatpush.xpose.msrb.mxu0 %v17277_v16  ;;  %1701 = vmatpush.xpose.msrb.mxu2 %v9981_v56  ;;  %v10021_v16 = vand.u32 4294901760, %v334_v40 }
  0xe9   : > { %1552 = vmatpush.xpose.msrb.mxu1 %v9671_v61  ;;  %v16725_v61 = vand.u32 4294901760, %v9994_v4 }
  0xea   : > { %17285 = vst [vmem:[#allocation54_spill] sm:$0xff] %v10021_v16 }
  0xeb   : > { %481 = vmatmul.f32.gmra.mxu0 %v9985_v60 }
  0xec   : > { %1395 = vmatpush.xpose.msrb.mxu0 %v17281_v34  ;;  %798 = vmatmul.f32.gmra.mxu1 %v9907_v5  ;;  %v10016_v34 = vand.u32 4294901760, %v487_v41  ;;  %v381_v41 = vld [vmem:[%s9532_s8 + $0xc8] sm:$0xff] }
  0xed   : > { %1554 = vmatpush.xpose.msrb.mxu1 %v9677_v0  ;;  %1188 = vmatmul.f32.gmra.mxu3 %v9962_v50  ;;  %v2012_v0 = vsub.f32 %v9994_v4, %v16725_v61 }
  0xee   : > { %17283 = vst [vmem:[#allocation52_spill] sm:$0xff] %v10016_v34 }
  0xef   : > { %987 = vmatmul.f32.gmra.mxu2 %v9948_v62  ;;  %v2013_v54 = vand.u32 4294901760, %v2012_v0 }
  0xf0   : > { %1399 = vmatpush.xpose.msrb.mxu0 %v769_v33  ;;  %v10030_v33 = vsub.f32 %v334_v40, %v10021_v16 }
  0xf1   : > { %1556 = vmatpush.xpose.msrb.mxu1 %v9698_v23  ;;  %2014 = vmatpush.xpose.msrb.mxu3 %v2013_v54  ;;  %v495_v23 = vsub.f32 %v10005_v49, %v10019_v55  ;;  %v10046_v54 = vand.u32 4294901760, %v335_v27 }
  0xf2   : > { %17286 = vst [vmem:[#allocation55_spill] sm:$0xff] %v10030_v33  ;;  %v10044_v40 = vand.u32 4294901760, %v10030_v33 }
  0xf3   : > { %489 = vmatmul.f32.gmra.mxu0 %v10016_v34  ;;  %v10041_v0 = vand.u32 4294901760, %v495_v23  ;;  %17289 = vst [vmem:[#allocation58_spill] sm:$0xff] %v10046_v54  ;;  %v10060_v11 = vsub.f32 %v335_v27, %v10046_v54 }
  0xf4   : > { %2206 = vmatpush.xpose.msra.mxu0 %v9723_v47  ;;  %802 = vmatmul.f32.gmra.mxu1 %v9933_v13  ;;  %17288 = vst [vmem:[#allocation57_spill] sm:$0xff] %v10044_v40  ;;  %v503_v23 = vsub.f32 %v10030_v33, %v10044_v40 }
  0xf5   : > { %1558 = vmatpush.xpose.msrb.mxu1 %v9717_v42  ;;  %1194 = vmatmul.f32.gmra.mxu3 %v9988_v37  ;;  %v10038_v42 = vand.u32 4294901760, %v381_v41  ;;  %17287 = vst [vmem:[#allocation56_spill] sm:$0xff] %v10041_v0  ;;  %v10073_v27 = vand.u32 4294901760, %v10060_v11 }
  0xf6   : > { %17290 = vst [vmem:[#allocation59_spill] sm:$0xff] %v10060_v11  ;;  %v10070_v50 = vand.u32 4294901760, %v503_v23 }
  0xf7   : > { %992 = vmatmul.f32.gmra.mxu2 %v9974_v3  ;;  %v10050_v61 = vsub.f32 %v381_v41, %v10038_v42  ;;  %v336_v41 = vld [vmem:[%s9524_s1 + $0x60] sm:$0xff]  ;;  %17292 = vst [vmem:[#allocation61_spill] sm:$0xff] %v10073_v27 }
  0xf8   : > { %2209 = vmatpush.xpose.msra.mxu0 %v9759_v36  ;;  %1703 = vmatpush.xpose.msrb.mxu2 %v10038_v42  ;;  %17291 = vst [vmem:[#allocation60_spill] sm:$0xff] %v10070_v50 }
  0xf9   : > { %1560 = vmatpush.xpose.msrb.mxu1 %v9735_v57  ;;  %v16731_v57 = vand.u32 4294901760, %v10050_v61 }
  0xfb   : > { %497 = vmatmul.f32.gmra.mxu0 %v10041_v0  ;;  %v2018_v9 = vsub.f32 %v10050_v61, %v16731_v57  ;;  %v337_v57 = vld [vmem:[%s9524_s1 + $0x68] sm:$0xff] }
  0xfc   : > { %2212 = vmatpush.xpose.msra.mxu0 %v9822_v39  ;;  %806 = vmatmul.f32.gmra.mxu1 %v9964_v26 }
  0xfd   : > { %2414 = vmatpush.xpose.msra.mxu1 %v9705_v30  ;;  %1200 = vmatmul.f32.gmra.mxu3 %v10019_v55  ;;  %v2019_v37 = vand.u32 4294901760, %v2018_v9  ;;  %v10075_v55 = vand.u32 4294901760, %v336_v41  ;;  %v511_v9 = vsub.f32 %v10060_v11, %v10073_v27 }
  0xff   : > { %997 = vmatmul.f32.gmra.mxu2 %v10005_v49  ;;  %17293 = vst [vmem:[#allocation62_spill] sm:$0xff] %v10075_v55  ;;  %2020 = vmatpush.xpose.msrb.mxu3 %v2019_v37  ;;  %v10084_v23 = vsub.f32 %v336_v41, %v10075_v55  ;;  %v380_v37 = vld [vmem:[%s9532_s8 + $0xc0] sm:$0xff]  ;;  %v10094_v3 = vand.u32 4294901760, %v511_v9  ;;  %v10099_v41 = vand.u32 4294901760, %v337_v57 }
 0x100   : > { %2215 = vmatpush.xpose.msra.mxu0 %v9880_v48  ;;  %v10091_v49 = vand.u32 4294901760, %v380_v37 }
 0x101   : > { %2416 = vmatpush.xpose.msra.mxu1 %v9743_v2  ;;  %17294 = vst [vmem:[#allocation63_spill] sm:$0xff] %v10084_v23  ;;  %v10097_v52 = vand.u32 4294901760, %v10084_v23  ;;  %v10113_v62 = vsub.f32 %v337_v57, %v10099_v41 }
 0x102   : > { %17295 = vst [vmem:[#allocation64_spill] sm:$0xff] %v10094_v3  ;;  %1705 = vmatpush.xpose.msrb.mxu2 %v10091_v49 }
 0x103   : > { %505 = vmatmul.f32.gmra.mxu0 %v10070_v50  ;;  %17296 = vst [vmem:[#allocation65_spill] sm:$0xff] %v10097_v52  ;;  %v519_v9 = vsub.f32 %v10084_v23, %v10097_v52  ;;  %v10126_v57 = vand.u32 4294901760, %v10113_v62 }
 0x104   : > { %2218 = vmatpush.xpose.msra.mxu0 %v9937_v31  ;;  %810 = vmatmul.f32.gmra.mxu1 %v9990_v15  ;;  %17297 = vst [vmem:[#allocation66_spill] sm:$0xff] %v10099_v41 }
 0x105   : > { %2418 = vmatpush.xpose.msra.mxu1 %v9811_v1  ;;  %1206 = vmatmul.f32.gmra.mxu3 %v10044_v40  ;;  %v10103_v40 = vsub.f32 %v380_v37, %v10091_v49  ;;  %17298 = vst [vmem:[#allocation67_spill] sm:$0xff] %v10113_v62  ;;  %v338_v37 = vld [vmem:[%s9524_s1 + $0x70] sm:$0xff]  ;;  %v10123_v32 = vand.u32 4294901760, %v519_v9  ;;  %v339_v9 = vld [vmem:[%s9524_s1 + $0x78] sm:$0xff] }
 0x106   : > { %17300 = vst [vmem:[#allocation69_spill] sm:$0xff] %v10126_v57  ;;  %v10146_v38 = vand.u32 4294901760, %v339_v9  ;;  %1707 = vmatpush.xpose.msrb.mxu2 %v10149_v18 }
 0x107   : > { %1002 = vmatmul.f32.gmra.mxu2 %v10030_v33  ;;  %v16742_v33 = vand.u32 4294901760, %v10103_v40  ;;  %17299 = vst [vmem:[#allocation68_spill] sm:$0xff] %v10123_v32 }
 0x108   : > { %2221 = vmatpush.xpose.msra.mxu0 %v9994_v4  ;;  %17305 = vst [vmem:[#allocation74_spill] sm:$0xff] %v10146_v38 }
 0x109   : > { %2420 = vmatpush.xpose.msra.mxu1 %v9867_v6  ;;  %v2024_v10 = vsub.f32 %v10103_v40, %v16742_v33 }
 0x10a   : > { %1709 = vmatpush.xpose.msrb.mxu2 %v10196_v51 }
 0x10b   : > { %513 = vmatmul.f32.gmra.mxu0 %v10094_v3  ;;  %v2025_v43 = vand.u32 4294901760, %v2024_v10  ;;  %v527_v10 = vsub.f32 %v10113_v62, %v10126_v57 }
 0x10c   : > { %2224 = vmatpush.xpose.msra.mxu0 %v10050_v61  ;;  %814 = vmatmul.f32.gmra.mxu1 %v10021_v16 }
 0x10d   : > { %2422 = vmatpush.xpose.msra.mxu1 %v9924_v28  ;;  %1212 = vmatmul.f32.gmra.mxu3 %v10073_v27  ;;  %v10128_v27 = vand.u32 4294901760, %v338_v37 }
 0x10e   : > { %2026 = vmatpush.xpose.msrb.mxu3 %v2025_v43 }
 0x10f   : > { %1007 = vmatmul.f32.gmra.mxu2 %v10060_v11  ;;  %17301 = vst [vmem:[#allocation70_spill] sm:$0xff] %v10128_v27  ;;  %v10136_v33 = vsub.f32 %v338_v37, %v10128_v27  ;;  %v10141_v11 = vand.u32 4294901760, %v527_v10  ;;  %v10158_v10 = vsub.f32 %v339_v9, %v10146_v38 }
 0x110   : > { %2227 = vmatpush.xpose.msra.mxu0 %v10103_v40 }
 0x111   : > { %2424 = vmatpush.xpose.msra.mxu1 %v9981_v56  ;;  %17302 = vst [vmem:[#allocation71_spill] sm:$0xff] %v10136_v33  ;;  %v10144_v43 = vand.u32 4294901760, %v10136_v33  ;;  %v10171_v12 = vand.u32 4294901760, %v10158_v10 }
 0x112   : > { %17303 = vst [vmem:[#allocation72_spill] sm:$0xff] %v10141_v11 }
 0x113   : > { %521 = vmatmul.f32.gmra.mxu0 %v10123_v32  ;;  %17304 = vst [vmem:[#allocation73_spill] sm:$0xff] %v10144_v43  ;;  %v535_v37 = vsub.f32 %v10136_v33, %v10144_v43 }
 0x114   : > { %818 = vmatmul.f32.gmra.mxu1 %v10046_v54  ;;  %17306 = vst [vmem:[#allocation75_spill] sm:$0xff] %v10158_v10  ;;  %v344_v54 = vld [vmem:[%s9524_s1 + $0xa0] sm:$0xff] }
 0x115   : > { %2426 = vmatpush.xpose.msra.mxu1 %v10038_v42  ;;  %1218 = vmatmul.f32.gmra.mxu3 %v10097_v52  ;;  %v10161_v52 = vsub.f32 %v379_v58, %v10149_v18  ;;  %v10168_v53 = vand.u32 4294901760, %v535_v37  ;;  %17308 = vst [vmem:[#allocation77_spill] sm:$0xff] %v10171_v12 }
 0x117   : > { %1012 = vmatmul.f32.gmra.mxu2 %v10084_v23  ;;  %v340_v23 = vld [vmem:[%s9524_s1 + $0x80] sm:$0xff]  ;;  %v16756_v24 = vand.u32 4294901760, %v10161_v52  ;;  %2230 = vmatpush.xpose.msra.mxu0 %v10161_v52  ;;  %17307 = vst [vmem:[#allocation76_spill] sm:$0xff] %v10168_v53 }
 0x118   : > { %v10173_v9 = vand.u32 4294901760, %v340_v23 }
 0x119   : > { %2428 = vmatpush.xpose.msra.mxu1 %v10091_v49  ;;  %v2030_v58 = vsub.f32 %v10161_v52, %v16756_v24  ;;  %v10193_v24 = vand.u32 4294901760, %v341_v63 }
 0x11a   : > { %17309 = vst [vmem:[#allocation78_spill] sm:$0xff] %v10173_v9  ;;  %v10183_v37 = vsub.f32 %v340_v23, %v10173_v9 }
 0x11b   : > { %529 = vmatmul.f32.gmra.mxu0 %v10141_v11  ;;  %17313 = vst [vmem:[#allocation82_spill] sm:$0xff] %v10193_v24  ;;  %v10205_v23 = vsub.f32 %v341_v63, %v10193_v24  ;;  %v343_v11 = vld [vmem:[%s9524_s1 + $0x98] sm:$0xff] }
 0x11c   : > { %822 = vmatmul.f32.gmra.mxu1 %v10075_v55  ;;  %17310 = vst [vmem:[#allocation79_spill] sm:$0xff] %v10183_v37 }
 0x11d   : > { %2430 = vmatpush.xpose.msra.mxu1 %v10149_v18  ;;  %1224 = vmatmul.f32.gmra.mxu3 %v10126_v57  ;;  %v2031_v57 = vand.u32 4294901760, %v2030_v58  ;;  %v10191_v58 = vand.u32 4294901760, %v10183_v37  ;;  %17314 = vst [vmem:[#allocation83_spill] sm:$0xff] %v10205_v23  ;;  %v10220_v63 = vand.u32 4294901760, %v10205_v23 }
 0x11f   : > { %1017 = vmatmul.f32.gmra.mxu2 %v10113_v62  ;;  %v543_v62 = vsub.f32 %v10158_v10, %v10171_v12  ;;  %2032 = vmatpush.xpose.msrb.mxu3 %v2031_v57  ;;  %17312 = vst [vmem:[#allocation81_spill] sm:$0xff] %v10191_v58  ;;  %v342_v57 = vld [vmem:[%s9524_s1 + $0x90] sm:$0xff] }
 0x120   : > { %17317 = vst [vmem:[#allocation86_spill] sm:$0xff] %v10220_v63 }
 0x121   : > { %v10188_v17 = vand.u32 4294901760, %v543_v62  ;;  %2432 = vmatpush.xpose.msra.mxu1 %v10196_v51  ;;  %v551_v62 = vsub.f32 %v10183_v37, %v10191_v58 }
 0x123   : > { %537 = vmatmul.f32.gmra.mxu0 %v10168_v53  ;;  %17311 = vst [vmem:[#allocation80_spill] sm:$0xff] %v10188_v17  ;;  %v10217_v53 = vand.u32 4294901760, %v551_v62  ;;  %v559_v62 = vsub.f32 %v10205_v23, %v10220_v63 }
 0x124   : > { %826 = vmatmul.f32.gmra.mxu1 %v10099_v41  ;;  %v10240_v41 = vand.u32 4294901760, %v343_v11 }
 0x125   : > { %1230 = vmatmul.f32.gmra.mxu3 %v10144_v43  ;;  %v10209_v43 = vsub.f32 %v378_v45, %v10196_v51  ;;  %17316 = vst [vmem:[#allocation85_spill] sm:$0xff] %v10217_v53 }
 0x126   : > { %17321 = vst [vmem:[#allocation90_spill] sm:$0xff] %v10240_v41 }
 0x127   : > { %1022 = vmatmul.f32.gmra.mxu2 %v10136_v33  ;;  %v16768_v33 = vand.u32 4294901760, %v10209_v43  ;;  %2233 = vmatpush.xpose.msra.mxu0 %v10209_v43 }
 0x129   : > { %v2036_v45 = vsub.f32 %v10209_v43, %v16768_v33 }
 0x12b   : > { %545 = vmatmul.f32.gmra.mxu0 %v10188_v17  ;;  %v10215_v17 = vand.u32 4294901760, %v342_v57 }
 0x12c   : > { %830 = vmatmul.f32.gmra.mxu1 %v10128_v27 }
 0x12d   : > { %1236 = vmatmul.f32.gmra.mxu3 %v10171_v12  ;;  %17315 = vst [vmem:[#allocation84_spill] sm:$0xff] %v10215_v17  ;;  %v2037_v12 = vand.u32 4294901760, %v2036_v45 }
 0x12f   : > { %1027 = vmatmul.f32.gmra.mxu2 %v10158_v10  ;;  %v10226_v10 = vsub.f32 %v342_v57, %v10215_v17  ;;  %2038 = vmatpush.xpose.msrb.mxu3 %v2037_v12  ;;  %v10238_v57 = vand.u32 4294901760, %v559_v62  ;;  %v10252_v62 = vsub.f32 %v343_v11, %v10240_v41 }
 0x130   : > { %v426_v27 = vpop.f32.mrf.mxu0 }
 0x131   : > { %17318 = vst [vmem:[#allocation87_spill] sm:$0xff] %v10226_v10  ;;  %v10236_v33 = vand.u32 4294901760, %v10226_v10 }
 0x132   : > { %17320 = vst [vmem:[#allocation89_spill] sm:$0xff] %v10238_v57 }
 0x133   : > { %553 = vmatmul.f32.gmra.mxu0 %v10217_v53  ;;  %17319 = vst [vmem:[#allocation88_spill] sm:$0xff] %v10236_v33  ;;  %v377_v53 = vld [vmem:[%s9532_s8 + $0xa8] sm:$0xff] }
 0x134   : > { %834 = vmatmul.f32.gmra.mxu1 %v10146_v38  ;;  %v10243_v55 = vand.u32 4294901760, %v377_v53  ;;  %17322 = vst [vmem:[#allocation91_spill] sm:$0xff] %v10252_v62 }
 0x135   : > { %1242 = vmatmul.f32.gmra.mxu3 %v10191_v58 }
 0x136   : > { %1711 = vmatpush.xpose.msrb.mxu2 %v10243_v55  ;;  %2434 = vmatpush.xpose.msra.mxu1 %v10243_v55  ;;  %v10256_v50 = vsub.f32 %v377_v53, %v10243_v55 }
 0x137   : > { %1032 = vmatmul.f32.gmra.mxu2 %v10183_v37  ;;  %v1147_v45 = vpop.f32.mrf.mxu3  ;;  %v567_v37 = vsub.f32 %v10226_v10, %v10236_v33 }
 0x138   : > { %v434_v38 = vpop.f32.mrf.mxu0  ;;  %2236 = vmatpush.xpose.msra.mxu0 %v10256_v50 }
 0x139   : > { %v775_v32 = vpop.f32.mrf.mxu1  ;;  %v10266_v11 = vand.u32 4294901760, %v567_v37 }
 0x13a   : > { %v776_v3 = vadd.f32 %v775_v32, %v426_v27  ;;  %v953_v58 = vpop.f32.mrf.mxu2  ;;  %v16790_v32 = vand.u32 4294901760, %v10256_v50 }
 0x13b   : > { %561 = vmatmul.f32.gmra.mxu0 %v10238_v57  ;;  %17325 = vst [vmem:[#allocation94_spill] sm:$0xff] %v10266_v11  ;;  %v10269_v57 = vand.u32 4294901760, %v10252_v62 }
 0x13c   : > { %v954_v12 = vadd.f32 %v953_v58, %v776_v3  ;;  %838 = vmatmul.f32.gmra.mxu1 %v10173_v9  ;;  %v10264_v3 = vand.u32 4294901760, %v344_v54  ;;  %v2042_v53 = vsub.f32 %v10256_v50, %v16790_v32  ;;  %v345_v32 = vld [vmem:[%s9524_s1 + $0xa8] sm:$0xff] }
 0x13d   : > { %1248 = vmatmul.f32.gmra.mxu3 %v10220_v63  ;;  %17326 = vst [vmem:[#allocation95_spill] sm:$0xff] %v10269_v57  ;;  %v575_v37 = vsub.f32 %v10252_v62, %v10269_v57 }
 0x13e   : > { %v10261_v27 = vadd.f32 %v1147_v45, %v954_v12  ;;  %17324 = vst [vmem:[#allocation93_spill] sm:$0xff] %v10264_v3  ;;  %v2043_v12 = vand.u32 4294901760, %v2042_v53  ;;  %v10291_v53 = vand.u32 4294901760, %v345_v32 }
 0x13f   : > { %1037 = vmatmul.f32.gmra.mxu2 %v10205_v23 }
 0x140   : > { %17323 = vst [vmem:[#allocation92_spill] sm:$0xff] %v10261_v27  ;;  %v1153_v58 = vpop.f32.mrf.mxu3  ;;  %v442_v63 = vpop.f32.mrf.mxu0  ;;  %v10275_v27 = vsub.f32 %v344_v54, %v10264_v3  ;;  %2044 = vmatpush.xpose.msrb.mxu3 %v2043_v12  ;;  %v10303_v12 = vsub.f32 %v345_v32, %v10291_v53 }
 0x141   : > { %v779_v23 = vpop.f32.mrf.mxu1  ;;  %17331 = vst [vmem:[#allocation100_spill] sm:$0xff] %v10291_v53 }
 0x142   : > { %v780_v9 = vadd.f32 %v779_v23, %v434_v38  ;;  %v958_v45 = vpop.f32.mrf.mxu2  ;;  %17327 = vst [vmem:[#allocation96_spill] sm:$0xff] %v10275_v27  ;;  %v10287_v23 = vand.u32 4294901760, %v10275_v27 }
 0x143   : > { %569 = vmatmul.f32.gmra.mxu0 %v10266_v11  ;;  %17332 = vst [vmem:[#allocation101_spill] sm:$0xff] %v10303_v12 }
 0x144   : > { %v959_v16 = vadd.f32 %v958_v45, %v780_v9  ;;  %842 = vmatmul.f32.gmra.mxu1 %v10193_v24  ;;  %17329 = vst [vmem:[#allocation98_spill] sm:$0xff] %v10287_v23  ;;  %v10289_v9 = vand.u32 4294901760, %v575_v37  ;;  %v376_v45 = vld [vmem:[%s9532_s8 + $0xa0] sm:$0xff]  ;;  %v346_v37 = vld [vmem:[%s9524_s1 + $0xb0] sm:$0xff] }
 0x145   : > { %1254 = vmatmul.f32.gmra.mxu3 %v10236_v33  ;;  %v10294_v0 = vand.u32 4294901760, %v376_v45 }
 0x146   : > { %v10284_v38 = vadd.f32 %v1153_v58, %v959_v16  ;;  %17330 = vst [vmem:[#allocation99_spill] sm:$0xff] %v10289_v9  ;;  %v583_v16 = vsub.f32 %v10275_v27, %v10287_v23 }
 0x147   : > { %1042 = vmatmul.f32.gmra.mxu2 %v10226_v10  ;;  %2436 = vmatpush.xpose.msra.mxu1 %v10294_v0  ;;  %v10320_v10 = vand.u32 4294901760, %v10303_v12 }
 0x148   : > { %17328 = vst [vmem:[#allocation97_spill] sm:$0xff] %v10284_v38  ;;  %v1159_v54 = vpop.f32.mrf.mxu3  ;;  %v450_v11 = vpop.f32.mrf.mxu0  ;;  %1713 = vmatpush.xpose.msrb.mxu2 %v10294_v0  ;;  %v10307_v38 = vsub.f32 %v376_v45, %v10294_v0  ;;  %v10317_v32 = vand.u32 4294901760, %v583_v16 }
 0x149   : > { %v783_v24 = vpop.f32.mrf.mxu1  ;;  %17336 = vst [vmem:[#allocation105_spill] sm:$0xff] %v10320_v10  ;;  %v591_v16 = vsub.f32 %v10303_v12, %v10320_v10 }
 0x14a   : > { %v784_v33 = vadd.f32 %v783_v24, %v442_v63  ;;  %v963_v15 = vpop.f32.mrf.mxu2  ;;  %v16804_v24 = vand.u32 4294901760, %v10307_v38  ;;  %2239 = vmatpush.xpose.msra.mxu0 %v10307_v38  ;;  %17335 = vst [vmem:[#allocation104_spill] sm:$0xff] %v10317_v32 }
 0x14b   : > { %577 = vmatmul.f32.gmra.mxu0 %v10289_v9 }
 0x14c   : > { %v964_v58 = vadd.f32 %v963_v15, %v784_v33  ;;  %846 = vmatmul.f32.gmra.mxu1 %v10215_v17  ;;  %v10315_v15 = vand.u32 4294901760, %v346_v37  ;;  %v2048_v45 = vsub.f32 %v10307_v38, %v16804_v24  ;;  %v347_v24 = vld [vmem:[%s9524_s1 + $0xb8] sm:$0xff] }
 0x14d   : > { %1260 = vmatmul.f32.gmra.mxu3 %v10269_v57 }
 0x14e   : > { %v10312_v63 = vadd.f32 %v1159_v54, %v964_v58  ;;  %17334 = vst [vmem:[#allocation103_spill] sm:$0xff] %v10315_v15  ;;  %v2049_v58 = vand.u32 4294901760, %v2048_v45  ;;  %v10342_v45 = vand.u32 4294901760, %v347_v24 }
 0x14f   : > { %1047 = vmatmul.f32.gmra.mxu2 %v10252_v62 }
 0x150   : > { %17333 = vst [vmem:[#allocation102_spill] sm:$0xff] %v10312_v63  ;;  %v1165_v33 = vpop.f32.mrf.mxu3  ;;  %v458_v57 = vpop.f32.mrf.mxu0  ;;  %v10326_v63 = vsub.f32 %v346_v37, %v10315_v15  ;;  %2050 = vmatpush.xpose.msrb.mxu3 %v2049_v58  ;;  %v10354_v58 = vsub.f32 %v347_v24, %v10342_v45 }
 0x151   : > { %v787_v62 = vpop.f32.mrf.mxu1  ;;  %17341 = vst [vmem:[#allocation110_spill] sm:$0xff] %v10342_v45 }
 0x152   : > { %v788_v9 = vadd.f32 %v787_v62, %v450_v11  ;;  %v968_v54 = vpop.f32.mrf.mxu2  ;;  %17337 = vst [vmem:[#allocation106_spill] sm:$0xff] %v10326_v63  ;;  %v10338_v11 = vand.u32 4294901760, %v10326_v63 }
 0x153   : > { %585 = vmatmul.f32.gmra.mxu0 %v10317_v32  ;;  %17342 = vst [vmem:[#allocation111_spill] sm:$0xff] %v10354_v58 }
 0x154   : > { %v969_v17 = vadd.f32 %v968_v54, %v788_v9  ;;  %850 = vmatmul.f32.gmra.mxu1 %v10240_v41  ;;  %17339 = vst [vmem:[#allocation108_spill] sm:$0xff] %v10338_v11  ;;  %v10340_v9 = vand.u32 4294901760, %v591_v16  ;;  %v375_v54 = vld [vmem:[%s9532_s8 + $0x98] sm:$0xff]  ;;  %v348_v16 = vld [vmem:[%s9524_s1 + $0xc0] sm:$0xff] }
 0x155   : > { %1266 = vmatmul.f32.gmra.mxu3 %v10287_v23  ;;  %v10345_v34 = vand.u32 4294901760, %v375_v54 }
 0x156   : > { %v10335_v62 = vadd.f32 %v1165_v33, %v969_v17  ;;  %17340 = vst [vmem:[#allocation109_spill] sm:$0xff] %v10340_v9  ;;  %v599_v17 = vsub.f32 %v10326_v63, %v10338_v11 }
 0x157   : > { %1052 = vmatmul.f32.gmra.mxu2 %v10275_v27  ;;  %2438 = vmatpush.xpose.msra.mxu1 %v10345_v34  ;;  %v10371_v27 = vand.u32 4294901760, %v10354_v58 }
 0x158   : > { %17338 = vst [vmem:[#allocation107_spill] sm:$0xff] %v10335_v62  ;;  %v1171_v37 = vpop.f32.mrf.mxu3  ;;  %v466_v32 = vpop.f32.mrf.mxu0  ;;  %1715 = vmatpush.xpose.msrb.mxu2 %v10345_v34  ;;  %v10358_v62 = vsub.f32 %v375_v54, %v10345_v34  ;;  %v10368_v24 = vand.u32 4294901760, %v599_v17 }
 0x159   : > { %v791_v41 = vpop.f32.mrf.mxu1  ;;  %17346 = vst [vmem:[#allocation115_spill] sm:$0xff] %v10371_v27  ;;  %v607_v17 = vsub.f32 %v10354_v58, %v10371_v27 }
 0x15a   : > { %v792_v23 = vadd.f32 %v791_v41, %v458_v57  ;;  %v973_v26 = vpop.f32.mrf.mxu2  ;;  %v16818_v41 = vand.u32 4294901760, %v10358_v62  ;;  %2242 = vmatpush.xpose.msra.mxu0 %v10358_v62  ;;  %17345 = vst [vmem:[#allocation114_spill] sm:$0xff] %v10368_v24 }
 0x15b   : > { %593 = vmatmul.f32.gmra.mxu0 %v10340_v9 }
 0x15c   : > { %v974_v33 = vadd.f32 %v973_v26, %v792_v23  ;;  %854 = vmatmul.f32.gmra.mxu1 %v10264_v3  ;;  %v10366_v26 = vand.u32 4294901760, %v348_v16  ;;  %v2054_v54 = vsub.f32 %v10358_v62, %v16818_v41  ;;  %v349_v41 = vld [vmem:[%s9524_s1 + $0xc8] sm:$0xff] }
 0x15d   : > { %1272 = vmatmul.f32.gmra.mxu3 %v10320_v10 }
 0x15e   : > { %v10363_v57 = vadd.f32 %v1171_v37, %v974_v33  ;;  %17344 = vst [vmem:[#allocation113_spill] sm:$0xff] %v10366_v26  ;;  %v2055_v33 = vand.u32 4294901760, %v2054_v54  ;;  %v10393_v54 = vand.u32 4294901760, %v349_v41 }
 0x15f   : > { %1057 = vmatmul.f32.gmra.mxu2 %v10303_v12 }
 0x160   : > { %17343 = vst [vmem:[#allocation112_spill] sm:$0xff] %v10363_v57  ;;  %v1177_v23 = vpop.f32.mrf.mxu3  ;;  %v474_v10 = vpop.f32.mrf.mxu0  ;;  %v10377_v57 = vsub.f32 %v348_v16, %v10366_v26  ;;  %2056 = vmatpush.xpose.msrb.mxu3 %v2055_v33  ;;  %v10405_v33 = vsub.f32 %v349_v41, %v10393_v54 }
 0x161   : > { %v795_v12 = vpop.f32.mrf.mxu1  ;;  %17351 = vst [vmem:[#allocation120_spill] sm:$0xff] %v10393_v54 }
 0x162   : > { %v796_v9 = vadd.f32 %v795_v12, %v466_v32  ;;  %v978_v37 = vpop.f32.mrf.mxu2  ;;  %17347 = vst [vmem:[#allocation116_spill] sm:$0xff] %v10377_v57  ;;  %v10389_v32 = vand.u32 4294901760, %v10377_v57 }
 0x163   : > { %601 = vmatmul.f32.gmra.mxu0 %v10368_v24  ;;  %17352 = vst [vmem:[#allocation121_spill] sm:$0xff] %v10405_v33 }
 0x164   : > { %v979_v3 = vadd.f32 %v978_v37, %v796_v9  ;;  %858 = vmatmul.f32.gmra.mxu1 %v10291_v53  ;;  %17349 = vst [vmem:[#allocation118_spill] sm:$0xff] %v10389_v32  ;;  %v10391_v9 = vand.u32 4294901760, %v607_v17  ;;  %v374_v37 = vld [vmem:[%s9532_s8 + $0x90] sm:$0xff] }
 0x165   : > { %1278 = vmatmul.f32.gmra.mxu3 %v10338_v11  ;;  %v10396_v60 = vand.u32 4294901760, %v374_v37  ;;  %v350_v17 = vld [vmem:[%s9524_s1 + $0xd0] sm:$0xff] }
 0x166   : > { %v10386_v12 = vadd.f32 %v1177_v23, %v979_v3  ;;  %17350 = vst [vmem:[#allocation119_spill] sm:$0xff] %v10391_v9  ;;  %v615_v3 = vsub.f32 %v10377_v57, %v10389_v32 }
 0x167   : > { %1062 = vmatmul.f32.gmra.mxu2 %v10326_v63  ;;  %2440 = vmatpush.xpose.msra.mxu1 %v10396_v60  ;;  %v10409_v63 = vsub.f32 %v374_v37, %v10396_v60 }
 0x168   : > { %17348 = vst [vmem:[#allocation117_spill] sm:$0xff] %v10386_v12  ;;  %v1183_v16 = vpop.f32.mrf.mxu3  ;;  %v482_v24 = vpop.f32.mrf.mxu0  ;;  %1717 = vmatpush.xpose.msrb.mxu2 %v10396_v60  ;;  %v10419_v41 = vand.u32 4294901760, %v615_v3  ;;  %v10422_v12 = vand.u32 4294901760, %v10405_v33 }
 0x169   : > { %v799_v53 = vpop.f32.mrf.mxu1  ;;  %2245 = vmatpush.xpose.msra.mxu0 %v10409_v63 }
 0x16a   : > { %v800_v11 = vadd.f32 %v799_v53, %v474_v10  ;;  %v983_v13 = vpop.f32.mrf.mxu2  ;;  %v16832_v10 = vand.u32 4294901760, %v10409_v63  ;;  %17355 = vst [vmem:[#allocation124_spill] sm:$0xff] %v10419_v41  ;;  %v623_v3 = vsub.f32 %v10405_v33, %v10422_v12 }
 0x16b   : > { %609 = vmatmul.f32.gmra.mxu0 %v10391_v9  ;;  %17356 = vst [vmem:[#allocation125_spill] sm:$0xff] %v10422_v12 }
 0x16c   : > { %v984_v23 = vadd.f32 %v983_v13, %v800_v11  ;;  %862 = vmatmul.f32.gmra.mxu1 %v10315_v15  ;;  %v10417_v13 = vand.u32 4294901760, %v350_v17  ;;  %v2060_v37 = vsub.f32 %v10409_v63, %v16832_v10  ;;  %v351_v10 = vld [vmem:[%s9524_s1 + $0xd8] sm:$0xff] }
 0x16d   : > { %1284 = vmatmul.f32.gmra.mxu3 %v10371_v27 }
 0x16e   : > { %v10414_v53 = vadd.f32 %v1183_v16, %v984_v23  ;;  %17354 = vst [vmem:[#allocation123_spill] sm:$0xff] %v10417_v13  ;;  %v2061_v23 = vand.u32 4294901760, %v2060_v37  ;;  %v10428_v15 = vsub.f32 %v350_v17, %v10417_v13  ;;  %v10444_v37 = vand.u32 4294901760, %v351_v10 }
 0x16f   : > { %1067 = vmatmul.f32.gmra.mxu2 %v10354_v58 }
 0x170   : > { %17353 = vst [vmem:[#allocation122_spill] sm:$0xff] %v10414_v53  ;;  %v1189_v11 = vpop.f32.mrf.mxu3  ;;  %v490_v27 = vpop.f32.mrf.mxu0  ;;  %2062 = vmatpush.xpose.msrb.mxu3 %v2061_v23  ;;  %v10456_v23 = vsub.f32 %v351_v10, %v10444_v37 }
 0x171   : > { %v803_v58 = vpop.f32.mrf.mxu1  ;;  %17357 = vst [vmem:[#allocation126_spill] sm:$0xff] %v10428_v15 }
 0x172   : > { %v804_v9 = vadd.f32 %v803_v58, %v482_v24  ;;  %v988_v16 = vpop.f32.mrf.mxu2  ;;  %v10440_v24 = vand.u32 4294901760, %v10428_v15  ;;  %17361 = vst [vmem:[#allocation130_spill] sm:$0xff] %v10444_v37  ;;  %v10471_v10 = vand.u32 4294901760, %v10456_v23 }
 0x173   : > { %617 = vmatmul.f32.gmra.mxu0 %v10419_v41  ;;  %17362 = vst [vmem:[#allocation131_spill] sm:$0xff] %v10456_v23 }
 0x174   : > { %v989_v53 = vadd.f32 %v988_v16, %v804_v9  ;;  %866 = vmatmul.f32.gmra.mxu1 %v10342_v45  ;;  %17359 = vst [vmem:[#allocation128_spill] sm:$0xff] %v10440_v24  ;;  %v10442_v9 = vand.u32 4294901760, %v623_v3  ;;  %v373_v16 = vld [vmem:[%s9532_s8 + $0x88] sm:$0xff] }
 0x175   : > { %1290 = vmatmul.f32.gmra.mxu3 %v10389_v32  ;;  %v10447_v22 = vand.u32 4294901760, %v373_v16  ;;  %17365 = vst [vmem:[#allocation134_spill] sm:$0xff] %v10471_v10 }
 0x176   : > { %v10437_v58 = vadd.f32 %v1189_v11, %v989_v53  ;;  %17360 = vst [vmem:[#allocation129_spill] sm:$0xff] %v10442_v9  ;;  %v631_v53 = vsub.f32 %v10428_v15, %v10440_v24 }
 0x177   : > { %1072 = vmatmul.f32.gmra.mxu2 %v10377_v57  ;;  %2442 = vmatpush.xpose.msra.mxu1 %v10447_v22  ;;  %v10459_v3 = vsub.f32 %v373_v16, %v10447_v22 }
 0x178   : > { %17358 = vst [vmem:[#allocation127_spill] sm:$0xff] %v10437_v58  ;;  %v1195_v17 = vpop.f32.mrf.mxu3  ;;  %v498_v41 = vpop.f32.mrf.mxu0  ;;  %1719 = vmatpush.xpose.msrb.mxu2 %v10447_v22 }
 0x179   : > { %v807_v45 = vpop.f32.mrf.mxu1  ;;  %2248 = vmatpush.xpose.msra.mxu0 %v10459_v3 }
 0x17a   : > { %v808_v32 = vadd.f32 %v807_v45, %v490_v27  ;;  %v993_v5 = vpop.f32.mrf.mxu2  ;;  %v352_v27 = vld [vmem:[%s9524_s1 + $0xe0] sm:$0xff]  ;;  %v16846_v45 = vand.u32 4294901760, %v10459_v3 }
 0x17b   : > { %625 = vmatmul.f32.gmra.mxu0 %v10442_v9  ;;  %v10473_v16 = vand.u32 4294901760, %v352_v27 }
 0x17c   : > { %v994_v11 = vadd.f32 %v993_v5, %v808_v32  ;;  %870 = vmatmul.f32.gmra.mxu1 %v10366_v26  ;;  %v10468_v32 = vand.u32 4294901760, %v631_v53  ;;  %v639_v53 = vsub.f32 %v10456_v23, %v10471_v10 }
 0x17d   : > { %1296 = vmatmul.f32.gmra.mxu3 %v10422_v12  ;;  %17366 = vst [vmem:[#allocation135_spill] sm:$0xff] %v10473_v16  ;;  %v2066_v12 = vsub.f32 %v10459_v3, %v16846_v45  ;;  %v10483_v26 = vsub.f32 %v352_v27, %v10473_v16  ;;  %v353_v45 = vld [vmem:[%s9524_s1 + $0xe8] sm:$0xff] }
 0x17e   : > { %v10465_v57 = vadd.f32 %v1195_v17, %v994_v11  ;;  %17364 = vst [vmem:[#allocation133_spill] sm:$0xff] %v10468_v32 }
 0x17f   : > { %1077 = vmatmul.f32.gmra.mxu2 %v10405_v33  ;;  %17367 = vst [vmem:[#allocation136_spill] sm:$0xff] %v10483_v26 }
 0x180   : > { %17363 = vst [vmem:[#allocation132_spill] sm:$0xff] %v10465_v57  ;;  %v1201_v5 = vpop.f32.mrf.mxu3  ;;  %v506_v33 = vpop.f32.mrf.mxu0  ;;  %v2067_v57 = vand.u32 4294901760, %v2066_v12  ;;  %v372_v12 = vld [vmem:[%s9532_s8 + $0x80] sm:$0xff] }
 0x181   : > { %v811_v9 = vpop.f32.mrf.mxu1 }
 0x182   : > { %v812_v17 = vadd.f32 %v811_v9, %v498_v41  ;;  %v998_v11 = vpop.f32.mrf.mxu2  ;;  %2068 = vmatpush.xpose.msrb.mxu3 %v2067_v57 }
 0x183   : > { %633 = vmatmul.f32.gmra.mxu0 %v10468_v32  ;;  %v10496_v32 = vand.u32 4294901760, %v353_v45 }
 0x184   : > { %v999_v58 = vadd.f32 %v998_v11, %v812_v17  ;;  %874 = vmatmul.f32.gmra.mxu1 %v10393_v54  ;;  %v10491_v17 = vand.u32 4294901760, %v639_v53  ;;  %v10494_v11 = vand.u32 4294901760, %v10483_v26  ;;  %v10498_v54 = vand.u32 4294901760, %v372_v12 }
 0x185   : > { %1302 = vmatmul.f32.gmra.mxu3 %v10440_v24  ;;  %17371 = vst [vmem:[#allocation140_spill] sm:$0xff] %v10496_v32 }
 0x186   : > { %v10488_v41 = vadd.f32 %v1201_v5, %v999_v58  ;;  %17369 = vst [vmem:[#allocation138_spill] sm:$0xff] %v10491_v17  ;;  %1721 = vmatpush.xpose.msrb.mxu2 %v10498_v54  ;;  %v10502_v57 = vsub.f32 %v372_v12, %v10498_v54  ;;  %2444 = vmatpush.xpose.msra.mxu1 %v10498_v54  ;;  %v17372_v58 = vand.u32 4294901760, %v9723_v47  ;;  %v354_v12 = vld [vmem:[%s9524_s1 + $0xf0] sm:$0xff] }
 0x187   : > { %1082 = vmatmul.f32.gmra.mxu2 %v10428_v15  ;;  %17370 = vst [vmem:[#allocation139_spill] sm:$0xff] %v10494_v11  ;;  %v647_v53 = vsub.f32 %v10483_v26, %v10494_v11 }
 0x188   : > { %17368 = vst [vmem:[#allocation137_spill] sm:$0xff] %v10488_v41  ;;  %v1207_v9 = vpop.f32.mrf.mxu3  ;;  %v514_v27 = vpop.f32.mrf.mxu0  ;;  %2251 = vmatpush.xpose.msra.mxu0 %v10502_v57 }
 0x189   : > { %v815_v24 = vpop.f32.mrf.mxu1 }
 0x18a   : > { %v816_v46 = vadd.f32 %v815_v24, %v506_v33  ;;  %v1003_v14 = vpop.f32.mrf.mxu2  ;;  %2641 = vmatpush.xpose.msra.mxu2 %v17372_v58  ;;  %v10512_v33 = vsub.f32 %v353_v45, %v10496_v32  ;;  %v2071_v24 = vand.u32 4294901760, %v10502_v57  ;;  %v10526_v58 = vand.u32 4294901760, %v647_v53 }
 0x18b   : > { %641 = vmatmul.f32.gmra.mxu0 %v10491_v17 }
 0x18c   : > { %v1004_v5 = vadd.f32 %v1003_v14, %v816_v46  ;;  %878 = vmatmul.f32.gmra.mxu1 %v10417_v13  ;;  %17373 = vst [vmem:[#allocation141_spill] sm:$0xff] %v10512_v33  ;;  %v2072_v47 = vsub.f32 %v10502_v57, %v2071_v24  ;;  %v17374_v46 = vand.u32 4294901760, %v9759_v36  ;;  %v10529_v15 = vand.u32 4294901760, %v10512_v33 }
 0x18d   : > { %1308 = vmatmul.f32.gmra.mxu3 %v10471_v10  ;;  %v10531_v10 = vand.u32 4294901760, %v354_v12  ;;  %v17377_v36 = vand.u32 4294901760, %v9822_v39  ;;  %v17379_v39 = vand.u32 4294901760, %v9880_v48 }
 0x18e   : > { %v10522_v14 = vadd.f32 %v1207_v9, %v1004_v5  ;;  %2645 = vmatpush.xpose.msra.mxu2 %v17374_v46  ;;  %17375 = vst [vmem:[#allocation142_spill] sm:$0xff] %v10529_v15  ;;  %v2073_v17 = vand.u32 4294901760, %v2072_v47  ;;  %v655_v5 = vsub.f32 %v10512_v33, %v10529_v15 }
 0x18f   : > { %1087 = vmatmul.f32.gmra.mxu2 %v10456_v23  ;;  %17376 = vst [vmem:[#allocation143_spill] sm:$0xff] %v10531_v10  ;;  %v10541_v53 = vsub.f32 %v354_v12, %v10531_v10 }
 0x190   : > { %v1213_v45 = vpop.f32.mrf.mxu3  ;;  %v522_v23 = vpop.f32.mrf.mxu0  ;;  %2074 = vmatpush.xpose.msrb.mxu3 %v2073_v17 }
 0x191   : > { %v819_v41 = vpop.f32.mrf.mxu1  ;;  %17378 = vst [vmem:[#allocation144_spill] sm:$0xff] %v10541_v53  ;;  %v10554_v17 = vand.u32 4294901760, %v10541_v53 }
 0x192   : > { %v820_v13 = vadd.f32 %v819_v41, %v514_v27  ;;  %v1008_v44 = vpop.f32.mrf.mxu2  ;;  %2649 = vmatpush.xpose.msra.mxu2 %v17377_v36  ;;  %v355_v41 = vld [vmem:[%s9524_s1 + $0xf8] sm:$0xff] }
 0x193   : > { %649 = vmatmul.f32.gmra.mxu0 %v10526_v58  ;;  %17380 = vst [vmem:[#allocation145_spill] sm:$0xff] %v10554_v17  ;;  %v10556_v27 = vand.u32 4294901760, %v355_v41  ;;  %v663_v48 = vsub.f32 %v10541_v53, %v10554_v17 }
 0x194   : > { %2832 = vmatpush.xpose.msra.mxu3 %v9705_v30  ;;  %v1009_v9 = vadd.f32 %v1008_v44, %v820_v13  ;;  %882 = vmatmul.f32.gmra.mxu1 %v10444_v37  ;;  %v10551_v13 = vand.u32 4294901760, %v655_v5 }
 0x195   : > { %1314 = vmatmul.f32.gmra.mxu3 %v10494_v11  ;;  %17381 = vst [vmem:[#allocation146_spill] sm:$0xff] %v10556_v27  ;;  %v10575_v5 = vand.u32 4294901760, %v663_v48  ;;  %v17423_v11 = vld [vmem:[#allocation80_spill] sm:$0xff] }
 0x196   : > { %v10546_v30 = vadd.f32 %v1213_v45, %v1009_v9  ;;  %2653 = vmatpush.xpose.msra.mxu2 %v17379_v39  ;;  %v17382_v45 = vand.u32 4294901760, %v9937_v31  ;;  %v10566_v9 = vsub.f32 %v355_v41, %v10556_v27 }
 0x197   : > { %1092 = vmatmul.f32.gmra.mxu2 %v10483_v26 }
 0x198   : > { %2834 = vmatpush.xpose.msra.mxu3 %v9743_v2  ;;  %v1219_v44 = vpop.f32.mrf.mxu3  ;;  %v530_v12 = vpop.f32.mrf.mxu0  ;;  %17383 = vst [vmem:[#allocation147_spill] sm:$0xff] %v10566_v9  ;;  %v10578_v39 = vand.u32 4294901760, %v10566_v9 }
 0x199   : > { %v823_v47 = vpop.f32.mrf.mxu1 }
 0x19a   : > { %v824_v46 = vadd.f32 %v823_v47, %v522_v23  ;;  %v1013_v36 = vpop.f32.mrf.mxu2  ;;  %2657 = vmatpush.xpose.msra.mxu2 %v17382_v45  ;;  %17385 = vst [vmem:[#allocation148_spill] sm:$0xff] %v10578_v39 }
 0x19b   : > { %657 = vmatmul.f32.gmra.mxu0 %v10551_v13 }
 0x19c   : > { %2836 = vmatpush.xpose.msra.mxu3 %v9811_v1  ;;  %v1014_v2 = vadd.f32 %v1013_v36, %v824_v46  ;;  %886 = vmatmul.f32.gmra.mxu1 %v10473_v16  ;;  %v17384_v1 = vand.u32 4294901760, %v9994_v4  ;;  %v17387_v4 = vand.u32 4294901760, %v10103_v40  ;;  %v17389_v40 = vand.u32 4294901760, %v10209_v43 }
 0x19d   : > { %1320 = vmatmul.f32.gmra.mxu3 %v10529_v15 }
 0x19e   : > { %v10570_v23 = vadd.f32 %v1219_v44, %v1014_v2  ;;  %2661 = vmatpush.xpose.msra.mxu2 %v17384_v1  ;;  %v17386_v44 = vand.u32 4294901760, %v10050_v61 }
 0x19f   : > { %1097 = vmatmul.f32.gmra.mxu2 %v10512_v33 }
 0x1a0   : > { %2838 = vmatpush.xpose.msra.mxu3 %v9867_v6  ;;  %v1225_v31 = vpop.f32.mrf.mxu3  ;;  %v538_v47 = vpop.f32.mrf.mxu0  ;;  %v671_v6 = vsub.f32 %v10566_v9, %v10578_v39 }
 0x1a1   : > { %v827_v41 = vpop.f32.mrf.mxu1 }
 0x1a2   : > { %v828_v46 = vadd.f32 %v827_v41, %v530_v12  ;;  %v1018_v36 = vpop.f32.mrf.mxu2  ;;  %2665 = vmatpush.xpose.msra.mxu2 %v17386_v44  ;;  %v10592_v61 = vand.u32 4294901760, %v671_v6  ;;  %v17388_v41 = vand.u32 4294901760, %v10161_v52  ;;  %v17390_v6 = vand.u32 4294901760, %v10256_v50 }
 0x1a3   : > { %665 = vmatmul.f32.gmra.mxu0 %v10575_v5 }
 0x1a4   : > { %2840 = vmatpush.xpose.msra.mxu3 %v9924_v28  ;;  %v1019_v45 = vadd.f32 %v1018_v36, %v828_v46  ;;  %890 = vmatmul.f32.gmra.mxu1 %v10496_v32 }
 0x1a5   : > { %1326 = vmatmul.f32.gmra.mxu3 %v10554_v17 }
 0x1a6   : > { %2669 = vmatpush.xpose.msra.mxu2 %v17387_v4 }
 0x1a7   : > { %1102 = vmatmul.f32.gmra.mxu2 %v10541_v53 }
 0x1a8   : > { %2842 = vmatpush.xpose.msra.mxu3 %v9981_v56  ;;  %v1231_v28 = vpop.f32.mrf.mxu3  ;;  %v546_v12 = vpop.f32.mrf.mxu0  ;;  %v10600_v56 = vadd.f32 %v1225_v31, %v1019_v45 }
 0x1a9   : > { %v831_v2 = vpop.f32.mrf.mxu1 }
 0x1aa   : > { %v832_v48 = vadd.f32 %v831_v2, %v538_v47  ;;  %v1023_v1 = vpop.f32.mrf.mxu2  ;;  %2673 = vmatpush.xpose.msra.mxu2 %v17388_v41  ;;  %v17392_v2 = vand.u32 4294901760, %v10358_v62 }
 0x1ab   : > { %673 = vmatmul.f32.gmra.mxu0 %v10592_v61 }
 0x1ac   : > { %2844 = vmatpush.xpose.msra.mxu3 %v10038_v42  ;;  %v1024_v46 = vadd.f32 %v1023_v1, %v832_v48  ;;  %894 = vmatmul.f32.gmra.mxu1 %v10531_v10  ;;  %v17394_v1 = vand.u32 4294901760, %v10459_v3 }
 0x1ad   : > { %1332 = vmatmul.f32.gmra.mxu3 %v10578_v39 }
 0x1ae   : > { %2677 = vmatpush.xpose.msra.mxu2 %v17389_v40  ;;  %v10616_v45 = vadd.f32 %v1231_v28, %v1024_v46 }
 0x1af   : > { %1107 = vmatmul.f32.gmra.mxu2 %v10566_v9 }
 0x1b0   : > { %2846 = vmatpush.xpose.msra.mxu3 %v10091_v49  ;;  %v1237_v42 = vpop.f32.mrf.mxu3  ;;  %v554_v47 = vpop.f32.mrf.mxu0  ;;  %v17391_v49 = vand.u32 4294901760, %v10307_v38 }
 0x1b1   : > { %v835_v52 = vpop.f32.mrf.mxu1 }
 0x1b2   : > { %v836_v36 = vadd.f32 %v835_v52, %v546_v12  ;;  %v1028_v44 = vpop.f32.mrf.mxu2  ;;  %2681 = vmatpush.xpose.msra.mxu2 %v17390_v6 }
 0x1b3   : > { %1401 = vmatmul.f32.vlgmr.msrb.gmra.mxu0 %v9708_v35 }
 0x1b4   : > { %2848 = vmatpush.xpose.msra.mxu3 %v10149_v18  ;;  %v1029_v4 = vadd.f32 %v1028_v44, %v836_v36  ;;  %898 = vmatmul.f32.gmra.mxu1 %v10556_v27 }
 0x1b5   : > { %2076 = vmatmul.f32.vlgmr.msrb.gmra.mxu3 %v9708_v35 }
 0x1b6   : > { %2685 = vmatpush.xpose.msra.mxu2 %v17391_v49  ;;  %v17396_v49 = vld [vmem:[#allocation34_spill] sm:$0xff] }
 0x1b7   : > { %1727 = vmatmul.f32.vlgmr.msrb.gmra.mxu2 %v9783_v7  ;;  %v17393_v7 = vand.u32 4294901760, %v10409_v63 }
 0x1b8   : > { %2850 = vmatpush.xpose.msra.mxu3 %v10196_v51  ;;  %v1243_v43 = vpop.f32.mrf.mxu3  ;;  %v562_v31 = vpop.f32.mrf.mxu0 }
 0x1b9   : > { %v839_v18 = vpop.f32.mrf.mxu1 }
 0x1ba   : > { %v840_v50 = vadd.f32 %v839_v18, %v554_v47  ;;  %v1033_v12 = vpop.f32.mrf.mxu2  ;;  %2689 = vmatpush.xpose.msra.mxu2 %v17392_v2 }
 0x1bb   : > { %1405 = vmatmul.f32.gmra.mxu0 %v9748_v20 }
 0x1bc   : > { %2852 = vmatpush.xpose.msra.mxu3 %v10243_v55  ;;  %v1034_v48 = vadd.f32 %v1033_v12, %v840_v50  ;;  %1562 = vmatmul.f32.vlgmr.msrb.gmra.mxu1 %v9708_v35 }
 0x1bd   : > { %2080 = vmatmul.f32.gmra.mxu3 %v9748_v20 }
 0x1be   : > { %2693 = vmatpush.xpose.msra.mxu2 %v17393_v7 }
 0x1bf   : > { %1735 = vmatmul.f32.gmra.mxu2 %v9813_v59  ;;  %v10635_v59 = vadd.f32 %v1237_v42, %v1029_v4 }
 0x1c0   : > { %2854 = vmatpush.xpose.msra.mxu3 %v10294_v0  ;;  %v1249_v51 = vpop.f32.mrf.mxu3  ;;  %v570_v38 = vpop.f32.mrf.mxu0 }
 0x1c1   : > { %v843_v55 = vpop.f32.mrf.mxu1 }
 0x1c2   : > { %v844_v28 = vadd.f32 %v843_v55, %v562_v31  ;;  %v1038_v62 = vpop.f32.mrf.mxu2  ;;  %2697 = vmatpush.xpose.msra.mxu2 %v17394_v1  ;;  %v17397_v31 = vld [vmem:[#allocation40_spill] sm:$0xff] }
 0x1c3   : > { %1409 = vmatmul.f32.gmra.mxu0 %v9788_v21  ;;  %v17399_v55 = vld [vmem:[#allocation44_spill] sm:$0xff] }
 0x1c4   : > { %2856 = vmatpush.xpose.msra.mxu3 %v10345_v34  ;;  %v1039_v41 = vadd.f32 %v1038_v62, %v844_v28  ;;  %1566 = vmatmul.f32.gmra.mxu1 %v9748_v20 }
 0x1c5   : > { %2084 = vmatmul.f32.gmra.mxu3 %v9788_v21 }
 0x1c6   : > { %2701 = vmatpush.xpose.msra.mxu2 %v2071_v24 }
 0x1c7   : > { %1743 = vmatmul.f32.gmra.mxu2 %v9845_v19 }
 0x1c8   : > { %2858 = vmatpush.xpose.msra.mxu3 %v10396_v60  ;;  %v1255_v34 = vpop.f32.mrf.mxu3  ;;  %v578_v0 = vpop.f32.mrf.mxu0  ;;  %v10646_v60 = vadd.f32 %v1243_v43, %v1034_v48  ;;  %v10654_v43 = vadd.f32 %v1249_v51, %v1039_v41 }
 0x1c9   : > { %v847_v63 = vpop.f32.mrf.mxu1 }
 0x1ca   : > { %v848_v3 = vadd.f32 %v847_v63, %v570_v38  ;;  %v1043_v46 = vpop.f32.mrf.mxu2  ;;  %v17398_v38 = vld [vmem:[#allocation38_spill] sm:$0xff] }
 0x1cb   : > { %1413 = vmatmul.f32.gmra.mxu0 %v9819_v29 }
 0x1cc   : > { %2860 = vmatpush.xpose.msra.mxu3 %v10447_v22  ;;  %v1044_v40 = vadd.f32 %v1043_v46, %v848_v3  ;;  %1570 = vmatmul.f32.gmra.mxu1 %v9788_v21  ;;  %v17395_v22 = vld [vmem:[#allocation36_spill] sm:$0xff]  ;;  %v17400_v3 = vld [vmem:[#allocation42_spill] sm:$0xff] }
 0x1cd   : > { %2088 = vmatmul.f32.gmra.mxu3 %v9819_v29  ;;  %v17401_v46 = vld [vmem:[#allocation48_spill] sm:$0xff] }
 0x1ce   : > { %v10666_v28 = vadd.f32 %v1255_v34, %v1044_v40 }
 0x1cf   : > { %1751 = vmatmul.f32.gmra.mxu2 %v9871_v25 }
 0x1d0   : > { %2862 = vmatpush.xpose.msra.mxu3 %v10498_v54  ;;  %v1261_v19 = vpop.f32.mrf.mxu3  ;;  %v586_v57 = vpop.f32.mrf.mxu0 }
 0x1d1   : > { %v851_v24 = vpop.f32.mrf.mxu1 }
 0x1d2   : > { %v852_v42 = vadd.f32 %v851_v24, %v578_v0  ;;  %v1048_v47 = vpop.f32.mrf.mxu2 }
 0x1d3   : > { %1417 = vmatmul.f32.gmra.mxu0 %v9850_v8 }
 0x1d4   : > { %v1049_v52 = vadd.f32 %v1048_v47, %v852_v42  ;;  %1574 = vmatmul.f32.gmra.mxu1 %v9819_v29 }
 0x1d5   : > { %2092 = vmatmul.f32.gmra.mxu3 %v9850_v8 }
 0x1d6   : > { %v10676_v47 = vadd.f32 %v1261_v19, %v1049_v52  ;;  %v17404_v19 = vld [vmem:[#allocation50_spill] sm:$0xff]  ;;  %v17405_v52 = vld [vmem:[#allocation56_spill] sm:$0xff] }
 0x1d7   : > { %1759 = vmatmul.f32.gmra.mxu2 %v17395_v22 }
 0x1d8   : > { %v1267_v36 = vpop.f32.mrf.mxu3  ;;  %v594_v25 = vpop.f32.mrf.mxu0 }
 0x1d9   : > { %v855_v44 = vpop.f32.mrf.mxu1 }
 0x1da   : > { %v856_v54 = vadd.f32 %v855_v44, %v586_v57  ;;  %v1053_v6 = vpop.f32.mrf.mxu2  ;;  %v17403_v44 = vld [vmem:[#allocation52_spill] sm:$0xff] }
 0x1db   : > { %1421 = vmatmul.f32.gmra.mxu0 %v17396_v49 }
 0x1dc   : > { %v1054_v4 = vadd.f32 %v1053_v6, %v856_v54  ;;  %1578 = vmatmul.f32.gmra.mxu1 %v9850_v8 }
 0x1dd   : > { %2096 = vmatmul.f32.gmra.mxu3 %v17396_v49 }
 0x1df   : > { %1767 = vmatmul.f32.gmra.mxu2 %v17397_v31 }
 0x1e0   : > { %v10658_v18 = vpop.f32.mrf.mxu3  ;;  %v602_v50 = vpop.f32.mrf.mxu0 }
 0x1e1   : > { %v859_v12 = vpop.f32.mrf.mxu1 }
 0x1e2   : > { %v860_v2 = vadd.f32 %v859_v12, %v594_v25  ;;  %v1058_v48 = vpop.f32.mrf.mxu2  ;;  %v17402_v25 = vld [vmem:[#allocation46_spill] sm:$0xff] }
 0x1e3   : > { %1425 = vmatmul.f32.gmra.mxu0 %v17398_v38 }
 0x1e4   : > { %v1059_v7 = vadd.f32 %v1058_v48, %v860_v2  ;;  %1582 = vmatmul.f32.gmra.mxu1 %v17396_v49 }
 0x1e5   : > { %2100 = vmatmul.f32.gmra.mxu3 %v17398_v38 }
 0x1e7   : > { %1775 = vmatmul.f32.gmra.mxu2 %v17399_v55  ;;  %v10694_v55 = vadd.f32 %v1267_v36, %v1054_v4 }
 0x1e8   : > { %v10664_v51 = vpop.f32.mrf.mxu3  ;;  %v610_v62 = vpop.f32.mrf.mxu0 }
 0x1e9   : > { %v863_v1 = vpop.f32.mrf.mxu1 }
 0x1ea   : > { %v864_v41 = vadd.f32 %v863_v1, %v602_v50  ;;  %v1063_v0 = vpop.f32.mrf.mxu2 }
 0x1eb   : > { %1429 = vmatmul.f32.gmra.mxu0 %v17400_v3 }
 0x1ec   : > { %v10668_v63 = vadd.f32 %v1063_v0, %v864_v41  ;;  %1586 = vmatmul.f32.gmra.mxu1 %v17398_v38 }
 0x1ed   : > { %2104 = vmatmul.f32.gmra.mxu3 %v17400_v3 }
 0x1ef   : > { %1783 = vmatmul.f32.gmra.mxu2 %v17401_v46 }
 0x1f0   : > { %v10674_v57 = vpop.f32.mrf.mxu3  ;;  %v618_v24 = vpop.f32.mrf.mxu0 }
 0x1f1   : > { %v867_v42 = vpop.f32.mrf.mxu1 }
 0x1f2   : > { %v868_v34 = vadd.f32 %v867_v42, %v610_v62  ;;  %v1068_v40 = vpop.f32.mrf.mxu2  ;;  %v17407_v42 = vld [vmem:[#allocation60_spill] sm:$0xff] }
 0x1f3   : > { %1433 = vmatmul.f32.gmra.mxu0 %v17402_v25 }
 0x1f4   : > { %v10678_v22 = vadd.f32 %v1068_v40, %v868_v34  ;;  %1590 = vmatmul.f32.gmra.mxu1 %v17400_v3 }
 0x1f5   : > { %2108 = vmatmul.f32.gmra.mxu3 %v17402_v25 }
 0x1f7   : > { %1791 = vmatmul.f32.gmra.mxu2 %v17403_v44 }
 0x1f8   : > { %v10684_v54 = vpop.f32.mrf.mxu3  ;;  %v626_v6 = vpop.f32.mrf.mxu0 }
 0x1f9   : > { %v871_v31 = vpop.f32.mrf.mxu1 }
 0x1fa   : > { %v872_v50 = vadd.f32 %v871_v31, %v618_v24  ;;  %v1073_v12 = vpop.f32.mrf.mxu2  ;;  %v17406_v24 = vld [vmem:[#allocation54_spill] sm:$0xff] }
 0x1fb   : > { %1437 = vmatmul.f32.gmra.mxu0 %v17404_v19 }
 0x1fc   : > { %v10686_v2 = vadd.f32 %v1073_v12, %v872_v50  ;;  %1594 = vmatmul.f32.gmra.mxu1 %v17402_v25  ;;  %v17409_v50 = vld [vmem:[#allocation64_spill] sm:$0xff]  ;;  %v10711_v12 = vadd.f32 %v10658_v18, %v1059_v7 }
 0x1fd   : > { %2112 = vmatmul.f32.gmra.mxu3 %v17404_v19 }
 0x1ff   : > { %1799 = vmatmul.f32.gmra.mxu2 %v17405_v52 }
 0x200   : > { %v10692_v48 = vpop.f32.mrf.mxu3  ;;  %v634_v62 = vpop.f32.mrf.mxu0 }
 0x201   : > { %v875_v1 = vpop.f32.mrf.mxu1 }
 0x202   : > { %v876_v41 = vadd.f32 %v875_v1, %v626_v6  ;;  %v1078_v0 = vpop.f32.mrf.mxu2  ;;  %v17408_v6 = vld [vmem:[#allocation58_spill] sm:$0xff] }
 0x203   : > { %1441 = vmatmul.f32.gmra.mxu0 %v17406_v24 }
 0x204   : > { %v10696_v46 = vadd.f32 %v1078_v0, %v876_v41  ;;  %1598 = vmatmul.f32.gmra.mxu1 %v17404_v19 }
 0x205   : > { %2116 = vmatmul.f32.gmra.mxu3 %v17406_v24 }
 0x207   : > { %1807 = vmatmul.f32.gmra.mxu2 %v17407_v42 }
 0x208   : > { %v10702_v34 = vpop.f32.mrf.mxu3  ;;  %v642_v40 = vpop.f32.mrf.mxu0 }
 0x209   : > { %v879_v44 = vpop.f32.mrf.mxu1 }
 0x20a   : > { %v880_v36 = vadd.f32 %v879_v44, %v634_v62  ;;  %v1083_v4 = vpop.f32.mrf.mxu2  ;;  %v17410_v44 = vld [vmem:[#allocation62_spill] sm:$0xff] }
 0x20b   : > { %1445 = vmatmul.f32.gmra.mxu0 %v17408_v6 }
 0x20c   : > { %v10704_v31 = vadd.f32 %v1083_v4, %v880_v36  ;;  %1602 = vmatmul.f32.gmra.mxu1 %v17406_v24  ;;  %v17411_v36 = vld [vmem:[#allocation68_spill] sm:$0xff] }
 0x20d   : > { %2120 = vmatmul.f32.gmra.mxu3 %v17408_v6 }
 0x20f   : > { %1815 = vmatmul.f32.gmra.mxu2 %v17409_v50 }
 0x210   : > { %v10713_v52 = vpop.f32.mrf.mxu3  ;;  %v650_v1 = vpop.f32.mrf.mxu0 }
 0x211   : > { %v883_v41 = vpop.f32.mrf.mxu1 }
 0x212   : > { %v884_v0 = vadd.f32 %v883_v41, %v642_v40  ;;  %v1088_v62 = vpop.f32.mrf.mxu2  ;;  %v10725_v40 = vadd.f32 %v10664_v51, %v10668_v63  ;;  %v17418_v51 = vld [vmem:[#allocation70_spill] sm:$0xff]  ;;  %v10743_v63 = vadd.f32 %v10674_v57, %v10678_v22 }
 0x213   : > { %1449 = vmatmul.f32.gmra.mxu0 %v17410_v44 }
 0x214   : > { %v10715_v42 = vadd.f32 %v1088_v62, %v884_v0  ;;  %1606 = vmatmul.f32.gmra.mxu1 %v17408_v6  ;;  %v17414_v0 = vld [vmem:[#allocation66_spill] sm:$0xff]  ;;  %v17415_v62 = vld [vmem:[#allocation72_spill] sm:$0xff] }
 0x215   : > { %2124 = vmatmul.f32.gmra.mxu3 %v17410_v44 }
 0x217   : > { %1823 = vmatmul.f32.gmra.mxu2 %v17411_v36 }
 0x218   : > { %v10721_v4 = vpop.f32.mrf.mxu3  ;;  %v658_v18 = vpop.f32.mrf.mxu0 }
 0x219   : > { %17412 = vst [vmem:[#allocation36_spill] sm:$0xff] %v10721_v4  ;;  %v887_v7 = vpop.f32.mrf.mxu1  ;;  %v17441_v4 = vld [vmem:[#allocation90_spill] sm:$0xff] }
 0x21a   : > { %v888_v50 = vadd.f32 %v887_v7, %v650_v1  ;;  %v1093_v39 = vpop.f32.mrf.mxu2 }
 0x21b   : > { %1453 = vmatmul.f32.gmra.mxu0 %v17414_v0 }
 0x21c   : > { %v10727_v41 = vadd.f32 %v1093_v39, %v888_v50  ;;  %1610 = vmatmul.f32.gmra.mxu1 %v17410_v44  ;;  %v17419_v39 = vld [vmem:[#allocation76_spill] sm:$0xff] }
 0x21d   : > { %2128 = vmatmul.f32.gmra.mxu3 %v17414_v0 }
 0x21e   : > { %17413 = vst [vmem:[#allocation34_spill] sm:$0xff] %v10727_v41  ;;  %v17444_v41 = vld [vmem:[#allocation93_spill] sm:$0xff] }
 0x21f   : > { %1831 = vmatmul.f32.gmra.mxu2 %v17415_v62 }
 0x220   : > { %v10733_v36 = vpop.f32.mrf.mxu3  ;;  %v666_v17 = vpop.f32.mrf.mxu0 }
 0x221   : > { %17416 = vst [vmem:[#allocation40_spill] sm:$0xff] %v10733_v36  ;;  %v891_v9 = vpop.f32.mrf.mxu1 }
 0x222   : > { %v892_v1 = vadd.f32 %v891_v9, %v658_v18  ;;  %v1098_v7 = vpop.f32.mrf.mxu2 }
 0x223   : > { %1457 = vmatmul.f32.gmra.mxu0 %v17418_v51 }
 0x224   : > { %v10735_v15 = vadd.f32 %v1098_v7, %v892_v1  ;;  %1614 = vmatmul.f32.gmra.mxu1 %v17414_v0  ;;  %v17422_v7 = vld [vmem:[#allocation74_spill] sm:$0xff] }
 0x225   : > { %2132 = vmatmul.f32.gmra.mxu3 %v17418_v51 }
 0x226   : > { %17417 = vst [vmem:[#allocation38_spill] sm:$0xff] %v10735_v15 }
 0x227   : > { %1839 = vmatmul.f32.gmra.mxu2 %v17419_v39 }
 0x228   : > { %v10745_v50 = vpop.f32.mrf.mxu3  ;;  %v674_v62 = vpop.f32.mrf.mxu0 }
 0x229   : > { %17420 = vst [vmem:[#allocation44_spill] sm:$0xff] %v10745_v50  ;;  %v895_v53 = vpop.f32.mrf.mxu1 }
 0x22a   : > { %v896_v9 = vadd.f32 %v895_v53, %v666_v17  ;;  %v1103_v18 = vpop.f32.mrf.mxu2  ;;  %v17426_v53 = vld [vmem:[#allocation78_spill] sm:$0xff]  ;;  %v10763_v17 = vadd.f32 %v10684_v54, %v10686_v2  ;;  %v10777_v54 = vadd.f32 %v10692_v48, %v10696_v46  ;;  %v17432_v2 = vld [vmem:[#allocation89_spill] sm:$0xff] }
 0x22b   : > { %1461 = vmatmul.f32.gmra.mxu0 %v17422_v7  ;;  %v17437_v48 = vld [vmem:[#allocation94_spill] sm:$0xff] }
 0x22c   : > { %v10747_v1 = vadd.f32 %v1103_v18, %v896_v9  ;;  %1618 = vmatmul.f32.gmra.mxu1 %v17418_v51 }
 0x22d   : > { %2136 = vmatmul.f32.gmra.mxu3 %v17422_v7 }
 0x22e   : > { %17421 = vst [vmem:[#allocation42_spill] sm:$0xff] %v10747_v1 }
 0x22f   : > { %1847 = vmatmul.f32.gmra.mxu2 %v17423_v11  ;;  %v17427_v11 = vld [vmem:[#allocation85_spill] sm:$0xff] }
 0x230   : > { %v10753_v39 = vpop.f32.mrf.mxu3  ;;  %v10755_v22 = vpop.f32.mrf.mxu0 }
 0x231   : > { %17424 = vst [vmem:[#allocation48_spill] sm:$0xff] %v10753_v39  ;;  %v899_v57 = vpop.f32.mrf.mxu1 }
 0x232   : > { %v900_v33 = vadd.f32 %v899_v57, %v674_v62  ;;  %v1108_v26 = vpop.f32.mrf.mxu2 }
 0x233   : > { %1465 = vmatmul.f32.gmra.mxu0 %v17426_v53 }
 0x234   : > { %v10757_v50 = vadd.f32 %v1108_v26, %v900_v33  ;;  %1622 = vmatmul.f32.gmra.mxu1 %v17422_v7  ;;  %v17431_v33 = vld [vmem:[#allocation82_spill] sm:$0xff] }
 0x235   : > { %2140 = vmatmul.f32.gmra.mxu3 %v17426_v53 }
 0x236   : > { %17425 = vst [vmem:[#allocation46_spill] sm:$0xff] %v10757_v50 }
 0x237   : > { %1855 = vmatmul.f32.gmra.mxu2 %v17427_v11 }
 0x238   : > { %v2077_v9 = vpop.f32.mrf.mxu3  ;;  %v10767_v18 = vpop.f32.mrf.mxu0 }
 0x239   : > { %17428 = vst [vmem:[#allocation52_spill] sm:$0xff] %v10767_v18  ;;  %v10769_v39 = vpop.f32.mrf.mxu1 }
 0x23a   : > { %17429 = vst [vmem:[#allocation50_spill] sm:$0xff] %v10769_v39  ;;  %v1728_v62 = vpop.f32.mrf.mxu2  ;;  %v17467_v39 = vld [vmem:[#allocation129_spill] sm:$0xff] }
 0x23b   : > { %v10771_v26 = vadd.f32 %v2077_v9, %v1728_v62  ;;  %1469 = vmatmul.f32.gmra.mxu0 %v17431_v33  ;;  %v17436_v62 = vld [vmem:[#allocation84_spill] sm:$0xff] }
 0x23c   : > { %1626 = vmatmul.f32.gmra.mxu1 %v17426_v53 }
 0x23d   : > { %17430 = vst [vmem:[#allocation56_spill] sm:$0xff] %v10771_v26  ;;  %2144 = vmatmul.f32.gmra.mxu3 %v17431_v33 }
 0x23f   : > { %1863 = vmatmul.f32.gmra.mxu2 %v17432_v2 }
 0x240   : > { %v2081_v57 = vpop.f32.mrf.mxu3  ;;  %v10781_v11 = vpop.f32.mrf.mxu0 }
 0x241   : > { %17433 = vst [vmem:[#allocation54_spill] sm:$0xff] %v10781_v11  ;;  %v10783_v50 = vpop.f32.mrf.mxu1  ;;  %v17451_v11 = vld [vmem:[#allocation100_spill] sm:$0xff] }
 0x242   : > { %17434 = vst [vmem:[#allocation60_spill] sm:$0xff] %v10783_v50  ;;  %v1736_v1 = vpop.f32.mrf.mxu2 }
 0x243   : > { %v10785_v9 = vadd.f32 %v2081_v57, %v1736_v1  ;;  %1473 = vmatmul.f32.gmra.mxu0 %v17436_v62  ;;  %v10802_v1 = vadd.f32 %v10702_v34, %v10704_v31  ;;  %v17442_v57 = vld [vmem:[#allocation99_spill] sm:$0xff]  ;;  %v10817_v34 = vadd.f32 %v10713_v52, %v10715_v42 }
 0x244   : > { %1630 = vmatmul.f32.gmra.mxu1 %v17431_v33  ;;  %v17455_v42 = vld [vmem:[#allocation103_spill] sm:$0xff] }
 0x245   : > { %17435 = vst [vmem:[#allocation58_spill] sm:$0xff] %v10785_v9  ;;  %2148 = vmatmul.f32.gmra.mxu3 %v17436_v62 }
 0x246   : > { %17448 = vst [vmem:[#allocation76_spill] sm:$0xff] %v10817_v34 }
 0x247   : > { %1871 = vmatmul.f32.gmra.mxu2 %v17437_v48 }
 0x248   : > { %v2085_v46 = vpop.f32.mrf.mxu3  ;;  %v10791_v26 = vpop.f32.mrf.mxu0 }
 0x249   : > { %17438 = vst [vmem:[#allocation64_spill] sm:$0xff] %v10791_v26  ;;  %v10793_v36 = vpop.f32.mrf.mxu1 }
 0x24a   : > { %v1744_v2 = vpop.f32.mrf.mxu2  ;;  %17439 = vst [vmem:[#allocation62_spill] sm:$0xff] %v10793_v36 }
 0x24b   : > { %v10795_v15 = vadd.f32 %v2085_v46, %v1744_v2  ;;  %1477 = vmatmul.f32.gmra.mxu0 %v17441_v4 }
 0x24c   : > { %1634 = vmatmul.f32.gmra.mxu1 %v17436_v62 }
 0x24d   : > { %17440 = vst [vmem:[#allocation68_spill] sm:$0xff] %v10795_v15  ;;  %2152 = vmatmul.f32.gmra.mxu3 %v17441_v4  ;;  %v17447_v15 = vld [vmem:[#allocation104_spill] sm:$0xff] }
 0x24f   : > { %1879 = vmatmul.f32.gmra.mxu2 %v17442_v57 }
 0x250   : > { %v2089_v48 = vpop.f32.mrf.mxu3  ;;  %v10805_v9 = vpop.f32.mrf.mxu0 }
 0x251   : > { %17443 = vst [vmem:[#allocation66_spill] sm:$0xff] %v10805_v9  ;;  %v10809_v46 = vpop.f32.mrf.mxu1 }
 0x252   : > { %v1752_v26 = vpop.f32.mrf.mxu2  ;;  %17445 = vst [vmem:[#allocation72_spill] sm:$0xff] %v10809_v46 }
 0x253   : > { %1481 = vmatmul.f32.gmra.mxu0 %v17444_v41  ;;  %v10811_v2 = vadd.f32 %v2089_v48, %v1752_v26  ;;  %v17452_v26 = vld [vmem:[#allocation109_spill] sm:$0xff] }
 0x254   : > { %1638 = vmatmul.f32.gmra.mxu1 %v17441_v4 }
 0x255   : > { %17446 = vst [vmem:[#allocation70_spill] sm:$0xff] %v10811_v2  ;;  %2156 = vmatmul.f32.gmra.mxu3 %v17444_v41  ;;  %v17454_v2 = vld [vmem:[#allocation122_spill] sm:$0xff] }
 0x257   : > { %1887 = vmatmul.f32.gmra.mxu2 %v17447_v15 }
 0x258   : > { %v10819_v31 = vpop.f32.mrf.mxu0  ;;  %v2093_v57 = vpop.f32.mrf.mxu3 }
 0x259   : > { %17449 = vst [vmem:[#allocation74_spill] sm:$0xff] %v10819_v31  ;;  %v10827_v48 = vpop.f32.mrf.mxu1 }
 0x25a   : > { %v1760_v9 = vpop.f32.mrf.mxu2  ;;  %17453 = vst [vmem:[#allocation78_spill] sm:$0xff] %v10827_v48  ;;  %v17461_v48 = vld [vmem:[#allocation113_spill] sm:$0xff] }
 0x25b   : > { %v10821_v36 = vadd.f32 %v2093_v57, %v1760_v9  ;;  %1485 = vmatmul.f32.gmra.mxu0 %v17451_v11  ;;  %v17456_v9 = vld [vmem:[#allocation114_spill] sm:$0xff] }
 0x25c   : > { %1642 = vmatmul.f32.gmra.mxu1 %v17444_v41  ;;  %v17459_v41 = vld [vmem:[#allocation119_spill] sm:$0xff] }
 0x25d   : > { %17450 = vst [vmem:[#allocation80_spill] sm:$0xff] %v10821_v36  ;;  %2160 = vmatmul.f32.gmra.mxu3 %v17451_v11  ;;  %v17458_v36 = vld [vmem:[#allocation110_spill] sm:$0xff] }
 0x25f   : > { %1895 = vmatmul.f32.gmra.mxu2 %v17452_v26 }
 0x260   : > { %v1426_v15 = vpop.f32.mrf.mxu0  ;;  %v2097_v26 = vpop.f32.mrf.mxu3 }
 0x261   : > { %v1427_v52 = vadd.f32 %v1426_v15, %v17454_v2  ;;  %v10834_v57 = vpop.f32.mrf.mxu1 }
 0x262   : > { %17457 = vst [vmem:[#allocation85_spill] sm:$0xff] %v10834_v57  ;;  %v1768_v31 = vpop.f32.mrf.mxu2  ;;  %v17463_v57 = vld [vmem:[#allocation127_spill] sm:$0xff] }
 0x263   : > { %1489 = vmatmul.f32.gmra.mxu0 %v17455_v42  ;;  %v10840_v2 = vadd.f32 %v2097_v26, %v1768_v31  ;;  %v17465_v31 = vld [vmem:[#allocation120_spill] sm:$0xff] }
 0x264   : > { %1646 = vmatmul.f32.gmra.mxu1 %v17451_v11 }
 0x265   : > { %2164 = vmatmul.f32.gmra.mxu3 %v17455_v42  ;;  %17460 = vst [vmem:[#allocation82_spill] sm:$0xff] %v10840_v2  ;;  %v17466_v2 = vld [vmem:[#allocation132_spill] sm:$0xff] }
 0x267   : > { %1903 = vmatmul.f32.gmra.mxu2 %v17456_v9  ;;  %v17462_v9 = vld [vmem:[#allocation124_spill] sm:$0xff] }
 0x268   : > { %v1430_v15 = vpop.f32.mrf.mxu0  ;;  %v2101_v46 = vpop.f32.mrf.mxu3 }
 0x269   : > { %v1587_v11 = vpop.f32.mrf.mxu1 }
 0x26a   : > { %v10847_v50 = vadd.f32 %v1587_v11, %v1427_v52  ;;  %v1776_v18 = vpop.f32.mrf.mxu2  ;;  %v17469_v52 = vld [vmem:[#allocation123_spill] sm:$0xff] }
 0x26b   : > { %1493 = vmatmul.f32.gmra.mxu0 %v17458_v36  ;;  %v10849_v34 = vadd.f32 %v2101_v46, %v1776_v18  ;;  %v17470_v46 = vld [vmem:[#allocation133_spill] sm:$0xff] }
 0x26c   : > { %1650 = vmatmul.f32.gmra.mxu1 %v17455_v42  ;;  %v1431_v42 = vadd.f32 %v1430_v15, %v17463_v57 }
 0x26d   : > { %2168 = vmatmul.f32.gmra.mxu3 %v17458_v36  ;;  %17464 = vst [vmem:[#allocation89_spill] sm:$0xff] %v10849_v34 }
 0x26f   : > { %1911 = vmatmul.f32.gmra.mxu2 %v17459_v41 }
 0x270   : > { %v1434_v41 = vpop.f32.mrf.mxu0  ;;  %v2105_v57 = vpop.f32.mrf.mxu3 }
 0x271   : > { %v1591_v26 = vpop.f32.mrf.mxu1 }
 0x272   : > { %v1784_v11 = vpop.f32.mrf.mxu2 }
 0x273   : > { %1497 = vmatmul.f32.gmra.mxu0 %v17461_v48  ;;  %v10862_v15 = vadd.f32 %v2105_v57, %v1784_v11 }
 0x274   : > { %1654 = vmatmul.f32.gmra.mxu1 %v17458_v36  ;;  %v1435_v36 = vadd.f32 %v1434_v41, %v17466_v2 }
 0x275   : > { %2172 = vmatmul.f32.gmra.mxu3 %v17461_v48  ;;  %17471 = vst [vmem:[#allocation94_spill] sm:$0xff] %v10862_v15 }
 0x277   : > { %1919 = vmatmul.f32.gmra.mxu2 %v17462_v9  ;;  %v10856_v9 = vadd.f32 %v1591_v26, %v1431_v42  ;;  %v17473_v26 = vld [vmem:[#allocation138_spill] sm:$0xff] }
 0x278   : > { %v1438_v18 = vpop.f32.mrf.mxu0 }
 0x279   : > { %17468 = vst [vmem:[#allocation84_spill] sm:$0xff] %v10856_v9  ;;  %v1595_v34 = vpop.f32.mrf.mxu1 }
 0x27a   : > { %v10865_v41 = vadd.f32 %v1595_v34, %v1435_v36  ;;  %v1792_v42 = vpop.f32.mrf.mxu2 }
 0x27b   : > { %1501 = vmatmul.f32.gmra.mxu0 %v17465_v31 }
 0x27c   : > { %1658 = vmatmul.f32.gmra.mxu1 %v17461_v48  ;;  %v17472_v48 = vld [vmem:[#allocation137_spill] sm:$0xff] }
 0x27d   : > { %2176 = vmatmul.f32.gmra.mxu3 %v17465_v31  ;;  %v1439_v2 = vadd.f32 %v1438_v18, %v17472_v48 }
 0x27f   : > { %1927 = vmatmul.f32.gmra.mxu2 %v17467_v39  ;;  %v2109_v39 = vpop.f32.mrf.mxu3 }
 0x280   : > { %v10871_v9 = vadd.f32 %v2109_v39, %v1792_v42 }
 0x281   : > { %v1599_v57 = vpop.f32.mrf.mxu1 }
 0x282   : > { %17474 = vst [vmem:[#allocation90_spill] sm:$0xff] %v10871_v9  ;;  %v10876_v36 = vadd.f32 %v1599_v57, %v1439_v2  ;;  %v1800_v48 = vpop.f32.mrf.mxu2  ;;  %v5862_v9 = vld [vmem:[%s9538_s6 + $0xb0] sm:$0xff] }
 0x283   : > { %1505 = vmatmul.f32.gmra.mxu0 %v17469_v52 }
 0x284   : > { %1662 = vmatmul.f32.gmra.mxu1 %v17465_v31  ;;  %v1442_v31 = vpop.f32.mrf.mxu0 }
 0x285   : > { %2180 = vmatmul.f32.gmra.mxu3 %v17469_v52  ;;  %v1443_v11 = vadd.f32 %v1442_v31, %v10522_v14 }
 0x287   : > { %1935 = vmatmul.f32.gmra.mxu2 %v17470_v46  ;;  %v2113_v34 = vpop.f32.mrf.mxu3 }
 0x288   : > { %v10880_v18 = vadd.f32 %v2113_v34, %v1800_v48  ;;  %v17477_v48 = vld [vmem:[#allocation24_spill] sm:$0xff] }
 0x289   : > { %v1603_v39 = vpop.f32.mrf.mxu1 }
 0x28a   : > { %17475 = vst [vmem:[#allocation99_spill] sm:$0xff] %v10880_v18  ;;  %v10887_v31 = vadd.f32 %v1603_v39, %v1443_v11  ;;  %v1808_v42 = vpop.f32.mrf.mxu2 }
 0x28b   : > { %1509 = vmatmul.f32.gmra.mxu0 %v10444_v37 }
 0x28c   : > { %1666 = vmatmul.f32.gmra.mxu1 %v17469_v52  ;;  %v1446_v46 = vpop.f32.mrf.mxu0 }
 0x28d   : > { %2184 = vmatmul.f32.gmra.mxu3 %v10444_v37  ;;  %v1447_v14 = vadd.f32 %v1446_v46, %v10546_v30 }
 0x28f   : > { %1943 = vmatmul.f32.gmra.mxu2 %v17473_v26  ;;  %v2117_v2 = vpop.f32.mrf.mxu3 }
 0x290   : > { %v10893_v26 = vadd.f32 %v2117_v2, %v1808_v42  ;;  %v17479_v2 = vld [vmem:[#allocation26_spill] sm:$0xff]  ;;  %v17480_v42 = vld [vmem:[#allocation25_spill] sm:$0xff] }
 0x292   : > { %17476 = vst [vmem:[#allocation104_spill] sm:$0xff] %v10893_v26  ;;  %v1816_v34 = vpop.f32.mrf.mxu2 }
 0x293   : > { %1513 = vmatmul.f32.gmra.mxu0 %v10473_v16 }
 0x294   : > { %1670 = vmatmul.f32.gmra.mxu1 %v10444_v37 }
 0x295   : > { %2188 = vmatmul.f32.gmra.mxu3 %v10473_v16 }
 0x297   : > { %1951 = vmatmul.f32.gmra.mxu2 %v10526_v58  ;;  %v1450_v58 = vpop.f32.mrf.mxu0  ;;  %v2121_v11 = vpop.f32.mrf.mxu3 }
 0x298   : > { %v1451_v57 = vadd.f32 %v1450_v58, %v10570_v23  ;;  %v10906_v46 = vadd.f32 %v2121_v11, %v1816_v34 }
 0x29a   : > { %17478 = vst [vmem:[#allocation109_spill] sm:$0xff] %v10906_v46 }
 0x29b   : > { %1517 = vmatmul.f32.gmra.mxu0 %v10496_v32 }
 0x29c   : > { %1674 = vmatmul.f32.gmra.mxu1 %v10473_v16 }
 0x29d   : > { %2192 = vmatmul.f32.gmra.mxu3 %v10496_v32 }
 0x29f   : > { %1959 = vmatmul.f32.gmra.mxu2 %v10551_v13  ;;  %v1607_v13 = vpop.f32.mrf.mxu1 }
 0x2a0   : > { %v10900_v30 = vadd.f32 %v1607_v13, %v1447_v14  ;;  %v1824_v13 = vpop.f32.mrf.mxu2 }
 0x2a3   : > { %1521 = vmatmul.f32.gmra.mxu0 %v10531_v10 }
 0x2a4   : > { %1678 = vmatmul.f32.gmra.mxu1 %v10496_v32 }
 0x2a5   : > { %2196 = vmatmul.f32.gmra.mxu3 %v10531_v10 }
 0x2a7   : > { %1967 = vmatmul.f32.gmra.mxu2 %v10575_v5  ;;  %v1454_v5 = vpop.f32.mrf.mxu0  ;;  %v1611_v23 = vpop.f32.mrf.mxu1 }
 0x2a8   : > { %v1455_v39 = vadd.f32 %v1454_v5, %v10600_v56  ;;  %v10909_v58 = vadd.f32 %v1611_v23, %v1451_v57  ;;  %v17482_v56 = vld [vmem:[#allocation28_spill] sm:$0xff]  ;;  %v17483_v57 = vld [vmem:[#allocation27_spill] sm:$0xff]  ;;  %v1832_v23 = vpop.f32.mrf.mxu2 }
 0x2ab   : > { %1525 = vmatmul.f32.gmra.mxu0 %v10556_v27 }
 0x2ac   : > { %1682 = vmatmul.f32.gmra.mxu1 %v10531_v10 }
 0x2ad   : > { %2200 = vmatmul.f32.gmra.mxu3 %v10556_v27 }
 0x2af   : > { %1975 = vmatmul.f32.gmra.mxu2 %v10592_v61  ;;  %v2125_v61 = vpop.f32.mrf.mxu3  ;;  %v1458_v14 = vpop.f32.mrf.mxu0 }
 0x2b0   : > { %v10915_v26 = vadd.f32 %v2125_v61, %v1824_v13  ;;  %v17485_v61 = vld [vmem:[#allocation30_spill] sm:$0xff]  ;;  %v1840_v13 = vpop.f32.mrf.mxu2 }
 0x2b2   : > { %17481 = vst [vmem:[#allocation122_spill] sm:$0xff] %v10915_v26 }
 0x2b3   : > { %2254 = vmatmul.f32.vlgmr.msra.gmra.mxu0 %v17477_v48  ;;  %v1615_v48 = vpop.f32.mrf.mxu1 }
 0x2b4   : > { %1686 = vmatmul.f32.gmra.mxu1 %v10556_v27  ;;  %v10918_v11 = vadd.f32 %v1615_v48, %v1455_v39  ;;  %v17487_v48 = vld [vmem:[#allocation32_spill] sm:$0xff] }
 0x2b5   : > { %2864 = vmatmul.f32.vlgmr.msra.gmra.mxu3 %v9708_v35 }
 0x2b7   : > { %2703 = vmatmul.f32.vlgmr.msra.gmra.mxu2 %v9708_v35  ;;  %v1459_v35 = vadd.f32 %v1458_v14, %v10616_v45  ;;  %v2129_v5 = vpop.f32.mrf.mxu3  ;;  %v1462_v34 = vpop.f32.mrf.mxu0  ;;  %v17486_v45 = vld [vmem:[#allocation29_spill] sm:$0xff] }
 0x2bb   : > { %2259 = vmatmul.f32.gmra.mxu0 %v17479_v2  ;;  %v10924_v2 = vadd.f32 %v2129_v5, %v1832_v23  ;;  %v1619_v39 = vpop.f32.mrf.mxu1  ;;  %v1848_v23 = vpop.f32.mrf.mxu2 }
 0x2bc   : > { %2448 = vmatmul.f32.vlgmr.msra.gmra.mxu1 %v17480_v42  ;;  %v10931_v42 = vadd.f32 %v1619_v39, %v1459_v35 }
 0x2bd   : > { %2868 = vmatmul.f32.gmra.mxu3 %v9748_v20  ;;  %17484 = vst [vmem:[#allocation114_spill] sm:$0xff] %v10924_v2 }
 0x2bf   : > { %2707 = vmatmul.f32.gmra.mxu2 %v9748_v20  ;;  %v1463_v20 = vadd.f32 %v1462_v34, %v10635_v59  ;;  %v2133_v14 = vpop.f32.mrf.mxu3  ;;  %v17490_v34 = vld [vmem:[#allocation35_spill] sm:$0xff] }
 0x2c0   : > { %v10937_v59 = vadd.f32 %v2133_v14, %v1840_v13  ;;  %v17493_v13 = vld [vmem:[#allocation39_spill] sm:$0xff] }
 0x2c2   : > { %17489 = vst [vmem:[#allocation119_spill] sm:$0xff] %v10937_v59 }
 0x2c3   : > { %2264 = vmatmul.f32.gmra.mxu0 %v17482_v56  ;;  %v17488_v56 = vld [vmem:[#allocation31_spill] sm:$0xff] }
 0x2c4   : > { %2454 = vmatmul.f32.gmra.mxu1 %v17483_v57  ;;  %v1623_v57 = vpop.f32.mrf.mxu1 }
 0x2c5   : > { %2872 = vmatmul.f32.gmra.mxu3 %v9788_v21  ;;  %v10941_v35 = vadd.f32 %v1623_v57, %v1463_v20 }
 0x2c7   : > { %2711 = vmatmul.f32.gmra.mxu2 %v9788_v21  ;;  %v1466_v21 = vpop.f32.mrf.mxu0  ;;  %v2137_v5 = vpop.f32.mrf.mxu3 }
 0x2c8   : > { %v10946_v39 = vadd.f32 %v2137_v5, %v1848_v23  ;;  %v17496_v5 = vld [vmem:[#allocation43_spill] sm:$0xff] }
 0x2ca   : > { %17492 = vst [vmem:[#allocation124_spill] sm:$0xff] %v10946_v39 }
 0x2cb   : > { %2269 = vmatmul.f32.gmra.mxu0 %v17485_v61  ;;  %v17491_v61 = vld [vmem:[#allocation33_spill] sm:$0xff] }
 0x2cc   : > { %2460 = vmatmul.f32.gmra.mxu1 %v17486_v45 }
 0x2cd   : > { %2876 = vmatmul.f32.gmra.mxu3 %v9819_v29 }
 0x2cf   : > { %2715 = vmatmul.f32.gmra.mxu2 %v9819_v29  ;;  %v1467_v29 = vadd.f32 %v1466_v21, %v10646_v60  ;;  %v1470_v45 = vpop.f32.mrf.mxu0  ;;  %v2141_v14 = vpop.f32.mrf.mxu3 }
 0x2d0   : > { %v1471_v60 = vadd.f32 %v1470_v45, %v10654_v43  ;;  %v1856_v21 = vpop.f32.mrf.mxu2  ;;  %v17499_v45 = vld [vmem:[#allocation47_spill] sm:$0xff] }
 0x2d3   : > { %2274 = vmatmul.f32.gmra.mxu0 %v17487_v48  ;;  %v17494_v48 = vld [vmem:[#allocation37_spill] sm:$0xff] }
 0x2d4   : > { %2466 = vmatmul.f32.gmra.mxu1 %v17488_v56  ;;  %v10955_v56 = vadd.f32 %v2141_v14, %v1856_v21  ;;  %v17501_v21 = vld [vmem:[#allocation51_spill] sm:$0xff] }
 0x2d5   : > { %2880 = vmatmul.f32.gmra.mxu3 %v9850_v8 }
 0x2d6   : > { %17495 = vst [vmem:[#allocation127_spill] sm:$0xff] %v10955_v56  ;;  %v17571_v56 = vld [vmem:[#allocation72_spill] sm:$0xff] }
 0x2d7   : > { %2719 = vmatmul.f32.gmra.mxu2 %v9850_v8  ;;  %v1627_v8 = vpop.f32.mrf.mxu1  ;;  %v2145_v23 = vpop.f32.mrf.mxu3 }
 0x2d8   : > { %v10951_v20 = vadd.f32 %v1627_v8, %v1467_v29  ;;  %v1864_v29 = vpop.f32.mrf.mxu2  ;;  %v17500_v8 = vld [vmem:[#allocation45_spill] sm:$0xff] }
 0x2db   : > { %2279 = vmatmul.f32.gmra.mxu0 %v17490_v34  ;;  %v17497_v34 = vld [vmem:[#allocation41_spill] sm:$0xff] }
 0x2dc   : > { %2472 = vmatmul.f32.gmra.mxu1 %v17491_v61 }
 0x2dd   : > { %2884 = vmatmul.f32.gmra.mxu3 %v17396_v49 }
 0x2df   : > { %2723 = vmatmul.f32.gmra.mxu2 %v17396_v49  ;;  %v1474_v49 = vpop.f32.mrf.mxu0  ;;  %v1631_v43 = vpop.f32.mrf.mxu1 }
 0x2e0   : > { %v1475_v57 = vadd.f32 %v1474_v49, %v10666_v28  ;;  %v10962_v61 = vadd.f32 %v1631_v43, %v1471_v60  ;;  %v2149_v28 = vpop.f32.mrf.mxu3  ;;  %v17503_v49 = vld [vmem:[#allocation49_spill] sm:$0xff] }
 0x2e3   : > { %2284 = vmatmul.f32.gmra.mxu0 %v17493_v13 }
 0x2e4   : > { %2478 = vmatmul.f32.gmra.mxu1 %v17494_v48 }
 0x2e5   : > { %2888 = vmatmul.f32.gmra.mxu3 %v17398_v38 }
 0x2e7   : > { %2727 = vmatmul.f32.gmra.mxu2 %v17398_v38  ;;  %v10964_v38 = vadd.f32 %v2145_v23, %v1864_v29  ;;  %v1478_v14 = vpop.f32.mrf.mxu0  ;;  %v1635_v13 = vpop.f32.mrf.mxu1  ;;  %v17507_v23 = vld [vmem:[#allocation53_spill] sm:$0xff] }
 0x2e8   : > { %v1479_v48 = vadd.f32 %v1478_v14, %v10676_v47  ;;  %v10972_v60 = vadd.f32 %v1635_v13, %v1475_v57  ;;  %v2153_v47 = vpop.f32.mrf.mxu3  ;;  %v17506_v57 = vld [vmem:[#allocation55_spill] sm:$0xff] }
 0x2e9   : > { %17498 = vst [vmem:[#allocation132_spill] sm:$0xff] %v10964_v38  ;;  %v17509_v13 = vld [vmem:[#allocation59_spill] sm:$0xff] }
 0x2ea   : > { %17502 = vst [vmem:[#allocation129_spill] sm:$0xff] %v10972_v60  ;;  %v17569_v38 = vld [vmem:[#allocation107_spill] sm:$0xff] }
 0x2eb   : > { %2289 = vmatmul.f32.gmra.mxu0 %v17496_v5  ;;  %v5870_v5 = vld [vmem:[%s9538_s6 + $0xf0] sm:$0xff] }
 0x2ec   : > { %2484 = vmatmul.f32.gmra.mxu1 %v17497_v34  ;;  %v10978_v34 = vand.u32 4294901760, %v5870_v5 }
 0x2ed   : > { %2892 = vmatmul.f32.gmra.mxu3 %v17400_v3 }
 0x2ee   : > { %17504 = vst [vmem:[#allocation133_spill] sm:$0xff] %v10978_v34  ;;  %5873 = vmatpush.xpose.msrb.mxu0 %v10978_v34  ;;  %6596 = vmatpush.xpose.msrb.mxu3 %v10978_v34 }
 0x2ef   : > { %2731 = vmatmul.f32.gmra.mxu2 %v17400_v3  ;;  %v1872_v3 = vpop.f32.mrf.mxu2  ;;  %v1639_v29 = vpop.f32.mrf.mxu1 }
 0x2f0   : > { %v2157_v14 = vpop.f32.mrf.mxu3  ;;  %v11003_v39 = vadd.f32 %v1639_v29, %v1479_v48  ;;  %v17518_v29 = vld [vmem:[#allocation65_spill] sm:$0xff] }
 0x2f2   : > { %17512 = vst [vmem:[#allocation24_spill] sm:$0xff] %v11003_v39 }
 0x2f3   : > { %2294 = vmatmul.f32.gmra.mxu0 %v17499_v45  ;;  %v10990_v45 = vadd.f32 %v2149_v28, %v1872_v3 }
 0x2f4   : > { %2490 = vmatmul.f32.gmra.mxu1 %v17500_v8 }
 0x2f5   : > { %2896 = vmatmul.f32.gmra.mxu3 %v17402_v25  ;;  %17508 = vst [vmem:[#allocation138_spill] sm:$0xff] %v10990_v45  ;;  %v17564_v45 = vld [vmem:[#allocation34_spill] sm:$0xff] }
 0x2f7   : > { %2735 = vmatmul.f32.gmra.mxu2 %v17402_v25  ;;  %v10981_v25 = vsub.f32 %v5870_v5, %v10978_v34  ;;  %v1880_v43 = vpop.f32.mrf.mxu2  ;;  %v1643_v28 = vpop.f32.mrf.mxu1 }
 0x2f8   : > { %v2161_v2 = vpop.f32.mrf.mxu3 }
 0x2f9   : > { %17505 = vst [vmem:[#allocation137_spill] sm:$0xff] %v10981_v25  ;;  %6388 = vmatpush.xpose.msrb.mxu2 %v10981_v25  ;;  %v16876_v8 = vand.u32 4294901760, %v10981_v25 }
 0x2fb   : > { %2299 = vmatmul.f32.gmra.mxu0 %v17501_v21  ;;  %v17510_v21 = vld [vmem:[#allocation57_spill] sm:$0xff] }
 0x2fc   : > { %2496 = vmatmul.f32.gmra.mxu1 %v17503_v49  ;;  %v6164_v49 = vsub.f32 %v10981_v25, %v16876_v8  ;;  %v11008_v8 = vadd.f32 %v2153_v47, %v1880_v43  ;;  %v17517_v43 = vld [vmem:[#allocation67_spill] sm:$0xff] }
 0x2fd   : > { %2900 = vmatmul.f32.gmra.mxu3 %v17404_v19 }
 0x2fe   : > { %v6165_v5 = vand.u32 4294901760, %v6164_v49  ;;  %17515 = vst [vmem:[#allocation25_spill] sm:$0xff] %v11008_v8  ;;  %v17565_v8 = vld [vmem:[#allocation36_spill] sm:$0xff] }
 0x2ff   : > { %2739 = vmatmul.f32.gmra.mxu2 %v17404_v19  ;;  %v1482_v19 = vpop.f32.mrf.mxu0  ;;  %v1647_v47 = vpop.f32.mrf.mxu1 }
 0x300   : > { %6166 = vmatpush.xpose.msrb.mxu1 %v6165_v5  ;;  %v1483_v3 = vadd.f32 %v1482_v19, %v10694_v55 }
 0x302   : > { %v11021_v49 = vadd.f32 %v1643_v28, %v1483_v3 }
 0x303   : > { %2304 = vmatmul.f32.gmra.mxu0 %v17506_v57 }
 0x304   : > { %2502 = vmatmul.f32.gmra.mxu1 %v17507_v23  ;;  %v17511_v23 = vld [vmem:[#allocation63_spill] sm:$0xff]  ;;  %17519 = vst [vmem:[#allocation27_spill] sm:$0xff] %v11021_v49 }
 0x305   : > { %2904 = vmatmul.f32.gmra.mxu3 %v17406_v24 }
 0x307   : > { %2743 = vmatmul.f32.gmra.mxu2 %v17406_v24  ;;  %v1888_v24 = vpop.f32.mrf.mxu2  ;;  %v1486_v57 = vpop.f32.mrf.mxu0 }
 0x308   : > { %v1487_v19 = vadd.f32 %v1486_v57, %v10711_v12 }
 0x30b   : > { %2309 = vmatmul.f32.gmra.mxu0 %v17509_v13  ;;  %v5868_v13 = vld [vmem:[%s9538_s6 + $0xe0] sm:$0xff] }
 0x30c   : > { %2508 = vmatmul.f32.gmra.mxu1 %v17510_v21  ;;  %v17513_v21 = vld [vmem:[#allocation61_spill] sm:$0xff]  ;;  %v11006_v59 = vand.u32 4294901760, %v5868_v13 }
 0x30d   : > { %2908 = vmatmul.f32.gmra.mxu3 %v17408_v6 }
 0x30e   : > { %17514 = vst [vmem:[#allocation26_spill] sm:$0xff] %v11006_v59  ;;  %5875 = vmatpush.xpose.msrb.mxu0 %v11006_v59  ;;  %6598 = vmatpush.xpose.msrb.mxu3 %v11006_v59 }
 0x30f   : > { %2747 = vmatmul.f32.gmra.mxu2 %v17408_v6  ;;  %v11013_v6 = vsub.f32 %v5868_v13, %v11006_v59  ;;  %v1896_v55 = vpop.f32.mrf.mxu2  ;;  %v1490_v48 = vpop.f32.mrf.mxu0  ;;  %v11028_v13 = vadd.f32 %v1647_v47, %v1487_v19  ;;  %v17525_v19 = vld [vmem:[#allocation75_spill] sm:$0xff]  ;;  %v17526_v47 = vld [vmem:[#allocation73_spill] sm:$0xff]  ;;  %v17574_v59 = vld [vmem:[#allocation78_spill] sm:$0xff] }
 0x310   : > { %v1491_v5 = vadd.f32 %v1490_v48, %v10725_v40  ;;  %v1651_v40 = vpop.f32.mrf.mxu1  ;;  %v11038_v48 = vadd.f32 %v2161_v2, %v1896_v55  ;;  %v17530_v55 = vld [vmem:[#allocation79_spill] sm:$0xff] }
 0x311   : > { %17516 = vst [vmem:[#allocation28_spill] sm:$0xff] %v11013_v6  ;;  %6391 = vmatpush.xpose.msrb.mxu2 %v11013_v6  ;;  %v16877_v12 = vand.u32 4294901760, %v11013_v6 }
 0x312   : > { %17521 = vst [vmem:[#allocation29_spill] sm:$0xff] %v11028_v13  ;;  %v17588_v13 = vld [vmem:[#allocation44_spill] sm:$0xff] }
 0x313   : > { %2314 = vmatmul.f32.gmra.mxu0 %v17511_v23  ;;  %v2165_v23 = vpop.f32.mrf.mxu3  ;;  %v6170_v28 = vsub.f32 %v11013_v6, %v16877_v12  ;;  %17524 = vst [vmem:[#allocation32_spill] sm:$0xff] %v11038_v48  ;;  %v17577_v6 = vld [vmem:[#allocation40_spill] sm:$0xff] }
 0x314   : > { %2514 = vmatmul.f32.gmra.mxu1 %v17513_v21  ;;  %v17522_v21 = vld [vmem:[#allocation71_spill] sm:$0xff] }
 0x315   : > { %2912 = vmatmul.f32.gmra.mxu3 %v17410_v44 }
 0x317   : > { %2751 = vmatmul.f32.gmra.mxu2 %v17410_v44  ;;  %v11023_v44 = vadd.f32 %v2157_v14, %v1888_v24  ;;  %v1904_v57 = vpop.f32.mrf.mxu2  ;;  %v1494_v14 = vpop.f32.mrf.mxu0  ;;  %v17523_v24 = vld [vmem:[#allocation69_spill] sm:$0xff] }
 0x319   : > { %17520 = vst [vmem:[#allocation30_spill] sm:$0xff] %v11023_v44 }
 0x31b   : > { %2319 = vmatmul.f32.gmra.mxu0 %v17517_v43  ;;  %v2169_v3 = vpop.f32.mrf.mxu3  ;;  %v1495_v43 = vadd.f32 %v1494_v14, %v10743_v63 }
 0x31c   : > { %2520 = vmatmul.f32.gmra.mxu1 %v17518_v29  ;;  %v11043_v29 = vadd.f32 %v1651_v40, %v1491_v5  ;;  %v17531_v5 = vld [vmem:[#allocation77_spill] sm:$0xff]  ;;  %v11060_v40 = vadd.f32 %v2165_v23, %v1904_v57 }
 0x31d   : > { %2916 = vmatmul.f32.gmra.mxu3 %v17414_v0 }
 0x31e   : > { %17527 = vst [vmem:[#allocation31_spill] sm:$0xff] %v11043_v29 }
 0x31f   : > { %2755 = vmatmul.f32.gmra.mxu2 %v17414_v0  ;;  %v6171_v0 = vand.u32 4294901760, %v6170_v28  ;;  %v1655_v28 = vpop.f32.mrf.mxu1  ;;  %17532 = vst [vmem:[#allocation39_spill] sm:$0xff] %v11060_v40 }
 0x321   : > { %6172 = vmatpush.xpose.msrb.mxu1 %v6171_v0 }
 0x323   : > { %2324 = vmatmul.f32.gmra.mxu0 %v17522_v21  ;;  %v1912_v21 = vpop.f32.mrf.mxu2  ;;  %v2173_v63 = vpop.f32.mrf.mxu3 }
 0x324   : > { %2526 = vmatmul.f32.gmra.mxu1 %v17523_v24  ;;  %v1498_v24 = vpop.f32.mrf.mxu0  ;;  %v11065_v12 = vadd.f32 %v2169_v3, %v1912_v21  ;;  %v17538_v21 = vld [vmem:[#allocation86_spill] sm:$0xff] }
 0x325   : > { %2920 = vmatmul.f32.gmra.mxu3 %v17418_v51 }
 0x326   : > { %17534 = vst [vmem:[#allocation43_spill] sm:$0xff] %v11065_v12 }
 0x327   : > { %2759 = vmatmul.f32.gmra.mxu2 %v17418_v51  ;;  %v5866_v51 = vld [vmem:[%s9538_s6 + $0xd0] sm:$0xff] }
 0x328   : > { %v11048_v0 = vand.u32 4294901760, %v5866_v51 }
 0x32a   : > { %17528 = vst [vmem:[#allocation35_spill] sm:$0xff] %v11048_v0  ;;  %v11051_v2 = vsub.f32 %v5866_v51, %v11048_v0  ;;  %5877 = vmatpush.xpose.msrb.mxu0 %v11048_v0  ;;  %6600 = vmatpush.xpose.msrb.mxu3 %v11048_v0  ;;  %v11063_v51 = vadd.f32 %v1655_v28, %v1495_v43  ;;  %v17537_v43 = vld [vmem:[#allocation87_spill] sm:$0xff]  ;;  %v17570_v0 = vld [vmem:[#allocation64_spill] sm:$0xff] }
 0x32b   : > { %2329 = vmatmul.f32.gmra.mxu0 %v17525_v19  ;;  %v1499_v19 = vadd.f32 %v1498_v24, %v10763_v17  ;;  %v2177_v46 = vpop.f32.mrf.mxu3 }
 0x32c   : > { %2532 = vmatmul.f32.gmra.mxu1 %v17526_v47  ;;  %17529 = vst [vmem:[#allocation33_spill] sm:$0xff] %v11051_v2  ;;  %6394 = vmatpush.xpose.msrb.mxu2 %v11051_v2  ;;  %v1502_v14 = vpop.f32.mrf.mxu0  ;;  %v1659_v47 = vpop.f32.mrf.mxu1  ;;  %v16878_v26 = vand.u32 4294901760, %v11051_v2 }
 0x32d   : > { %2924 = vmatmul.f32.gmra.mxu3 %v17422_v7  ;;  %17533 = vst [vmem:[#allocation37_spill] sm:$0xff] %v11063_v51  ;;  %v1503_v24 = vadd.f32 %v1502_v14, %v10777_v54  ;;  %v17544_v14 = vld [vmem:[#allocation88_spill] sm:$0xff] }
 0x32f   : > { %2763 = vmatmul.f32.gmra.mxu2 %v17422_v7  ;;  %v1920_v7 = vpop.f32.mrf.mxu2 }
 0x333   : > { %2334 = vmatmul.f32.gmra.mxu0 %v17530_v55  ;;  %v17535_v55 = vld [vmem:[#allocation83_spill] sm:$0xff]  ;;  %v11078_v28 = vpop.f32.mrf.mxu3 }
 0x334   : > { %2538 = vmatmul.f32.gmra.mxu1 %v17531_v5  ;;  %v17536_v5 = vld [vmem:[#allocation81_spill] sm:$0xff]  ;;  %v1506_v57 = vpop.f32.mrf.mxu0  ;;  %v1663_v3 = vpop.f32.mrf.mxu1  ;;  %17539 = vst [vmem:[#allocation41_spill] sm:$0xff] %v11078_v28 }
 0x335   : > { %2928 = vmatmul.f32.gmra.mxu3 %v17426_v53  ;;  %v11107_v18 = vadd.f32 %v1663_v3, %v1503_v24  ;;  %v17553_v3 = vld [vmem:[#allocation50_spill] sm:$0xff] }
 0x337   : > { %2767 = vmatmul.f32.gmra.mxu2 %v17426_v53  ;;  %v6176_v53 = vsub.f32 %v11051_v2, %v16878_v26  ;;  %v1928_v17 = vpop.f32.mrf.mxu2  ;;  %17548 = vst [vmem:[#allocation59_spill] sm:$0xff] %v11107_v18  ;;  %v17576_v2 = vld [vmem:[#allocation38_spill] sm:$0xff] }
 0x338   : > { %v1322_v25 = vadd.f32 %v17577_v6, %v17576_v2  ;;  %v17583_v2 = vld [vmem:[#allocation117_spill] sm:$0xff] }
 0x339   : > { %v6177_v23 = vand.u32 4294901760, %v6176_v53 }
 0x33b   : > { %2339 = vmatmul.f32.gmra.mxu0 %v17535_v55  ;;  %6178 = vmatpush.xpose.msrb.mxu1 %v6177_v23  ;;  %v11081_v55 = vadd.f32 %v1659_v47, %v1499_v19  ;;  %v17543_v23 = vld [vmem:[#allocation91_spill] sm:$0xff]  ;;  %v11097_v47 = vadd.f32 %v2173_v63, %v1920_v7  ;;  %v17552_v7 = vld [vmem:[#allocation92_spill] sm:$0xff] }
 0x33c   : > { %2544 = vmatmul.f32.gmra.mxu1 %v17536_v5  ;;  %v5864_v5 = vld [vmem:[%s9538_s6 + $0xc0] sm:$0xff]  ;;  %v1510_v53 = vpop.f32.mrf.mxu0  ;;  %v1667_v54 = vpop.f32.mrf.mxu1 }
 0x33d   : > { %2932 = vmatmul.f32.gmra.mxu3 %v17431_v33  ;;  %17540 = vst [vmem:[#allocation47_spill] sm:$0xff] %v11081_v55  ;;  %v11084_v26 = vand.u32 4294901760, %v5864_v5 }
 0x33e   : > { %17546 = vst [vmem:[#allocation55_spill] sm:$0xff] %v11097_v47 }
 0x33f   : > { %2771 = vmatmul.f32.gmra.mxu2 %v17431_v33  ;;  %17541 = vst [vmem:[#allocation45_spill] sm:$0xff] %v11084_v26  ;;  %v11087_v33 = vsub.f32 %v5864_v5, %v11084_v26  ;;  %5879 = vmatpush.xpose.msrb.mxu0 %v11084_v26  ;;  %v11094_v19 = vpop.f32.mrf.mxu2 }
 0x340   : > { %6602 = vmatpush.xpose.msrb.mxu3 %v11084_v26  ;;  %17545 = vst [vmem:[#allocation49_spill] sm:$0xff] %v11094_v19  ;;  %v17580_v19 = vld [vmem:[#allocation101_spill] sm:$0xff] }
 0x341   : > { %17542 = vst [vmem:[#allocation51_spill] sm:$0xff] %v11087_v33  ;;  %6397 = vmatpush.xpose.msrb.mxu2 %v11087_v33  ;;  %v16879_v5 = vand.u32 4294901760, %v11087_v33 }
 0x343   : > { %2344 = vmatmul.f32.gmra.mxu0 %v17537_v43  ;;  %v1507_v43 = vadd.f32 %v1506_v57, %v10802_v1  ;;  %v11117_v1 = vadd.f32 %v2177_v46, %v1928_v17  ;;  %v1403_v57 = vadd.f32 %v10755_v22, %v17552_v7 }
 0x344   : > { %2550 = vmatmul.f32.gmra.mxu1 %v17538_v21  ;;  %v11100_v21 = vpop.f32.mrf.mxu3 }
 0x345   : > { %2936 = vmatmul.f32.gmra.mxu3 %v17436_v62  ;;  %17547 = vst [vmem:[#allocation53_spill] sm:$0xff] %v11100_v21  ;;  %v11123_v24 = vadd.f32 %v17553_v3, %v1403_v57  ;;  %v5860_v3 = vld [vmem:[%s9538_s6 + $0xa0] sm:$0xff] }
 0x346   : > { %17551 = vst [vmem:[#allocation61_spill] sm:$0xff] %v11117_v1  ;;  %v17558_v1 = vld [vmem:[#allocation60_spill] sm:$0xff]  ;;  %v11146_v40 = vand.u32 4294901760, %v5860_v3 }
 0x347   : > { %2775 = vmatmul.f32.gmra.mxu2 %v17436_v62  ;;  %v11110_v62 = vand.u32 4294901760, %v5862_v9 }
 0x348   : > { %17559 = vst [vmem:[#allocation65_spill] sm:$0xff] %v11146_v40  ;;  %v11149_v48 = vsub.f32 %v5860_v3, %v11146_v40 }
 0x349   : > { %17549 = vst [vmem:[#allocation57_spill] sm:$0xff] %v11110_v62  ;;  %v11113_v63 = vsub.f32 %v5862_v9, %v11110_v62  ;;  %5881 = vmatpush.xpose.msrb.mxu0 %v11110_v62  ;;  %6604 = vmatpush.xpose.msrb.mxu3 %v11110_v62  ;;  %v11129_v9 = vmul.f32 0.70710677, %v11123_v24 }
 0x34a   : > { %17560 = vst [vmem:[#allocation71_spill] sm:$0xff] %v11149_v48  ;;  %v16886_v62 = vand.u32 4294901760, %v11149_v48 }
 0x34b   : > { %2349 = vmatmul.f32.gmra.mxu0 %v17543_v23  ;;  %v6182_v23 = vsub.f32 %v11087_v33, %v16879_v5  ;;  %17550 = vst [vmem:[#allocation63_spill] sm:$0xff] %v11113_v63  ;;  %6400 = vmatpush.xpose.msrb.mxu2 %v11113_v63  ;;  %v11126_v5 = vadd.f32 %v1667_v54, %v1507_v43  ;;  %v16880_v46 = vand.u32 4294901760, %v11113_v63  ;;  %v17556_v54 = vld [vmem:[#allocation97_spill] sm:$0xff]  ;;  %v17557_v43 = vld [vmem:[#allocation52_spill] sm:$0xff] }
 0x34c   : > { %2556 = vmatmul.f32.gmra.mxu1 %v17544_v14  ;;  %v3120_v47 = vmul.f32 %v11129_v9, %v11129_v9  ;;  %v1407_v57 = vadd.f32 %v17557_v43, %v17556_v54  ;;  %v17563_v54 = vld [vmem:[#allocation62_spill] sm:$0xff] }
 0x34d   : > { %2940 = vmatmul.f32.gmra.mxu3 %v17441_v4  ;;  %v6183_v14 = vand.u32 4294901760, %v6182_v23  ;;  %v17554_v23 = vld [vmem:[#allocation76_spill] sm:$0xff]  ;;  %17555 = vst [vmem:[#allocation67_spill] sm:$0xff] %v11126_v5  ;;  %v6188_v22 = vsub.f32 %v11113_v63, %v16880_v46  ;;  %5883 = vmatpush.xpose.msrb.mxu0 %v11146_v40  ;;  %v1415_v63 = vadd.f32 %v17570_v0, %v17569_v38 }
 0x34e   : > { %v11137_v17 = vmin.f32 %v3120_v47, 16.0  ;;  %v11144_v12 = vadd.f32 %v17558_v1, %v1407_v57  ;;  %6606 = vmatpush.xpose.msrb.mxu3 %v11146_v40  ;;  %v1316_v40 = vadd.f32 %v17565_v8, %v17564_v45  ;;  %v6194_v45 = vsub.f32 %v11149_v48, %v16886_v62 }
 0x34f   : > { %6184 = vmatpush.xpose.msrb.mxu1 %v6183_v14  ;;  %v1511_v14 = vadd.f32 %v1510_v53, %v17554_v23  ;;  %v6189_v7 = vand.u32 4294901760, %v6188_v22  ;;  %6403 = vmatpush.xpose.msrb.mxu2 %v11149_v48 }
 0x350   : > { %v3133_v53 = vmul.f32 3.8918573e-05, %v11137_v17  ;;  %v11155_v22 = vmul.f32 0.70710677, %v11144_v12 }
 0x352   : > { %v3134_v23 = vadd.f32 0.001143296, %v3133_v53  ;;  %v17562_v53 = vld [vmem:[#allocation54_spill] sm:$0xff]  ;;  %v3200_v3 = vmul.f32 %v11155_v22, %v11155_v22 }
 0x353   : > { %6190 = vmatpush.xpose.msrb.mxu1 %v6189_v7  ;;  %v17561_v7 = vld [vmem:[#allocation102_spill] sm:$0xff] }
 0x354   : > { %v3135_v47 = vmul.f32 %v3134_v23, %v11137_v17  ;;  %v1411_v1 = vadd.f32 %v17562_v53, %v17561_v7  ;;  %v11169_v44 = vmin.f32 %v3200_v3, 16.0  ;;  %v1514_v7 = vpop.f32.mrf.mxu0  ;;  %v1671_v53 = vpop.f32.mrf.mxu1 }
 0x355   : > { %v11176_v26 = vadd.f32 %v1671_v53, %v1511_v14  ;;  %v3122_v14 = vmul.f32 2.1237322e-06, %v11137_v17 }
 0x356   : > { %v11161_v43 = vadd.f32 %v17563_v54, %v1411_v1  ;;  %v3136_v57 = vadd.f32 0.014752088, %v3135_v47  ;;  %v17566_v1 = vld [vmem:[#allocation96_spill] sm:$0xff]  ;;  %v17567_v47 = vld [vmem:[#allocation95_spill] sm:$0xff]  ;;  %v1515_v54 = vadd.f32 %v1514_v7, %v1316_v40  ;;  %v3213_v3 = vmul.f32 3.8918573e-05, %v11169_v44 }
 0x357   : > { %2354 = vmatmul.f32.gmra.mxu0 %v17566_v1  ;;  %2562 = vmatmul.f32.gmra.mxu1 %v17567_v47  ;;  %17568 = vst [vmem:[#allocation69_spill] sm:$0xff] %v11176_v26  ;;  %v11187_v1 = vadd.f32 %v17571_v56, %v1415_v63  ;;  %v6195_v47 = vand.u32 4294901760, %v6194_v45  ;;  %v17572_v56 = vld [vmem:[#allocation112_spill] sm:$0xff]  ;;  %v17573_v63 = vld [vmem:[#allocation66_spill] sm:$0xff] }
 0x358   : > { %v11166_v46 = vmul.f32 0.70710677, %v11161_v43  ;;  %v3137_v23 = vmul.f32 %v3136_v57, %v11137_v17  ;;  %v3214_v0 = vadd.f32 0.001143296, %v3213_v3  ;;  %v1419_v45 = vadd.f32 %v17573_v63, %v17572_v56 }
 0x359   : > { %6196 = vmatpush.xpose.msrb.mxu1 %v6195_v47  ;;  %v11194_v7 = vmul.f32 0.70710677, %v11187_v1 }
 0x35a   : > { %v3280_v57 = vmul.f32 %v11166_v46, %v11166_v46  ;;  %v3138_v8 = vadd.f32 0.112945676, %v3137_v23  ;;  %v3123_v23 = vadd.f32 0.00028619796, %v3122_v14  ;;  %v3215_v48 = vmul.f32 %v3214_v0, %v11169_v44 }
 0x35b   : > { %v11203_v33 = vadd.f32 %v17574_v59, %v1419_v45  ;;  %v3202_v45 = vmul.f32 2.1237322e-06, %v11169_v44 }
 0x35c   : > { %v11189_v40 = vmin.f32 %v3280_v57, 16.0  ;;  %v3139_v38 = vmul.f32 %v3138_v8, %v11137_v17  ;;  %v3360_v57 = vmul.f32 %v11194_v7, %v11194_v7  ;;  %v3124_v8 = vmul.f32 %v3123_v23, %v11137_v17 }
 0x35d   : > { %v3216_v21 = vadd.f32 0.014752088, %v3215_v48  ;;  %v3203_v26 = vadd.f32 0.00028619796, %v3202_v45 }
 0x35e   : > { %v3293_v53 = vmul.f32 3.8918573e-05, %v11189_v40  ;;  %v3140_v62 = vadd.f32 0.4994258, %v3139_v38  ;;  %v11207_v34 = vmin.f32 %v3360_v57, 16.0 }
 0x35f   : > { %v11211_v38 = vmul.f32 0.70710677, %v11203_v33  ;;  %v3125_v0 = vadd.f32 0.0036580483, %v3124_v8 }
 0x360   : > { %v3294_v47 = vadd.f32 0.001143296, %v3293_v53  ;;  %v3141_v3 = vmul.f32 %v3140_v62, %v11137_v17  ;;  %v3217_v53 = vmul.f32 %v3216_v21, %v11169_v44  ;;  %v3373_v59 = vmul.f32 3.8918573e-05, %v11207_v34  ;;  %v11227_v21 = vpop.f32.mrf.mxu3 }
 0x361   : > { %v3440_v62 = vmul.f32 %v11211_v38, %v11211_v38  ;;  %v3126_v48 = vmul.f32 %v3125_v0, %v11137_v17  ;;  %v17578_v0 = vld [vmem:[#allocation93_spill] sm:$0xff]  ;;  %v3362_v10 = vmul.f32 2.1237322e-06, %v11207_v34 }
 0x362   : > { %v3295_v14 = vmul.f32 %v3294_v47, %v11189_v40  ;;  %v11213_v56 = vadd.f32 1.0, %v3141_v3  ;;  %v3218_v23 = vadd.f32 0.112945676, %v3217_v53  ;;  %v3374_v57 = vadd.f32 0.001143296, %v3373_v59  ;;  %v11225_v3 = vpop.f32.mrf.mxu2  ;;  %2779 = vmatmul.f32.gmra.mxu2 %v17441_v4  ;;  %2944 = vmatmul.f32.gmra.mxu3 %v17578_v0 }
 0x363   : > { %v11223_v8 = vmin.f32 %v3440_v62, 16.0  ;;  %17575 = vst [vmem:[#allocation75_spill] sm:$0xff] %v11225_v3  ;;  %v3127_v53 = vadd.f32 0.05243302, %v3126_v48  ;;  %v1675_v62 = vpop.f32.mrf.mxu1  ;;  %v17581_v3 = vld [vmem:[#allocation98_spill] sm:$0xff] }
 0x364   : > { %v3296_v63 = vadd.f32 0.014752088, %v3295_v14  ;;  %8964 = vrcp.f32 %v11213_v56  ;;  %v5858_v14 = vld [vmem:[%s9538_s6 + $0x90] sm:$0xff]  ;;  %v3219_v28 = vmul.f32 %v3218_v23, %v11169_v44  ;;  %2568 = vmatmul.f32.gmra.mxu1 %v17581_v3  ;;  %v3375_v27 = vmul.f32 %v3374_v57, %v11207_v34  ;;  %v17586_v3 = vld [vmem:[#allocation85_spill] sm:$0xff] }
 0x365   : > { %v11235_v59 = vand.u32 4294901760, %v5858_v14  ;;  %v11242_v6 = vadd.f32 %v1675_v62, %v1515_v54  ;;  %v17584_v48 = vld [vmem:[#allocation74_spill] sm:$0xff]  ;;  %v3128_v54 = vmul.f32 %v3127_v53, %v11137_v17  ;;  %v3204_v62 = vmul.f32 %v3203_v26, %v11169_v44 }
 0x366   : > { %v3297_v47 = vmul.f32 %v3296_v63, %v11189_v40  ;;  %v1518_v63 = vpop.f32.mrf.mxu0  ;;  %2359 = vmatmul.f32.gmra.mxu0 %v17580_v19  ;;  %v1423_v23 = vadd.f32 %v17584_v48, %v17583_v2  ;;  %v3282_v19 = vmul.f32 2.1237322e-06, %v11189_v40  ;;  %v3220_v57 = vadd.f32 0.4994258, %v3219_v28 }
 0x367   : > { %17579 = vst [vmem:[#allocation73_spill] sm:$0xff] %v11235_v59  ;;  %v11240_v5 = vadd.f32 %v1518_v63, %v1322_v25  ;;  %v11249_v15 = vsub.f32 %v5858_v14, %v11235_v59  ;;  %5885 = vmatpush.xpose.msrb.mxu0 %v11235_v59  ;;  %6608 = vmatpush.xpose.msrb.mxu3 %v11235_v59  ;;  %v3453_v25 = vmul.f32 3.8918573e-05, %v11223_v8  ;;  %v3376_v2 = vadd.f32 0.014752088, %v3375_v27 }
 0x368   : > { %17582 = vst [vmem:[#allocation79_spill] sm:$0xff] %v11242_v6  ;;  %v3298_v45 = vadd.f32 0.112945676, %v3297_v47  ;;  %v11257_v63 = vadd.f32 %v17586_v3, %v1423_v23  ;;  %v3283_v48 = vadd.f32 0.00028619796, %v3282_v19  ;;  %v3221_v18 = vmul.f32 %v3220_v57, %v11169_v44 }
 0x369   : > { %17585 = vst [vmem:[#allocation77_spill] sm:$0xff] %v11249_v15  ;;  %6406 = vmatpush.xpose.msrb.mxu2 %v11249_v15  ;;  %v3454_v47 = vadd.f32 0.001143296, %v3453_v25  ;;  %v3129_v6 = vadd.f32 0.18741608, %v3128_v54  ;;  %v3377_v3 = vmul.f32 %v3376_v2, %v11207_v34  ;;  %vm3148_vm1 = vweird.f32 %v11213_v56 }
 0x36a   : > { %v11244_v4 = vpop.eup %8964  ;;  %v3299_v59 = vmul.f32 %v3298_v45, %v11189_v40  ;;  %v11266_v28 = vmul.f32 0.70710677, %v11257_v63  ;;  %v3205_v23 = vadd.f32 0.0036580483, %v3204_v62  ;;  %v3284_v55 = vmul.f32 %v3283_v48, %v11189_v40 }
 0x36b   : > { %v3144_v14 = vmul.f32 %v11244_v4, %v11213_v56  ;;  %v3455_v27 = vmul.f32 %v3454_v47, %v11223_v8  ;;  %v3130_v19 = vmul.f32 %v3129_v6, %v11137_v17  ;;  %v11273_v45 = vadd.f32 1.0, %v3221_v18 }
 0x36c   : > { %v3300_v26 = vadd.f32 0.4994258, %v3299_v59  ;;  %v3520_v25 = vmul.f32 %v11266_v28, %v11266_v28  ;;  %v3206_v57 = vmul.f32 %v3205_v23, %v11169_v44  ;;  %v3363_v62 = vadd.f32 0.00028619796, %v3362_v10 }
 0x36d   : > { %v3145_v53 = vsub.f32 1.0, %v3144_v14  ;;  %v3378_v14 = vadd.f32 0.112945676, %v3377_v3  ;;  %v3285_v2 = vadd.f32 0.0036580483, %v3284_v55  ;;  %8966 = vrcp.f32 %v11273_v45 }
 0x36e   : > { %v3301_v32 = vmul.f32 %v3300_v26, %v11189_v40  ;;  %v3456_v48 = vadd.f32 0.014752088, %v3455_v27  ;;  %v3131_v59 = vadd.f32 1.1283791, %v3130_v19  ;;  %v11281_v47 = vmin.f32 %v3520_v25, 16.0 }
 0x36f   : > { %v3146_v54 = vmul.f32 %v11244_v4, %v3145_v53  ;;  %vm3149_vm0 = vweird.f32 %v11244_v4  ;;  %v3207_v17 = vadd.f32 0.05243302, %v3206_v57  ;;  %v3379_v6 = vmul.f32 %v3378_v14, %v11207_v34 }
 0x370   : > { %v3152_v10 = vand.u32 2147483647, %v11213_v56  ;;  %v3154_v55 = vand.u32 2147483648, %v11213_v56  ;;  %v3364_v53 = vmul.f32 %v3363_v62, %v11207_v34  ;;  %v3286_v23 = vmul.f32 %v3285_v2, %v11189_v40  ;;  %vm3150_vm2 = vmor %vm3148_vm1, %vm3149_vm0 }
 0x371   : > { %v3147_v18 = vadd.f32 %v11244_v4, %v3146_v54  ;;  %v11291_v3 = vadd.f32 1.0, %v3301_v32  ;;  %v3457_v26 = vmul.f32 %v3456_v48, %v11223_v8  ;;  %v11295_v27 = vmul.f32 0.70710677, %v10847_v50 }
 0x372   : > { %v3533_v19 = vmul.f32 3.8918573e-05, %v11281_v47  ;;  %v3208_v54 = vmul.f32 %v3207_v17, %v11169_v44  ;;  %v3380_v57 = vadd.f32 0.4994258, %v3379_v6  ;;  %v3132_v14 = vmul.f32 %v3131_v59, %v11129_v9  ;;  %v11307_v17 = vpop.f32.mrf.mxu3  ;;  %v17587_v6 = vld [vmem:[#allocation42_spill] sm:$0xff]  ;;  %v17589_v59 = vld [vmem:[#allocation100_spill] sm:$0xff] }
 0x373   : > { %v3151_v25 = vsel %vm3150_vm2, %v11244_v4, %v3147_v18  ;;  %v11300_v56 = vpop.eup %8966  ;;  %vm3153_vm3 = vcmp.eq.f32.partialorder %v3152_v10, 8.507059e+37  ;;  %v3155_v32 = vor.u32 1.1754944e-38, %v3154_v55  ;;  %v3365_v62 = vadd.f32 0.0036580483, %v3364_v53  ;;  %v1952_v4 = vpop.f32.mrf.mxu2  ;;  %2783 = vmatmul.f32.gmra.mxu2 %v17578_v0  ;;  %2948 = vmatmul.f32.gmra.mxu3 %v17589_v59 }
 0x374   : > { %v3287_v2 = vadd.f32 0.05243302, %v3286_v23  ;;  %8968 = vrcp.f32 %v11291_v3  ;;  %v3458_v48 = vadd.f32 0.112945676, %v3457_v26  ;;  %v3600_v51 = vmul.f32 %v11295_v27, %v11295_v27  ;;  %v1522_v26 = vpop.f32.mrf.mxu0 }
 0x375   : > { %v3156_v16 = vsel %vm3153_vm3, %v3155_v32, %v3151_v25  ;;  %v3534_v29 = vadd.f32 0.001143296, %v3533_v19  ;;  %v16914_v18 = vand.u32 4294901760, %v11249_v15  ;;  %v1328_v9 = vadd.f32 %v17588_v13, %v17587_v6  ;;  %v1679_v19 = vpop.f32.mrf.mxu1  ;;  %v17591_v25 = vld [vmem:[#allocation106_spill] sm:$0xff]  ;;  %v17592_v32 = vld [vmem:[#allocation105_spill] sm:$0xff] }
 0x376   : > { %v3209_v10 = vadd.f32 0.18741608, %v3208_v54  ;;  %v3224_v55 = vmul.f32 %v11300_v56, %v11273_v45  ;;  %v3381_v53 = vmul.f32 %v3380_v57, %v11207_v34  ;;  %v11317_v23 = vadd.f32 %v11227_v21, %v1952_v4  ;;  %2364 = vmatmul.f32.gmra.mxu0 %v17591_v25  ;;  %2574 = vmatmul.f32.gmra.mxu1 %v17592_v32 }
 0x377   : > { %v3366_v13 = vmul.f32 %v3365_v62, %v11207_v34  ;;  %v6200_v0 = vsub.f32 %v11249_v15, %v16914_v18  ;;  %v11325_v54 = vadd.f32 %v1522_v26, %v1328_v9  ;;  %v11328_v6 = vadd.f32 %v1679_v19, %v11240_v5  ;;  %v17594_v26 = vld [vmem:[#allocation84_spill] sm:$0xff] }
 0x378   : > { %17590 = vst [vmem:[#allocation83_spill] sm:$0xff] %v11317_v23  ;;  %v3157_v57 = vmul.f32 %v3156_v16, %v3132_v14  ;;  %v3459_v21 = vmul.f32 %v3458_v48, %v11223_v8  ;;  %v11331_v4 = vmin.f32 %v3600_v51, 16.0  ;;  %v3288_v25 = vmul.f32 %v3287_v2, %v11189_v40 }
 0x379   : > { %17593 = vst [vmem:[#allocation81_spill] sm:$0xff] %v11328_v6  ;;  %v3535_v32 = vmul.f32 %v3534_v29, %v11281_v47  ;;  %v6201_v23 = vand.u32 4294901760, %v6200_v0  ;;  %v3225_v49 = vsub.f32 1.0, %v3224_v55  ;;  %v11337_v37 = vadd.f32 1.0, %v3381_v53 }
 0x37a   : > { %v11335_v62 = vpop.eup %8968  ;;  %v3442_v9 = vmul.f32 2.1237322e-06, %v11223_v8  ;;  %v11341_v5 = vmul.f32 0.70710677, %v17594_v26  ;;  %v3210_v16 = vmul.f32 %v3209_v10, %v11169_v44  ;;  %v3367_v14 = vadd.f32 0.05243302, %v3366_v13 }
 0x37b   : > { %6202 = vmatpush.xpose.msrb.mxu1 %v6201_v23  ;;  %v2992_v51 = vmul.f32 0.5, %v11123_v24  ;;  %v8770_v2 = vclamps-f32 %v3157_v57, 1.0  ;;  %v3460_v48 = vadd.f32 0.4994258, %v3459_v21  ;;  %v3613_v29 = vmul.f32 3.8918573e-05, %v11331_v4 }
 0x37c   : > { %v11347_v19 = vmul.f32 0.5, %v11144_v12  ;;  %v3289_v55 = vadd.f32 0.18741608, %v3288_v25  ;;  %v3304_v53 = vmul.f32 %v11335_v62, %v11291_v3  ;;  %v3536_v0 = vadd.f32 0.014752088, %v3535_v32 }
 0x37d   : > { %v3226_v18 = vmul.f32 %v11300_v56, %v3225_v49  ;;  %8970 = vrcp.f32 %v11337_v37  ;;  %v3443_v44 = vadd.f32 0.00028619796, %v3442_v9  ;;  %v3680_v24 = vmul.f32 %v11341_v5, %v11341_v5 }
 0x37e   : > { %v3211_v10 = vadd.f32 1.1283791, %v3210_v16  ;;  %v3232_v23 = vand.u32 2147483647, %v11273_v45  ;;  %v11357_v13 = vmul.f32 0.5, %v11161_v43  ;;  %v11360_v12 = vmul.f32 0.5, %v11187_v1 }
 0x37f   : > { %v5680_v57 = vadd.f32 1.0, %v8770_v2  ;;  %v3368_v21 = vmul.f32 %v3367_v14, %v11207_v34  ;;  %v3461_v49 = vmul.f32 %v3460_v48, %v11223_v8  ;;  %v3614_v25 = vadd.f32 0.001143296, %v3613_v29 }
 0x380   : > { %v3234_v32 = vand.u32 2147483648, %v11273_v45  ;;  %v3290_v9 = vmul.f32 %v3289_v55, %v11189_v40  ;;  %v3305_v15 = vsub.f32 1.0, %v3304_v53  ;;  %v3537_v16 = vmul.f32 %v3536_v0, %v11281_v47 }
 0x381   : > { %v3227_v6 = vadd.f32 %v11300_v56, %v3226_v18  ;;  %vm3229_vm4 = vweird.f32 %v11300_v56  ;;  %v3444_v43 = vmul.f32 %v3443_v44, %v11223_v8  ;;  %v11370_v1 = vmin.f32 %v3680_v24, 16.0 }
 0x382   : > { %v3212_v14 = vmul.f32 %v3211_v10, %v11155_v22  ;;  %vm3228_vm5 = vweird.f32 %v11273_v45  ;;  %vm11374_vm6 = vcmp.eq.f32.partialorder %v3232_v23, 8.507059e+37  ;;  %v11379_v40 = vmul.f32 0.5, %v11203_v33 }
 0x383   : > { %v11381_v48 = vpop.eup %8970  ;;  %v5744_v18 = vmul.f32 %v5680_v57, %v2992_v51  ;;  %v3369_v29 = vadd.f32 0.18741608, %v3368_v21  ;;  %v11383_v55 = vadd.f32 1.0, %v3461_v49  ;;  %v3615_v53 = vmul.f32 %v3614_v25, %v11331_v4  ;;  %vm11386_vm7 = vmor %vm3228_vm5, %vm3229_vm4 }
 0x384   : > { %v3235_v22 = vor.u32 1.1754944e-38, %v3234_v32  ;;  %v3291_v45 = vadd.f32 1.1283791, %v3290_v9  ;;  %v3306_v44 = vmul.f32 %v11335_v62, %v3305_v15  ;;  %v3538_v24 = vadd.f32 0.112945676, %v3537_v16 }
 0x385   : > { %v3231_v33 = vsel %vm11386_vm7, %v11300_v56, %v3227_v6  ;;  %v3445_v10 = vadd.f32 0.0036580483, %v3444_v43  ;;  %v3522_v51 = vmul.f32 2.1237322e-06, %v11281_v47  ;;  %v3693_v23 = vmul.f32 3.8918573e-05, %v11370_v1 }
 0x386   : > { %v3312_v57 = vand.u32 2147483647, %v11291_v3  ;;  %v3314_v21 = vand.u32 2147483648, %v11291_v3  ;;  %v3384_v49 = vmul.f32 %v11381_v48, %v11337_v37  ;;  %v11401_v25 = vmul.f32 0.70710677, %v10865_v41 }
 0x387   : > { %v11403_v15 = vand.u32 4294901760, %v5744_v18  ;;  %v3370_v32 = vmul.f32 %v3369_v29, %v11207_v34  ;;  %8972 = vrcp.f32 %v11383_v55  ;;  %v3616_v56 = vadd.f32 0.014752088, %v3615_v53 }
 0x388   : > { %v3236_v6 = vsel %vm11374_vm6, %v3235_v22, %v3231_v33  ;;  %v3307_v9 = vadd.f32 %v11335_v62, %v3306_v44  ;;  %vm3309_vm8 = vweird.f32 %v11335_v62  ;;  %v3539_v16 = vmul.f32 %v3538_v24, %v11281_v47  ;;  %v17607_v22 = vld [vmem:[#allocation103_spill] sm:$0xff] }
 0x389   : > { %17599 = vst [vmem:[#allocation87_spill] sm:$0xff] %v11403_v15  ;;  %v3292_v43 = vmul.f32 %v3291_v45, %v11166_v46  ;;  %v3446_v0 = vmul.f32 %v3445_v10, %v11223_v8  ;;  %v3523_v39 = vadd.f32 0.00028619796, %v3522_v51  ;;  %v3694_v52 = vadd.f32 0.001143296, %v3693_v23 }
 0x38a   : > { %vm3308_vm9 = vweird.f32 %v11291_v3  ;;  %v3385_v34 = vsub.f32 1.0, %v3384_v49  ;;  %v11416_v29 = vmul.f32 0.5, %v11257_v63  ;;  %v3760_v2 = vmul.f32 %v11401_v25, %v11401_v25  ;;  %v5856_v49 = vld [vmem:[%s9538_s6 + $0x80] sm:$0xff] }
 0x38b   : > { %v3237_v53 = vmul.f32 %v3236_v6, %v3212_v14  ;;  %vm11420_vm10 = vmor %vm3308_vm9, %vm3309_vm8  ;;  %vm11424_vm11 = vcmp.eq.f32.partialorder %v3312_v57, 8.507059e+37  ;;  %v3315_v45 = vor.u32 1.1754944e-38, %v3314_v21  ;;  %v3617_v3 = vmul.f32 %v3616_v56, %v11331_v4  ;;  %v1960_v57 = vpop.f32.mrf.mxu2  ;;  %v11439_v21 = vpop.f32.mrf.mxu3  ;;  %v17605_v56 = vld [vmem:[#allocation46_spill] sm:$0xff]  ;;  %2787 = vmatmul.f32.gmra.mxu2 %v17589_v59  ;;  %2952 = vmatmul.f32.gmra.mxu3 %v17607_v22 }
 0x38c   : > { %v11430_v44 = vsub.f32 %v5744_v18, %v11403_v15  ;;  %v3311_v63 = vsel %vm11420_vm10, %v11335_v62, %v3307_v9  ;;  %v3371_v24 = vadd.f32 1.1283791, %v3370_v32  ;;  %v3540_v14 = vadd.f32 0.4994258, %v3539_v16  ;;  %v17606_v18 = vld [vmem:[#allocation48_spill] sm:$0xff]  ;;  %v1683_v16 = vpop.f32.mrf.mxu1 }
 0x38d   : > { %v11435_v33 = vpop.eup %8972  ;;  %v3447_v10 = vadd.f32 0.05243302, %v3446_v0  ;;  %v3524_v51 = vmul.f32 %v3523_v39, %v11281_v47  ;;  %v3695_v23 = vmul.f32 %v3694_v52, %v11370_v1  ;;  %v1334_v6 = vadd.f32 %v17606_v18, %v17605_v56  ;;  %v1526_v52 = vpop.f32.mrf.mxu0  ;;  %v17609_v0 = vld [vmem:[#allocation111_spill] sm:$0xff]  ;;  %v17610_v15 = vld [vmem:[#allocation108_spill] sm:$0xff] }
 0x38e   : > { %17604 = vst [vmem:[#allocation86_spill] sm:$0xff] %v11430_v44  ;;  %v3386_v62 = vmul.f32 %v11381_v48, %v3385_v34  ;;  %v3602_v32 = vmul.f32 2.1237322e-06, %v11331_v4  ;;  %v11448_v9 = vmin.f32 %v3760_v2, 16.0  ;;  %v11451_v39 = vadd.f32 %v11307_v17, %v1960_v57  ;;  %2369 = vmatmul.f32.gmra.mxu0 %v17609_v0  ;;  %2580 = vmatmul.f32.gmra.mxu1 %v17610_v15 }
 0x38f   : > { %v3618_v56 = vadd.f32 0.112945676, %v3617_v3  ;;  %v11455_v18 = vand.u32 4294901760, %v5856_v49  ;;  %v11457_v59 = vadd.f32 %v1526_v52, %v1334_v6  ;;  %v11460_v34 = vadd.f32 %v1683_v16, %v11325_v54 }
 0x390   : > { %17608 = vst [vmem:[#allocation91_spill] sm:$0xff] %v11451_v39  ;;  %v8772_v60 = vclamps-f32 %v3237_v53, 1.0  ;;  %v3464_v2 = vmul.f32 %v11435_v33, %v11383_v55  ;;  %v3541_v17 = vmul.f32 %v3540_v14, %v11281_v47  ;;  %v11466_v57 = vmul.f32 0.70710677, %v10876_v36 }
 0x391   : > { %17611 = vst [vmem:[#allocation88_spill] sm:$0xff] %v11455_v18  ;;  %v16922_v0 = vand.u32 4294901760, %v11430_v44  ;;  %v3372_v15 = vmul.f32 %v3371_v24, %v11194_v7  ;;  %v3696_v3 = vadd.f32 0.014752088, %v3695_v23  ;;  %v11471_v6 = vsub.f32 %v5856_v49, %v11455_v18  ;;  %5887 = vmatpush.xpose.msrb.mxu0 %v11455_v18  ;;  %6610 = vmatpush.xpose.msrb.mxu3 %v11455_v18 }
 0x392   : > { %17612 = vst [vmem:[#allocation92_spill] sm:$0xff] %v11460_v34  ;;  %v3316_v54 = vsel %vm11424_vm11, %v3315_v45, %v3311_v63  ;;  %vm3389_vm12 = vweird.f32 %v11381_v48  ;;  %v3448_v53 = vmul.f32 %v3447_v10, %v11223_v8  ;;  %v3773_v14 = vmul.f32 3.8918573e-05, %v11448_v9 }
 0x393   : > { %17613 = vst [vmem:[#allocation50_spill] sm:$0xff] %v11471_v6  ;;  %v3387_v52 = vadd.f32 %v11381_v48, %v3386_v62  ;;  %v3525_v7 = vadd.f32 0.0036580483, %v3524_v51  ;;  %v3603_v24 = vadd.f32 0.00028619796, %v3602_v32  ;;  %v3619_v23 = vmul.f32 %v3618_v56, %v11331_v4  ;;  %6409 = vmatpush.xpose.msrb.mxu2 %v11471_v6 }
 0x394   : > { %vm3388_vm13 = vweird.f32 %v11337_v37  ;;  %v3465_v49 = vsub.f32 1.0, %v3464_v2  ;;  %v11484_v16 = vadd.f32 1.0, %v3541_v17  ;;  %v3840_v46 = vmul.f32 %v11466_v57, %v11466_v57 }
 0x395   : > { %v3317_v45 = vmul.f32 %v3316_v54, %v3292_v43  ;;  %v3392_v63 = vand.u32 2147483647, %v11337_v37  ;;  %v3394_v10 = vand.u32 2147483648, %v11337_v37  ;;  %v3697_v51 = vmul.f32 %v3696_v3, %v11370_v1  ;;  %vm11498_vm14 = vmor %vm3388_vm13, %vm3389_vm12 }
 0x396   : > { %v11494_v62 = vsub.f32 %v11430_v44, %v16922_v0  ;;  %v5682_v32 = vadd.f32 1.0, %v8772_v60  ;;  %v3449_v2 = vadd.f32 0.18741608, %v3448_v53  ;;  %v3774_v43 = vadd.f32 0.001143296, %v3773_v14 }
 0x397   : > { %v3391_v37 = vsel %vm11498_vm14, %v11381_v48, %v3387_v52  ;;  %v3526_v17 = vmul.f32 %v3525_v7, %v11281_v47  ;;  %v3604_v3 = vmul.f32 %v3603_v24, %v11331_v4  ;;  %v3620_v54 = vadd.f32 0.4994258, %v3619_v23 }
 0x398   : > { %17614 = vst [vmem:[#allocation76_spill] sm:$0xff] %v11494_v62  ;;  %v3466_v0 = vmul.f32 %v11435_v33, %v3465_v49  ;;  %8974 = vrcp.f32 %v11484_v16  ;;  %v3682_v60 = vmul.f32 2.1237322e-06, %v11370_v1  ;;  %v11510_v39 = vmin.f32 %v3840_v46, 16.0 }
 0x399   : > { %v8774_v18 = vclamps-f32 %v3317_v45, 1.0  ;;  %v3395_v53 = vor.u32 1.1754944e-38, %v3394_v10  ;;  %v3698_v14 = vadd.f32 0.112945676, %v3697_v51  ;;  %v11513_v44 = vmul.f32 0.70710677, %v10887_v31 }
 0x39a   : > { %v5746_v48 = vmul.f32 %v5682_v32, %v11347_v19  ;;  %vm3393_vm15 = vcmp.eq.f32.partialorder %v3392_v63, 8.507059e+37  ;;  %v3450_v52 = vmul.f32 %v3449_v2, %v11223_v8  ;;  %v3775_v7 = vmul.f32 %v3774_v43, %v11448_v9 }
 0x39b   : > { %v3396_v24 = vsel %vm3393_vm15, %v3395_v53, %v3391_v37  ;;  %v3527_v23 = vadd.f32 0.05243302, %v3526_v17  ;;  %v3605_v49 = vadd.f32 0.0036580483, %v3604_v3  ;;  %v3621_v56 = vmul.f32 %v3620_v54, %v11331_v4 }
 0x39c   : > { %v3467_v46 = vadd.f32 %v11435_v33, %v3466_v0  ;;  %vm3469_vm0 = vweird.f32 %v11435_v33  ;;  %v3683_v45 = vadd.f32 0.00028619796, %v3682_v60  ;;  %v3853_v10 = vmul.f32 3.8918573e-05, %v11510_v39 }
 0x39d   : > { %v5684_v51 = vadd.f32 1.0, %v8774_v18  ;;  %v3474_v19 = vand.u32 2147483648, %v11383_v55  ;;  %v3699_v63 = vmul.f32 %v3698_v14, %v11370_v1  ;;  %v3920_v8 = vmul.f32 %v11513_v44, %v11513_v44 }
 0x39e   : > { %v11526_v32 = vpop.eup %8974  ;;  %v3397_v2 = vmul.f32 %v3396_v24, %v3372_v15  ;;  %vm3468_vm1 = vweird.f32 %v11383_v55  ;;  %v3472_v0 = vand.u32 2147483647, %v11383_v55  ;;  %v3776_v43 = vadd.f32 0.014752088, %v3775_v7 }
 0x39f   : > { %v11530_v37 = vand.u32 4294901760, %v5746_v48  ;;  %vm11532_vm2 = vmor %vm3468_vm1, %vm3469_vm0  ;;  %v3528_v18 = vmul.f32 %v3527_v23, %v11281_v47  ;;  %v3606_v3 = vmul.f32 %v3605_v49, %v11331_v4  ;;  %v11538_v54 = vadd.f32 1.0, %v3621_v56 }
 0x3a0   : > { %v3451_v60 = vadd.f32 1.1283791, %v3450_v52  ;;  %v3471_v15 = vsel %vm11532_vm2, %v11435_v33, %v3467_v46  ;;  %v3684_v55 = vmul.f32 %v3683_v45, %v11370_v1  ;;  %v3854_v53 = vadd.f32 0.001143296, %v3853_v10 }
 0x3a1   : > { %17617 = vst [vmem:[#allocation97_spill] sm:$0xff] %v11530_v37  ;;  %v3475_v14 = vor.u32 1.1754944e-38, %v3474_v19  ;;  %v3544_v7 = vmul.f32 %v11526_v32, %v11484_v16  ;;  %v3700_v24 = vadd.f32 0.4994258, %v3699_v63  ;;  %v11546_v62 = vmin.f32 %v3920_v8, 16.0 }
 0x3a2   : > { %v5748_v23 = vmul.f32 %v5684_v51, %v11357_v13  ;;  %v8776_v49 = vclamps-f32 %v3397_v2, 1.0  ;;  %vm3473_vm3 = vcmp.eq.f32.partialorder %v3472_v0, 8.507059e+37  ;;  %v3777_v52 = vmul.f32 %v3776_v43, %v11448_v9  ;;  %v1968_v43 = vpop.f32.mrf.mxu2  ;;  %2791 = vmatmul.f32.gmra.mxu2 %v17607_v22 }
 0x3a3   : > { %v3476_v56 = vsel %vm3473_vm3, %v3475_v14, %v3471_v15  ;;  %v3529_v34 = vadd.f32 0.18741608, %v3528_v18  ;;  %v3607_v17 = vadd.f32 0.05243302, %v3606_v3  ;;  %8976 = vrcp.f32 %v11538_v54  ;;  %v11564_v18 = vpop.f32.mrf.mxu3 }
 0x3a4   : > { %v11552_v33 = vsub.f32 %v5746_v48, %v11530_v37  ;;  %v3452_v46 = vmul.f32 %v3451_v60, %v11211_v38  ;;  %v3685_v45 = vadd.f32 0.0036580483, %v3684_v55  ;;  %v3855_v10 = vmul.f32 %v3854_v53, %v11510_v39  ;;  %v17621_v38 = vld [vmem:[#allocation110_spill] sm:$0xff]  ;;  %v1687_v55 = vpop.f32.mrf.mxu1  ;;  %v17623_v53 = vld [vmem:[#allocation115_spill] sm:$0xff] }
 0x3a5   : > { %v3545_v19 = vsub.f32 1.0, %v3544_v7  ;;  %v11557_v13 = vmul.f32 0.5, %v10847_v50  ;;  %v3701_v51 = vmul.f32 %v3700_v24, %v11370_v1  ;;  %v3933_v63 = vmul.f32 3.8918573e-05, %v11546_v62  ;;  %2956 = vmatmul.f32.gmra.mxu3 %v17621_v38  ;;  %2586 = vmatmul.f32.gmra.mxu1 %v17623_v53 }
 0x3a6   : > { %v11561_v8 = vand.u32 4294901760, %v5748_v23  ;;  %v3477_v2 = vmul.f32 %v3476_v56, %v3452_v46  ;;  %v3778_v0 = vadd.f32 0.112945676, %v3777_v52  ;;  %v16927_v48 = vand.u32 4294901760, %v11471_v6 }
 0x3a7   : > { %v5686_v3 = vadd.f32 1.0, %v8776_v49  ;;  %v3530_v50 = vmul.f32 %v3529_v34, %v11281_v47  ;;  %v3608_v60 = vmul.f32 %v3607_v17, %v11331_v4  ;;  %v11571_v15 = vadd.f32 %v11439_v21, %v1968_v43 }
 0x3a8   : > { %17620 = vst [vmem:[#allocation52_spill] sm:$0xff] %v11561_v8  ;;  %v3686_v14 = vmul.f32 %v3685_v45, %v11370_v1  ;;  %v3856_v7 = vadd.f32 0.014752088, %v3855_v10  ;;  %v6206_v22 = vsub.f32 %v11471_v6, %v16927_v48  ;;  %v11579_v24 = vadd.f32 %v1687_v55, %v11457_v59 }
 0x3a9   : > { %17622 = vst [vmem:[#allocation60_spill] sm:$0xff] %v11571_v15  ;;  %v11581_v49 = vpop.eup %8976  ;;  %v3546_v47 = vmul.f32 %v11526_v32, %v3545_v19  ;;  %v11584_v34 = vadd.f32 1.0, %v3701_v51  ;;  %v3934_v21 = vadd.f32 0.001143296, %v3933_v63  ;;  %v11587_v52 = vmul.f32 0.70710677, %v10900_v30 }
 0x3aa   : > { %17624 = vst [vmem:[#allocation102_spill] sm:$0xff] %v11579_v24  ;;  %v8778_v56 = vclamps-f32 %v3477_v2, 1.0  ;;  %v11590_v17 = vmul.f32 0.5, %v17594_v26  ;;  %v3779_v46 = vmul.f32 %v3778_v0, %v11448_v9  ;;  %v6207_v45 = vand.u32 4294901760, %v6206_v22 }
 0x3ab   : > { %v5750_v59 = vmul.f32 %v5686_v3, %v11360_v12  ;;  %v3531_v10 = vadd.f32 1.1283791, %v3530_v50  ;;  %vm3549_vm4 = vweird.f32 %v11526_v32  ;;  %v3762_v19 = vmul.f32 2.1237322e-06, %v11448_v9 }
 0x3ac   : > { %v3609_v51 = vadd.f32 0.18741608, %v3608_v60  ;;  %v3624_v63 = vmul.f32 %v11581_v49, %v11538_v54  ;;  %v3687_v43 = vadd.f32 0.05243302, %v3686_v14  ;;  %v3857_v2 = vmul.f32 %v3856_v7, %v11510_v39  ;;  %6208 = vmatpush.xpose.msrb.mxu1 %v6207_v45 }
 0x3ad   : > { %v3547_v26 = vadd.f32 %v11526_v32, %v3546_v47  ;;  %8978 = vrcp.f32 %v11584_v34  ;;  %v3935_v0 = vmul.f32 %v3934_v21, %v11546_v62  ;;  %v4000_v12 = vmul.f32 %v11587_v52, %v11587_v52 }
 0x3ae   : > { %v11605_v3 = vsub.f32 %v5748_v23, %v11561_v8  ;;  %v5688_v50 = vadd.f32 1.0, %v8778_v56  ;;  %v3554_v60 = vand.u32 2147483648, %v11484_v16  ;;  %v3780_v55 = vadd.f32 0.4994258, %v3779_v46 }
 0x3af   : > { %v11608_v53 = vand.u32 4294901760, %v5750_v59  ;;  %vm3548_vm5 = vweird.f32 %v11484_v16  ;;  %v3552_v14 = vand.u32 2147483647, %v11484_v16  ;;  %v3763_v7 = vadd.f32 0.00028619796, %v3762_v19 }
 0x3b0   : > { %v3532_v22 = vmul.f32 %v3531_v10, %v11266_v28  ;;  %vm11615_vm6 = vmor %vm3548_vm5, %vm3549_vm4  ;;  %v3610_v23 = vmul.f32 %v3609_v51, %v11331_v4  ;;  %v3625_v21 = vsub.f32 1.0, %v3624_v63  ;;  %v3858_v56 = vadd.f32 0.112945676, %v3857_v2 }
 0x3b1   : > { %17625 = vst [vmem:[#allocation54_spill] sm:$0xff] %v11608_v53  ;;  %v3551_v46 = vsel %vm11615_vm6, %v11526_v32, %v3547_v26  ;;  %v3688_v45 = vmul.f32 %v3687_v43, %v11370_v1  ;;  %v3936_v16 = vadd.f32 0.014752088, %v3935_v0  ;;  %v11624_v19 = vmin.f32 %v4000_v12, 16.0 }
 0x3b2   : > { %v5752_v28 = vmul.f32 %v5688_v50, %v11379_v40  ;;  %v3555_v10 = vor.u32 1.1754944e-38, %v3554_v60  ;;  %v3781_v48 = vmul.f32 %v3780_v55, %v11448_v9  ;;  %v3842_v15 = vmul.f32 2.1237322e-06, %v11510_v39 }
 0x3b3   : > { %v11629_v6 = vpop.eup %8978  ;;  %v11632_v4 = vsub.f32 %v5750_v59, %v11608_v53  ;;  %vm3553_vm7 = vcmp.eq.f32.partialorder %v3552_v14, 8.507059e+37  ;;  %v11635_v32 = vmul.f32 0.5, %v10865_v41  ;;  %v3764_v51 = vmul.f32 %v3763_v7, %v11448_v9 }
 0x3b4   : > { %v3556_v63 = vsel %vm3553_vm7, %v3555_v10, %v3551_v46  ;;  %v3626_v43 = vmul.f32 %v11581_v49, %v3625_v21  ;;  %v3859_v40 = vmul.f32 %v3858_v56, %v11510_v39  ;;  %v11641_v2 = vmul.f32 0.70710677, %v10909_v58 }
 0x3b5   : > { %v3611_v26 = vadd.f32 1.1283791, %v3610_v23  ;;  %v3689_v0 = vadd.f32 0.18741608, %v3688_v45  ;;  %v3937_v12 = vmul.f32 %v3936_v16, %v11546_v62  ;;  %v4013_v59 = vmul.f32 3.8918573e-05, %v11624_v19 }
 0x3b6   : > { %v11645_v50 = vand.u32 4294901760, %v5752_v28  ;;  %v3704_v41 = vmul.f32 %v11629_v6, %v11584_v34  ;;  %v11649_v60 = vadd.f32 1.0, %v3781_v48  ;;  %v3843_v55 = vadd.f32 0.00028619796, %v3842_v15 }
 0x3b7   : > { %v3557_v14 = vmul.f32 %v3556_v63, %v3532_v22  ;;  %vm3628_vm8 = vweird.f32 %v11538_v54  ;;  %v3632_v7 = vand.u32 2147483647, %v11538_v54  ;;  %v3765_v47 = vadd.f32 0.0036580483, %v3764_v51 }
 0x3b8   : > { %17628 = vst [vmem:[#allocation62_spill] sm:$0xff] %v11645_v50  ;;  %v3627_v23 = vadd.f32 %v11581_v49, %v3626_v43  ;;  %vm3629_vm9 = vweird.f32 %v11581_v49  ;;  %v3860_v21 = vadd.f32 0.4994258, %v3859_v40  ;;  %v4080_v56 = vmul.f32 %v11641_v2, %v11641_v2  ;;  %v2255_v43 = vpop.f32.mrf.mxu0 }
 0x3b9   : > { %v3634_v46 = vand.u32 2147483648, %v11538_v54  ;;  %v3690_v48 = vmul.f32 %v3689_v0, %v11370_v1  ;;  %v3938_v45 = vadd.f32 0.112945676, %v3937_v12  ;;  %v4014_v15 = vadd.f32 0.001143296, %v4013_v59  ;;  %vm11665_vm10 = vmor %vm3628_vm8, %vm3629_vm9 }
 0x3ba   : > { %v3705_v22 = vsub.f32 1.0, %v3704_v41  ;;  %8980 = vrcp.f32 %v11649_v60  ;;  %v3844_v16 = vmul.f32 %v3843_v55, %v11510_v39  ;;  %v3922_v10 = vmul.f32 2.1237322e-06, %v11546_v62 }
 0x3bb   : > { %v8780_v51 = vclamps-f32 %v3557_v14, 1.0  ;;  %v3612_v63 = vmul.f32 %v3611_v26, %v11295_v27  ;;  %v3766_v1 = vmul.f32 %v3765_v47, %v11448_v9  ;;  %v11671_v40 = vmul.f32 0.5, %v10876_v36 }
 0x3bc   : > { %v11674_v0 = vsub.f32 %v5752_v28, %v11645_v50  ;;  %v3631_v12 = vsel %vm11665_vm10, %v11581_v49, %v3627_v23  ;;  %v3861_v27 = vmul.f32 %v3860_v21, %v11510_v39  ;;  %v11680_v54 = vmin.f32 %v4080_v56, 16.0  ;;  %v1976_v21 = vpop.f32.mrf.mxu2  ;;  %v5854_v56 = vld [vmem:[%s9538_s6 + $0x70] sm:$0xff]  ;;  %2795 = vmatmul.f32.gmra.mxu2 %v17621_v38 }
 0x3bd   : > { %vm3633_vm11 = vcmp.eq.f32.partialorder %v3632_v7, 8.507059e+37  ;;  %v3635_v26 = vor.u32 1.1754944e-38, %v3634_v46  ;;  %v3939_v59 = vmul.f32 %v3938_v45, %v11546_v62  ;;  %v4015_v41 = vmul.f32 %v4014_v15, %v11624_v19  ;;  %v17632_v7 = vld [vmem:[#allocation116_spill] sm:$0xff] }
 0x3be   : > { %17631 = vst [vmem:[#allocation34_spill] sm:$0xff] %v11674_v0  ;;  %v3691_v36 = vadd.f32 1.1283791, %v3690_v48  ;;  %v3706_v55 = vmul.f32 %v11629_v6, %v3705_v22  ;;  %v3845_v28 = vadd.f32 0.0036580483, %v3844_v16  ;;  %v5690_v47 = vadd.f32 1.0, %v8780_v51  ;;  %2374 = vmatmul.f32.gmra.mxu0 %v17632_v7  ;;  %v2865_v16 = vpop.f32.mrf.mxu3 }
 0x3bf   : > { %v3923_v14 = vadd.f32 0.00028619796, %v3922_v10  ;;  %v3636_v50 = vsel %vm3633_vm11, %v3635_v26, %v3631_v12  ;;  %v3712_v49 = vand.u32 2147483647, %v11584_v34  ;;  %v3767_v23 = vadd.f32 0.05243302, %v3766_v1  ;;  %v2449_v10 = vpop.f32.mrf.mxu1 }
 0x3c0   : > { %v11689_v46 = vpop.eup %8980  ;;  %v11691_v45 = vadd.f32 1.0, %v3861_v27  ;;  %v4093_v48 = vmul.f32 3.8918573e-05, %v11680_v54  ;;  %v11695_v15 = vmul.f32 0.70710677, %v10918_v11  ;;  %v11698_v22 = vadd.f32 %v11564_v18, %v1976_v21  ;;  %v17634_v51 = vld [vmem:[#allocation113_spill] sm:$0xff] }
 0x3c1   : > { %2960 = vmatmul.f32.gmra.mxu3 %v17634_v51  ;;  %v17635_v1 = vld [vmem:[#allocation118_spill] sm:$0xff]  ;;  %v3940_v38 = vadd.f32 0.4994258, %v3939_v59  ;;  %v4016_v12 = vadd.f32 0.014752088, %v4015_v41  ;;  %v17636_v26 = vld [vmem:[#allocation56_spill] sm:$0xff]  ;;  %v3707_v53 = vadd.f32 %v11629_v6, %v3706_v55  ;;  %vm3709_vm12 = vweird.f32 %v11629_v6 }
 0x3c2   : > { %17633 = vst [vmem:[#allocation36_spill] sm:$0xff] %v11698_v22  ;;  %2592 = vmatmul.f32.gmra.mxu1 %v17635_v1  ;;  %v2256_v7 = vadd.f32 %v2255_v43, %v17636_v26  ;;  %v11703_v27 = vand.u32 4294901760, %v5854_v56  ;;  %v3846_v8 = vmul.f32 %v3845_v28, %v11510_v39  ;;  %v3924_v18 = vmul.f32 %v3923_v14, %v11546_v62 }
 0x3c3   : > { %v3714_v21 = vand.u32 2147483648, %v11584_v34  ;;  %v3784_v22 = vmul.f32 %v11689_v46, %v11649_v60  ;;  %vm3708_vm13 = vweird.f32 %v11584_v34  ;;  %8982 = vrcp.f32 %v11691_v45 }
 0x3c4   : > { %17637 = vst [vmem:[#allocation96_spill] sm:$0xff] %v11703_v27  ;;  %v11713_v59 = vsub.f32 %v5854_v56, %v11703_v27  ;;  %v2450_v41 = vadd.f32 %v2449_v10, %v2256_v7  ;;  %5889 = vmatpush.xpose.msrb.mxu0 %v11703_v27  ;;  %6612 = vmatpush.xpose.msrb.mxu3 %v11703_v27  ;;  %v4094_v55 = vadd.f32 0.001143296, %v4093_v48  ;;  %vm11725_vm14 = vmor %vm3708_vm13, %vm3709_vm12  ;;  %vm3713_vm15 = vcmp.eq.f32.partialorder %v3712_v49, 8.507059e+37  ;;  %v2260_v7 = vpop.f32.mrf.mxu0  ;;  %v2704_v27 = vpop.f32.mrf.mxu2 }
 0x3c5   : > { %v4160_v28 = vmul.f32 %v11695_v15, %v11695_v15  ;;  %v5754_v14 = vmul.f32 %v5690_v47, %v11416_v29  ;;  %v3692_v43 = vmul.f32 %v3691_v36, %v11341_v5  ;;  %v3941_v10 = vmul.f32 %v3940_v38, %v11546_v62  ;;  %2799 = vmatmul.f32.gmra.mxu2 %v17634_v51  ;;  %v17641_v38 = vld [vmem:[#allocation121_spill] sm:$0xff] }
 0x3c6   : > { %17638 = vst [vmem:[#allocation95_spill] sm:$0xff] %v11713_v59  ;;  %v4017_v34 = vmul.f32 %v4016_v12, %v11624_v19  ;;  %6412 = vmatpush.xpose.msrb.mxu2 %v11713_v59  ;;  %v3637_v48 = vmul.f32 %v3636_v50, %v3612_v63  ;;  %v3711_v1 = vsel %vm11725_vm14, %v11629_v6, %v3707_v53  ;;  %v3847_v5 = vadd.f32 0.05243302, %v3846_v8  ;;  %v17642_v63 = vld [vmem:[#allocation58_spill] sm:$0xff] }
 0x3c7   : > { %v3768_v29 = vmul.f32 %v3767_v23, %v11448_v9  ;;  %v3715_v36 = vor.u32 1.1754944e-38, %v3714_v21  ;;  %v3785_v47 = vsub.f32 1.0, %v3784_v22  ;;  %v3925_v26 = vadd.f32 0.0036580483, %v3924_v18  ;;  %2379 = vmatmul.f32.gmra.mxu0 %v17641_v38 }
 0x3c8   : > { %v4095_v12 = vmul.f32 %v4094_v55, %v11680_v54  ;;  %v11739_v50 = vmin.f32 %v4160_v28, 16.0  ;;  %v11742_v56 = vadd.f32 %v2260_v7, %v17642_v63  ;;  %v2705_v6 = vadd.f32 %v2704_v27, %v2450_v41 }
 0x3c9   : > { %v3716_v53 = vsel %vm3713_vm15, %v3715_v36, %v3711_v1  ;;  %v11744_v8 = vadd.f32 1.0, %v3941_v10  ;;  %v4002_v49 = vmul.f32 2.1237322e-06, %v11624_v19  ;;  %v4018_v23 = vadd.f32 0.112945676, %v4017_v34  ;;  %v11747_v22 = vpop.eup %8982 }
 0x3ca   : > { %v8782_v18 = vclamps-f32 %v3637_v48, 1.0  ;;  %v3769_v51 = vadd.f32 0.18741608, %v3768_v29  ;;  %v3848_v21 = vmul.f32 %v3847_v5, %v11510_v39  ;;  %v11750_v38 = vadd.f32 %v2865_v16, %v2705_v6 }
 0x3cb   : > { %v3786_v55 = vmul.f32 %v11689_v46, %v3785_v47  ;;  %v11754_v28 = vmul.f32 0.5, %v10887_v31  ;;  %v3926_v27 = vmul.f32 %v3925_v26, %v11546_v62  ;;  %v11758_v41 = vmul.f32 0.70710677, %v10931_v42 }
 0x3cc   : > { %17643 = vst [vmem:[#allocation107_spill] sm:$0xff] %v11750_v38  ;;  %v11760_v10 = vand.u32 4294901760, %v5754_v14  ;;  %v3717_v34 = vmul.f32 %v3716_v53, %v3692_v43  ;;  %v4096_v1 = vadd.f32 0.014752088, %v4095_v12  ;;  %v4173_v48 = vmul.f32 3.8918573e-05, %v11739_v50 }
 0x3cd   : > { %v3864_v16 = vmul.f32 %v11747_v22, %v11691_v45  ;;  %8984 = vrcp.f32 %v11744_v8  ;;  %v4003_v29 = vadd.f32 0.00028619796, %v4002_v49  ;;  %v4019_v31 = vmul.f32 %v4018_v23, %v11624_v19 }
 0x3ce   : > { %17644 = vst [vmem:[#allocation64_spill] sm:$0xff] %v11760_v10  ;;  %v5692_v5 = vadd.f32 1.0, %v8782_v18  ;;  %v3770_v36 = vmul.f32 %v3769_v51, %v11448_v9  ;;  %vm3788_vm0 = vweird.f32 %v11649_v60  ;;  %v3849_v47 = vadd.f32 0.18741608, %v3848_v21 }
 0x3cf   : > { %v3787_v26 = vadd.f32 %v11689_v46, %v3786_v55  ;;  %vm3789_vm1 = vweird.f32 %v11689_v46  ;;  %v3927_v43 = vadd.f32 0.05243302, %v3926_v27  ;;  %v4240_v7 = vmul.f32 %v11758_v41, %v11758_v41 }
 0x3d0   : > { %v8784_v12 = vclamps-f32 %v3717_v34, 1.0  ;;  %v3794_v63 = vand.u32 2147483648, %v11649_v60  ;;  %v4097_v6 = vmul.f32 %v4096_v1, %v11680_v54  ;;  %v4174_v53 = vadd.f32 0.001143296, %v4173_v48  ;;  %vm11785_vm2 = vmor %vm3788_vm0, %vm3789_vm1 }
 0x3d1   : > { %v3792_v49 = vand.u32 2147483647, %v11649_v60  ;;  %v3865_v9 = vsub.f32 1.0, %v3864_v16  ;;  %v4004_v23 = vmul.f32 %v4003_v29, %v11624_v19  ;;  %v4020_v18 = vadd.f32 0.4994258, %v4019_v31 }
 0x3d2   : > { %v11778_v51 = vsub.f32 %v5754_v14, %v11760_v10  ;;  %v11781_v21 = vmul.f32 %v5692_v5, %v11557_v13  ;;  %v3771_v55 = vadd.f32 1.1283791, %v3770_v36  ;;  %v11790_v34 = vmul.f32 0.5, %v10900_v30 }
 0x3d3   : > { %v11792_v1 = vpop.eup %8984  ;;  %v3791_v14 = vsel %vm11785_vm2, %v11689_v46, %v3787_v26  ;;  %v3850_v48 = vmul.f32 %v3849_v47, %v11510_v39  ;;  %v3928_v13 = vmul.f32 %v3927_v43, %v11546_v62  ;;  %v11799_v16 = vmin.f32 %v4240_v7, 16.0 }
 0x3d4   : > { %17645 = vst [vmem:[#allocation72_spill] sm:$0xff] %v11778_v51  ;;  %v5694_v60 = vadd.f32 1.0, %v8784_v12  ;;  %v3795_v29 = vor.u32 1.1754944e-38, %v3794_v63  ;;  %v4098_v31 = vadd.f32 0.112945676, %v4097_v6  ;;  %v4175_v5 = vmul.f32 %v4174_v53, %v11739_v50 }
 0x3d5   : > { %vm3793_vm3 = vcmp.eq.f32.partialorder %v3792_v49, 8.507059e+37  ;;  %v3866_v30 = vmul.f32 %v11747_v22, %v3865_v9  ;;  %v4005_v36 = vadd.f32 0.0036580483, %v4004_v23  ;;  %v4021_v10 = vmul.f32 %v4020_v18, %v11624_v19 }
 0x3d6   : > { %v11805_v27 = vand.u32 4294901760, %v11781_v21  ;;  %v3796_v46 = vsel %vm3793_vm3, %v3795_v29, %v3791_v14  ;;  %v3944_v39 = vmul.f32 %v11792_v1, %v11744_v8  ;;  %v4082_v47 = vmul.f32 2.1237322e-06, %v11680_v54 }
 0x3d7   : > { %v3772_v26 = vmul.f32 %v3771_v55, %v11401_v25  ;;  %v3851_v43 = vadd.f32 1.1283791, %v3850_v48  ;;  %v3929_v7 = vadd.f32 0.18741608, %v3928_v13  ;;  %v4253_v12 = vmul.f32 3.8918573e-05, %v11799_v16 }
 0x3d8   : > { %17648 = vst [vmem:[#allocation112_spill] sm:$0xff] %v11805_v27  ;;  %v11813_v63 = vmul.f32 %v5694_v60, %v11590_v17  ;;  %vm3869_vm4 = vweird.f32 %v11747_v22  ;;  %v4099_v6 = vmul.f32 %v4098_v31, %v11680_v54  ;;  %v4176_v53 = vadd.f32 0.014752088, %v4175_v5 }
 0x3d9   : > { %v3797_v49 = vmul.f32 %v3796_v46, %v3772_v26  ;;  %v3867_v9 = vadd.f32 %v11747_v22, %v3866_v30  ;;  %v4006_v23 = vmul.f32 %v4005_v36, %v11624_v19  ;;  %v11819_v18 = vadd.f32 1.0, %v4021_v10 }
 0x3da   : > { %v3874_v25 = vand.u32 2147483648, %v11691_v45  ;;  %v3945_v55 = vsub.f32 1.0, %v3944_v39  ;;  %v4083_v14 = vadd.f32 0.00028619796, %v4082_v47  ;;  %v11823_v48 = vmul.f32 0.70710677, %v10941_v35 }
 0x3db   : > { %vm3868_vm5 = vweird.f32 %v11691_v45  ;;  %v3872_v17 = vand.u32 2147483647, %v11691_v45  ;;  %v3930_v13 = vmul.f32 %v3929_v7, %v11546_v62  ;;  %v4254_v60 = vadd.f32 0.001143296, %v4253_v12 }
 0x3dc   : > { %v3852_v29 = vmul.f32 %v3851_v43, %v11466_v57  ;;  %vm11831_vm6 = vmor %vm3868_vm5, %vm3869_vm4  ;;  %v3954_v31 = vand.u32 2147483648, %v11744_v8  ;;  %v4100_v5 = vadd.f32 0.4994258, %v4099_v6  ;;  %v4177_v30 = vmul.f32 %v4176_v53, %v11739_v50 }
 0x3dd   : > { %v8786_v36 = vclamps-f32 %v3797_v49, 1.0  ;;  %v3871_v45 = vsel %vm11831_vm6, %v11747_v22, %v3867_v9  ;;  %v4007_v62 = vadd.f32 0.05243302, %v4006_v23  ;;  %8986 = vrcp.f32 %v11819_v18 }
 0x3de   : > { %v3875_v57 = vor.u32 1.1754944e-38, %v3874_v25  ;;  %v3946_v46 = vmul.f32 %v11792_v1, %v3945_v55  ;;  %v4084_v39 = vmul.f32 %v4083_v14, %v11680_v54  ;;  %v4320_v47 = vmul.f32 %v11823_v48, %v11823_v48 }
 0x3df   : > { %vm3873_vm7 = vcmp.eq.f32.partialorder %v3872_v17, 8.507059e+37  ;;  %v3931_v26 = vadd.f32 1.1283791, %v3930_v13  ;;  %v4255_v43 = vmul.f32 %v4254_v60, %v11799_v16  ;;  %v11847_v7 = vmul.f32 0.70710677, %v10951_v20 }
 0x3e0   : > { %v3876_v12 = vsel %vm3873_vm7, %v3875_v57, %v3871_v45  ;;  %vm3948_vm8 = vweird.f32 %v11744_v8  ;;  %v4101_v22 = vmul.f32 %v4100_v5, %v11680_v54  ;;  %v4178_v6 = vadd.f32 0.112945676, %v4177_v30  ;;  %v2869_v30 = vpop.f32.mrf.mxu3  ;;  %v17652_v45 = vld [vmem:[#allocation126_spill] sm:$0xff] }
 0x3e1   : > { %v5696_v53 = vadd.f32 1.0, %v8786_v36  ;;  %v3952_v49 = vand.u32 2147483647, %v11744_v8  ;;  %v3955_v9 = vor.u32 1.1754944e-38, %v3954_v31  ;;  %v4008_v23 = vmul.f32 %v4007_v62, %v11624_v19  ;;  %v2265_v31 = vpop.f32.mrf.mxu0  ;;  %v17651_v36 = vld [vmem:[#allocation120_spill] sm:$0xff]  ;;  %2384 = vmatmul.f32.gmra.mxu0 %v17652_v45 }
 0x3e2   : > { %v3947_v25 = vadd.f32 %v11792_v1, %v3946_v46  ;;  %vm3949_vm9 = vweird.f32 %v11792_v1  ;;  %v4085_v55 = vadd.f32 0.0036580483, %v4084_v39  ;;  %v11855_v14 = vmin.f32 %v4320_v47, 16.0  ;;  %2964 = vmatmul.f32.gmra.mxu3 %v17651_v36  ;;  %v17653_v39 = vld [vmem:[#allocation68_spill] sm:$0xff]  ;;  %v2455_v47 = vpop.f32.mrf.mxu1 }
 0x3e3   : > { %v11857_v17 = vpop.eup %8986  ;;  %v3877_v13 = vmul.f32 %v3876_v12, %v3852_v29  ;;  %v4256_v60 = vadd.f32 0.014752088, %v4255_v43  ;;  %v4400_v10 = vmul.f32 %v11847_v7, %v11847_v7  ;;  %v11864_v62 = vadd.f32 1.0, %v4101_v22  ;;  %v2708_v43 = vpop.f32.mrf.mxu2  ;;  %2803 = vmatmul.f32.gmra.mxu2 %v17651_v36  ;;  %v17654_v12 = vld [vmem:[#allocation125_spill] sm:$0xff]  ;;  %vm11878_vm10 = vmor %vm3948_vm8, %vm3949_vm9 }
 0x3e4   : > { %v4162_v57 = vmul.f32 2.1237322e-06, %v11739_v50  ;;  %v4179_v46 = vmul.f32 %v4178_v6, %v11739_v50  ;;  %v11869_v29 = vadd.f32 %v2265_v31, %v17653_v39  ;;  %2598 = vmatmul.f32.gmra.mxu1 %v17654_v12  ;;  %v5760_v5 = vmul.f32 %v5696_v53, %v11635_v32 }
 0x3e5   : > { %v4009_v6 = vadd.f32 0.18741608, %v4008_v23  ;;  %v17657_v31 = vand.u32 4294901760, %v11713_v59  ;;  %v2456_v39 = vadd.f32 %v2455_v47, %v11742_v56  ;;  %v3951_v36 = vsel %vm11878_vm10, %v11792_v1, %v3947_v25 }
 0x3e6   : > { %v4024_v32 = vmul.f32 %v11857_v17, %v11819_v18  ;;  %v4086_v8 = vmul.f32 %v4085_v55, %v11680_v54  ;;  %v4333_v53 = vmul.f32 3.8918573e-05, %v11855_v14  ;;  %v4257_v12 = vmul.f32 %v4256_v60, %v11799_v16 }
 0x3e7   : > { %v6212_v45 = vsub.f32 %v11713_v59, %v17657_v31  ;;  %v11894_v23 = vmin.f32 %v4400_v10, 16.0  ;;  %v2709_v0 = vadd.f32 %v2708_v43, %v2456_v39  ;;  %v8788_v31 = vclamps-f32 %v3877_v13, 1.0 }
 0x3e8   : > { %8988 = vrcp.f32 %v11864_v62  ;;  %v4163_v56 = vadd.f32 0.00028619796, %v4162_v57  ;;  %v4180_v47 = vadd.f32 0.4994258, %v4179_v46  ;;  %v11898_v1 = vand.u32 4294901760, %v11813_v63 }
 0x3e9   : > { %v6213_v51 = vand.u32 4294901760, %v6212_v45  ;;  %vm3953_vm11 = vcmp.eq.f32.partialorder %v3952_v49, 8.507059e+37  ;;  %v4010_v25 = vmul.f32 %v4009_v6, %v11624_v19  ;;  %v11901_v55 = vadd.f32 %v2869_v30, %v2709_v0 }
 0x3ea   : > { %17658 = vst [vmem:[#allocation66_spill] sm:$0xff] %v11898_v1  ;;  %v3956_v22 = vsel %vm3953_vm11, %v3955_v9, %v3951_v36  ;;  %v4025_v60 = vsub.f32 1.0, %v4024_v32  ;;  %v4087_v10 = vadd.f32 0.05243302, %v4086_v8  ;;  %v4334_v59 = vadd.f32 0.001143296, %v4333_v53 }
 0x3eb   : > { %6214 = vmatpush.xpose.msrb.mxu1 %v6213_v51  ;;  %v11905_v13 = vsub.f32 %v11781_v21, %v11805_v27  ;;  %v3932_v57 = vmul.f32 %v3931_v26, %v11513_v44  ;;  %v4258_v46 = vadd.f32 0.112945676, %v4257_v12  ;;  %v4413_v43 = vmul.f32 3.8918573e-05, %v11894_v23 }
 0x3ec   : > { %v11909_v45 = vand.u32 4294901760, %v5760_v5  ;;  %v5698_v49 = vadd.f32 1.0, %v8788_v31  ;;  %v4164_v19 = vmul.f32 %v4163_v56, %v11739_v50  ;;  %v4181_v0 = vmul.f32 %v4180_v47, %v11739_v50 }
 0x3ed   : > { %17659 = vst [vmem:[#allocation78_spill] sm:$0xff] %v11905_v13  ;;  %v11915_v51 = vsub.f32 %v11813_v63, %v11898_v1  ;;  %v3957_v9 = vmul.f32 %v3956_v22, %v3932_v57  ;;  %v4011_v30 = vadd.f32 1.1283791, %v4010_v25  ;;  %v11918_v21 = vmul.f32 0.70710677, %v10962_v61 }
 0x3ee   : > { %17660 = vst [vmem:[#allocation38_spill] sm:$0xff] %v11909_v45  ;;  %v11920_v44 = vpop.eup %8988  ;;  %v4026_v26 = vmul.f32 %v11857_v17, %v4025_v60  ;;  %v11924_v6 = vmul.f32 0.5, %v10909_v58  ;;  %v4088_v39 = vmul.f32 %v4087_v10, %v11680_v54  ;;  %v4335_v36 = vmul.f32 %v4334_v59, %v11855_v14 }
 0x3ef   : > { %17661 = vst [vmem:[#allocation40_spill] sm:$0xff] %v11915_v51  ;;  %v11929_v32 = vmul.f32 0.5, %v10918_v11  ;;  %v4242_v63 = vmul.f32 2.1237322e-06, %v11799_v16  ;;  %v4259_v8 = vmul.f32 %v4258_v46, %v11799_v16  ;;  %v4414_v53 = vadd.f32 0.001143296, %v4413_v43 }
 0x3f0   : > { %v11934_v12 = vsub.f32 %v5760_v5, %v11909_v45  ;;  %v11937_v31 = vmul.f32 %v5698_v49, %v11671_v40  ;;  %v4165_v58 = vadd.f32 0.0036580483, %v4164_v19  ;;  %v11939_v56 = vadd.f32 1.0, %v4181_v0  ;;  %v17668_v45 = vld [vmem:[#allocation131_spill] sm:$0xff] }
 0x3f1   : > { %v8790_v47 = vclamps-f32 %v3957_v9, 1.0  ;;  %v4012_v59 = vmul.f32 %v4011_v30, %v11587_v52  ;;  %v4104_v11 = vmul.f32 %v11920_v44, %v11864_v62  ;;  %v4480_v25 = vmul.f32 %v11918_v21, %v11918_v21 }
 0x3f2   : > { %17662 = vst [vmem:[#allocation93_spill] sm:$0xff] %v11934_v12  ;;  %v4027_v22 = vadd.f32 %v11857_v17, %v4026_v26  ;;  %vm4029_vm12 = vweird.f32 %v11857_v17  ;;  %v4089_v5 = vadd.f32 0.18741608, %v4088_v39  ;;  %v4336_v60 = vadd.f32 0.014752088, %v4335_v36  ;;  %v17666_v36 = vld [vmem:[#allocation129_spill] sm:$0xff] }
 0x3f3   : > { %v4034_v40 = vand.u32 2147483648, %v11819_v18  ;;  %v4243_v10 = vadd.f32 0.00028619796, %v4242_v63  ;;  %v4260_v57 = vadd.f32 0.4994258, %v4259_v8  ;;  %v4415_v46 = vmul.f32 %v4414_v53, %v11894_v23  ;;  %v17671_v12 = vld [vmem:[#allocation70_spill] sm:$0xff] }
 0x3f4   : > { %vm4028_vm13 = vweird.f32 %v11819_v18  ;;  %v4032_v52 = vand.u32 2147483647, %v11819_v18  ;;  %v4166_v43 = vmul.f32 %v4165_v58, %v11739_v50  ;;  %8990 = vrcp.f32 %v11939_v56 }
 0x3f5   : > { %v11955_v49 = vand.u32 4294901760, %v11937_v31  ;;  %v5700_v19 = vadd.f32 1.0, %v8790_v47  ;;  %vm11957_vm14 = vmor %vm4028_vm13, %vm4029_vm12  ;;  %v4105_v9 = vsub.f32 1.0, %v4104_v11  ;;  %v11961_v30 = vmin.f32 %v4480_v25, 16.0 }
 0x3f6   : > { %v4031_v26 = vsel %vm11957_vm14, %v11857_v17, %v4027_v22  ;;  %v4090_v18 = vmul.f32 %v4089_v5, %v11680_v54  ;;  %v4337_v39 = vmul.f32 %v4336_v60, %v11855_v14  ;;  %v11969_v63 = vmul.f32 0.70710677, %v17666_v36 }
 0x3f7   : > { %17663 = vst [vmem:[#allocation101_spill] sm:$0xff] %v11955_v49  ;;  %v4035_v8 = vor.u32 1.1754944e-38, %v4034_v40  ;;  %v4244_v53 = vmul.f32 %v4243_v10, %v11799_v16  ;;  %v4261_v58 = vmul.f32 %v4260_v57, %v11799_v16  ;;  %v4416_v47 = vadd.f32 0.014752088, %v4415_v46 }
 0x3f8   : > { %vm4033_vm15 = vcmp.eq.f32.partialorder %v4032_v52, 8.507059e+37  ;;  %v4167_v11 = vadd.f32 0.05243302, %v4166_v43  ;;  %v11974_v25 = vmul.f32 0.5, %v10931_v42  ;;  %v4322_v17 = vmul.f32 2.1237322e-06, %v11855_v14 }
 0x3f9   : > { %v11978_v54 = vmul.f32 %v5700_v19, %v11754_v28  ;;  %v4036_v22 = vsel %vm4033_vm15, %v4035_v8, %v4031_v26  ;;  %v4106_v5 = vmul.f32 %v11920_v44, %v4105_v9  ;;  %v4493_v60 = vmul.f32 3.8918573e-05, %v11961_v30  ;;  %v2873_v26 = vpop.f32.mrf.mxu3  ;;  %v2270_v8 = vpop.f32.mrf.mxu0  ;;  %2389 = vmatmul.f32.gmra.mxu0 %v17668_v45 }
 0x3fa   : > { %v11982_v40 = vpop.eup %8990  ;;  %v4091_v10 = vadd.f32 1.1283791, %v4090_v18  ;;  %vm4108_vm0 = vweird.f32 %v11864_v62  ;;  %v4338_v57 = vadd.f32 0.112945676, %v4337_v39  ;;  %v4560_v42 = vmul.f32 %v11969_v63, %v11969_v63  ;;  %v5852_v18 = vld [vmem:[%s9538_s6 + $0x60] sm:$0xff]  ;;  %v17667_v39 = vld [vmem:[#allocation123_spill] sm:$0xff] }
 0x3fb   : > { %v4114_v46 = vand.u32 2147483648, %v11864_v62  ;;  %v4245_v52 = vadd.f32 0.0036580483, %v4244_v53  ;;  %v11988_v28 = vadd.f32 1.0, %v4261_v58  ;;  %v4417_v43 = vmul.f32 %v4416_v47, %v11894_v23  ;;  %2968 = vmatmul.f32.gmra.mxu3 %v17667_v39 }
 0x3fc   : > { %v4037_v19 = vmul.f32 %v4036_v22, %v4012_v59  ;;  %vm4109_vm1 = vweird.f32 %v11920_v44  ;;  %v4168_v0 = vmul.f32 %v4167_v11, %v11739_v50  ;;  %v4323_v9 = vadd.f32 0.00028619796, %v4322_v17  ;;  %v2461_v59 = vpop.f32.mrf.mxu1  ;;  %v2712_v22 = vpop.f32.mrf.mxu2  ;;  %2807 = vmatmul.f32.gmra.mxu2 %v17667_v39  ;;  %v17670_v11 = vld [vmem:[#allocation128_spill] sm:$0xff] }
 0x3fd   : > { %v4107_v1 = vadd.f32 %v11920_v44, %v4106_v5  ;;  %v4184_v53 = vmul.f32 %v11982_v40, %v11939_v56  ;;  %v4494_v58 = vadd.f32 0.001143296, %v4493_v60  ;;  %v11999_v47 = vand.u32 4294901760, %v5852_v18  ;;  %2604 = vmatmul.f32.gmra.mxu1 %v17670_v11  ;;  %vm12027_vm2 = vmor %vm4108_vm0, %vm4109_vm1 }
 0x3fe   : > { %v4339_v17 = vmul.f32 %v4338_v57, %v11855_v14  ;;  %v12004_v27 = vmin.f32 %v4560_v42, 16.0  ;;  %v12007_v45 = vadd.f32 %v2270_v8, %v17671_v12  ;;  %v2462_v5 = vadd.f32 %v2461_v59, %v11869_v29 }
 0x3ff   : > { %17669 = vst [vmem:[#allocation98_spill] sm:$0xff] %v11999_v47  ;;  %v4246_v51 = vmul.f32 %v4245_v52, %v11799_v16  ;;  %8992 = vrcp.f32 %v11988_v28  ;;  %v4418_v60 = vadd.f32 0.112945676, %v4417_v43  ;;  %v12013_v13 = vsub.f32 %v5852_v18, %v11999_v47  ;;  %5891 = vmatpush.xpose.msrb.mxu0 %v11999_v47  ;;  %6614 = vmatpush.xpose.msrb.mxu3 %v11999_v47 }
 0x400   : > { %v8792_v57 = vclamps-f32 %v4037_v19, 1.0  ;;  %v4112_v42 = vand.u32 2147483647, %v11864_v62  ;;  %v4324_v12 = vmul.f32 %v4323_v9, %v11855_v14  ;;  %v2713_v8 = vadd.f32 %v2712_v22, %v2462_v5 }
 0x401   : > { %17672 = vst [vmem:[#allocation117_spill] sm:$0xff] %v12013_v13  ;;  %v12021_v29 = vsub.f32 %v11937_v31, %v11955_v49  ;;  %v4169_v43 = vadd.f32 0.18741608, %v4168_v0  ;;  %v4185_v18 = vsub.f32 1.0, %v4184_v53  ;;  %v4495_v19 = vmul.f32 %v4494_v58, %v11961_v30  ;;  %6415 = vmatpush.xpose.msrb.mxu2 %v12013_v13 }
 0x402   : > { %v4111_v9 = vsel %vm12027_vm2, %v11920_v44, %v4107_v1  ;;  %v4340_v31 = vadd.f32 0.4994258, %v4339_v17  ;;  %v4573_v39 = vmul.f32 3.8918573e-05, %v12004_v27  ;;  %v12037_v59 = vadd.f32 %v2873_v26, %v2713_v8  ;;  %v17677_v26 = vld [vmem:[#allocation24_spill] sm:$0xff] }
 0x403   : > { %17673 = vst [vmem:[#allocation74_spill] sm:$0xff] %v12021_v29  ;;  %v12040_v62 = vand.u32 4294901760, %v11978_v54  ;;  %v4115_v22 = vor.u32 1.1754944e-38, %v4114_v46  ;;  %v4247_v11 = vadd.f32 0.05243302, %v4246_v51  ;;  %v4419_v0 = vmul.f32 %v4418_v60, %v11894_v23 }
 0x404   : > { %v5702_v53 = vadd.f32 1.0, %v8792_v57  ;;  %v4092_v58 = vmul.f32 %v4091_v10, %v11641_v2  ;;  %vm4113_vm3 = vcmp.eq.f32.partialorder %v4112_v42, 8.507059e+37  ;;  %v4325_v5 = vadd.f32 0.0036580483, %v4324_v12 }
 0x405   : > { %17676 = vst [vmem:[#allocation85_spill] sm:$0xff] %v12040_v62  ;;  %v12044_v49 = vpop.eup %8992  ;;  %v4116_v1 = vsel %vm4113_vm3, %v4115_v22, %v4111_v9  ;;  %v4186_v44 = vmul.f32 %v11982_v40, %v4185_v18  ;;  %v4496_v17 = vadd.f32 0.014752088, %v4495_v19  ;;  %v12048_v8 = vmul.f32 0.70710677, %v17677_v26 }
 0x406   : > { %v4170_v52 = vmul.f32 %v4169_v43, %v11739_v50  ;;  %v4341_v51 = vmul.f32 %v4340_v31, %v11855_v14  ;;  %v4402_v46 = vmul.f32 2.1237322e-06, %v11894_v23  ;;  %v4574_v60 = vadd.f32 0.001143296, %v4573_v39 }
 0x407   : > { %v12055_v2 = vsub.f32 %v11978_v54, %v12040_v62  ;;  %v4248_v10 = vmul.f32 %v4247_v11, %v11799_v16  ;;  %v12059_v57 = vmul.f32 0.5, %v10941_v35  ;;  %v4420_v42 = vadd.f32 0.4994258, %v4419_v0 }
 0x408   : > { %v5766_v12 = vmul.f32 %v5702_v53, %v11790_v34  ;;  %v4117_v18 = vmul.f32 %v4116_v1, %v4092_v58  ;;  %v4264_v50 = vmul.f32 %v12044_v49, %v11988_v28  ;;  %v4326_v43 = vmul.f32 %v4325_v5, %v11855_v14 }
 0x409   : > { %17678 = vst [vmem:[#allocation42_spill] sm:$0xff] %v12055_v2  ;;  %v4187_v19 = vadd.f32 %v11982_v40, %v4186_v44  ;;  %vm4189_vm4 = vweird.f32 %v11982_v40  ;;  %v4497_v54 = vmul.f32 %v4496_v17, %v11961_v30  ;;  %v4640_v9 = vmul.f32 %v12048_v8, %v12048_v8 }
 0x40a   : > { %v4171_v35 = vadd.f32 1.1283791, %v4170_v52  ;;  %v12070_v31 = vadd.f32 1.0, %v4341_v51  ;;  %v4403_v39 = vadd.f32 0.00028619796, %v4402_v46  ;;  %v4575_v34 = vmul.f32 %v4574_v60, %v12004_v27 }
 0x40b   : > { %vm4188_vm5 = vweird.f32 %v11939_v56  ;;  %v4194_v22 = vand.u32 2147483648, %v11939_v56  ;;  %v4249_v11 = vadd.f32 0.18741608, %v4248_v10  ;;  %v4421_v0 = vmul.f32 %v4420_v42, %v11894_v23 }
 0x40c   : > { %v12076_v53 = vand.u32 4294901760, %v5766_v12  ;;  %vm12078_vm6 = vmor %vm4188_vm5, %vm4189_vm4  ;;  %v4192_v5 = vand.u32 2147483647, %v11939_v56  ;;  %v4265_v1 = vsub.f32 1.0, %v4264_v50  ;;  %v4327_v44 = vadd.f32 0.05243302, %v4326_v43 }
 0x40d   : > { %v8794_v17 = vclamps-f32 %v4117_v18, 1.0  ;;  %v4191_v52 = vsel %vm12078_vm6, %v11982_v40, %v4187_v19  ;;  %v4498_v51 = vadd.f32 0.112945676, %v4497_v54  ;;  %v12086_v46 = vmin.f32 %v4640_v9, 16.0 }
 0x40e   : > { %17679 = vst [vmem:[#allocation44_spill] sm:$0xff] %v12076_v53  ;;  %8994 = vrcp.f32 %v12070_v31  ;;  %v4404_v60 = vmul.f32 %v4403_v39, %v11894_v23  ;;  %v4482_v10 = vmul.f32 2.1237322e-06, %v11961_v30  ;;  %v4576_v42 = vadd.f32 0.014752088, %v4575_v34 }
 0x40f   : > { %v4172_v62 = vmul.f32 %v4171_v35, %v11695_v15  ;;  %v4195_v56 = vor.u32 1.1754944e-38, %v4194_v22  ;;  %v4250_v50 = vmul.f32 %v4249_v11, %v11799_v16  ;;  %v12093_v18 = vadd.f32 1.0, %v4421_v0 }
 0x410   : > { %vm4193_vm7 = vcmp.eq.f32.partialorder %v4192_v5, 8.507059e+37  ;;  %v4266_v40 = vmul.f32 %v12044_v49, %v4265_v1  ;;  %v4328_v43 = vmul.f32 %v4327_v44, %v11855_v14  ;;  %v12098_v19 = vmul.f32 0.5, %v10951_v20 }
 0x411   : > { %v12101_v54 = vsub.f32 %v5766_v12, %v12076_v53  ;;  %v4196_v9 = vsel %vm4193_vm7, %v4195_v56, %v4191_v52  ;;  %v4499_v39 = vmul.f32 %v4498_v51, %v11961_v30  ;;  %v4653_v15 = vmul.f32 3.8918573e-05, %v12086_v46  ;;  %v2877_v51 = vpop.f32.mrf.mxu3  ;;  %v2716_v53 = vpop.f32.mrf.mxu2 }
 0x412   : > { %v5704_v35 = vadd.f32 1.0, %v8794_v17  ;;  %v4405_v16 = vadd.f32 0.0036580483, %v4404_v60  ;;  %v4483_v34 = vadd.f32 0.00028619796, %v4482_v10  ;;  %v4577_v22 = vmul.f32 %v4576_v42, %v12004_v27  ;;  %v2275_v60 = vpop.f32.mrf.mxu0  ;;  %v17683_v10 = vld [vmem:[#allocation130_spill] sm:$0xff] }
 0x413   : > { %17682 = vst [vmem:[#allocation100_spill] sm:$0xff] %v12101_v54  ;;  %v4251_v11 = vadd.f32 1.1283791, %v4250_v50  ;;  %v4272_v0 = vand.u32 2147483647, %v11988_v28  ;;  %v4274_v58 = vand.u32 2147483648, %v11988_v28  ;;  %8996 = vrcp.f32 %v12093_v18  ;;  %2972 = vmatmul.f32.gmra.mxu3 %v17683_v10  ;;  %2811 = vmatmul.f32.gmra.mxu2 %v17683_v10 }
 0x414   : > { %v12109_v20 = vpop.eup %8994  ;;  %v4197_v12 = vmul.f32 %v4196_v9, %v4172_v62  ;;  %v4267_v5 = vadd.f32 %v12044_v49, %v4266_v40  ;;  %vm4269_vm8 = vweird.f32 %v12044_v49  ;;  %v4329_v1 = vadd.f32 0.18741608, %v4328_v43  ;;  %v17684_v42 = vld [vmem:[#allocation136_spill] sm:$0xff]  ;;  %v2467_v43 = vpop.f32.mrf.mxu1  ;;  %v17689_v10 = vld [vmem:[#allocation134_spill] sm:$0xff] }
 0x415   : > { %vm4268_vm9 = vweird.f32 %v11988_v28  ;;  %v4500_v44 = vadd.f32 0.4994258, %v4499_v39  ;;  %v4654_v17 = vadd.f32 0.001143296, %v4653_v15  ;;  %v16959_v52 = vand.u32 4294901760, %v12013_v13  ;;  %2394 = vmatmul.f32.gmra.mxu0 %v17684_v42  ;;  %v17685_v40 = vld [vmem:[#allocation80_spill] sm:$0xff]  ;;  %2610 = vmatmul.f32.gmra.mxu1 %v17689_v10 }
 0x416   : > { %v4406_v56 = vmul.f32 %v4405_v16, %v11894_v23  ;;  %v4484_v62 = vmul.f32 %v4483_v34, %v11961_v30  ;;  %v4578_v50 = vadd.f32 0.112945676, %v4577_v22  ;;  %v12120_v9 = vadd.f32 %v2275_v60, %v17685_v40  ;;  %vm12127_vm10 = vmor %vm4268_vm9, %vm4269_vm8  ;;  %v17688_v16 = vld [vmem:[#allocation27_spill] sm:$0xff] }
 0x417   : > { %v4344_v15 = vmul.f32 %v12109_v20, %v12070_v31  ;;  %v12134_v34 = vmul.f32 0.70710677, %v17688_v16  ;;  %v6218_v22 = vsub.f32 %v12013_v13, %v16959_v52  ;;  %v2468_v60 = vadd.f32 %v2467_v43, %v12007_v45 }
 0x418   : > { %v8796_v42 = vclamps-f32 %v4197_v12, 1.0  ;;  %v4271_v28 = vsel %vm12127_vm10, %v12044_v49, %v4267_v5  ;;  %vm12144_vm11 = vcmp.eq.f32.partialorder %v4272_v0, 8.507059e+37  ;;  %v4275_v54 = vor.u32 1.1754944e-38, %v4274_v58 }
 0x419   : > { %v12148_v2 = vpop.eup %8996  ;;  %v4501_v29 = vmul.f32 %v4500_v44, %v11961_v30  ;;  %v4655_v52 = vmul.f32 %v4654_v17, %v12086_v46  ;;  %v6219_v47 = vand.u32 4294901760, %v6218_v22  ;;  %v2717_v45 = vadd.f32 %v2716_v53, %v2468_v60 }
 0x41a   : > { %v4407_v43 = vadd.f32 0.05243302, %v4406_v56  ;;  %v4485_v10 = vadd.f32 0.0036580483, %v4484_v62  ;;  %v4562_v12 = vmul.f32 2.1237322e-06, %v12004_v27  ;;  %v4579_v39 = vmul.f32 %v4578_v50, %v12004_v27 }
 0x41b   : > { %v4330_v49 = vmul.f32 %v4329_v1, %v11855_v14  ;;  %v4345_v0 = vsub.f32 1.0, %v4344_v15  ;;  %v4720_v58 = vmul.f32 %v12134_v34, %v12134_v34  ;;  %6220 = vmatpush.xpose.msrb.mxu1 %v6219_v47  ;;  %v12157_v5 = vadd.f32 %v2877_v51, %v2717_v45 }
 0x41c   : > { %v5768_v44 = vmul.f32 %v5704_v35, %v11924_v6  ;;  %v4276_v53 = vsel %vm12144_vm11, %v4275_v54, %v4271_v28  ;;  %v4424_v17 = vmul.f32 %v12148_v2, %v12093_v18  ;;  %v12165_v56 = vmul.f32 0.5, %v10962_v61 }
 0x41d   : > { %17692 = vst [vmem:[#allocation106_spill] sm:$0xff] %v12157_v5  ;;  %v5706_v62 = vadd.f32 1.0, %v8796_v42  ;;  %v4252_v14 = vmul.f32 %v4251_v11, %v11758_v41  ;;  %v12168_v1 = vadd.f32 1.0, %v4501_v29  ;;  %v4656_v50 = vadd.f32 0.014752088, %v4655_v52  ;;  %v17694_v29 = vld [vmem:[#allocation29_spill] sm:$0xff] }
 0x41e   : > { %v4408_v47 = vmul.f32 %v4407_v43, %v11894_v23  ;;  %v4486_v51 = vmul.f32 %v4485_v10, %v11961_v30  ;;  %v4563_v6 = vadd.f32 0.00028619796, %v4562_v12  ;;  %v4580_v35 = vadd.f32 0.4994258, %v4579_v39 }
 0x41f   : > { %v4277_v15 = vmul.f32 %v4276_v53, %v4252_v14  ;;  %v4331_v54 = vadd.f32 1.1283791, %v4330_v49  ;;  %v4346_v22 = vmul.f32 %v12109_v20, %v4345_v0  ;;  %v12173_v60 = vmin.f32 %v4720_v58, 16.0 }
 0x420   : > { %v12175_v61 = vand.u32 4294901760, %v5768_v44  ;;  %v4352_v42 = vand.u32 2147483647, %v12070_v31  ;;  %v4425_v41 = vsub.f32 1.0, %v4424_v17  ;;  %v12179_v11 = vmul.f32 0.70710677, %v17694_v29 }
 0x421   : > { %v5770_v52 = vmul.f32 %v5706_v62, %v11929_v32  ;;  %v4354_v28 = vand.u32 2147483648, %v12070_v31  ;;  %8998 = vrcp.f32 %v12168_v1  ;;  %v4657_v40 = vmul.f32 %v4656_v50, %v12086_v46 }
 0x422   : > { %17693 = vst [vmem:[#allocation105_spill] sm:$0xff] %v12175_v61  ;;  %v4409_v45 = vadd.f32 0.18741608, %v4408_v47  ;;  %v4487_v43 = vadd.f32 0.05243302, %v4486_v51  ;;  %v4564_v10 = vmul.f32 %v4563_v6, %v12004_v27  ;;  %v4581_v12 = vmul.f32 %v4580_v35, %v12004_v27 }
 0x423   : > { %v8798_v39 = vclamps-f32 %v4277_v15, 1.0  ;;  %v4347_v49 = vadd.f32 %v12109_v20, %v4346_v22  ;;  %vm4349_vm12 = vweird.f32 %v12109_v20  ;;  %v4733_v0 = vmul.f32 3.8918573e-05, %v12173_v60 }
 0x424   : > { %v12191_v32 = vsub.f32 %v5768_v44, %v12175_v61  ;;  %v4332_v58 = vmul.f32 %v4331_v54, %v11823_v48  ;;  %v4426_v53 = vmul.f32 %v12148_v2, %v4425_v41  ;;  %v4800_v17 = vmul.f32 %v12179_v11, %v12179_v11  ;;  %v5850_v61 = vld [vmem:[%s9538_s6 + $0x50] sm:$0xff] }
 0x425   : > { %vm4348_vm13 = vweird.f32 %v12070_v31  ;;  %vm12198_vm14 = vcmp.eq.f32.partialorder %v4352_v42, 8.507059e+37  ;;  %v4355_v14 = vor.u32 1.1754944e-38, %v4354_v28  ;;  %v4658_v50 = vadd.f32 0.112945676, %v4657_v40 }
 0x426   : > { %17695 = vst [vmem:[#allocation84_spill] sm:$0xff] %v12191_v32  ;;  %v12202_v47 = vand.u32 4294901760, %v5770_v52  ;;  %vm12204_vm15 = vmor %vm4348_vm13, %vm4349_vm12  ;;  %v4410_v48 = vmul.f32 %v4409_v45, %v11894_v23  ;;  %v4565_v51 = vadd.f32 0.0036580483, %v4564_v10  ;;  %v12209_v6 = vadd.f32 1.0, %v4581_v12 }
 0x427   : > { %v12211_v35 = vpop.eup %8998  ;;  %v5708_v31 = vadd.f32 1.0, %v8798_v39  ;;  %v4351_v15 = vsel %vm12204_vm15, %v12109_v20, %v4347_v49  ;;  %v4488_v54 = vmul.f32 %v4487_v43, %v11961_v30  ;;  %v4734_v22 = vadd.f32 0.001143296, %v4733_v0  ;;  %v2280_v49 = vpop.f32.mrf.mxu0 }
 0x428   : > { %17698 = vst [vmem:[#allocation46_spill] sm:$0xff] %v12202_v47  ;;  %v4427_v42 = vadd.f32 %v12148_v2, %v4426_v53  ;;  %vm4429_vm0 = vweird.f32 %v12148_v2  ;;  %v4642_v41 = vmul.f32 2.1237322e-06, %v12086_v46  ;;  %v12220_v23 = vmin.f32 %v4800_v17, 16.0 }
 0x429   : > { %vm4428_vm1 = vweird.f32 %v12093_v18  ;;  %v4432_v28 = vand.u32 2147483647, %v12093_v18  ;;  %v4434_v40 = vand.u32 2147483648, %v12093_v18  ;;  %v4659_v45 = vmul.f32 %v4658_v50, %v12086_v46 }
 0x42a   : > { %v4356_v20 = vsel %vm12198_vm14, %v4355_v14, %v4351_v15  ;;  %v4504_v43 = vmul.f32 %v12211_v35, %v12168_v1  ;;  %v4566_v10 = vmul.f32 %v4565_v51, %v12004_v27  ;;  %9000 = vrcp.f32 %v12209_v6  ;;  %vm12235_vm2 = vmor %vm4428_vm1, %vm4429_vm0 }
 0x42b   : > { %v12233_v12 = vsub.f32 %v5770_v52, %v12202_v47  ;;  %v4411_v39 = vadd.f32 1.1283791, %v4410_v48  ;;  %v12240_v18 = vmul.f32 0.5, %v17666_v36  ;;  %v4735_v0 = vmul.f32 %v4734_v22, %v12173_v60  ;;  %v17704_v48 = vld [vmem:[#allocation31_spill] sm:$0xff]  ;;  %v2881_v47 = vpop.f32.mrf.mxu3 }
 0x42c   : > { %v4431_v53 = vsel %vm12235_vm2, %v12148_v2, %v4427_v42  ;;  %v4489_v17 = vadd.f32 0.18741608, %v4488_v54  ;;  %v4643_v62 = vadd.f32 0.00028619796, %v4642_v41  ;;  %v4813_v52 = vmul.f32 3.8918573e-05, %v12220_v23 }
 0x42d   : > { %17701 = vst [vmem:[#allocation48_spill] sm:$0xff] %v12233_v12  ;;  %v4357_v14 = vmul.f32 %v4356_v20, %v4332_v58  ;;  %v4435_v50 = vor.u32 1.1754944e-38, %v4434_v40  ;;  %v4660_v44 = vadd.f32 0.4994258, %v4659_v45  ;;  %v12248_v51 = vmul.f32 0.70710677, %v17704_v48  ;;  %v2473_v45 = vpop.f32.mrf.mxu1  ;;  %v2720_v20 = vpop.f32.mrf.mxu2 }
 0x42e   : > { %v12251_v15 = vmul.f32 %v5708_v31, %v11974_v25  ;;  %vm4433_vm3 = vcmp.eq.f32.partialorder %v4432_v28, 8.507059e+37  ;;  %v4505_v36 = vsub.f32 1.0, %v4504_v43  ;;  %v4567_v22 = vadd.f32 0.05243302, %v4566_v10  ;;  %v17705_v2 = vld [vmem:[#allocation135_spill] sm:$0xff]  ;;  %v17706_v54 = vld [vmem:[#allocation141_spill] sm:$0xff] }
 0x42f   : > { %2976 = vmatmul.f32.gmra.mxu3 %v17705_v2  ;;  %2399 = vmatmul.f32.gmra.mxu0 %v17706_v54  ;;  %v4412_v58 = vmul.f32 %v4411_v39, %v11847_v7  ;;  %v4436_v42 = vsel %vm4433_vm3, %v4435_v50, %v4431_v53  ;;  %v4736_v41 = vadd.f32 0.014752088, %v4735_v0  ;;  %v12257_v40 = vand.u32 4294901760, %v5850_v61  ;;  %v17708_v25 = vld [vmem:[#allocation139_spill] sm:$0xff]  ;;  %v17709_v10 = vld [vmem:[#allocation82_spill] sm:$0xff] }
 0x430   : > { %2815 = vmatmul.f32.gmra.mxu2 %v17705_v2  ;;  %2616 = vmatmul.f32.gmra.mxu1 %v17708_v25  ;;  %v12261_v31 = vpop.eup %9000  ;;  %v4644_v28 = vmul.f32 %v4643_v62, %v12086_v46  ;;  %v4814_v43 = vadd.f32 0.001143296, %v4813_v52  ;;  %v12265_v12 = vadd.f32 %v2280_v49, %v17709_v10  ;;  %v2474_v7 = vadd.f32 %v2473_v45, %v12120_v9 }
 0x431   : > { %17707 = vst [vmem:[#allocation103_spill] sm:$0xff] %v12257_v40  ;;  %v8800_v39 = vclamps-f32 %v4357_v14, 1.0  ;;  %v4661_v0 = vmul.f32 %v4660_v44, %v12086_v46  ;;  %v4880_v53 = vmul.f32 %v12248_v51, %v12248_v51  ;;  %v12272_v50 = vsub.f32 %v5850_v61, %v12257_v40  ;;  %5893 = vmatpush.xpose.msrb.mxu0 %v12257_v40  ;;  %v17712_v61 = vld [vmem:[#allocation37_spill] sm:$0xff] }
 0x432   : > { %6616 = vmatpush.xpose.msrb.mxu3 %v12257_v40  ;;  %v4437_v62 = vmul.f32 %v4436_v42, %v4412_v58  ;;  %v4506_v52 = vmul.f32 %v12211_v35, %v4505_v36  ;;  %v4568_v49 = vmul.f32 %v4567_v22, %v12004_v27  ;;  %v2721_v2 = vadd.f32 %v2720_v20, %v2474_v7 }
 0x433   : > { %17710 = vst [vmem:[#allocation111_spill] sm:$0xff] %v12272_v50  ;;  %v12279_v9 = vand.u32 4294901760, %v12251_v15  ;;  %v4584_v14 = vmul.f32 %v12261_v31, %v12209_v6  ;;  %v4737_v44 = vmul.f32 %v4736_v41, %v12173_v60  ;;  %v12285_v54 = vmul.f32 0.70710677, %v17712_v61  ;;  %6418 = vmatpush.xpose.msrb.mxu2 %v12272_v50 }
 0x434   : > { %v4490_v58 = vmul.f32 %v4489_v17, %v11961_v30  ;;  %v4722_v36 = vmul.f32 2.1237322e-06, %v12173_v60  ;;  %v4815_v22 = vmul.f32 %v4814_v43, %v12220_v23  ;;  %v12291_v42 = vadd.f32 %v2881_v47, %v2721_v2 }
 0x435   : > { %17711 = vst [vmem:[#allocation108_spill] sm:$0xff] %v12279_v9  ;;  %v5710_v45 = vadd.f32 1.0, %v8800_v39  ;;  %v4645_v20 = vadd.f32 0.0036580483, %v4644_v28  ;;  %v12293_v25 = vadd.f32 1.0, %v4661_v0  ;;  %v12295_v10 = vmin.f32 %v4880_v53, 16.0 }
 0x436   : > { %17713 = vst [vmem:[#allocation110_spill] sm:$0xff] %v12291_v42  ;;  %v8802_v41 = vclamps-f32 %v4437_v62, 1.0  ;;  %v4507_v7 = vadd.f32 %v12211_v35, %v4506_v52  ;;  %vm4509_vm4 = vweird.f32 %v12211_v35  ;;  %v4569_v32 = vadd.f32 0.18741608, %v4568_v49 }
 0x437   : > { %v4514_v30 = vand.u32 2147483648, %v12168_v1  ;;  %v4585_v17 = vsub.f32 1.0, %v4584_v14  ;;  %v4738_v40 = vadd.f32 0.112945676, %v4737_v44  ;;  %v4960_v47 = vmul.f32 %v12285_v54, %v12285_v54 }
 0x438   : > { %vm4508_vm5 = vweird.f32 %v12168_v1  ;;  %v4512_v28 = vand.u32 2147483647, %v12168_v1  ;;  %v4723_v43 = vadd.f32 0.00028619796, %v4722_v36  ;;  %v4816_v39 = vadd.f32 0.014752088, %v4815_v22 }
 0x439   : > { %v4491_v0 = vadd.f32 1.1283791, %v4490_v58  ;;  %vm12304_vm6 = vmor %vm4508_vm5, %vm4509_vm4  ;;  %v4646_v62 = vmul.f32 %v4645_v20, %v12086_v46  ;;  %9002 = vrcp.f32 %v12293_v25  ;;  %v4893_v52 = vmul.f32 3.8918573e-05, %v12295_v10 }
 0x43a   : > { %v5774_v49 = vmul.f32 %v5710_v45, %v12059_v57  ;;  %v5712_v2 = vadd.f32 1.0, %v8802_v41  ;;  %v4511_v1 = vsel %vm12304_vm6, %v12211_v35, %v4507_v7  ;;  %v4570_v14 = vmul.f32 %v4569_v32, %v12004_v27 }
 0x43b   : > { %v4515_v44 = vor.u32 1.1754944e-38, %v4514_v30  ;;  %v4586_v58 = vmul.f32 %v12261_v31, %v4585_v17  ;;  %v4739_v36 = vmul.f32 %v4738_v40, %v12173_v60  ;;  %v12318_v22 = vmin.f32 %v4960_v47, 16.0 }
 0x43c   : > { %v12322_v20 = vsub.f32 %v12251_v15, %v12279_v9  ;;  %vm4513_vm7 = vcmp.eq.f32.partialorder %v4512_v28, 8.507059e+37  ;;  %v4724_v57 = vmul.f32 %v4723_v43, %v12173_v60  ;;  %v4817_v45 = vmul.f32 %v4816_v39, %v12220_v23  ;;  %v17722_v9 = vld [vmem:[#allocation140_spill] sm:$0xff] }
 0x43d   : > { %v4492_v35 = vmul.f32 %v4491_v0, %v11918_v21  ;;  %v4516_v41 = vsel %vm4513_vm7, %v4515_v44, %v4511_v1  ;;  %v4647_v27 = vadd.f32 0.05243302, %v4646_v62  ;;  %v4894_v32 = vadd.f32 0.001143296, %v4893_v52 }
 0x43e   : > { %17716 = vst [vmem:[#allocation115_spill] sm:$0xff] %v12322_v20  ;;  %v12327_v7 = vand.u32 4294901760, %v5774_v49  ;;  %v5776_v40 = vmul.f32 %v5712_v2, %v12098_v19  ;;  %v4571_v30 = vadd.f32 1.1283791, %v4570_v14  ;;  %v12331_v17 = vmul.f32 0.5, %v17677_v26 }
 0x43f   : > { %v12333_v15 = vpop.eup %9002  ;;  %v4587_v47 = vadd.f32 %v12261_v31, %v4586_v58  ;;  %vm4589_vm8 = vweird.f32 %v12261_v31  ;;  %v4740_v28 = vadd.f32 0.4994258, %v4739_v36  ;;  %v4973_v21 = vmul.f32 3.8918573e-05, %v12318_v22 }
 0x440   : > { %17717 = vst [vmem:[#allocation116_spill] sm:$0xff] %v12327_v7  ;;  %v4517_v43 = vmul.f32 %v4516_v41, %v4492_v35  ;;  %v4594_v39 = vand.u32 2147483648, %v12209_v6  ;;  %v4725_v0 = vadd.f32 0.0036580483, %v4724_v57  ;;  %v4818_v53 = vadd.f32 0.112945676, %v4817_v45 }
 0x441   : > { %vm4588_vm9 = vweird.f32 %v12209_v6  ;;  %v4592_v19 = vand.u32 2147483647, %v12209_v6  ;;  %v4648_v26 = vmul.f32 %v4647_v27, %v12086_v46  ;;  %v4895_v62 = vmul.f32 %v4894_v32, %v12295_v10 }
 0x442   : > { %v12344_v52 = vsub.f32 %v5774_v49, %v12327_v7  ;;  %vm12346_vm10 = vmor %vm4588_vm9, %vm4589_vm8  ;;  %v4664_v1 = vmul.f32 %v12333_v15, %v12293_v25  ;;  %v12353_v14 = vmul.f32 0.5, %v17688_v16  ;;  %v4802_v44 = vmul.f32 2.1237322e-06, %v12220_v23  ;;  %v2885_v7 = vpop.f32.mrf.mxu3  ;;  %2980 = vmatmul.f32.gmra.mxu3 %v17722_v9 }
 0x443   : > { %v12356_v6 = vand.u32 4294901760, %v5776_v40  ;;  %v4591_v58 = vsel %vm12346_vm10, %v12261_v31, %v4587_v47  ;;  %v4741_v49 = vmul.f32 %v4740_v28, %v12173_v60  ;;  %v4974_v36 = vadd.f32 0.001143296, %v4973_v21  ;;  %v17723_v47 = vld [vmem:[#allocation47_spill] sm:$0xff] }
 0x444   : > { %17718 = vst [vmem:[#allocation113_spill] sm:$0xff] %v12344_v52  ;;  %v8804_v57 = vclamps-f32 %v4517_v43, 1.0  ;;  %v4595_v45 = vor.u32 1.1754944e-38, %v4594_v39  ;;  %v4726_v35 = vmul.f32 %v4725_v0, %v12173_v60  ;;  %v4819_v41 = vmul.f32 %v4818_v53, %v12220_v23  ;;  %v2479_v0 = vpop.f32.mrf.mxu1  ;;  %v17725_v53 = vld [vmem:[#allocation144_spill] sm:$0xff] }
 0x445   : > { %17721 = vst [vmem:[#allocation118_spill] sm:$0xff] %v12356_v6  ;;  %v4572_v16 = vmul.f32 %v4571_v30, %v11969_v63  ;;  %vm4593_vm11 = vcmp.eq.f32.partialorder %v4592_v19, 8.507059e+37  ;;  %v4649_v27 = vadd.f32 0.18741608, %v4648_v26  ;;  %v4896_v32 = vadd.f32 0.014752088, %v4895_v62  ;;  %v2285_v30 = vpop.f32.mrf.mxu0  ;;  %2404 = vmatmul.f32.gmra.mxu0 %v17725_v53 }
 0x446   : > { %v4596_v52 = vsel %vm4593_vm11, %v4595_v45, %v4591_v58  ;;  %v4665_v2 = vsub.f32 1.0, %v4664_v1  ;;  %v4803_v31 = vadd.f32 0.00028619796, %v4802_v44  ;;  %v12367_v28 = vmul.f32 0.70710677, %v17723_v47  ;;  %v17726_v19 = vld [vmem:[#allocation142_spill] sm:$0xff]  ;;  %v2724_v45 = vpop.f32.mrf.mxu2  ;;  %2819 = vmatmul.f32.gmra.mxu2 %v17722_v9 }
 0x447   : > { %v12370_v21 = vsub.f32 %v5776_v40, %v12356_v6  ;;  %v12372_v43 = vadd.f32 1.0, %v4741_v49  ;;  %v4975_v39 = vmul.f32 %v4974_v36, %v12318_v22  ;;  %v16975_v63 = vand.u32 4294901760, %v12272_v50  ;;  %2622 = vmatmul.f32.gmra.mxu1 %v17726_v19  ;;  %v17727_v44 = vld [vmem:[#allocation89_spill] sm:$0xff]  ;;  %v17729_v19 = vld [vmem:[#allocation143_spill] sm:$0xff] }
 0x448   : > { %v5714_v26 = vadd.f32 1.0, %v8804_v57  ;;  %v4727_v62 = vadd.f32 0.05243302, %v4726_v35  ;;  %v4820_v1 = vadd.f32 0.4994258, %v4819_v41  ;;  %v2286_v58 = vadd.f32 %v2285_v30, %v17727_v44 }
 0x449   : > { %17724 = vst [vmem:[#allocation56_spill] sm:$0xff] %v12370_v21  ;;  %v4597_v40 = vmul.f32 %v4596_v52, %v4572_v16  ;;  %v4897_v49 = vmul.f32 %v4896_v32, %v12295_v10  ;;  %v6224_v36 = vsub.f32 %v12272_v50, %v16975_v63  ;;  %v2480_v6 = vadd.f32 %v2479_v0, %v12265_v12  ;;  %v17733_v63 = vld [vmem:[#allocation94_spill] sm:$0xff] }
 0x44a   : > { %v4650_v53 = vmul.f32 %v4649_v27, %v12086_v46  ;;  %v4666_v57 = vmul.f32 %v12333_v15, %v4665_v2  ;;  %v4804_v35 = vmul.f32 %v4803_v31, %v12220_v23  ;;  %v5040_v41 = vmul.f32 %v12367_v28, %v12367_v28 }
 0x44b   : > { %9004 = vrcp.f32 %v12372_v43  ;;  %v4976_v9 = vadd.f32 0.014752088, %v4975_v39  ;;  %v6225_v52 = vand.u32 4294901760, %v6224_v36  ;;  %v2725_v16 = vadd.f32 %v2724_v45, %v2480_v6  ;;  %v2889_v39 = vpop.f32.mrf.mxu3  ;;  %2984 = vmatmul.f32.gmra.mxu3 %v17729_v19  ;;  %v17732_v36 = vld [vmem:[#allocation145_spill] sm:$0xff] }
 0x44c   : > { %v4728_v32 = vmul.f32 %v4727_v62, %v12173_v60  ;;  %v12393_v30 = vmul.f32 0.5, %v17694_v29  ;;  %v4821_v12 = vmul.f32 %v4820_v1, %v12220_v23  ;;  %v4882_v46 = vmul.f32 2.1237322e-06, %v12295_v10 }
 0x44d   : > { %v12398_v27 = vmul.f32 %v5714_v26, %v12165_v56  ;;  %v8806_v2 = vclamps-f32 %v4597_v40, 1.0  ;;  %v4898_v31 = vadd.f32 0.112945676, %v4897_v49  ;;  %6226 = vmatpush.xpose.msrb.mxu1 %v6225_v52  ;;  %v12400_v0 = vadd.f32 %v2885_v7, %v2725_v16  ;;  %v17730_v26 = vld [vmem:[#allocation59_spill] sm:$0xff]  ;;  %v2290_v7 = vpop.f32.mrf.mxu0  ;;  %v2485_v40 = vpop.f32.mrf.mxu1 }
 0x44e   : > { %v4651_v6 = vadd.f32 1.1283791, %v4650_v53  ;;  %v4674_v62 = vand.u32 2147483648, %v12293_v25  ;;  %v4805_v29 = vadd.f32 0.0036580483, %v4804_v35  ;;  %v12404_v44 = vmin.f32 %v5040_v41, 16.0 }
 0x44f   : > { %17728 = vst [vmem:[#allocation121_spill] sm:$0xff] %v12400_v0  ;;  %v4667_v1 = vadd.f32 %v12333_v15, %v4666_v57  ;;  %vm4669_vm12 = vweird.f32 %v12333_v15  ;;  %v4977_v56 = vmul.f32 %v4976_v9, %v12318_v22  ;;  %v12410_v45 = vmul.f32 0.70710677, %v17730_v26  ;;  %v17731_v49 = vld [vmem:[#allocation147_spill] sm:$0xff]  ;;  %2628 = vmatmul.f32.gmra.mxu1 %v17732_v36  ;;  %v2728_v57 = vpop.f32.mrf.mxu2  ;;  %2823 = vmatmul.f32.gmra.mxu2 %v17729_v19 }
 0x450   : > { %2409 = vmatmul.f32.gmra.mxu0 %v17731_v49  ;;  %vm4668_vm13 = vweird.f32 %v12293_v25  ;;  %v4729_v53 = vadd.f32 0.18741608, %v4728_v32  ;;  %v12415_v35 = vadd.f32 1.0, %v4821_v12  ;;  %v4883_v41 = vadd.f32 0.00028619796, %v4882_v46 }
 0x451   : > { %v12418_v52 = vpop.eup %9004  ;;  %v5716_v9 = vadd.f32 1.0, %v8806_v2  ;;  %v4899_v16 = vmul.f32 %v4898_v31, %v12295_v10  ;;  %v2291_v21 = vadd.f32 %v2290_v7, %v17733_v63  ;;  %v2486_v20 = vadd.f32 %v2485_v40, %v2286_v58  ;;  %vm12424_vm14 = vmor %vm4668_vm13, %vm4669_vm12 }
 0x452   : > { %v4672_v32 = vand.u32 2147483647, %v12293_v25  ;;  %v4675_v12 = vor.u32 1.1754944e-38, %v4674_v62  ;;  %v4806_v46 = vmul.f32 %v4805_v29, %v12220_v23  ;;  %v5053_v19 = vmul.f32 3.8918573e-05, %v12404_v44  ;;  %v17736_v62 = vld [vmem:[#allocation67_spill] sm:$0xff] }
 0x453   : > { %v4671_v2 = vsel %vm12424_vm14, %v12333_v15, %v4667_v1  ;;  %v4978_v31 = vadd.f32 0.112945676, %v4977_v56  ;;  %v5120_v63 = vmul.f32 %v12410_v45, %v12410_v45  ;;  %v2729_v58 = vadd.f32 %v2728_v57, %v2486_v20  ;;  %v2893_v36 = vpop.f32.mrf.mxu3  ;;  %v17738_v20 = vld [vmem:[#allocation146_spill] sm:$0xff] }
 0x454   : > { %v4744_v7 = vmul.f32 %v12418_v52, %v12372_v43  ;;  %9006 = vrcp.f32 %v12415_v35  ;;  %v4884_v25 = vmul.f32 %v4883_v41, %v12295_v10  ;;  %v12441_v29 = vmul.f32 0.70710677, %v17736_v62  ;;  %2988 = vmatmul.f32.gmra.mxu3 %v17738_v20 }
 0x455   : > { %v12444_v40 = vmul.f32 %v5716_v9, %v12240_v18  ;;  %v4730_v15 = vmul.f32 %v4729_v53, %v12173_v60  ;;  %v4900_v1 = vadd.f32 0.4994258, %v4899_v16  ;;  %v12447_v56 = vadd.f32 %v2889_v39, %v2729_v58  ;;  %v2491_v60 = vpop.f32.mrf.mxu1  ;;  %v17740_v53 = vld [vmem:[#allocation148_spill] sm:$0xff] }
 0x456   : > { %v12451_v57 = vand.u32 4294901760, %v12398_v27  ;;  %vm4673_vm15 = vcmp.eq.f32.partialorder %v4672_v32, 8.507059e+37  ;;  %v4807_v49 = vadd.f32 0.05243302, %v4806_v46  ;;  %v5054_v41 = vadd.f32 0.001143296, %v5053_v19 }
 0x457   : > { %17737 = vst [vmem:[#allocation58_spill] sm:$0xff] %v12447_v56  ;;  %v4652_v0 = vmul.f32 %v4651_v6, %v12048_v8  ;;  %v4676_v42 = vsel %vm4673_vm15, %v4675_v12, %v4671_v2  ;;  %v4979_v18 = vmul.f32 %v4978_v31, %v12318_v22  ;;  %v12455_v9 = vmin.f32 %v5120_v63, 16.0  ;;  %2634 = vmatmul.f32.gmra.mxu1 %v17740_v53  ;;  %v2732_v50 = vpop.f32.mrf.mxu2 }
 0x458   : > { %17739 = vst [vmem:[#allocation120_spill] sm:$0xff] %v12451_v57  ;;  %v4745_v39 = vsub.f32 1.0, %v4744_v7  ;;  %v4885_v16 = vadd.f32 0.0036580483, %v4884_v25  ;;  %v5200_v58 = vmul.f32 %v12441_v29, %v12441_v29  ;;  %v2492_v56 = vadd.f32 %v2491_v60, %v2291_v21  ;;  %2827 = vmatmul.f32.gmra.mxu2 %v17738_v20 }
 0x459   : > { %v12462_v32 = vand.u32 4294901760, %v12444_v40  ;;  %v4731_v8 = vadd.f32 1.1283791, %v4730_v15  ;;  %v12465_v6 = vmul.f32 0.5, %v17704_v48  ;;  %v4901_v12 = vmul.f32 %v4900_v1, %v12295_v10 }
 0x45a   : > { %v12468_v46 = vpop.eup %9006  ;;  %v4677_v19 = vmul.f32 %v4676_v42, %v4652_v0  ;;  %v4808_v2 = vmul.f32 %v4807_v49, %v12220_v23  ;;  %v5055_v31 = vmul.f32 %v5054_v41, %v12404_v44  ;;  %v2733_v21 = vadd.f32 %v2732_v50, %v2492_v56  ;;  %v17744_v56 = vld [vmem:[#allocation69_spill] sm:$0xff] }
 0x45b   : > { %17741 = vst [vmem:[#allocation126_spill] sm:$0xff] %v12462_v32  ;;  %v12474_v63 = vsub.f32 %v12398_v27, %v12451_v57  ;;  %v4962_v7 = vmul.f32 2.1237322e-06, %v12318_v22  ;;  %v4980_v25 = vadd.f32 0.4994258, %v4979_v18  ;;  %v4746_v15 = vmul.f32 %v12418_v52, %v4745_v39 }
 0x45c   : > { %v5133_v48 = vmul.f32 3.8918573e-05, %v12455_v9  ;;  %v4886_v1 = vmul.f32 %v4885_v16, %v12295_v10  ;;  %v12480_v20 = vmin.f32 %v5200_v58, 16.0  ;;  %v12482_v42 = vadd.f32 %v2893_v36, %v2733_v21  ;;  %v12495_v58 = vpop.f32.mrf.mxu0 }
 0x45d   : > { %17742 = vst [vmem:[#allocation68_spill] sm:$0xff] %v12474_v63  ;;  %v4752_v0 = vand.u32 2147483647, %v12372_v43  ;;  %v4824_v50 = vmul.f32 %v12468_v46, %v12415_v35  ;;  %v12487_v27 = vadd.f32 1.0, %v4901_v12  ;;  %v12490_v49 = vmul.f32 0.70710677, %v17744_v56 }
 0x45e   : > { %17743 = vst [vmem:[#allocation125_spill] sm:$0xff] %v12482_v42  ;;  %v8808_v41 = vclamps-f32 %v4677_v19, 1.0  ;;  %vm4748_vm0 = vweird.f32 %v12372_v43  ;;  %v4809_v18 = vadd.f32 0.18741608, %v4808_v2  ;;  %v5056_v60 = vadd.f32 0.014752088, %v5055_v31 }
 0x45f   : > { %v4754_v53 = vand.u32 2147483648, %v12372_v43  ;;  %v4963_v36 = vadd.f32 0.00028619796, %v4962_v7  ;;  %v4981_v39 = vmul.f32 %v4980_v25, %v12318_v22  ;;  %v5134_v16 = vadd.f32 0.001143296, %v5133_v48  ;;  %17745 = vst [vmem:[#allocation129_spill] sm:$0xff] %v12495_v58 }
 0x460   : > { %v4747_v21 = vadd.f32 %v12418_v52, %v4746_v15  ;;  %vm4749_vm1 = vweird.f32 %v12418_v52  ;;  %v4887_v12 = vadd.f32 0.05243302, %v4886_v1  ;;  %v5213_v57 = vmul.f32 3.8918573e-05, %v12480_v20  ;;  %v5848_v19 = vld [vmem:[%s9538_s6 + $0x40] sm:$0xff] }
 0x461   : > { %v4825_v63 = vsub.f32 1.0, %v4824_v50  ;;  %9008 = vrcp.f32 %v12487_v27  ;;  %v5280_v2 = vmul.f32 %v12490_v49, %v12490_v49  ;;  %v12504_v31 = vand.u32 4294901760, %v5848_v19  ;;  %vm12523_vm2 = vmor %vm4748_vm0, %vm4749_vm1 }
 0x462   : > { %v5718_v7 = vadd.f32 1.0, %v8808_v41  ;;  %v4810_v25 = vmul.f32 %v4809_v18, %v12220_v23  ;;  %v5042_v48 = vmul.f32 2.1237322e-06, %v12404_v44  ;;  %v5057_v15 = vmul.f32 %v5056_v60, %v12404_v44 }
 0x463   : > { %17746 = vst [vmem:[#allocation123_spill] sm:$0xff] %v12504_v31  ;;  %v4964_v1 = vmul.f32 %v4963_v36, %v12318_v22  ;;  %v12510_v58 = vadd.f32 1.0, %v4981_v39  ;;  %v5135_v50 = vmul.f32 %v5134_v16, %v12455_v9  ;;  %v12514_v42 = vsub.f32 %v5848_v19, %v12504_v31  ;;  %5895 = vmatpush.xpose.msrb.mxu0 %v12504_v31 }
 0x464   : > { %6618 = vmatpush.xpose.msrb.mxu3 %v12504_v31  ;;  %v4732_v41 = vmul.f32 %v4731_v8, %v12134_v34  ;;  %vm12527_vm3 = vcmp.eq.f32.partialorder %v4752_v0, 8.507059e+37  ;;  %v4755_v60 = vor.u32 1.1754944e-38, %v4754_v53  ;;  %v5214_v36 = vadd.f32 0.001143296, %v5213_v57 }
 0x465   : > { %17747 = vst [vmem:[#allocation131_spill] sm:$0xff] %v12514_v42  ;;  %v4751_v39 = vsel %vm12523_vm2, %v12418_v52, %v4747_v21  ;;  %v4826_v34 = vmul.f32 %v12468_v46, %v4825_v63  ;;  %v4888_v8 = vmul.f32 %v4887_v12, %v12295_v10  ;;  %v12536_v16 = vmin.f32 %v5280_v2, 16.0  ;;  %6421 = vmatpush.xpose.msrb.mxu2 %v12514_v42  ;;  %v12552_v2 = vpop.f32.mrf.mxu1 }
 0x466   : > { %v12541_v43 = vsub.f32 %v12444_v40, %v12462_v32  ;;  %v4811_v0 = vadd.f32 1.1283791, %v4810_v25  ;;  %v5043_v19 = vadd.f32 0.00028619796, %v5042_v48  ;;  %v5058_v53 = vadd.f32 0.112945676, %v5057_v15  ;;  %v12557_v48 = vpop.f32.mrf.mxu0 }
 0x467   : > { %v12543_v57 = vpop.eup %9008  ;;  %v5782_v23 = vmul.f32 %v5718_v7, %v12331_v17  ;;  %v4965_v52 = vadd.f32 0.0036580483, %v4964_v1  ;;  %9010 = vrcp.f32 %v12510_v58  ;;  %v5136_v63 = vadd.f32 0.014752088, %v5135_v50  ;;  %17753 = vst [vmem:[#allocation70_spill] sm:$0xff] %v12552_v2 }
 0x468   : > { %17752 = vst [vmem:[#allocation128_spill] sm:$0xff] %v12541_v43  ;;  %v4756_v21 = vsel %vm12527_vm3, %v4755_v60, %v4751_v39  ;;  %vm4828_vm4 = vweird.f32 %v12415_v35  ;;  %v4834_v12 = vand.u32 2147483648, %v12415_v35  ;;  %v5215_v40 = vmul.f32 %v5214_v36, %v12480_v20 }
 0x469   : > { %v4827_v25 = vadd.f32 %v12468_v46, %v4826_v34  ;;  %vm4829_vm5 = vweird.f32 %v12468_v46  ;;  %v4889_v17 = vadd.f32 0.18741608, %v4888_v8  ;;  %v5293_v7 = vmul.f32 3.8918573e-05, %v12536_v16  ;;  %17754 = vst [vmem:[#allocation24_spill] sm:$0xff] %v12557_v48 }
 0x46a   : > { %v4904_v15 = vmul.f32 %v12543_v57, %v12487_v27  ;;  %v5044_v1 = vmul.f32 %v5043_v19, %v12404_v44  ;;  %v5059_v50 = vmul.f32 %v5058_v53, %v12404_v44  ;;  %v16991_v18 = vand.u32 4294901760, %v12514_v42  ;;  %vm12571_vm6 = vmor %vm4828_vm4, %vm4829_vm5  ;;  %v12578_v53 = vpop.f32.mrf.mxu2 }
 0x46b   : > { %v4757_v60 = vmul.f32 %v4756_v21, %v4732_v41  ;;  %v4832_v36 = vand.u32 2147483647, %v12415_v35  ;;  %v4966_v39 = vmul.f32 %v4965_v52, %v12318_v22  ;;  %v5137_v34 = vmul.f32 %v5136_v63, %v12455_v9  ;;  %17758 = vst [vmem:[#allocation136_spill] sm:$0xff] %v12578_v53 }
 0x46c   : > { %v12567_v8 = vand.u32 4294901760, %v5782_v23  ;;  %v4835_v19 = vor.u32 1.1754944e-38, %v4834_v12  ;;  %v5216_v48 = vadd.f32 0.014752088, %v5215_v40  ;;  %v6230_v41 = vsub.f32 %v12514_v42, %v16991_v18 }
 0x46d   : > { %v12580_v21 = vpop.eup %9010  ;;  %v4831_v52 = vsel %vm12571_vm6, %v12468_v46, %v4827_v25  ;;  %v4890_v35 = vmul.f32 %v4889_v17, %v12295_v10  ;;  %v5122_v63 = vmul.f32 2.1237322e-06, %v12455_v9  ;;  %v5294_v43 = vadd.f32 0.001143296, %v5293_v7 }
 0x46e   : > { %17755 = vst [vmem:[#allocation130_spill] sm:$0xff] %v12567_v8  ;;  %v4905_v2 = vsub.f32 1.0, %v4904_v15  ;;  %v5045_v12 = vadd.f32 0.0036580483, %v5044_v1  ;;  %v5060_v40 = vadd.f32 0.4994258, %v5059_v50  ;;  %v4984_v32 = vmul.f32 %v12580_v21, %v12510_v58 }
 0x46f   : > { %v6231_v31 = vand.u32 4294901760, %v6230_v41  ;;  %v8810_v13 = vclamps-f32 %v4757_v60, 1.0  ;;  %vm4833_vm7 = vcmp.eq.f32.partialorder %v4832_v36, 8.507059e+37  ;;  %v4967_v18 = vadd.f32 0.05243302, %v4966_v39  ;;  %v12601_v60 = vpop.f32.mrf.mxu1  ;;  %v17763_v41 = vld [vmem:[#allocation79_spill] sm:$0xff] }
 0x470   : > { %v5138_v42 = vadd.f32 0.112945676, %v5137_v34  ;;  %v4836_v53 = vsel %vm4833_vm7, %v4835_v19, %v4831_v52  ;;  %v12588_v5 = vmul.f32 0.5, %v17712_v61  ;;  %v5217_v10 = vmul.f32 %v5216_v48, %v12480_v20  ;;  %17760 = vst [vmem:[#allocation27_spill] sm:$0xff] %v12601_v60  ;;  %v12609_v34 = vpop.f32.mrf.mxu3 }
 0x471   : > { %6232 = vmatpush.xpose.msrb.mxu1 %v6231_v31  ;;  %v12594_v46 = vsub.f32 %v5782_v23, %v12567_v8  ;;  %v4812_v25 = vmul.f32 %v4811_v0, %v12179_v11  ;;  %v5123_v17 = vadd.f32 0.00028619796, %v5122_v63  ;;  %v5295_v7 = vmul.f32 %v5294_v43, %v12536_v16  ;;  %v12605_v11 = vpop.f32.mrf.mxu0  ;;  %17762 = vst [vmem:[#allocation29_spill] sm:$0xff] %v12609_v34 }
 0x472   : > { %v4891_v15 = vadd.f32 1.1283791, %v4890_v35  ;;  %v4906_v1 = vmul.f32 %v12543_v57, %v4905_v2  ;;  %v5046_v61 = vmul.f32 %v5045_v12, %v12404_v44  ;;  %v5061_v50 = vmul.f32 %v5060_v40, %v12404_v44  ;;  %17761 = vst [vmem:[#allocation134_spill] sm:$0xff] %v12605_v11  ;;  %v12622_v12 = vpop.f32.mrf.mxu2  ;;  %v17776_v11 = vld [vmem:[#allocation81_spill] sm:$0xff] }
 0x473   : > { %17759 = vst [vmem:[#allocation80_spill] sm:$0xff] %v12594_v46  ;;  %v5720_v48 = vadd.f32 1.0, %v8810_v13  ;;  %v4837_v31 = vmul.f32 %v4836_v53, %v4812_v25  ;;  %v4968_v23 = vmul.f32 %v4967_v18, %v12318_v22  ;;  %v5139_v36 = vmul.f32 %v5138_v42, %v12455_v9  ;;  %v5846_v18 = vld [vmem:[%s9538_s6 + $0x30] sm:$0xff] }
 0x474   : > { %v4912_v43 = vand.u32 2147483647, %v12487_v27  ;;  %v4914_v0 = vand.u32 2147483648, %v12487_v27  ;;  %v4985_v2 = vsub.f32 1.0, %v4984_v32  ;;  %v5218_v39 = vadd.f32 0.112945676, %v5217_v10 }
 0x475   : > { %vm4909_vm8 = vweird.f32 %v12543_v57  ;;  %v5124_v19 = vmul.f32 %v5123_v17, %v12455_v9  ;;  %v5296_v13 = vadd.f32 0.014752088, %v5295_v7  ;;  %v12614_v53 = vmul.f32 0.70710677, %v17763_v41  ;;  %17764 = vst [vmem:[#allocation31_spill] sm:$0xff] %v12622_v12 }
 0x476   : > { %v4907_v42 = vadd.f32 %v12543_v57, %v4906_v1  ;;  %v5047_v52 = vadd.f32 0.05243302, %v5046_v61  ;;  %v12618_v35 = vadd.f32 1.0, %v5061_v50  ;;  %v12620_v63 = vand.u32 4294901760, %v5846_v18 }
 0x477   : > { %v12625_v40 = vmul.f32 %v5720_v48, %v12353_v14  ;;  %v8812_v32 = vclamps-f32 %v4837_v31, 1.0  ;;  %v4969_v10 = vadd.f32 0.18741608, %v4968_v23  ;;  %v5140_v25 = vadd.f32 0.4994258, %v5139_v36 }
 0x478   : > { %vm4908_vm9 = vweird.f32 %v12487_v27  ;;  %v4986_v17 = vmul.f32 %v12580_v21, %v4985_v2  ;;  %v5219_v7 = vmul.f32 %v5218_v39, %v12480_v20  ;;  %v12631_v1 = vsub.f32 %v5846_v18, %v12620_v63  ;;  %5897 = vmatpush.xpose.msrb.mxu0 %v12620_v63  ;;  %6620 = vmatpush.xpose.msrb.mxu3 %v12620_v63  ;;  %v12660_v18 = vpop.f32.mrf.mxu1 }
 0x479   : > { %vm12636_vm10 = vmor %vm4908_vm9, %vm4909_vm8  ;;  %vm12640_vm11 = vcmp.eq.f32.partialorder %v4912_v43, 8.507059e+37  ;;  %v5125_v27 = vadd.f32 0.0036580483, %v5124_v19  ;;  %v5297_v50 = vmul.f32 %v5296_v13, %v12536_v16  ;;  %v5360_v48 = vmul.f32 %v12614_v53, %v12614_v53  ;;  %17769 = vst [vmem:[#allocation135_spill] sm:$0xff] %v12660_v18 }
 0x47a   : > { %v4911_v31 = vsel %vm12636_vm10, %v12543_v57, %v4907_v42  ;;  %v4915_v23 = vor.u32 1.1754944e-38, %v4914_v0  ;;  %v5048_v36 = vmul.f32 %v5047_v52, %v12404_v44  ;;  %9012 = vrcp.f32 %v12618_v35  ;;  %6424 = vmatpush.xpose.msrb.mxu2 %v12631_v1 }
 0x47b   : > { %v5722_v43 = vadd.f32 1.0, %v8812_v32  ;;  %v4970_v2 = vmul.f32 %v4969_v10, %v12318_v22  ;;  %v5141_v39 = vmul.f32 %v5140_v25, %v12455_v9  ;;  %v5202_v19 = vmul.f32 2.1237322e-06, %v12480_v20  ;;  %v12667_v10 = vpop.f32.mrf.mxu0 }
 0x47c   : > { %v4987_v13 = vadd.f32 %v12580_v21, %v4986_v17  ;;  %vm4989_vm12 = vweird.f32 %v12580_v21  ;;  %v4994_v57 = vand.u32 2147483648, %v12510_v58  ;;  %v5220_v0 = vadd.f32 0.4994258, %v5219_v7  ;;  %17770 = vst [vmem:[#allocation141_spill] sm:$0xff] %v12667_v10  ;;  %v12672_v7 = vpop.f32.mrf.mxu3 }
 0x47d   : > { %v4916_v42 = vsel %vm12640_vm11, %v4915_v23, %v4911_v31  ;;  %v5126_v52 = vmul.f32 %v5125_v27, %v12455_v9  ;;  %v5298_v32 = vadd.f32 0.112945676, %v5297_v50  ;;  %v12665_v22 = vmin.f32 %v5360_v48, 16.0  ;;  %17771 = vst [vmem:[#allocation139_spill] sm:$0xff] %v12672_v7 }
 0x47e   : > { %v4892_v25 = vmul.f32 %v4891_v15, %v12248_v51  ;;  %vm4988_vm13 = vweird.f32 %v12510_v58  ;;  %v4992_v17 = vand.u32 2147483647, %v12510_v58  ;;  %v5049_v61 = vadd.f32 0.18741608, %v5048_v36  ;;  %v12692_v36 = vpop.f32.mrf.mxu2 }
 0x47f   : > { %v12675_v8 = vand.u32 4294901760, %v12625_v40  ;;  %v4971_v14 = vadd.f32 1.1283791, %v4970_v2  ;;  %vm12679_vm14 = vmor %vm4988_vm13, %vm4989_vm12  ;;  %v12683_v50 = vadd.f32 1.0, %v5141_v39  ;;  %v5203_v51 = vadd.f32 0.00028619796, %v5202_v19 }
 0x480   : > { %v12685_v15 = vpop.eup %9012  ;;  %v5786_v58 = vmul.f32 %v5722_v43, %v12393_v30  ;;  %v4917_v48 = vmul.f32 %v4916_v42, %v4892_v25  ;;  %v4991_v31 = vsel %vm12679_vm14, %v12580_v21, %v4987_v13  ;;  %v5221_v23 = vmul.f32 %v5220_v0, %v12480_v20  ;;  %17775 = vst [vmem:[#allocation37_spill] sm:$0xff] %v12692_v36 }
 0x481   : > { %17772 = vst [vmem:[#allocation82_spill] sm:$0xff] %v12675_v8  ;;  %v4995_v2 = vor.u32 1.1754944e-38, %v4994_v57  ;;  %v5127_v10 = vadd.f32 0.05243302, %v5126_v52  ;;  %v5299_v18 = vmul.f32 %v5298_v32, %v12536_v16  ;;  %v5373_v39 = vmul.f32 3.8918573e-05, %v12665_v22 }
 0x482   : > { %vm4993_vm15 = vcmp.eq.f32.partialorder %v4992_v17, 8.507059e+37  ;;  %v5050_v19 = vmul.f32 %v5049_v61, %v12404_v44  ;;  %v12698_v30 = vmul.f32 0.70710677, %v17776_v11  ;;  %v16996_v43 = vand.u32 4294901760, %v12631_v1 }
 0x483   : > { %v4996_v42 = vsel %vm4993_vm15, %v4995_v2, %v4991_v31  ;;  %v5064_v21 = vmul.f32 %v12685_v15, %v12618_v35  ;;  %9014 = vrcp.f32 %v12683_v50  ;;  %v5204_v13 = vmul.f32 %v5203_v51, %v12480_v20  ;;  %v12722_v36 = vpop.f32.mrf.mxu0 }
 0x484   : > { %v8814_v57 = vclamps-f32 %v4917_v48, 1.0  ;;  %v4972_v0 = vmul.f32 %v4971_v14, %v12285_v54  ;;  %v12706_v52 = vadd.f32 1.0, %v5221_v23  ;;  %v6236_v44 = vsub.f32 %v12631_v1, %v16996_v43  ;;  %v12717_v54 = vpop.f32.mrf.mxu1  ;;  %17779 = vst [vmem:[#allocation144_spill] sm:$0xff] %v12722_v36 }
 0x485   : > { %v12711_v32 = vand.u32 4294901760, %v5786_v58  ;;  %v5128_v25 = vmul.f32 %v5127_v10, %v12455_v9  ;;  %v5300_v17 = vadd.f32 0.4994258, %v5299_v18  ;;  %v5374_v61 = vadd.f32 0.001143296, %v5373_v39  ;;  %17778 = vst [vmem:[#allocation47_spill] sm:$0xff] %v12717_v54 }
 0x486   : > { %v4997_v27 = vmul.f32 %v4996_v42, %v4972_v0  ;;  %v5282_v31 = vmul.f32 2.1237322e-06, %v12536_v16  ;;  %v5440_v51 = vmul.f32 %v12698_v30, %v12698_v30  ;;  %v6237_v48 = vand.u32 4294901760, %v6236_v44  ;;  %v12732_v42 = vpop.f32.mrf.mxu3  ;;  %v12747_v36 = vpop.f32.mrf.mxu2 }
 0x487   : > { %17777 = vst [vmem:[#allocation140_spill] sm:$0xff] %v12711_v32  ;;  %v12720_v14 = vmul.f32 0.5, %v17723_v47  ;;  %v5051_v23 = vadd.f32 1.1283791, %v5050_v19  ;;  %v5065_v2 = vsub.f32 1.0, %v5064_v21  ;;  %v12726_v18 = vsub.f32 %v12625_v40, %v12675_v8  ;;  %v17782_v21 = vld [vmem:[#allocation49_spill] sm:$0xff] }
 0x488   : > { %v5205_v43 = vadd.f32 0.0036580483, %v5204_v13  ;;  %v5724_v10 = vadd.f32 1.0, %v8814_v57  ;;  %v12729_v39 = vmul.f32 0.5, %v17730_v26  ;;  %9016 = vrcp.f32 %v12706_v52  ;;  %6238 = vmatpush.xpose.msrb.mxu1 %v6237_v48  ;;  %17781 = vst [vmem:[#allocation89_spill] sm:$0xff] %v12732_v42  ;;  %v17783_v13 = vld [vmem:[#allocation41_spill] sm:$0xff] }
 0x489   : > { %17780 = vst [vmem:[#allocation142_spill] sm:$0xff] %v12726_v18  ;;  %v12734_v47 = vpop.eup %9014  ;;  %v5129_v19 = vadd.f32 0.18741608, %v5128_v25  ;;  %v12738_v0 = vadd.f32 %v17783_v13, %v17782_v21  ;;  %v5301_v40 = vmul.f32 %v5300_v17, %v12536_v16  ;;  %v5375_v57 = vmul.f32 %v5374_v61, %v12665_v22 }
 0x48a   : > { %v12743_v26 = vsub.f32 %v5786_v58, %v12711_v32  ;;  %v8816_v44 = vclamps-f32 %v4997_v27, 1.0  ;;  %v5283_v8 = vadd.f32 0.00028619796, %v5282_v31  ;;  %v12745_v48 = vmin.f32 %v5440_v51, 16.0  ;;  %17786 = vst [vmem:[#allocation147_spill] sm:$0xff] %v12747_v36  ;;  %v17787_v31 = vld [vmem:[#allocation92_spill] sm:$0xff] }
 0x48b   : > { %17784 = vst [vmem:[#allocation143_spill] sm:$0xff] %v12738_v0  ;;  %v12750_v25 = vmul.f32 %v5051_v23, %v12367_v28  ;;  %v5066_v21 = vmul.f32 %v12685_v15, %v5065_v2  ;;  %v12754_v13 = vmul.f32 0.5, %v17736_v62  ;;  %v5206_v17 = vmul.f32 %v5205_v43, %v12480_v20  ;;  %v5844_v28 = vld [vmem:[%s9538_s6 + $0x20] sm:$0xff] }
 0x48c   : > { %17785 = vst [vmem:[#allocation59_spill] sm:$0xff] %v12743_v26  ;;  %v12758_v61 = vmul.f32 %v5724_v10, %v12465_v6  ;;  %v5072_v58 = vand.u32 2147483647, %v12618_v35  ;;  %v5144_v27 = vmul.f32 %v12734_v47, %v12683_v50  ;;  %v12764_v51 = vmul.f32 0.70710677, %v17787_v31 }
 0x48d   : > { %v5130_v23 = vmul.f32 %v5129_v19, %v12455_v9  ;;  %v12768_v2 = vadd.f32 1.0, %v5301_v40  ;;  %v5376_v62 = vadd.f32 0.014752088, %v5375_v57  ;;  %v12770_v32 = vand.u32 4294901760, %v5844_v28  ;;  %v12790_v57 = vpop.f32.mrf.mxu1 }
 0x48e   : > { %v12772_v43 = vpop.eup %9016  ;;  %v5726_v6 = vadd.f32 1.0, %v8816_v44  ;;  %v5074_v10 = vand.u32 2147483648, %v12618_v35  ;;  %v5284_v36 = vmul.f32 %v5283_v8, %v12536_v16  ;;  %v5453_v54 = vmul.f32 3.8918573e-05, %v12745_v48  ;;  %17789 = vst [vmem:[#allocation94_spill] sm:$0xff] %v12790_v57  ;;  %v12810_v18 = vpop.f32.mrf.mxu3 }
 0x48f   : > { %v5067_v42 = vadd.f32 %v12685_v15, %v5066_v21  ;;  %vm5069_vm0 = vweird.f32 %v12685_v15  ;;  %v5207_v26 = vadd.f32 0.05243302, %v5206_v17  ;;  %v12780_v9 = vsub.f32 %v5844_v28, %v12770_v32  ;;  %5899 = vmatpush.xpose.msrb.mxu0 %v12770_v32  ;;  %6622 = vmatpush.xpose.msrb.mxu3 %v12770_v32  ;;  %v12797_v28 = vpop.f32.mrf.mxu0  ;;  %17795 = vst [vmem:[#allocation146_spill] sm:$0xff] %v12810_v18 }
 0x490   : > { %v12785_v19 = vand.u32 4294901760, %v12758_v61  ;;  %vm5068_vm1 = vweird.f32 %v12618_v35  ;;  %v5145_v8 = vsub.f32 1.0, %v5144_v27  ;;  %v5520_v40 = vmul.f32 %v12764_v51, %v12764_v51  ;;  %17790 = vst [vmem:[#allocation67_spill] sm:$0xff] %v12797_v28  ;;  %v5842_v35 = vld [vmem:[%s9538_s6 + $0x10] sm:$0xff] }
 0x491   : > { %v5131_v44 = vadd.f32 1.1283791, %v5130_v23  ;;  %v5224_v21 = vmul.f32 %v12772_v43, %v12706_v52  ;;  %9018 = vrcp.f32 %v12768_v2  ;;  %v5377_v17 = vmul.f32 %v5376_v62, %v12665_v22  ;;  %6427 = vmatpush.xpose.msrb.mxu2 %v12780_v9  ;;  %vm12801_vm2 = vmor %vm5068_vm1, %vm5069_vm0 }
 0x492   : > { %17788 = vst [vmem:[#allocation145_spill] sm:$0xff] %v12785_v19  ;;  %vm12805_vm3 = vcmp.eq.f32.partialorder %v5072_v58, 8.507059e+37  ;;  %v5285_v23 = vadd.f32 0.0036580483, %v5284_v36  ;;  %v5454_v57 = vadd.f32 0.001143296, %v5453_v54  ;;  %v12813_v62 = vmul.f32 %v5726_v6, %v12588_v5  ;;  %v12828_v54 = vpop.f32.mrf.mxu2 }
 0x493   : > { %v17004_v7 = vand.u32 4294901760, %v12780_v9  ;;  %v5071_v28 = vsel %vm12801_vm2, %v12685_v15, %v5067_v42  ;;  %v5075_v46 = vor.u32 1.1754944e-38, %v5074_v10  ;;  %v5208_v58 = vmul.f32 %v5207_v26, %v12480_v20  ;;  %17796 = vst [vmem:[#allocation148_spill] sm:$0xff] %v12828_v54 }
 0x494   : > { %v5146_v12 = vmul.f32 %v12734_v47, %v5145_v8  ;;  %v12820_v0 = vmin.f32 %v5520_v40, 16.0  ;;  %v12823_v36 = vmul.f32 0.70710677, %v11579_v24  ;;  %v12831_v6 = vmul.f32 %v5131_v44, %v12410_v45 }
 0x495   : > { %v6242_v5 = vsub.f32 %v12780_v9, %v17004_v7  ;;  %v5152_v15 = vand.u32 2147483647, %v12683_v50  ;;  %v5225_v42 = vsub.f32 1.0, %v5224_v21  ;;  %v5378_v26 = vadd.f32 0.112945676, %v5377_v17  ;;  %v12860_v34 = vpop.f32.mrf.mxu1 }
 0x496   : > { %vm5148_vm4 = vweird.f32 %v12683_v50  ;;  %v5154_v10 = vand.u32 2147483648, %v12683_v50  ;;  %v5286_v8 = vmul.f32 %v5285_v23, %v12536_v16  ;;  %v5455_v40 = vmul.f32 %v5454_v57, %v12745_v48  ;;  %17799 = vst [vmem:[#allocation69_spill] sm:$0xff] %v12860_v34 }
 0x497   : > { %v12839_v18 = vpop.eup %9018  ;;  %v5076_v7 = vsel %vm12805_vm3, %v5075_v46, %v5071_v28  ;;  %v5209_v45 = vadd.f32 0.18741608, %v5208_v58  ;;  %v5362_v44 = vmul.f32 2.1237322e-06, %v12665_v22  ;;  %v6243_v54 = vand.u32 4294901760, %v6242_v5 }
 0x498   : > { %v5147_v21 = vadd.f32 %v12734_v47, %v5146_v12  ;;  %vm5149_vm5 = vweird.f32 %v12734_v47  ;;  %v5533_v17 = vmul.f32 3.8918573e-05, %v12820_v0  ;;  %v5600_v23 = vmul.f32 %v12823_v36, %v12823_v36 }
 0x499   : > { %vm12849_vm6 = vcmp.eq.f32.partialorder %v5152_v15, 8.507059e+37  ;;  %v5226_v27 = vmul.f32 %v12772_v43, %v5225_v42  ;;  %v5379_v46 = vmul.f32 %v5378_v26, %v12665_v22  ;;  %6244 = vmatpush.xpose.msrb.mxu1 %v6243_v54  ;;  %v12855_v28 = vand.u32 4294901760, %v5842_v35  ;;  %vm12864_vm7 = vmor %vm5148_vm4, %vm5149_vm5 }
 0x49a   : > { %v5077_v12 = vmul.f32 %v5076_v7, %v12750_v25  ;;  %v5287_v58 = vadd.f32 0.05243302, %v5286_v8  ;;  %v5304_v5 = vmul.f32 %v12839_v18, %v12768_v2  ;;  %v5456_v60 = vadd.f32 0.014752088, %v5455_v40  ;;  %v12874_v7 = vpop.f32.mrf.mxu0 }
 0x49b   : > { %v5155_v42 = vor.u32 1.1754944e-38, %v5154_v10  ;;  %v5210_v54 = vmul.f32 %v5209_v45, %v12480_v20  ;;  %v5363_v26 = vadd.f32 0.00028619796, %v5362_v44  ;;  %v12870_v24 = vsub.f32 %v5842_v35, %v12855_v28  ;;  %5901 = vmatpush.xpose.msrb.mxu0 %v12855_v28  ;;  %6624 = vmatpush.xpose.msrb.mxu3 %v12855_v28  ;;  %17802 = vst [vmem:[#allocation79_spill] sm:$0xff] %v12874_v7  ;;  %v12882_v20 = vpop.f32.mrf.mxu3 }
 0x49c   : > { %v5151_v50 = vsel %vm12864_vm7, %v12734_v47, %v5147_v21  ;;  %v5234_v25 = vand.u32 2147483648, %v12706_v52  ;;  %v5534_v8 = vadd.f32 0.001143296, %v5533_v17  ;;  %v12880_v10 = vmin.f32 %v5600_v23, 16.0  ;;  %17803 = vst [vmem:[#allocation81_spill] sm:$0xff] %v12882_v20  ;;  %v12892_v23 = vpop.f32.mrf.mxu2 }
 0x49d   : > { %v5227_v40 = vadd.f32 %v12772_v43, %v5226_v27  ;;  %vm5229_vm8 = vweird.f32 %v12772_v43  ;;  %v5380_v35 = vadd.f32 0.4994258, %v5379_v46  ;;  %v12887_v45 = vmul.f32 0.70710677, %v11750_v38  ;;  %6430 = vmatpush.xpose.msrb.mxu2 %v12870_v24  ;;  %17804 = vst [vmem:[#allocation49_spill] sm:$0xff] %v12892_v23  ;;  %v12917_v38 = vpop.f32.mrf.mxu1 }
 0x49e   : > { %v8818_v44 = vclamps-f32 %v5077_v12, 1.0  ;;  %v5288_v47 = vmul.f32 %v5287_v58, %v12536_v16  ;;  %v5305_v21 = vsub.f32 1.0, %v5304_v5  ;;  %v5457_v17 = vmul.f32 %v5456_v60, %v12745_v48  ;;  %17807 = vst [vmem:[#allocation41_spill] sm:$0xff] %v12917_v38 }
 0x49f   : > { %v5211_v15 = vadd.f32 1.1283791, %v5210_v54  ;;  %vm5228_vm9 = vweird.f32 %v12706_v52  ;;  %v5232_v27 = vand.u32 2147483647, %v12706_v52  ;;  %v5364_v46 = vmul.f32 %v5363_v26, %v12665_v22 }
 0x4a0   : > { %v5156_v7 = vsel %vm12849_vm6, %v5155_v42, %v5151_v50  ;;  %vm12899_vm10 = vmor %vm5228_vm9, %vm5229_vm8  ;;  %v5535_v12 = vmul.f32 %v5534_v8, %v12820_v0  ;;  %v5613_v60 = vmul.f32 3.8918573e-05, %v12880_v10  ;;  %v17007_v58 = vand.u32 4294901760, %v12870_v24 }
 0x4a1   : > { %v5231_v5 = vsel %vm12899_vm10, %v12772_v43, %v5227_v40  ;;  %v5235_v52 = vor.u32 1.1754944e-38, %v5234_v25  ;;  %v5381_v54 = vmul.f32 %v5380_v35, %v12665_v22  ;;  %v3160_v57 = vmul.f32 %v12887_v45, %v12887_v45 }
 0x4a2   : > { %v5289_v42 = vadd.f32 0.18741608, %v5288_v47  ;;  %v5306_v26 = vmul.f32 %v12839_v18, %v5305_v21  ;;  %v5458_v50 = vadd.f32 0.112945676, %v5457_v17  ;;  %v6248_v8 = vsub.f32 %v12870_v24, %v17007_v58 }
 0x4a3   : > { %v5728_v23 = vadd.f32 1.0, %v8818_v44  ;;  %v5212_v20 = vmul.f32 %v5211_v15, %v12441_v29  ;;  %vm5233_vm11 = vcmp.eq.f32.partialorder %v5232_v27, 8.507059e+37  ;;  %v5365_v34 = vadd.f32 0.0036580483, %v5364_v46  ;;  %v12925_v44 = vpop.f32.mrf.mxu0  ;;  %v12931_v46 = vpop.f32.mrf.mxu3 }
 0x4a4   : > { %v5236_v43 = vsel %vm5233_vm11, %v5235_v52, %v5231_v5  ;;  %v5536_v25 = vadd.f32 0.014752088, %v5535_v12  ;;  %v5614_v40 = vadd.f32 0.001143296, %v5613_v60  ;;  %v6249_v35 = vand.u32 4294901760, %v6248_v8  ;;  %17808 = vst [vmem:[#allocation149_spill] sm:$0xff] %v12925_v44 }
 0x4a5   : > { %v5157_v47 = vmul.f32 %v5156_v7, %v12831_v6  ;;  %v12920_v21 = vadd.f32 1.0, %v5381_v54  ;;  %v5442_v17 = vmul.f32 2.1237322e-06, %v12745_v48  ;;  %v12923_v31 = vmin.f32 %v3160_v57, 16.0  ;;  %17809 = vst [vmem:[#allocation150_spill] sm:$0xff] %v12931_v46  ;;  %v5840_v5 = vld [vmem:[%s9538_s6] sm:$0xff]  ;;  %v12943_v57 = vpop.f32.mrf.mxu2 }
 0x4a6   : > { %v5290_v29 = vmul.f32 %v5289_v42, %v12536_v16  ;;  %v5307_v15 = vadd.f32 %v12839_v18, %v5306_v26  ;;  %vm5309_vm12 = vweird.f32 %v12839_v18  ;;  %v5459_v27 = vmul.f32 %v5458_v50, %v12745_v48  ;;  %6250 = vmatpush.xpose.msrb.mxu1 %v6249_v35  ;;  %17810 = vst [vmem:[#allocation151_spill] sm:$0xff] %v12943_v57 }
 0x4a7   : > { %v5237_v6 = vmul.f32 %v5236_v43, %v5212_v20  ;;  %v5312_v7 = vand.u32 2147483647, %v12768_v2  ;;  %v5314_v12 = vand.u32 2147483648, %v12768_v2  ;;  %v5366_v60 = vmul.f32 %v5365_v34, %v12665_v22 }
 0x4a8   : > { %v12938_v52 = vmul.f32 %v5728_v23, %v12720_v14  ;;  %vm5308_vm13 = vweird.f32 %v12768_v2  ;;  %v5537_v16 = vmul.f32 %v5536_v25, %v12820_v0  ;;  %v5615_v54 = vmul.f32 %v5614_v40, %v12880_v10 }
 0x4a9   : > { %v8820_v42 = vclamps-f32 %v5157_v47, 1.0  ;;  %vm12947_vm14 = vmor %vm5308_vm13, %vm5309_vm12  ;;  %9020 = vrcp.f32 %v12920_v21  ;;  %v5443_v26 = vadd.f32 0.00028619796, %v5442_v17  ;;  %v3173_v14 = vmul.f32 3.8918573e-05, %v12923_v31  ;;  %v17813_v17 = vld [vmem:[#allocation76_spill] sm:$0xff] }
 0x4aa   : > { %v5291_v23 = vadd.f32 1.1283791, %v5290_v29  ;;  %v5311_v2 = vsel %vm12947_vm14, %v12839_v18, %v5307_v15  ;;  %v5460_v50 = vadd.f32 0.4994258, %v5459_v27  ;;  %v12956_v8 = vand.u32 4294901760, %v5840_v5  ;;  %v17814_v27 = vld [vmem:[#allocation137_spill] sm:$0xff] }
 0x4ab   : > { %v8822_v34 = vclamps-f32 %v5237_v6, 1.0  ;;  %vm5313_vm15 = vcmp.eq.f32.partialorder %v5312_v7, 8.507059e+37  ;;  %v5315_v43 = vor.u32 1.1754944e-38, %v5314_v12  ;;  %v5367_v25 = vadd.f32 0.05243302, %v5366_v60 }
 0x4ac   : > { %v5538_v40 = vadd.f32 0.112945676, %v5537_v16  ;;  %v5616_v35 = vadd.f32 0.014752088, %v5615_v54  ;;  %v12959_v47 = vsub.f32 %v5840_v5, %v12956_v8  ;;  %5903 = vmatpush.xpose.msrb.mxu0 %v12956_v8  ;;  %6626 = vmatpush.xpose.msrb.mxu3 %v12956_v8  ;;  %v5908_v29 = vand.u32 4294901760, %v17813_v17  ;;  %v12975_v54 = vpop.f32.mrf.mxu1  ;;  %v12984_v17 = vpop.f32.mrf.mxu0 }
 0x4ad   : > { %v5316_v20 = vsel %vm5313_vm15, %v5315_v43, %v5311_v2  ;;  %v5444_v18 = vmul.f32 %v5443_v26, %v12745_v48  ;;  %v3174_v15 = vadd.f32 0.001143296, %v3173_v14  ;;  %v17815_v6 = vand.u32 4294901760, %v17814_v27  ;;  %17817 = vst [vmem:[#allocation137_spill] sm:$0xff] %v12975_v54 }
 0x4ae   : > { %v5914_v7 = vand.u32 4294901760, %v11552_v33  ;;  %v12970_v12 = vsub.f32 %v12758_v61, %v12785_v19  ;;  %v5730_v60 = vadd.f32 1.0, %v8820_v42  ;;  %v5292_v5 = vmul.f32 %v5291_v23, %v12490_v49  ;;  %6433 = vmatpush.xpose.msrb.mxu2 %v12959_v47  ;;  %v17819_v49 = vld [vmem:[#allocation86_spill] sm:$0xff] }
 0x4af   : > { %v5461_v16 = vmul.f32 %v5460_v50, %v12745_v48  ;;  %v12977_v26 = vpop.eup %9020  ;;  %v12980_v14 = vand.u32 4294901760, %v12813_v62  ;;  %v5732_v2 = vadd.f32 1.0, %v8822_v34  ;;  %v5368_v43 = vmul.f32 %v5367_v25, %v12665_v22  ;;  %5909 = vmatmul.f32.vlgmr.msrb.gmra.mxu0 %v5908_v29 }
 0x4b0   : > { %6823 = vmatpush.xpose.msra.mxu0 %v17815_v6  ;;  %17816 = vst [vmem:[#allocation76_spill] sm:$0xff] %v12970_v12  ;;  %v5522_v61 = vmul.f32 2.1237322e-06, %v12820_v0  ;;  %v17820_v42 = vand.u32 4294901760, %v17819_v49  ;;  %v5317_v23 = vmul.f32 %v5316_v20, %v5292_v5  ;;  %v5539_v50 = vmul.f32 %v5538_v40, %v12820_v0  ;;  %v12990_v6 = vpop.f32.mrf.mxu3 }
 0x4b1   : > { %17818 = vst [vmem:[#allocation152_spill] sm:$0xff] %v12980_v14  ;;  %v5617_v27 = vmul.f32 %v5616_v35, %v12880_v10  ;;  %v17010_v58 = vand.u32 4294901760, %v12959_v47  ;;  %v12994_v34 = vand.u32 4294901760, %v12938_v52  ;;  %v5445_v25 = vadd.f32 0.0036580483, %v5444_v18  ;;  %6436 = vmatmul.f32.vlgmr.msrb.gmra.mxu2 %v17819_v49 }
 0x4b2   : > { %6630 = vmatmul.f32.vlgmr.msrb.gmra.mxu3 %v17820_v42  ;;  %17821 = vst [vmem:[#allocation86_spill] sm:$0xff] %v12990_v6  ;;  %v3175_v54 = vmul.f32 %v3174_v15, %v12923_v31  ;;  %v5915_v29 = vsub.f32 %v11552_v33, %v5914_v7  ;;  %v17823_v42 = vld [vmem:[#allocation28_spill] sm:$0xff]  ;;  %v5794_v40 = vmul.f32 %v5730_v60, %v12729_v39  ;;  %v13004_v5 = vadd.f32 1.0, %v5461_v16  ;;  %v13009_v6 = vpop.f32.mrf.mxu2 }
 0x4b3   : > { %17822 = vst [vmem:[#allocation153_spill] sm:$0xff] %v12994_v34  ;;  %v17824_v20 = vand.u32 4294901760, %v17823_v42  ;;  %v5384_v35 = vmul.f32 %v12977_v26, %v12920_v21  ;;  %v6254_v18 = vsub.f32 %v12959_v47, %v17010_v58  ;;  %v5796_v15 = vmul.f32 %v5732_v2, %v12754_v13  ;;  %v17826_v58 = vld [vmem:[#allocation33_spill] sm:$0xff] }
 0x4b4   : > { %17825 = vst [vmem:[#allocation28_spill] sm:$0xff] %v13009_v6  ;;  %v5369_v49 = vadd.f32 0.18741608, %v5368_v43  ;;  %v5523_v44 = vadd.f32 0.00028619796, %v5522_v61  ;;  %v5446_v16 = vmul.f32 %v5445_v25, %v12745_v48  ;;  %v5916_v19 = vand.u32 4294901760, %v5915_v29  ;;  %v2545_v25 = vpop.f32.mrf.mxu1 }
 0x4b5   : > { %6827 = vmatpush.xpose.msra.mxu0 %v17824_v20  ;;  %v13013_v42 = vmul.f32 0.70710677, %v11901_v55  ;;  %v8824_v20 = vclamps-f32 %v5317_v23, 1.0  ;;  %v5540_v39 = vadd.f32 0.4994258, %v5539_v50  ;;  %v6255_v57 = vand.u32 4294901760, %v6254_v18 }
 0x4b6   : > { %v5618_v60 = vadd.f32 0.112945676, %v5617_v27  ;;  %v3176_v38 = vadd.f32 0.014752088, %v3175_v54  ;;  %v5922_v46 = vand.u32 4294901760, %v11605_v3  ;;  %v17827_v12 = vand.u32 4294901760, %v17826_v58 }
 0x4b7   : > { %v13021_v13 = vsub.f32 %v12813_v62, %v12980_v14  ;;  %v13023_v2 = vand.u32 4294901760, %v5794_v40  ;;  %v5385_v43 = vsub.f32 1.0, %v5384_v35  ;;  %9022 = vrcp.f32 %v13004_v5  ;;  %6256 = vmatpush.xpose.msrb.mxu1 %v6255_v57  ;;  %5917 = vmatmul.f32.gmra.mxu0 %v5916_v19  ;;  %v17831_v57 = vld [vmem:[#allocation133_spill] sm:$0xff]  ;;  %v2340_v35 = vpop.f32.mrf.mxu0  ;;  %v17833_v19 = vld [vmem:[#allocation87_spill] sm:$0xff] }
 0x4b8   : > { %v13026_v61 = vand.u32 4294901760, %v5796_v15  ;;  %v3046_v54 = vmul.f32 0.5, %v17744_v56  ;;  %v5524_v23 = vmul.f32 %v5523_v44, %v12820_v0  ;;  %v3240_v58 = vmul.f32 %v13013_v42, %v13013_v42  ;;  %v17835_v18 = vld [vmem:[#allocation75_spill] sm:$0xff]  ;;  %v17853_v6 = vld [vmem:[#allocation45_spill] sm:$0xff] }
 0x4b9   : > { %6831 = vmatpush.xpose.msra.mxu0 %v17827_v12  ;;  %17828 = vst [vmem:[#allocation33_spill] sm:$0xff] %v13021_v13  ;;  %v5734_v12 = vadd.f32 1.0, %v8824_v20  ;;  %v5370_v62 = vmul.f32 %v5369_v49, %v12665_v22  ;;  %v5541_v50 = vmul.f32 %v5540_v39, %v12820_v0  ;;  %v5619_v27 = vmul.f32 %v5618_v60, %v12880_v10  ;;  %v17836_v49 = vld [vmem:[#allocation53_spill] sm:$0xff]  ;;  %v17839_v60 = vld [vmem:[#allocation51_spill] sm:$0xff] }
 0x4ba   : > { %17829 = vst [vmem:[#allocation154_spill] sm:$0xff] %v13023_v2  ;;  %6636 = vmatmul.f32.gmra.mxu3 %v5914_v7  ;;  %v13038_v56 = vsub.f32 %v12938_v52, %v12994_v34  ;;  %v5447_v44 = vadd.f32 0.05243302, %v5446_v16  ;;  %v3177_v29 = vmul.f32 %v3176_v38, %v12923_v31  ;;  %6258 = vmatmul.f32.vlgmr.msrb.gmra.mxu1 %v17833_v19  ;;  %v13052_v52 = vmul.f32 0.5, %v17763_v41  ;;  %v13055_v38 = vpop.f32.mrf.mxu3  ;;  %v17874_v13 = vld [vmem:[#allocation25_spill] sm:$0xff] }
 0x4bb   : > { %17830 = vst [vmem:[#allocation155_spill] sm:$0xff] %v13026_v61  ;;  %7014 = vmatpush.xpose.msra.mxu1 %v17831_v57  ;;  %6441 = vmatmul.f32.gmra.mxu2 %v11552_v33  ;;  %v5923_v22 = vsub.f32 %v11605_v3, %v5922_v46  ;;  %v13045_v7 = vsub.f32 %v5794_v40, %v13023_v2  ;;  %v17840_v16 = vand.u32 4294901760, %v17839_v60  ;;  %v5525_v57 = vadd.f32 0.0036580483, %v5524_v23 }
 0x4bc   : > { %17832 = vst [vmem:[#allocation133_spill] sm:$0xff] %v13038_v56  ;;  %v13049_v20 = vadd.f32 %v17836_v49, %v17835_v18  ;;  %v5386_v39 = vmul.f32 %v12977_v26, %v5385_v43  ;;  %v13060_v33 = vsub.f32 %v5796_v15, %v13026_v61  ;;  %v13062_v40 = vmin.f32 %v3240_v58, 16.0 }
 0x4bd   : > { %17834 = vst [vmem:[#allocation156_spill] sm:$0xff] %v13045_v7  ;;  %6835 = vmatpush.xpose.msra.mxu0 %v17840_v16  ;;  %v17015_v19 = vand.u32 4294901760, %v11632_v4  ;;  %v13065_v18 = vpop.eup %9022  ;;  %v13067_v49 = vmul.f32 %v5734_v12, %v3046_v54  ;;  %v5371_v41 = vadd.f32 1.1283791, %v5370_v62  ;;  %v13069_v2 = vadd.f32 1.0, %v5541_v50  ;;  %v17842_v7 = vld [vmem:[#allocation26_spill] sm:$0xff] }
 0x4be   : > { %17837 = vst [vmem:[#allocation75_spill] sm:$0xff] %v13049_v20  ;;  %v5620_v43 = vadd.f32 0.4994258, %v5619_v27  ;;  %v13073_v60 = vmul.f32 0.5, %v17776_v11  ;;  %v5448_v15 = vmul.f32 %v5447_v44, %v12745_v48  ;;  %v3178_v23 = vadd.f32 0.112945676, %v3177_v29 }
 0x4bf   : > { %17838 = vst [vmem:[#allocation53_spill] sm:$0xff] %v13055_v38  ;;  %v2768_v38 = vpop.f32.mrf.mxu2  ;;  %7016 = vmatpush.xpose.msra.mxu1 %v17842_v7  ;;  %v5924_v58 = vand.u32 4294901760, %v5923_v22  ;;  %v5387_v16 = vadd.f32 %v12977_v26, %v5386_v39  ;;  %vm5388_vm0 = vweird.f32 %v12920_v21  ;;  %vm5389_vm1 = vweird.f32 %v12977_v26  ;;  %v17843_v54 = vld [vmem:[#allocation127_spill] sm:$0xff] }
 0x4c0   : > { %17841 = vst [vmem:[#allocation51_spill] sm:$0xff] %v13060_v33  ;;  %v2336_v12 = vadd.f32 %v12984_v17, %v17843_v54  ;;  %v17844_v62 = vld [vmem:[#allocation63_spill] sm:$0xff]  ;;  %v5464_v11 = vmul.f32 %v13065_v18, %v13004_v5  ;;  %v5526_v27 = vmul.f32 %v5525_v57, %v12820_v0  ;;  %v3253_v44 = vmul.f32 3.8918573e-05, %v13062_v40  ;;  %vm13102_vm2 = vmor %vm5388_vm0, %vm5389_vm1 }
 0x4c1   : > { %v17845_v50 = vand.u32 4294901760, %v17844_v62  ;;  %5925 = vmatmul.f32.gmra.mxu0 %v5924_v58  ;;  %v5931_v29 = vsub.f32 %v11632_v4, %v17015_v19  ;;  %9024 = vrcp.f32 %v13069_v2  ;;  %v5602_v17 = vmul.f32 2.1237322e-06, %v12880_v10  ;;  %v17846_v39 = vld [vmem:[#allocation35_spill] sm:$0xff]  ;;  %v17852_v19 = vld [vmem:[#allocation132_spill] sm:$0xff] }
 0x4c2   : > { %6642 = vmatmul.f32.gmra.mxu3 %v5922_v46  ;;  %v5621_v22 = vmul.f32 %v5620_v43, %v12880_v10  ;;  %v2546_v7 = vadd.f32 %v2545_v25, %v2336_v12  ;;  %v13095_v54 = vand.u32 4294901760, %v13067_v49  ;;  %v5372_v57 = vmul.f32 %v5371_v41, %v12614_v53  ;;  %6262 = vmatmul.f32.gmra.mxu1 %v11530_v37  ;;  %v2551_v12 = vpop.f32.mrf.mxu1  ;;  %v2929_v33 = vpop.f32.mrf.mxu3 }
 0x4c3   : > { %6839 = vmatpush.xpose.msra.mxu0 %v17845_v50  ;;  %7018 = vmatpush.xpose.msra.mxu1 %v17846_v39  ;;  %v5449_v58 = vadd.f32 0.18741608, %v5448_v15  ;;  %v3179_v62 = vmul.f32 %v3178_v23, %v12923_v31  ;;  %v5391_v25 = vsel %vm13102_vm2, %v12977_v26, %v5387_v16  ;;  %v5392_v53 = vand.u32 2147483647, %v12920_v21  ;;  %v17850_v50 = vld [vmem:[#allocation71_spill] sm:$0xff] }
 0x4c4   : > { %17847 = vst [vmem:[#allocation26_spill] sm:$0xff] %v13095_v54  ;;  %6446 = vmatmul.f32.gmra.mxu2 %v11605_v3  ;;  %v5394_v41 = vand.u32 2147483648, %v12920_v21  ;;  %v13115_v43 = vmul.f32 0.70710677, %v12037_v59  ;;  %v17851_v15 = vand.u32 4294901760, %v17850_v50  ;;  %v5465_v23 = vsub.f32 1.0, %v5464_v11  ;;  %v13120_v3 = vpop.f32.mrf.mxu0 }
 0x4c5   : > { %v3254_v39 = vadd.f32 0.001143296, %v3253_v44  ;;  %v2341_v37 = vadd.f32 %v2340_v35, %v17852_v19  ;;  %v5932_v61 = vand.u32 4294901760, %v5931_v29  ;;  %v5527_v46 = vadd.f32 0.05243302, %v5526_v27 }
 0x4c6   : > { %v5603_v26 = vadd.f32 0.00028619796, %v5602_v17  ;;  %v13122_v16 = vadd.f32 1.0, %v5621_v22  ;;  %v2769_v21 = vadd.f32 %v2768_v38, %v2546_v7  ;;  %v5450_v34 = vmul.f32 %v5449_v58, %v12745_v48  ;;  %v17856_v38 = vld [vmem:[#allocation77_spill] sm:$0xff] }
 0x4c7   : > { %6843 = vmatpush.xpose.msra.mxu0 %v17851_v15  ;;  %7020 = vmatpush.xpose.msra.mxu1 %v17853_v6  ;;  %v3180_v14 = vadd.f32 0.4994258, %v3179_v62  ;;  %v2552_v50 = vadd.f32 %v2551_v12, %v2341_v37  ;;  %v17854_v15 = vld [vmem:[#allocation34_spill] sm:$0xff]  ;;  %v13127_v44 = vpop.eup %9024  ;;  %v5395_v35 = vor.u32 1.1754944e-38, %v5394_v41  ;;  %v3162_v19 = vmul.f32 2.1237322e-06, %v12923_v31  ;;  %v2772_v17 = vpop.f32.mrf.mxu2 }
 0x4c8   : > { %v5938_v11 = vand.u32 4294901760, %v17854_v15  ;;  %v3320_v27 = vmul.f32 %v13115_v43, %v13115_v43  ;;  %v13132_v29 = vadd.f32 %v2929_v33, %v2769_v21  ;;  %v17857_v22 = vand.u32 4294901760, %v17856_v38  ;;  %v17859_v41 = vld [vmem:[#allocation57_spill] sm:$0xff]  ;;  %v17861_v21 = vld [vmem:[#allocation72_spill] sm:$0xff]  ;;  %v17864_v38 = vld [vmem:[#allocation106_spill] sm:$0xff] }
 0x4c9   : > { %vm5393_vm3 = vcmp.eq.f32.partialorder %v5392_v53, 8.507059e+37  ;;  %v5466_v48 = vmul.f32 %v13065_v18, %v5465_v23  ;;  %v3255_v37 = vmul.f32 %v3254_v39, %v13062_v40  ;;  %v2773_v6 = vadd.f32 %v2772_v17, %v2552_v50  ;;  %5933 = vmatmul.f32.gmra.mxu0 %v5932_v61  ;;  %v17860_v39 = vld [vmem:[#allocation52_spill] sm:$0xff] }
 0x4ca   : > { %17855 = vst [vmem:[#allocation127_spill] sm:$0xff] %v13132_v29  ;;  %v5396_v7 = vsel %vm5393_vm3, %v5395_v35, %v5391_v25  ;;  %v5528_v58 = vmul.f32 %v5527_v46, %v12820_v0  ;;  %v5604_v62 = vmul.f32 %v5603_v26, %v12880_v10  ;;  %9026 = vrcp.f32 %v13122_v16  ;;  %6266 = vmatmul.f32.gmra.mxu1 %v17860_v39  ;;  %v17862_v35 = vld [vmem:[#allocation50_spill] sm:$0xff] }
 0x4cb   : > { %6847 = vmatpush.xpose.msra.mxu0 %v17857_v22  ;;  %v17858_v33 = vand.u32 4294901760, %v11632_v4  ;;  %7022 = vmatpush.xpose.msra.mxu1 %v17859_v41  ;;  %v5451_v12 = vadd.f32 1.1283791, %v5450_v34  ;;  %v5544_v53 = vmul.f32 %v13127_v44, %v13069_v2  ;;  %v3181_v23 = vmul.f32 %v3180_v14, %v12923_v31 }
 0x4cc   : > { %6451 = vmatmul.f32.gmra.mxu2 %v11632_v4  ;;  %v5939_v61 = vsub.f32 %v17854_v15, %v5938_v11  ;;  %v5472_v25 = vand.u32 2147483647, %v13004_v5  ;;  %v3163_v46 = vadd.f32 0.00028619796, %v3162_v19  ;;  %v13151_v26 = vmin.f32 %v3320_v27, 16.0  ;;  %v17865_v27 = vld [vmem:[#allocation65_spill] sm:$0xff] }
 0x4cd   : > { %6648 = vmatmul.f32.gmra.mxu3 %v17858_v33  ;;  %v17863_v34 = vand.u32 4294901760, %v17862_v35  ;;  %v5467_v17 = vadd.f32 %v13065_v18, %v5466_v48  ;;  %vm5469_vm4 = vweird.f32 %v13065_v18  ;;  %v3256_v14 = vadd.f32 0.014752088, %v3255_v37  ;;  %v17875_v37 = vld [vmem:[#allocation73_spill] sm:$0xff] }
 0x4ce   : > { %v13159_v22 = vmul.f32 0.70710677, %v17864_v38  ;;  %v5397_v4 = vmul.f32 %v5396_v7, %v5372_v57  ;;  %v5474_v33 = vand.u32 2147483648, %v13004_v5  ;;  %v5529_v41 = vadd.f32 0.18741608, %v5528_v58 }
 0x4cf   : > { %6851 = vmatpush.xpose.msra.mxu0 %v17863_v34  ;;  %v5605_v19 = vadd.f32 0.0036580483, %v5604_v62  ;;  %7024 = vmatpush.xpose.msra.mxu1 %v17865_v27  ;;  %vm5468_vm5 = vweird.f32 %v13004_v5  ;;  %v5545_v50 = vsub.f32 1.0, %v5544_v53  ;;  %v13164_v35 = vadd.f32 1.0, %v3181_v23  ;;  %v2350_v34 = vpop.f32.mrf.mxu0  ;;  %v2933_v5 = vpop.f32.mrf.mxu3  ;;  %v17871_v23 = vld [vmem:[#allocation95_spill] sm:$0xff] }
 0x4d0   : > { %v5940_v48 = vand.u32 4294901760, %v5939_v61  ;;  %v13166_v39 = vpop.eup %9026  ;;  %vm13168_vm6 = vmor %vm5468_vm5, %vm5469_vm4  ;;  %vm13172_vm7 = vcmp.eq.f32.partialorder %v5472_v25, 8.507059e+37  ;;  %v3164_v7 = vmul.f32 %v3163_v46, %v12923_v31  ;;  %v3333_v58 = vmul.f32 3.8918573e-05, %v13151_v26 }
 0x4d1   : > { %v17870_v62 = vand.u32 4294901760, %v17861_v21  ;;  %v17872_v61 = vand.u32 4294901760, %v17871_v23  ;;  %v5471_v27 = vsel %vm13168_vm6, %v13065_v18, %v5467_v17  ;;  %v3257_v25 = vmul.f32 %v3256_v14, %v13062_v40 }
 0x4d2   : > { %v3400_v29 = vmul.f32 %v13159_v22, %v13159_v22  ;;  %v13189_v46 = vadd.f32 %v2933_v5, %v2773_v6  ;;  %5941 = vmatmul.f32.gmra.mxu0 %v5940_v48  ;;  %v5475_v56 = vor.u32 1.1754944e-38, %v5474_v33  ;;  %v5530_v20 = vmul.f32 %v5529_v41, %v12820_v0  ;;  %v17876_v6 = vld [vmem:[#allocation138_spill] sm:$0xff] }
 0x4d3   : > { %v5947_v53 = vsub.f32 %v17861_v21, %v17870_v62  ;;  %6855 = vmatpush.xpose.msra.mxu0 %v17872_v61  ;;  %v5606_v62 = vmul.f32 %v5605_v19, %v12880_v10  ;;  %v13194_v23 = vadd.f32 %v2350_v34, %v17874_v13  ;;  %v2557_v61 = vpop.f32.mrf.mxu1  ;;  %7026 = vmatpush.xpose.msra.mxu1 %v17875_v37  ;;  %9028 = vrcp.f32 %v13164_v35  ;;  %v17877_v0 = vld [vmem:[#allocation54_spill] sm:$0xff]  ;;  %v17878_v19 = vld [vmem:[#allocation117_spill] sm:$0xff] }
 0x4d4   : > { %17873 = vst [vmem:[#allocation63_spill] sm:$0xff] %v13189_v46  ;;  %v5546_v18 = vmul.f32 %v13127_v44, %v5545_v50  ;;  %v5624_v17 = vmul.f32 %v13166_v39, %v13122_v16  ;;  %v2346_v14 = vadd.f32 %v13120_v3, %v17876_v6  ;;  %6270 = vmatmul.f32.gmra.mxu1 %v17877_v0  ;;  %v8826_v13 = vclamps-f32 %v5397_v4, 1.0  ;;  %v17881_v46 = vld [vmem:[#allocation88_spill] sm:$0xff] }
 0x4d5   : > { %6654 = vmatmul.f32.gmra.mxu3 %v5938_v11  ;;  %6456 = vmatmul.f32.gmra.mxu2 %v17854_v15  ;;  %v5476_v11 = vsel %vm13172_vm7, %v5475_v56, %v5471_v27  ;;  %v3165_v33 = vadd.f32 0.0036580483, %v3164_v7  ;;  %v3334_v41 = vadd.f32 0.001143296, %v3333_v58  ;;  %v17879_v50 = vand.u32 4294901760, %v17878_v19  ;;  %v17880_v15 = vld [vmem:[#allocation78_spill] sm:$0xff] }
 0x4d6   : > { %v5452_v34 = vmul.f32 %v5451_v12, %v12698_v30  ;;  %v3258_v48 = vadd.f32 0.112945676, %v3257_v25  ;;  %v13210_v5 = vmin.f32 %v3400_v29, 16.0  ;;  %v2558_v3 = vadd.f32 %v2557_v61, %v2346_v14  ;;  %v5871_v29 = vld [vmem:[%s9538_s6 + $0xf8] sm:$0xff] }
 0x4d7   : > { %6859 = vmatpush.xpose.msra.mxu0 %v17879_v50  ;;  %v5531_v37 = vadd.f32 1.1283791, %v5530_v20  ;;  %v5607_v6 = vadd.f32 0.05243302, %v5606_v62  ;;  %v5948_v0 = vand.u32 4294901760, %v5947_v53  ;;  %v17029_v4 = vand.u32 4294901760, %v17880_v15  ;;  %7028 = vmatpush.xpose.msra.mxu1 %v17881_v46 }
 0x4d8   : > { %v5477_v56 = vmul.f32 %v5476_v11, %v5452_v34  ;;  %v5547_v57 = vadd.f32 %v13127_v44, %v5546_v18  ;;  %vm5549_vm8 = vweird.f32 %v13127_v44  ;;  %v5625_v7 = vsub.f32 1.0, %v5624_v17  ;;  %v17882_v12 = vld [vmem:[#allocation111_spill] sm:$0xff]  ;;  %v2776_v11 = vpop.f32.mrf.mxu2  ;;  %v17889_v34 = vld [vmem:[#allocation62_spill] sm:$0xff] }
 0x4d9   : > { %v13216_v58 = vadd.f32 1.0, %v8826_v13  ;;  %vm5548_vm9 = vweird.f32 %v13069_v2  ;;  %v3166_v30 = vmul.f32 %v3165_v33, %v12923_v31  ;;  %v3335_v20 = vmul.f32 %v3334_v41, %v13151_v26  ;;  %v13224_v27 = vpop.eup %9028  ;;  %v17888_v41 = vld [vmem:[#allocation96_spill] sm:$0xff] }
 0x4da   : > { %v17883_v53 = vand.u32 4294901760, %v17882_v12  ;;  %v5554_v25 = vand.u32 2147483648, %v13069_v2  ;;  %v3259_v46 = vmul.f32 %v3258_v48, %v13062_v40  ;;  %v3413_v62 = vmul.f32 3.8918573e-05, %v13210_v5  ;;  %5949 = vmatmul.f32.gmra.mxu0 %v5948_v0  ;;  %vm13234_vm10 = vmor %vm5548_vm9, %vm5549_vm8 }
 0x4db   : > { %v13229_v61 = vand.u32 4294901760, %v5871_v29  ;;  %v5532_v18 = vmul.f32 %v5531_v37, %v12764_v51  ;;  %v5552_v14 = vand.u32 2147483647, %v13069_v2  ;;  %v5608_v13 = vmul.f32 %v5607_v6, %v12880_v10  ;;  %7030 = vmatpush.xpose.msra.mxu1 %v17888_v41 }
 0x4dc   : > { %6863 = vmatpush.xpose.msra.mxu0 %v17883_v53  ;;  %v17887_v33 = vand.u32 4294901760, %v17861_v21  ;;  %v5955_v0 = vsub.f32 %v17880_v15, %v17029_v4  ;;  %v8828_v51 = vclamps-f32 %v5477_v56, 1.0  ;;  %v5551_v19 = vsel %vm13234_vm10, %v13127_v44, %v5547_v57  ;;  %6274 = vmatmul.f32.gmra.mxu1 %v17889_v34  ;;  %v2937_v53 = vpop.f32.mrf.mxu3  ;;  %v17890_v56 = vld [vmem:[#allocation131_spill] sm:$0xff]  ;;  %v17894_v4 = vld [vmem:[#allocation98_spill] sm:$0xff] }
 0x4dd   : > { %17884 = vst [vmem:[#allocation35_spill] sm:$0xff] %v13229_v61  ;;  %v5626_v50 = vmul.f32 %v13166_v39, %v5625_v7  ;;  %7175 = vmatpush.xpose.msra.mxu2 %v13229_v61  ;;  %v2777_v2 = vadd.f32 %v2776_v11, %v2558_v3  ;;  %v3167_v48 = vadd.f32 0.05243302, %v3166_v30  ;;  %v3184_v37 = vmul.f32 %v13224_v27, %v13164_v35  ;;  %v17893_v11 = vld [vmem:[#allocation40_spill] sm:$0xff] }
 0x4de   : > { %6660 = vmatmul.f32.gmra.mxu3 %v17887_v33  ;;  %v3242_v6 = vmul.f32 2.1237322e-06, %v13062_v40  ;;  %v3336_v12 = vadd.f32 0.014752088, %v3335_v20  ;;  %6461 = vmatmul.f32.gmra.mxu2 %v17861_v21  ;;  %v17891_v17 = vand.u32 4294901760, %v17890_v56  ;;  %v5555_v44 = vor.u32 1.1754944e-38, %v5554_v25 }
 0x4df   : > { %v3260_v57 = vadd.f32 0.4994258, %v3259_v46  ;;  %v3414_v7 = vadd.f32 0.001143296, %v3413_v62  ;;  %v13258_v33 = vadd.f32 %v2937_v53, %v2777_v2  ;;  %vm5553_vm11 = vcmp.eq.f32.partialorder %v5552_v14, 8.507059e+37  ;;  %7032 = vmatpush.xpose.msra.mxu1 %v17894_v4 }
 0x4e0   : > { %6867 = vmatpush.xpose.msra.mxu0 %v17891_v17  ;;  %v5609_v3 = vadd.f32 0.18741608, %v5608_v13  ;;  %v5956_v30 = vand.u32 4294901760, %v5955_v0  ;;  %v5962_v41 = vand.u32 4294901760, %v17893_v11  ;;  %v5556_v34 = vsel %vm5553_vm11, %v5555_v44, %v5551_v19  ;;  %v17902_v17 = vld [vmem:[#allocation64_spill] sm:$0xff] }
 0x4e1   : > { %17892 = vst [vmem:[#allocation71_spill] sm:$0xff] %v13258_v33  ;;  %v5627_v20 = vadd.f32 %v13166_v39, %v5626_v50  ;;  %vm5629_vm12 = vweird.f32 %v13166_v39  ;;  %v5634_v21 = vand.u32 2147483648, %v13122_v16  ;;  %v3168_v25 = vmul.f32 %v3167_v48, %v12923_v31 }
 0x4e2   : > { %v3185_v46 = vsub.f32 1.0, %v3184_v37  ;;  %v3243_v62 = vadd.f32 0.00028619796, %v3242_v6  ;;  %v3337_v2 = vmul.f32 %v3336_v12, %v13151_v26  ;;  %v17895_v14 = vand.u32 4294901760, %v12631_v1  ;;  %5957 = vmatmul.f32.gmra.mxu0 %v5956_v30  ;;  %v17899_v37 = vld [vmem:[#allocation110_spill] sm:$0xff]  ;;  %v2355_v12 = vpop.f32.mrf.mxu0 }
 0x4e3   : > { %vm5628_vm13 = vweird.f32 %v13122_v16  ;;  %v3261_v4 = vmul.f32 %v3260_v57, %v13062_v40  ;;  %v3415_v13 = vmul.f32 %v3414_v7, %v13210_v5  ;;  %v13273_v0 = vsub.f32 %v5871_v29, %v13229_v61  ;;  %v17901_v29 = vld [vmem:[#allocation103_spill] sm:$0xff] }
 0x4e4   : > { %6871 = vmatpush.xpose.msra.mxu0 %v17895_v14  ;;  %v13275_v19 = vadd.f32 1.0, %v8828_v51  ;;  %v5610_v50 = vmul.f32 %v5609_v3, %v12880_v10  ;;  %vm13278_vm14 = vmor %vm5628_vm13, %vm5629_vm12  ;;  %v5632_v1 = vand.u32 2147483647, %v13122_v16  ;;  %v13284_v6 = vmul.f32 0.70710677, %v17899_v37  ;;  %7034 = vmatpush.xpose.msra.mxu1 %v17901_v29  ;;  %v17903_v14 = vld [vmem:[#allocation30_spill] sm:$0xff] }
 0x4e5   : > { %17896 = vst [vmem:[#allocation132_spill] sm:$0xff] %v13273_v0  ;;  %v17900_v53 = vand.u32 4294901760, %v17880_v15  ;;  %v13289_v56 = vmul.f32 %v5556_v34, %v5532_v18  ;;  %v5631_v10 = vsel %vm13278_vm14, %v13166_v39, %v5627_v20  ;;  %v5635_v51 = vor.u32 1.1754944e-38, %v5634_v21  ;;  %6278 = vmatmul.f32.gmra.mxu1 %v17902_v17 }
 0x4e6   : > { %v5963_v16 = vsub.f32 %v17893_v11, %v5962_v41  ;;  %v3169_v44 = vadd.f32 0.18741608, %v3168_v25  ;;  %v3186_v57 = vmul.f32 %v13224_v27, %v3185_v46  ;;  %v3244_v7 = vmul.f32 %v3243_v62, %v13062_v40  ;;  %6466 = vmatmul.f32.gmra.mxu2 %v17880_v15  ;;  %v2563_v46 = vpop.f32.mrf.mxu1  ;;  %v17905_v62 = vld [vmem:[#allocation93_spill] sm:$0xff]  ;;  %v17906_v15 = vld [vmem:[#allocation123_spill] sm:$0xff] }
 0x4e7   : > { %6666 = vmatmul.f32.gmra.mxu3 %v17900_v53  ;;  %v3338_v3 = vadd.f32 0.112945676, %v3337_v2  ;;  %v13299_v30 = vadd.f32 1.0, %v3261_v4  ;;  %v3416_v18 = vadd.f32 0.014752088, %v3415_v13  ;;  %v17030_v34 = vand.u32 4294901760, %v13273_v0  ;;  %v2941_v53 = vpop.f32.mrf.mxu3 }
 0x4e8   : > { %v13303_v39 = vadd.f32 %v2355_v12, %v17903_v14  ;;  %v17904_v20 = vand.u32 4294901760, %v12780_v9  ;;  %v5611_v21 = vadd.f32 1.1283791, %v5610_v50  ;;  %vm5633_vm15 = vcmp.eq.f32.partialorder %v5632_v1, 8.507059e+37  ;;  %7036 = vmatpush.xpose.msra.mxu1 %v17906_v15 }
 0x4e9   : > { %v3480_v25 = vmul.f32 %v13284_v6, %v13284_v6  ;;  %v5970_v2 = vand.u32 4294901760, %v17905_v62  ;;  %v8830_v4 = vclamps-f32 %v13289_v56, 1.0  ;;  %v5636_v13 = vsel %vm5633_vm15, %v5635_v51, %v5631_v10 }
 0x4ea   : > { %6875 = vmatpush.xpose.msra.mxu0 %v17904_v20  ;;  %v7466_v48 = vsub.f32 %v13273_v0, %v17030_v34  ;;  %v5964_v12 = vand.u32 4294901760, %v5963_v16  ;;  %v3170_v9 = vmul.f32 %v3169_v44, %v12923_v31  ;;  %v3187_v50 = vadd.f32 %v13224_v27, %v3186_v57 }
 0x4eb   : > { %vm3189_vm0 = vweird.f32 %v13224_v27  ;;  %v3339_v1 = vmul.f32 %v3338_v3, %v13151_v26  ;;  %v3245_v29 = vadd.f32 0.0036580483, %v3244_v7  ;;  %9030 = vrcp.f32 %v13299_v30  ;;  %v2780_v7 = vpop.f32.mrf.mxu2  ;;  %v17907_v3 = vld [vmem:[#allocation112_spill] sm:$0xff] }
 0x4ec   : > { %v3417_v56 = vmul.f32 %v3416_v18, %v13210_v5  ;;  %v7467_v10 = vand.u32 4294901760, %v7466_v48  ;;  %5965 = vmatmul.f32.gmra.mxu0 %v5964_v12  ;;  %v5612_v51 = vmul.f32 %v5611_v21, %v12823_v36  ;;  %v3194_v16 = vand.u32 2147483648, %v13164_v35  ;;  %7038 = vmatpush.xpose.msra.mxu1 %v12620_v63 }
 0x4ed   : > { %v13323_v14 = vmin.f32 %v3480_v25, 16.0  ;;  %v5971_v31 = vsub.f32 %v17905_v62, %v5970_v2  ;;  %vm3188_vm1 = vweird.f32 %v13164_v35  ;;  %v3192_v44 = vand.u32 2147483647, %v13164_v35  ;;  %6282 = vmatmul.f32.gmra.mxu1 %v17907_v3 }
 0x4ee   : > { %v3322_v57 = vmul.f32 2.1237322e-06, %v13151_v26  ;;  %7468 = vmatpush.xpose.msra.mxu3 %v7467_v10  ;;  %v2564_v36 = vadd.f32 %v2563_v46, %v13194_v23  ;;  %v13340_v18 = vmul.f32 %v13216_v58, %v13052_v52  ;;  %v5637_v63 = vmul.f32 %v5636_v13, %v5612_v51  ;;  %vm13344_vm2 = vmor %vm3188_vm1, %vm3189_vm0  ;;  %v2360_v23 = vpop.f32.mrf.mxu0  ;;  %6471 = vmatmul.f32.gmra.mxu2 %v17893_v11  ;;  %v17912_v11 = vld [vmem:[#allocation74_spill] sm:$0xff] }
 0x4ef   : > { %6672 = vmatmul.f32.gmra.mxu3 %v5962_v41  ;;  %v13336_v41 = vsub.f32 %v13067_v49, %v13095_v54  ;;  %v3340_v20 = vadd.f32 0.4994258, %v3339_v1  ;;  %v17911_v21 = vand.u32 4294901760, %v12870_v24  ;;  %v3171_v49 = vadd.f32 1.1283791, %v3170_v9  ;;  %v18015_v54 = vld [vmem:[#allocation89_spill] sm:$0xff] }
 0x4f0   : > { %v3191_v52 = vsel %vm13344_vm2, %v13224_v27, %v3187_v50  ;;  %v3246_v58 = vmul.f32 %v3245_v29, %v13062_v40  ;;  %v3418_v25 = vadd.f32 0.112945676, %v3417_v56  ;;  %v13357_v46 = vmul.f32 %v13275_v19, %v13073_v60  ;;  %7040 = vmatpush.xpose.msra.mxu1 %v12770_v32  ;;  %v13366_v56 = vld [vmem:[%s9538_s6 + $0xe8] sm:$0xff]  ;;  %v2569_v19 = vpop.f32.mrf.mxu1 }
 0x4f1   : > { %17908 = vst [vmem:[#allocation45_spill] sm:$0xff] %v13336_v41  ;;  %6879 = vmatpush.xpose.msra.mxu0 %v17911_v21  ;;  %v3195_v15 = vor.u32 1.1754944e-38, %v3194_v16  ;;  %v3493_v13 = vmul.f32 3.8918573e-05, %v13323_v14  ;;  %v5978_v48 = vand.u32 4294901760, %v17912_v11  ;;  %v13362_v24 = vpop.eup %9030  ;;  %v5740_v12 = vadd.f32 1.0, %v8830_v4 }
 0x4f2   : > { %vm3193_vm3 = vcmp.eq.f32.partialorder %v3192_v44, 8.507059e+37  ;;  %v3323_v27 = vadd.f32 0.00028619796, %v3322_v57  ;;  %v5972_v9 = vand.u32 4294901760, %v5971_v31  ;;  %v8832_v50 = vclamps-f32 %v5637_v63, 1.0  ;;  %v17916_v63 = vld [vmem:[#allocation32_spill] sm:$0xff] }
 0x4f3   : > { %v3196_v1 = vsel %vm3193_vm3, %v3195_v15, %v3191_v52  ;;  %v3341_v29 = vmul.f32 %v3340_v20, %v13151_v26  ;;  %v2781_v60 = vadd.f32 %v2780_v7, %v2564_v36  ;;  %v17913_v10 = vand.u32 4294901760, %v12959_v47  ;;  %v2945_v36 = vpop.f32.mrf.mxu3 }
 0x4f4   : > { %v3172_v51 = vmul.f32 %v3171_v49, %v12887_v45  ;;  %v3247_v32 = vadd.f32 0.05243302, %v3246_v58  ;;  %v3419_v16 = vmul.f32 %v3418_v25, %v13210_v5  ;;  %v13373_v4 = vand.u32 4294901760, %v13366_v56  ;;  %5973 = vmatmul.f32.gmra.mxu0 %v5972_v9  ;;  %7042 = vmatpush.xpose.msra.mxu1 %v12855_v28  ;;  %v17919_v58 = vld [vmem:[#allocation66_spill] sm:$0xff] }
 0x4f5   : > { %6883 = vmatpush.xpose.msra.mxu0 %v17913_v10  ;;  %v3264_v31 = vmul.f32 %v13362_v24, %v13299_v30  ;;  %v3494_v44 = vadd.f32 0.001143296, %v3493_v13  ;;  %v13377_v57 = vadd.f32 %v2941_v53, %v2781_v60  ;;  %v5979_v45 = vsub.f32 %v17912_v11, %v5978_v48  ;;  %6286 = vmatmul.f32.gmra.mxu1 %v17919_v58  ;;  %v17920_v28 = vld [vmem:[#allocation102_spill] sm:$0xff]  ;;  %v2784_v13 = vpop.f32.mrf.mxu2 }
 0x4f6   : > { %17914 = vst [vmem:[#allocation34_spill] sm:$0xff] %v13373_v4  ;;  %v3197_v47 = vmul.f32 %v3196_v1, %v3172_v51  ;;  %v3324_v7 = vmul.f32 %v3323_v27, %v13151_v26  ;;  %7177 = vmatpush.xpose.msra.mxu2 %v13373_v4  ;;  %v13388_v35 = vadd.f32 %v2360_v23, %v17916_v63  ;;  %v13392_v20 = vand.u32 4294901760, %v13340_v18  ;;  %v17921_v27 = vld [vmem:[#allocation42_spill] sm:$0xff]  ;;  %v2365_v60 = vpop.f32.mrf.mxu0 }
 0x4f7   : > { %17915 = vst [vmem:[#allocation77_spill] sm:$0xff] %v13377_v57  ;;  %6678 = vmatmul.f32.gmra.mxu3 %v5970_v2  ;;  %v2570_v53 = vadd.f32 %v2569_v19, %v13303_v39  ;;  %v17918_v2 = vld [vmem:[#allocation92_spill] sm:$0xff]  ;;  %v5742_v49 = vadd.f32 1.0, %v8832_v50  ;;  %v13395_v52 = vadd.f32 1.0, %v3341_v29  ;;  %6476 = vmatmul.f32.gmra.mxu2 %v17905_v62  ;;  %v3054_v25 = vmul.f32 0.5, %v17920_v28  ;;  %v17928_v28 = vld [vmem:[#allocation39_spill] sm:$0xff] }
 0x4f8   : > { %17917 = vst [vmem:[#allocation57_spill] sm:$0xff] %v13392_v20  ;;  %v3052_v21 = vmul.f32 0.5, %v17918_v2  ;;  %v3248_v15 = vmul.f32 %v3247_v32, %v13062_v40  ;;  %v3420_v23 = vadd.f32 0.4994258, %v3419_v16  ;;  %v17032_v39 = vand.u32 4294901760, %v17921_v27  ;;  %7044 = vmatpush.xpose.msra.mxu1 %v12956_v8 }
 0x4f9   : > { %7690 = vmatpush.xpose.msrb.mxu0 %v13273_v0  ;;  %v13404_v9 = vand.u32 4294901760, %v13357_v46  ;;  %v3265_v1 = vsub.f32 1.0, %v3264_v31  ;;  %v3495_v29 = vmul.f32 %v3494_v44, %v13323_v14  ;;  %v8771_v62 = vclamps-f32 %v3197_v47, 1.0 }
 0x4fa   : > { %v13406_v50 = vmul.f32 %v5740_v12, %v3052_v21  ;;  %v3325_v19 = vadd.f32 0.0036580483, %v3324_v7  ;;  %v2785_v10 = vadd.f32 %v2784_v13, %v2570_v53  ;;  %v5980_v51 = vand.u32 4294901760, %v5979_v45  ;;  %v17924_v45 = vld [vmem:[#allocation100_spill] sm:$0xff] }
 0x4fb   : > { %17922 = vst [vmem:[#allocation72_spill] sm:$0xff] %v13404_v9  ;;  %v13413_v32 = vsub.f32 %v13340_v18, %v13392_v20  ;;  %v13415_v16 = vmul.f32 %v5742_v49, %v3054_v25  ;;  %9032 = vrcp.f32 %v13395_v52  ;;  %v3402_v12 = vmul.f32 2.1237322e-06, %v13210_v5 }
 0x4fc   : > { %7898 = vmatpush.xpose.msrb.mxu1 %v13229_v61  ;;  %v3249_v31 = vadd.f32 0.18741608, %v3248_v15  ;;  %v3421_v44 = vmul.f32 %v3420_v23, %v13210_v5  ;;  %5981 = vmatmul.f32.gmra.mxu0 %v5980_v51  ;;  %v5987_v8 = vsub.f32 %v17921_v27, %v17032_v39  ;;  %v17031_v47 = vand.u32 4294901760, %v17924_v45  ;;  %v17930_v15 = vld [vmem:[#allocation107_spill] sm:$0xff] }
 0x4fd   : > { %17923 = vst [vmem:[#allocation50_spill] sm:$0xff] %v13413_v32  ;;  %v13426_v18 = vsub.f32 %v13357_v46, %v13404_v9  ;;  %v13429_v7 = vand.u32 4294901760, %v13406_v50  ;;  %v3266_v63 = vmul.f32 %v13362_v24, %v3265_v1  ;;  %v3496_v53 = vadd.f32 0.014752088, %v3495_v29  ;;  %v2575_v29 = vpop.f32.mrf.mxu1  ;;  %v18014_v32 = vld [vmem:[#allocation116_spill] sm:$0xff] }
 0x4fe   : > { %v5681_v2 = vadd.f32 1.0, %v8771_v62  ;;  %v3326_v21 = vmul.f32 %v3325_v19, %v13151_v26  ;;  %v13435_v49 = vadd.f32 %v2945_v36, %v2785_v10  ;;  %v13438_v25 = vadd.f32 %v2365_v60, %v17928_v28  ;;  %v17932_v36 = vld [vmem:[#allocation38_spill] sm:$0xff]  ;;  %v2788_v28 = vpop.f32.mrf.mxu2  ;;  %v2370_v34 = vpop.f32.mrf.mxu0 }
 0x4ff   : > { %17925 = vst [vmem:[#allocation106_spill] sm:$0xff] %v13426_v18  ;;  %6684 = vmatmul.f32.gmra.mxu3 %v5978_v48  ;;  %v13442_v46 = vand.u32 4294901760, %v13415_v16  ;;  %v2993_v23 = vmul.f32 0.5, %v17930_v15  ;;  %v3403_v13 = vadd.f32 0.00028619796, %v3402_v12  ;;  %v13447_v1 = vsub.f32 %v13366_v56, %v13373_v4  ;;  %v13449_v48 = vpop.f32.mrf.mxu3  ;;  %6290 = vmatmul.f32.gmra.mxu1 %v17932_v36 }
 0x500   : > { %17926 = vst [vmem:[#allocation65_spill] sm:$0xff] %v13429_v7  ;;  %7900 = vmatpush.xpose.msrb.mxu1 %v13373_v4  ;;  %v3250_v60 = vmul.f32 %v3249_v31, %v13062_v40  ;;  %v13453_v62 = vadd.f32 1.0, %v3421_v44  ;;  %6481 = vmatmul.f32.gmra.mxu2 %v17912_v11  ;;  %v5988_v19 = vand.u32 4294901760, %v5987_v8  ;;  %v13459_v10 = vsub.f32 %v17924_v45, %v17031_v47  ;;  %v17933_v47 = vld [vmem:[#allocation84_spill] sm:$0xff]  ;;  %v17953_v4 = vld [vmem:[#allocation113_spill] sm:$0xff] }
 0x501   : > { %17927 = vst [vmem:[#allocation95_spill] sm:$0xff] %v13435_v49  ;;  %v13461_v51 = vpop.eup %9032  ;;  %v3267_v56 = vadd.f32 %v13362_v24, %v3266_v63  ;;  %vm3269_vm4 = vweird.f32 %v13362_v24  ;;  %v3497_v12 = vmul.f32 %v3496_v53, %v13323_v14  ;;  %v17033_v40 = vand.u32 4294901760, %v13447_v1  ;;  %7693 = vmatpush.xpose.msrb.mxu0 %v13447_v1  ;;  %v17937_v53 = vld [vmem:[#allocation121_spill] sm:$0xff] }
 0x502   : > { %17929 = vst [vmem:[#allocation25_spill] sm:$0xff] %v13442_v46  ;;  %v5745_v31 = vmul.f32 %v5681_v2, %v2993_v23  ;;  %v3274_v11 = vand.u32 2147483648, %v13299_v30  ;;  %v3327_v44 = vadd.f32 0.05243302, %v3326_v21  ;;  %v2576_v8 = vadd.f32 %v2575_v29, %v13388_v35 }
 0x503   : > { %17931 = vst [vmem:[#allocation73_spill] sm:$0xff] %v13447_v1  ;;  %vm3268_vm5 = vweird.f32 %v13299_v30  ;;  %v3272_v15 = vand.u32 2147483647, %v13299_v30  ;;  %v3404_v63 = vmul.f32 %v3403_v13, %v13210_v5  ;;  %v3344_v2 = vmul.f32 %v13461_v51, %v13395_v52  ;;  %v17936_v30 = vld [vmem:[#allocation48_spill] sm:$0xff] }
 0x504   : > { %vm13474_vm6 = vmor %vm3268_vm5, %vm3269_vm4  ;;  %9034 = vrcp.f32 %v13453_v62  ;;  %v7472_v35 = vsub.f32 %v13447_v1, %v17033_v40  ;;  %5989 = vmatmul.f32.gmra.mxu0 %v5988_v19  ;;  %v17035_v21 = vand.u32 4294901760, %v17936_v30  ;;  %v3251_v23 = vadd.f32 1.1283791, %v3250_v60 }
 0x505   : > { %v3271_v13 = vsel %vm13474_vm6, %v13362_v24, %v3267_v56  ;;  %v3498_v29 = vadd.f32 0.112945676, %v3497_v12  ;;  %v13489_v36 = vmul.f32 0.70710677, %v17937_v53  ;;  %v17938_v58 = vand.u32 4294901760, %v17921_v27  ;;  %v17941_v24 = vld [vmem:[#allocation101_spill] sm:$0xff] }
 0x506   : > { %v13493_v3 = vand.u32 4294901760, %v5745_v31  ;;  %v3275_v17 = vor.u32 1.1754944e-38, %v3274_v11  ;;  %v3328_v40 = vmul.f32 %v3327_v44, %v13151_v26  ;;  %v7473_v19 = vand.u32 4294901760, %v7472_v35 }
 0x507   : > { %6690 = vmatmul.f32.gmra.mxu3 %v17938_v58  ;;  %v13498_v60 = vsub.f32 %v13406_v50, %v13429_v7  ;;  %vm3273_vm7 = vcmp.eq.f32.partialorder %v3272_v15, 8.507059e+37  ;;  %v3405_v39 = vadd.f32 0.0036580483, %v3404_v63  ;;  %6294 = vmatmul.f32.gmra.mxu1 %v17941_v24  ;;  %v17942_v56 = vand.u32 4294901760, %v17933_v47  ;;  %v17945_v24 = vld [vmem:[#allocation115_spill] sm:$0xff]  ;;  %v17974_v7 = vld [vmem:[#allocation105_spill] sm:$0xff] }
 0x508   : > { %17939 = vst [vmem:[#allocation138_spill] sm:$0xff] %v13493_v3  ;;  %v13508_v58 = vsub.f32 %v13415_v16, %v13442_v46  ;;  %v13511_v11 = vmul.f32 0.5, %v11901_v55  ;;  %v3276_v44 = vsel %vm3273_vm7, %v3275_v17, %v3271_v13  ;;  %v3345_v35 = vsub.f32 1.0, %v3344_v2  ;;  %7474 = vmatpush.xpose.msra.mxu3 %v7473_v19  ;;  %6486 = vmatmul.f32.gmra.mxu2 %v17921_v27 }
 0x509   : > { %17940 = vst [vmem:[#allocation117_spill] sm:$0xff] %v13498_v60  ;;  %v13504_v12 = vsub.f32 %v17933_v47, %v17942_v56  ;;  %v3252_v50 = vmul.f32 %v3251_v23, %v13013_v42  ;;  %v3499_v15 = vmul.f32 %v3498_v29, %v13323_v14  ;;  %v3560_v63 = vmul.f32 %v13489_v36, %v13489_v36  ;;  %v13518_v56 = vpop.f32.mrf.mxu3  ;;  %v2581_v29 = vpop.f32.mrf.mxu1 }
 0x50a   : > { %17943 = vst [vmem:[#allocation78_spill] sm:$0xff] %v13508_v58  ;;  %v13523_v16 = vsub.f32 %v17936_v30, %v17035_v21  ;;  %v13525_v55 = vpop.eup %9034  ;;  %v13528_v17 = vsub.f32 %v5745_v31, %v13493_v3  ;;  %v3329_v27 = vadd.f32 0.18741608, %v3328_v40  ;;  %v2789_v2 = vadd.f32 %v2788_v28, %v2576_v8  ;;  %v17947_v40 = vld [vmem:[#allocation43_spill] sm:$0xff]  ;;  %v2792_v28 = vpop.f32.mrf.mxu2  ;;  %v17959_v58 = vld [vmem:[#allocation125_spill] sm:$0xff] }
 0x50b   : > { %v5996_v42 = vand.u32 4294901760, %v13459_v10  ;;  %v3277_v23 = vmul.f32 %v3276_v44, %v3252_v50  ;;  %v3406_v13 = vmul.f32 %v3405_v39, %v13210_v5  ;;  %v6004_v19 = vand.u32 4294901760, %v13504_v12  ;;  %v5867_v12 = vld [vmem:[%s9538_s6 + $0xd8] sm:$0xff]  ;;  %v2375_v50 = vpop.f32.mrf.mxu0 }
 0x50c   : > { %17944 = vst [vmem:[#allocation88_spill] sm:$0xff] %v13528_v17  ;;  %v3346_v21 = vmul.f32 %v13461_v51, %v3345_v35  ;;  %v3482_v49 = vmul.f32 2.1237322e-06, %v13323_v14  ;;  %v13537_v31 = vadd.f32 %v13449_v48, %v2789_v2  ;;  %v13540_v8 = vadd.f32 %v2370_v34, %v17947_v40  ;;  %v17949_v2 = vld [vmem:[#allocation58_spill] sm:$0xff] }
 0x50d   : > { %5997 = vmatmul.f32.gmra.mxu0 %v5996_v42  ;;  %v3424_v10 = vmul.f32 %v13525_v55, %v13453_v62  ;;  %v3500_v39 = vadd.f32 0.4994258, %v3499_v15  ;;  %v13544_v44 = vmin.f32 %v3560_v63, 16.0  ;;  %v17948_v35 = vand.u32 4294901760, %v17924_v45 }
 0x50e   : > { %17946 = vst [vmem:[#allocation111_spill] sm:$0xff] %v13537_v31  ;;  %v3330_v34 = vmul.f32 %v3329_v27, %v13151_v26  ;;  %v13553_v40 = vmul.f32 0.70710677, %v17949_v2  ;;  %v13555_v42 = vand.u32 4294901760, %v5867_v12  ;;  %v13558_v15 = vmul.f32 0.5, %v12037_v59  ;;  %v17951_v31 = vld [vmem:[#allocation85_spill] sm:$0xff] }
 0x50f   : > { %6696 = vmatmul.f32.gmra.mxu3 %v17948_v35  ;;  %v3407_v63 = vadd.f32 0.05243302, %v3406_v13  ;;  %6298 = vmatmul.f32.gmra.mxu1 %v17951_v31  ;;  %v17952_v3 = vand.u32 4294901760, %v17945_v24  ;;  %v8773_v61 = vclamps-f32 %v3277_v23, 1.0  ;;  %v3347_v26 = vadd.f32 %v13461_v51, %v3346_v21 }
 0x510   : > { %17950 = vst [vmem:[#allocation96_spill] sm:$0xff] %v13555_v42  ;;  %vm3349_vm8 = vweird.f32 %v13461_v51  ;;  %v3483_v27 = vadd.f32 0.00028619796, %v3482_v49  ;;  %7179 = vmatpush.xpose.msra.mxu2 %v13555_v42  ;;  %7902 = vmatpush.xpose.msrb.mxu1 %v13555_v42  ;;  %v3425_v59 = vsub.f32 1.0, %v3424_v10  ;;  %v3501_v13 = vmul.f32 %v3500_v39, %v13323_v14 }
 0x511   : > { %v13564_v35 = vsub.f32 %v17945_v24, %v17952_v3  ;;  %v3573_v31 = vmul.f32 3.8918573e-05, %v13544_v44  ;;  %v2582_v3 = vadd.f32 %v2581_v29, %v13438_v25  ;;  %6491 = vmatmul.f32.gmra.mxu2 %v17924_v45  ;;  %v3331_v48 = vadd.f32 1.1283791, %v3330_v34  ;;  %v13581_v39 = vpop.f32.mrf.mxu3  ;;  %v17956_v34 = vld [vmem:[#allocation55_spill] sm:$0xff]  ;;  %v2587_v0 = vpop.f32.mrf.mxu1 }
 0x512   : > { %v3352_v23 = vand.u32 2147483647, %v13395_v52  ;;  %v3354_v21 = vand.u32 2147483648, %v13395_v52  ;;  %v3640_v49 = vmul.f32 %v13553_v40, %v13553_v40  ;;  %vm3348_vm9 = vweird.f32 %v13395_v52 }
 0x513   : > { %v3408_v10 = vmul.f32 %v3407_v63, %v13210_v5  ;;  %v2793_v57 = vadd.f32 %v2792_v28, %v2582_v3  ;;  %v13584_v25 = vadd.f32 1.0, %v8773_v61  ;;  %vm13588_vm10 = vmor %vm3348_vm9, %vm3349_vm8  ;;  %v3484_v29 = vmul.f32 %v3483_v27, %v13323_v14 }
 0x514   : > { %v13594_v17 = vadd.f32 %v2375_v50, %v17956_v34  ;;  %v17957_v52 = vand.u32 4294901760, %v17953_v4  ;;  %v3351_v61 = vsel %vm13588_vm10, %v13461_v51, %v3347_v26  ;;  %v3426_v63 = vmul.f32 %v13525_v55, %v3425_v59  ;;  %v2380_v26 = vpop.f32.mrf.mxu0  ;;  %v17962_v59 = vld [vmem:[#allocation56_spill] sm:$0xff] }
 0x515   : > { %6005 = vmatmul.f32.gmra.mxu0 %v6004_v19  ;;  %v13605_v3 = vadd.f32 1.0, %v3501_v13  ;;  %v3574_v1 = vadd.f32 0.001143296, %v3573_v31  ;;  %v17958_v27 = vand.u32 4294901760, %v17933_v47  ;;  %v3332_v19 = vmul.f32 %v3331_v48, %v13115_v43  ;;  %v17961_v31 = vld [vmem:[#allocation44_spill] sm:$0xff]  ;;  %v17963_v48 = vld [vmem:[#allocation90_spill] sm:$0xff] }
 0x516   : > { %v13599_v28 = vsub.f32 %v17953_v4, %v17957_v52  ;;  %vm3353_vm11 = vcmp.eq.f32.partialorder %v3352_v23, 8.507059e+37  ;;  %v3355_v50 = vor.u32 1.1754944e-38, %v3354_v21  ;;  %v13610_v34 = vmin.f32 %v3640_v49, 16.0  ;;  %v2796_v52 = vpop.f32.mrf.mxu2  ;;  %v17964_v23 = vld [vmem:[#allocation129_spill] sm:$0xff] }
 0x517   : > { %6702 = vmatmul.f32.gmra.mxu3 %v17958_v27  ;;  %v3409_v46 = vadd.f32 0.18741608, %v3408_v10  ;;  %v13613_v45 = vmul.f32 0.70710677, %v17959_v58  ;;  %v13616_v51 = vsub.f32 %v5867_v12, %v13555_v42  ;;  %6302 = vmatmul.f32.gmra.mxu1 %v17961_v31  ;;  %vm3429_vm12 = vweird.f32 %v13525_v55 }
 0x518   : > { %v3356_v27 = vsel %vm3353_vm11, %v3355_v50, %v3351_v61  ;;  %v3485_v43 = vadd.f32 0.0036580483, %v3484_v29  ;;  %v2296_v21 = vadd.f32 %v17964_v23, %v17963_v48  ;;  %v3427_v49 = vadd.f32 %v13525_v55, %v3426_v63  ;;  %v17965_v50 = vld [vmem:[#allocation70_spill] sm:$0xff] }
 0x519   : > { %17960 = vst [vmem:[#allocation131_spill] sm:$0xff] %v13616_v51  ;;  %9036 = vrcp.f32 %v13605_v3  ;;  %v3575_v10 = vmul.f32 %v3574_v1, %v13544_v44  ;;  %v17049_v12 = vand.u32 4294901760, %v13616_v51  ;;  %6496 = vmatmul.f32.gmra.mxu2 %v17933_v47  ;;  %7696 = vmatpush.xpose.msrb.mxu0 %v13616_v51  ;;  %v3653_v61 = vmul.f32 3.8918573e-05, %v13610_v34  ;;  %v2593_v33 = vpop.f32.mrf.mxu1 }
 0x51a   : > { %v2498_v13 = vadd.f32 %v17965_v50, %v2296_v21  ;;  %v13632_v29 = vadd.f32 %v13518_v56, %v2793_v57  ;;  %v2588_v48 = vadd.f32 %v2587_v0, %v13540_v8  ;;  %v3410_v63 = vmul.f32 %v3409_v46, %v13210_v5  ;;  %v17968_v0 = vld [vmem:[#allocation68_spill] sm:$0xff]  ;;  %v13654_v50 = vpop.f32.mrf.mxu3 }
 0x51b   : > { %v3434_v23 = vand.u32 2147483648, %v13453_v62  ;;  %v3720_v1 = vmul.f32 %v13613_v45, %v13613_v45  ;;  %v7478_v47 = vsub.f32 %v13616_v51, %v17049_v12  ;;  %v3357_v31 = vmul.f32 %v3356_v27, %v3332_v19  ;;  %v17973_v56 = vld [vmem:[#allocation136_spill] sm:$0xff] }
 0x51c   : > { %17966 = vst [vmem:[#allocation40_spill] sm:$0xff] %v13632_v29  ;;  %vm3428_vm13 = vweird.f32 %v13453_v62  ;;  %v3432_v21 = vand.u32 2147483647, %v13453_v62  ;;  %v17967_v57 = vand.u32 4294901760, %v13523_v16  ;;  %v3486_v46 = vmul.f32 %v3485_v43, %v13323_v14  ;;  %v2385_v9 = vpop.f32.mrf.mxu0 }
 0x51d   : > { %vm13649_vm14 = vmor %vm3428_vm13, %vm3429_vm12  ;;  %v3576_v8 = vadd.f32 0.014752088, %v3575_v10  ;;  %v17971_v19 = vand.u32 4294901760, %v17936_v30  ;;  %v17972_v16 = vand.u32 4294901760, %v17962_v59  ;;  %v3654_v12 = vadd.f32 0.001143296, %v3653_v61 }
 0x51e   : > { %6013 = vmatmul.f32.gmra.mxu0 %v17967_v57  ;;  %v3431_v57 = vsel %vm13649_vm14, %v13525_v55, %v3427_v49  ;;  %v2737_v43 = vadd.f32 %v17973_v56, %v2498_v13  ;;  %v7479_v10 = vand.u32 4294901760, %v7478_v47  ;;  %v3411_v42 = vadd.f32 1.1283791, %v3410_v63  ;;  %v2800_v5 = vpop.f32.mrf.mxu2  ;;  %v17976_v49 = vld [vmem:[#allocation128_spill] sm:$0xff] }
 0x51f   : > { %6708 = vmatmul.f32.gmra.mxu3 %v17971_v19  ;;  %v13662_v27 = vsub.f32 %v17962_v59, %v17972_v16  ;;  %v13668_v29 = vpop.eup %9036  ;;  %v3435_v51 = vor.u32 1.1754944e-38, %v3434_v23  ;;  %v3562_v19 = vmul.f32 2.1237322e-06, %v13544_v44  ;;  %v13671_v62 = vmin.f32 %v3720_v1, 16.0  ;;  %6306 = vmatmul.f32.gmra.mxu1 %v17974_v7  ;;  %v17977_v1 = vld [vmem:[#allocation99_spill] sm:$0xff]  ;;  %v17978_v56 = vld [vmem:[#allocation24_spill] sm:$0xff] }
 0x520   : > { %v8775_v16 = vclamps-f32 %v3357_v31, 1.0  ;;  %vm3433_vm15 = vcmp.eq.f32.partialorder %v3432_v21, 8.507059e+37  ;;  %7480 = vmatpush.xpose.msra.mxu3 %v7479_v10  ;;  %v17975_v55 = vand.u32 4294901760, %v17968_v0  ;;  %v17060_v61 = vand.u32 4294901760, %v17976_v49  ;;  %v17979_v21 = vld [vmem:[#allocation29_spill] sm:$0xff] }
 0x521   : > { %v3436_v63 = vsel %vm3433_vm15, %v3435_v51, %v3431_v57  ;;  %v3487_v23 = vadd.f32 0.05243302, %v3486_v46  ;;  %v3577_v47 = vmul.f32 %v3576_v8, %v13544_v44  ;;  %v2301_v60 = vadd.f32 %v17978_v56, %v17977_v1  ;;  %6501 = vmatmul.f32.gmra.mxu2 %v17936_v30  ;;  %v17980_v7 = vld [vmem:[#allocation61_spill] sm:$0xff]  ;;  %v17981_v1 = vld [vmem:[#allocation27_spill] sm:$0xff] }
 0x522   : > { %v13677_v13 = vsub.f32 %v17968_v0, %v17975_v55  ;;  %v3655_v31 = vmul.f32 %v3654_v12, %v13610_v34  ;;  %v13686_v10 = vadd.f32 %v17979_v21, %v2737_v43  ;;  %v2797_v55 = vadd.f32 %v2796_v52, %v2588_v48  ;;  %v17983_v56 = vld [vmem:[#allocation143_spill] sm:$0xff]  ;;  %v5865_v48 = vld [vmem:[%s9538_s6 + $0xc8] sm:$0xff] }
 0x523   : > { %v13689_v18 = vadd.f32 %v2380_v26, %v17980_v7  ;;  %v3412_v51 = vmul.f32 %v3411_v42, %v13159_v22  ;;  %v3504_v46 = vmul.f32 %v13668_v29, %v13605_v3  ;;  %v3563_v8 = vadd.f32 0.00028619796, %v3562_v19 }
 0x524   : > { %v3733_v57 = vmul.f32 3.8918573e-05, %v13671_v62  ;;  %v2504_v30 = vadd.f32 %v17981_v1, %v2301_v60  ;;  %v13697_v12 = vadd.f32 %v13581_v39, %v2797_v55  ;;  %v2594_v43 = vadd.f32 %v2593_v33, %v13594_v17  ;;  %v2599_v1 = vpop.f32.mrf.mxu1 }
 0x525   : > { %v13701_v52 = vadd.f32 %v2385_v9, %v17983_v56  ;;  %v17984_v7 = vand.u32 4294901760, %v13564_v35  ;;  %v13707_v22 = vmul.f32 %v13584_v25, %v13511_v11  ;;  %v13710_v42 = vmul.f32 0.5, %v17864_v38  ;;  %v13721_v25 = vpop.f32.mrf.mxu3  ;;  %v17988_v38 = vld [vmem:[#allocation46_spill] sm:$0xff] }
 0x526   : > { %17982 = vst [vmem:[#allocation98_spill] sm:$0xff] %v13697_v12  ;;  %v3437_v26 = vmul.f32 %v3436_v63, %v3412_v51  ;;  %v3578_v60 = vadd.f32 0.112945676, %v3577_v47  ;;  %v17986_v39 = vand.u32 4294901760, %v17945_v24  ;;  %v3488_v33 = vmul.f32 %v3487_v23, %v13323_v14  ;;  %v17989_v23 = vld [vmem:[#allocation31_spill] sm:$0xff]  ;;  %v2804_v47 = vpop.f32.mrf.mxu2 }
 0x527   : > { %6021 = vmatmul.f32.gmra.mxu0 %v17984_v7  ;;  %17985 = vst [vmem:[#allocation110_spill] sm:$0xff] %v13707_v22  ;;  %v3656_v9 = vadd.f32 0.014752088, %v3655_v31  ;;  %v13717_v17 = vmul.f32 0.70710677, %v13686_v10  ;;  %v13719_v35 = vand.u32 4294901760, %v5865_v48  ;;  %6310 = vmatmul.f32.gmra.mxu1 %v17988_v38  ;;  %v3564_v55 = vmul.f32 %v3563_v8, %v13544_v44 }
 0x528   : > { %6714 = vmatmul.f32.gmra.mxu3 %v17986_v39  ;;  %v5685_v19 = vadd.f32 1.0, %v8775_v16  ;;  %v3734_v11 = vadd.f32 0.001143296, %v3733_v57  ;;  %v3505_v21 = vsub.f32 1.0, %v3504_v46  ;;  %v2741_v31 = vadd.f32 %v17989_v23, %v2504_v30  ;;  %v17990_v46 = vld [vmem:[#allocation80_spill] sm:$0xff]  ;;  %v17991_v8 = vld [vmem:[#allocation142_spill] sm:$0xff] }
 0x529   : > { %17987 = vst [vmem:[#allocation103_spill] sm:$0xff] %v13719_v35  ;;  %7181 = vmatpush.xpose.msra.mxu2 %v13719_v35  ;;  %v13732_v16 = vsub.f32 %v17976_v49, %v17060_v61  ;;  %7904 = vmatpush.xpose.msrb.mxu1 %v13719_v35  ;;  %v3579_v51 = vmul.f32 %v3578_v60, %v13544_v44  ;;  %v8777_v30 = vclamps-f32 %v3437_v26, 1.0  ;;  %v3489_v39 = vadd.f32 0.18741608, %v3488_v33  ;;  %v17994_v33 = vld [vmem:[#allocation139_spill] sm:$0xff] }
 0x52a   : > { %v2801_v57 = vadd.f32 %v2800_v5, %v2594_v43  ;;  %6506 = vmatmul.f32.gmra.mxu2 %v17945_v24  ;;  %v3657_v23 = vmul.f32 %v3656_v9, %v13610_v34  ;;  %v3800_v61 = vmul.f32 %v13717_v17, %v13717_v17  ;;  %v13743_v63 = vmul.f32 %v5685_v19, %v13558_v15  ;;  %v18000_v15 = vld [vmem:[#allocation134_spill] sm:$0xff] }
 0x52b   : > { %v13746_v5 = vmul.f32 0.5, %v17899_v37  ;;  %v3735_v24 = vmul.f32 %v3734_v11, %v13671_v62  ;;  %v3506_v26 = vmul.f32 %v13668_v29, %v3505_v21  ;;  %v3565_v60 = vadd.f32 0.0036580483, %v3564_v55 }
 0x52c   : > { %17992 = vst [vmem:[#allocation30_spill] sm:$0xff] %v13743_v63  ;;  %v13750_v43 = vadd.f32 %v13654_v50, %v2801_v57  ;;  %v13754_v9 = vadd.f32 %v17994_v33, %v2741_v31  ;;  %v17995_v7 = vand.u32 4294901760, %v13599_v28  ;;  %v3580_v19 = vadd.f32 0.4994258, %v3579_v51  ;;  %v17999_v33 = vld [vmem:[#allocation104_spill] sm:$0xff] }
 0x52d   : > { %v3642_v37 = vmul.f32 2.1237322e-06, %v13610_v34  ;;  %v17996_v56 = vand.u32 4294901760, %v17953_v4  ;;  %v17997_v50 = vand.u32 4294901760, %v17990_v46  ;;  %v17998_v21 = vand.u32 4294901760, %v17991_v8 }
 0x52e   : > { %17993 = vst [vmem:[#allocation93_spill] sm:$0xff] %v13750_v43  ;;  %v13772_v28 = vadd.f32 1.0, %v8777_v30  ;;  %v3490_v31 = vmul.f32 %v3489_v39, %v13323_v14  ;;  %v3658_v51 = vadd.f32 0.112945676, %v3657_v23  ;;  %v13775_v57 = vmin.f32 %v3800_v61, 16.0  ;;  %v18002_v43 = vld [vmem:[#allocation59_spill] sm:$0xff] }
 0x52f   : > { %6029 = vmatmul.f32.gmra.mxu0 %v17995_v7  ;;  %v13765_v11 = vsub.f32 %v17990_v46, %v17997_v50  ;;  %v13770_v55 = vsub.f32 %v17991_v8, %v17998_v21  ;;  %v3514_v7 = vand.u32 2147483648, %v13605_v3  ;;  %v2306_v38 = vadd.f32 %v18000_v15, %v17999_v33  ;;  %v18001_v50 = vld [vmem:[#allocation108_spill] sm:$0xff]  ;;  %v18004_v23 = vld [vmem:[#allocation135_spill] sm:$0xff]  ;;  %v13793_v33 = vpop.f32.mrf.mxu3 }
 0x530   : > { %6720 = vmatmul.f32.gmra.mxu3 %v17996_v56  ;;  %v3736_v56 = vadd.f32 0.014752088, %v3735_v24  ;;  %6314 = vmatmul.f32.gmra.mxu1 %v18001_v50  ;;  %v3507_v21 = vadd.f32 %v13668_v29, %v3506_v26  ;;  %vm3509_vm0 = vweird.f32 %v13668_v29  ;;  %v3566_v30 = vmul.f32 %v3565_v60, %v13544_v44 }
 0x531   : > { %v13786_v14 = vmul.f32 0.70710677, %v13754_v9  ;;  %v3581_v61 = vmul.f32 %v3580_v19, %v13544_v44  ;;  %v3643_v39 = vadd.f32 0.00028619796, %v3642_v37  ;;  %v2510_v24 = vadd.f32 %v18004_v23, %v2306_v38  ;;  %v13803_v37 = vpop.f32.mrf.mxu1 }
 0x532   : > { %v13791_v15 = vsub.f32 %v5865_v48, %v13719_v35  ;;  %6511 = vmatmul.f32.gmra.mxu2 %v17953_v4  ;;  %v3491_v26 = vadd.f32 1.1283791, %v3490_v31  ;;  %v3659_v12 = vmul.f32 %v3658_v51, %v13610_v34  ;;  %v3813_v60 = vmul.f32 3.8918573e-05, %v13775_v57  ;;  %v13814_v51 = vpop.f32.mrf.mxu0 }
 0x533   : > { %18003 = vst [vmem:[#allocation123_spill] sm:$0xff] %v13786_v14  ;;  %v2600_v50 = vadd.f32 %v2599_v1, %v13689_v18  ;;  %vm3508_vm1 = vweird.f32 %v13605_v3  ;;  %v3512_v19 = vand.u32 2147483647, %v13605_v3  ;;  %v3737_v38 = vmul.f32 %v3736_v56, %v13671_v62  ;;  %v13816_v56 = vpop.f32.mrf.mxu2 }
 0x534   : > { %18005 = vst [vmem:[#allocation74_spill] sm:$0xff] %v13791_v15  ;;  %7699 = vmatpush.xpose.msrb.mxu0 %v13791_v15  ;;  %vm13808_vm2 = vmor %vm3508_vm1, %vm3509_vm0  ;;  %v3515_v31 = vor.u32 1.1754944e-38, %v3514_v7  ;;  %v3567_v18 = vadd.f32 0.05243302, %v3566_v30  ;;  %v3880_v1 = vmul.f32 %v13786_v14, %v13786_v14  ;;  %v18008_v23 = vand.u32 4294901760, %v13662_v27  ;;  %v18009_v30 = vld [vmem:[#allocation37_spill] sm:$0xff] }
 0x535   : > { %v2805_v3 = vadd.f32 %v2804_v47, %v2600_v50  ;;  %v3511_v48 = vsel %vm13808_vm2, %v13668_v29, %v3507_v21  ;;  %v13823_v35 = vadd.f32 1.0, %v3581_v61  ;;  %v3644_v7 = vmul.f32 %v3643_v39, %v13610_v34  ;;  %v18012_v21 = vld [vmem:[#allocation109_spill] sm:$0xff] }
 0x536   : > { %v2745_v63 = vadd.f32 %v18009_v30, %v2510_v24  ;;  %v18010_v22 = vand.u32 4294901760, %v17962_v59  ;;  %v3660_v47 = vadd.f32 0.4994258, %v3659_v12  ;;  %v3722_v50 = vmul.f32 2.1237322e-06, %v13671_v62  ;;  %v18013_v61 = vld [vmem:[#allocation141_spill] sm:$0xff] }
 0x537   : > { %6037 = vmatmul.f32.gmra.mxu0 %v18008_v23  ;;  %v3814_v20 = vadd.f32 0.001143296, %v3813_v60  ;;  %v18011_v27 = vand.u32 4294901760, %v13791_v15  ;;  %v3492_v4 = vmul.f32 %v3491_v26, %v13284_v6  ;;  %vm3513_vm3 = vcmp.eq.f32.partialorder %v3512_v19, 8.507059e+37  ;;  %v18016_v6 = vld [vmem:[#allocation47_spill] sm:$0xff] }
 0x538   : > { %6726 = vmatmul.f32.gmra.mxu3 %v18010_v22  ;;  %v3738_v29 = vadd.f32 0.112945676, %v3737_v38  ;;  %v2311_v39 = vadd.f32 %v18013_v61, %v18012_v21  ;;  %6318 = vmatmul.f32.gmra.mxu1 %v18014_v32  ;;  %v3516_v24 = vsel %vm3513_vm3, %v3515_v31, %v3511_v48  ;;  %v3568_v22 = vmul.f32 %v3567_v18, %v13544_v44  ;;  %v18022_v21 = vld [vmem:[#allocation147_spill] sm:$0xff] }
 0x539   : > { %v7484_v23 = vsub.f32 %v13791_v15, %v18011_v27  ;;  %v13838_v12 = vmin.f32 %v3880_v1, 16.0  ;;  %9038 = vrcp.f32 %v13823_v35  ;;  %v3645_v60 = vadd.f32 0.0036580483, %v3644_v7 }
 0x53a   : > { %v13842_v27 = vadd.f32 %v18015_v54, %v2745_v63  ;;  %v2516_v26 = vadd.f32 %v18016_v6, %v2311_v39  ;;  %6516 = vmatmul.f32.gmra.mxu2 %v17962_v59  ;;  %v3661_v19 = vmul.f32 %v3660_v47, %v13610_v34  ;;  %v3723_v38 = vadd.f32 0.00028619796, %v3722_v50  ;;  %v13854_v63 = vpop.f32.mrf.mxu3  ;;  %v18029_v59 = vld [vmem:[#allocation146_spill] sm:$0xff] }
 0x53b   : > { %v7485_v30 = vand.u32 4294901760, %v7484_v23  ;;  %v3815_v48 = vmul.f32 %v3814_v20, %v13775_v57  ;;  %v13851_v18 = vmul.f32 %v13772_v28, %v13710_v42  ;;  %v3517_v1 = vmul.f32 %v3516_v24, %v3492_v4 }
 0x53c   : > { %v3739_v54 = vmul.f32 %v3738_v29, %v13671_v62  ;;  %v3569_v7 = vadd.f32 0.18741608, %v3568_v22  ;;  %v3893_v47 = vmul.f32 3.8918573e-05, %v13838_v12  ;;  %v13859_v20 = vadd.f32 %v13721_v25, %v2805_v3  ;;  %v5863_v25 = vld [vmem:[%s9538_s6 + $0xb8] sm:$0xff]  ;;  %v13877_v3 = vpop.f32.mrf.mxu1 }
 0x53d   : > { %7486 = vmatpush.xpose.msra.mxu3 %v7485_v30  ;;  %18017 = vst [vmem:[#allocation32_spill] sm:$0xff] %v13851_v18  ;;  %v18019_v50 = vand.u32 4294901760, %v13677_v13  ;;  %v18020_v23 = vand.u32 4294901760, %v18002_v43  ;;  %v13869_v28 = vmul.f32 0.5, %v17937_v53  ;;  %v3646_v4 = vmul.f32 %v3645_v60, %v13610_v34  ;;  %v13886_v30 = vpop.f32.mrf.mxu0  ;;  %v13888_v60 = vpop.f32.mrf.mxu2 }
 0x53e   : > { %18018 = vst [vmem:[#allocation92_spill] sm:$0xff] %v13859_v20  ;;  %v13873_v29 = vmul.f32 0.70710677, %v13842_v27  ;;  %v2749_v61 = vadd.f32 %v18022_v21, %v2516_v26  ;;  %v18023_v13 = vand.u32 4294901760, %v17968_v0  ;;  %v13881_v39 = vadd.f32 1.0, %v3661_v19  ;;  %v18026_v21 = vld [vmem:[#allocation76_spill] sm:$0xff] }
 0x53f   : > { %6045 = vmatmul.f32.gmra.mxu0 %v18019_v50  ;;  %v13866_v42 = vsub.f32 %v18002_v43, %v18020_v23  ;;  %v3724_v24 = vmul.f32 %v3723_v38, %v13671_v62  ;;  %v3816_v22 = vadd.f32 0.014752088, %v3815_v48  ;;  %v13884_v53 = vand.u32 4294901760, %v5863_v25  ;;  %v13890_v6 = vpop.eup %9038  ;;  %v18025_v23 = vld [vmem:[#allocation118_spill] sm:$0xff]  ;;  %v18028_v48 = vld [vmem:[#allocation75_spill] sm:$0xff] }
 0x540   : > { %18021 = vst [vmem:[#allocation102_spill] sm:$0xff] %v13873_v29  ;;  %6732 = vmatmul.f32.gmra.mxu3 %v18023_v13  ;;  %v8779_v26 = vclamps-f32 %v3517_v1, 1.0  ;;  %v3740_v50 = vadd.f32 0.4994258, %v3739_v54  ;;  %6322 = vmatmul.f32.gmra.mxu1 %v18025_v23  ;;  %v18027_v13 = vld [vmem:[#allocation33_spill] sm:$0xff]  ;;  %v3570_v31 = vmul.f32 %v3569_v7, %v13544_v44  ;;  %v13899_v32 = vadd.f32 %v13814_v51, %v18028_v48 }
 0x541   : > { %18024 = vst [vmem:[#allocation42_spill] sm:$0xff] %v13884_v53  ;;  %v3894_v38 = vadd.f32 0.001143296, %v3893_v47  ;;  %7183 = vmatpush.xpose.msra.mxu2 %v13884_v53  ;;  %v2606_v20 = vadd.f32 %v13803_v37, %v13701_v52  ;;  %7906 = vmatpush.xpose.msrb.mxu1 %v13884_v53  ;;  %v3647_v1 = vadd.f32 0.05243302, %v3646_v4  ;;  %v3960_v54 = vmul.f32 %v13873_v29, %v13873_v29 }
 0x542   : > { %v13907_v19 = vadd.f32 %v18029_v59, %v2749_v61  ;;  %6521 = vmatmul.f32.gmra.mxu2 %v17968_v0  ;;  %v3584_v51 = vmul.f32 %v13890_v6, %v13823_v35  ;;  %9040 = vrcp.f32 %v13881_v39  ;;  %v3725_v7 = vadd.f32 0.0036580483, %v3724_v24 }
 0x543   : > { %v3817_v52 = vmul.f32 %v3816_v22, %v13775_v57  ;;  %v13916_v37 = vmul.f32 0.5, %v17949_v2  ;;  %v3741_v47 = vmul.f32 %v3740_v50, %v13671_v62  ;;  %v2809_v59 = vadd.f32 %v13816_v56, %v2606_v20 }
 0x544   : > { %v18030_v4 = vand.u32 4294901760, %v18026_v21  ;;  %v5689_v61 = vadd.f32 1.0, %v8779_v26  ;;  %v3571_v48 = vadd.f32 1.1283791, %v3570_v31  ;;  %v3895_v44 = vmul.f32 %v3894_v38, %v13838_v12  ;;  %v13942_v31 = vpop.f32.mrf.mxu3 }
 0x545   : > { %v18031_v24 = vand.u32 4294901760, %v13732_v16  ;;  %v18032_v22 = vand.u32 4294901760, %v18027_v13  ;;  %v3648_v50 = vmul.f32 %v3647_v1, %v13610_v34  ;;  %v13934_v56 = vmin.f32 %v3960_v54, 16.0 }
 0x546   : > { %v13923_v0 = vsub.f32 %v18026_v21, %v18030_v4  ;;  %v13937_v20 = vmul.f32 0.70710677, %v13907_v19  ;;  %v13940_v26 = vadd.f32 %v13793_v33, %v2809_v59  ;;  %v18035_v16 = vand.u32 4294901760, %v17976_v49  ;;  %v13956_v33 = vpop.f32.mrf.mxu1  ;;  %v18038_v59 = vld [vmem:[#allocation120_spill] sm:$0xff] }
 0x547   : > { %6053 = vmatmul.f32.gmra.mxu0 %v18031_v24  ;;  %v13931_v2 = vsub.f32 %v18027_v13, %v18032_v22  ;;  %v3585_v38 = vsub.f32 1.0, %v3584_v51  ;;  %v3726_v4 = vmul.f32 %v3725_v7, %v13671_v62  ;;  %v3802_v24 = vmul.f32 2.1237322e-06, %v13775_v57 }
 0x548   : > { %18033 = vst [vmem:[#allocation100_spill] sm:$0xff] %v13937_v20  ;;  %6738 = vmatmul.f32.gmra.mxu3 %v18035_v16  ;;  %v3818_v22 = vadd.f32 0.112945676, %v3817_v52  ;;  %v13949_v1 = vmul.f32 0.5, %v17959_v58  ;;  %v13951_v54 = vadd.f32 1.0, %v3741_v47  ;;  %v13954_v23 = vsub.f32 %v5863_v25, %v13884_v53  ;;  %6326 = vmatmul.f32.gmra.mxu1 %v18038_v59  ;;  %v13960_v51 = vpop.eup %9040  ;;  %v2400_v47 = vpop.f32.mrf.mxu0  ;;  %v18040_v25 = vld [vmem:[#allocation122_spill] sm:$0xff] }
 0x549   : > { %18034 = vst [vmem:[#allocation39_spill] sm:$0xff] %v13940_v26  ;;  %v13963_v7 = vmul.f32 %v5689_v61, %v13746_v5  ;;  %v13966_v52 = vmul.f32 %v3571_v48, %v13489_v36  ;;  %v3896_v58 = vadd.f32 0.014752088, %v3895_v44  ;;  %v13968_v26 = vpop.f32.mrf.mxu2  ;;  %vm3588_vm4 = vweird.f32 %v13823_v35 }
 0x54a   : > { %18036 = vst [vmem:[#allocation107_spill] sm:$0xff] %v13949_v1  ;;  %v3649_v53 = vadd.f32 0.18741608, %v3648_v50  ;;  %v3973_v59 = vmul.f32 3.8918573e-05, %v13934_v56  ;;  %v4040_v16 = vmul.f32 %v13937_v20, %v13937_v20  ;;  %v17081_v5 = vand.u32 4294901760, %v13954_v23  ;;  %6526 = vmatmul.f32.gmra.mxu2 %v17976_v49  ;;  %7702 = vmatpush.xpose.msrb.mxu0 %v13954_v23 }
 0x54b   : > { %18037 = vst [vmem:[#allocation84_spill] sm:$0xff] %v13954_v23  ;;  %v3586_v36 = vmul.f32 %v13890_v6, %v3585_v38  ;;  %v3727_v44 = vadd.f32 0.05243302, %v3726_v4  ;;  %v3803_v61 = vadd.f32 0.00028619796, %v3802_v24  ;;  %v3819_v48 = vmul.f32 %v3818_v22, %v13775_v57  ;;  %v18042_v24 = vld [vmem:[#allocation83_spill] sm:$0xff] }
 0x54c   : > { %18039 = vst [vmem:[#allocation48_spill] sm:$0xff] %v13963_v7  ;;  %v3664_v50 = vmul.f32 %v13960_v51, %v13881_v39  ;;  %9042 = vrcp.f32 %v13951_v54  ;;  %v18041_v7 = vld [vmem:[#allocation144_spill] sm:$0xff]  ;;  %v7490_v49 = vsub.f32 %v13954_v23, %v17081_v5  ;;  %v3592_v15 = vand.u32 2147483647, %v13823_v35 }
 0x54d   : > { %v2316_v18 = vadd.f32 %v18041_v7, %v18040_v25  ;;  %v3594_v38 = vand.u32 2147483648, %v13823_v35  ;;  %v3897_v4 = vmul.f32 %v3896_v58, %v13838_v12  ;;  %v2396_v22 = vadd.f32 %v13886_v30, %v18042_v24  ;;  %v18044_v25 = vld [vmem:[#allocation94_spill] sm:$0xff]  ;;  %v18052_v24 = vld [vmem:[#allocation91_spill] sm:$0xff] }
 0x54e   : > { %v18043_v20 = vand.u32 4294901760, %v13765_v11  ;;  %v3650_v41 = vmul.f32 %v3649_v53, %v13610_v34  ;;  %v3974_v29 = vadd.f32 0.001143296, %v3973_v59  ;;  %v13996_v7 = vmin.f32 %v4040_v16, 16.0  ;;  %v14007_v53 = vpop.f32.mrf.mxu3 }
 0x54f   : > { %v2522_v14 = vadd.f32 %v18044_v25, %v2316_v18  ;;  %v18045_v5 = vand.u32 4294901760, %v17990_v46  ;;  %vm3589_vm5 = vweird.f32 %v13890_v6  ;;  %v3728_v58 = vmul.f32 %v3727_v44, %v13671_v62  ;;  %v18046_v18 = vld [vmem:[#allocation126_spill] sm:$0xff] }
 0x550   : > { %6061 = vmatmul.f32.gmra.mxu0 %v18043_v20  ;;  %v3820_v23 = vadd.f32 0.4994258, %v3819_v48  ;;  %v7491_v1 = vand.u32 4294901760, %v7490_v49  ;;  %v3587_v30 = vadd.f32 %v13890_v6, %v3586_v36  ;;  %v3665_v11 = vsub.f32 1.0, %v3664_v50  ;;  %6330 = vmatmul.f32.gmra.mxu1 %v18046_v18  ;;  %v14022_v49 = vpop.f32.mrf.mxu1  ;;  %vm14029_vm7 = vmor %vm3588_vm4, %vm3589_vm5 }
 0x551   : > { %6744 = vmatmul.f32.gmra.mxu3 %v18045_v5  ;;  %v3804_v20 = vmul.f32 %v3803_v61, %v13775_v57  ;;  %v2612_v34 = vadd.f32 %v13877_v3, %v13899_v32  ;;  %vm14010_vm6 = vcmp.eq.f32.partialorder %v3592_v15, 8.507059e+37  ;;  %v3595_v16 = vor.u32 1.1754944e-38, %v3594_v38  ;;  %v18049_v3 = vld [vmem:[#allocation148_spill] sm:$0xff]  ;;  %v14036_v38 = vpop.f32.mrf.mxu2 }
 0x552   : > { %v14015_v5 = vmul.f32 0.5, %v13686_v10  ;;  %v3898_v44 = vadd.f32 0.112945676, %v3897_v4  ;;  %7492 = vmatpush.xpose.msra.mxu3 %v7491_v1  ;;  %v14017_v36 = vpop.eup %9042  ;;  %v3651_v61 = vadd.f32 1.1283791, %v3650_v41  ;;  %v3975_v48 = vmul.f32 %v3974_v29, %v13934_v56  ;;  %6531 = vmatmul.f32.gmra.mxu2 %v17990_v46  ;;  %v2405_v1 = vpop.f32.mrf.mxu0  ;;  %v18056_v10 = vld [vmem:[#allocation60_spill] sm:$0xff] }
 0x553   : > { %v4053_v32 = vmul.f32 3.8918573e-05, %v13996_v7  ;;  %v2753_v50 = vadd.f32 %v18049_v3, %v2522_v14  ;;  %v3729_v15 = vadd.f32 0.18741608, %v3728_v58  ;;  %v3821_v41 = vmul.f32 %v3820_v23, %v13775_v57 }
 0x554   : > { %v3882_v29 = vmul.f32 2.1237322e-06, %v13838_v12  ;;  %v2813_v14 = vadd.f32 %v13888_v60, %v2612_v34  ;;  %v3591_v46 = vsel %vm14029_vm7, %v13890_v6, %v3587_v30  ;;  %v3666_v35 = vmul.f32 %v13960_v51, %v3665_v11  ;;  %v18055_v11 = vld [vmem:[#allocation81_spill] sm:$0xff] }
 0x555   : > { %v3805_v4 = vadd.f32 0.0036580483, %v3804_v20  ;;  %v14043_v25 = vadd.f32 %v2400_v47, %v18052_v24  ;;  %v3744_v23 = vmul.f32 %v14017_v36, %v13951_v54  ;;  %v3899_v58 = vmul.f32 %v3898_v44, %v13838_v12  ;;  %v14058_v47 = vld [vmem:[%s9538_s6 + $0xa8] sm:$0xff] }
 0x556   : > { %v14049_v60 = vadd.f32 %v13854_v63, %v2813_v14  ;;  %v2618_v34 = vadd.f32 %v13956_v33, %v2396_v22  ;;  %v18054_v3 = vand.u32 4294901760, %v13770_v55  ;;  %v3976_v6 = vadd.f32 0.014752088, %v3975_v48  ;;  %v18058_v14 = vld [vmem:[#allocation130_spill] sm:$0xff] }
 0x557   : > { %v4054_v30 = vadd.f32 0.001143296, %v4053_v32  ;;  %v14055_v20 = vadd.f32 %v18055_v11, %v2753_v50  ;;  %v14061_v24 = vadd.f32 %v2405_v1, %v18056_v10  ;;  %v18057_v44 = vand.u32 4294901760, %v17991_v8 }
 0x558   : > { %18053 = vst [vmem:[#allocation121_spill] sm:$0xff] %v14049_v60  ;;  %6069 = vmatmul.f32.gmra.mxu0 %v18054_v3  ;;  %vm3668_vm8 = vweird.f32 %v13881_v39  ;;  %v14066_v63 = vadd.f32 1.0, %v3821_v41  ;;  %v3883_v33 = vadd.f32 0.00028619796, %v3882_v29  ;;  %v14069_v55 = vand.u32 4294901760, %v14058_v47  ;;  %6334 = vmatmul.f32.gmra.mxu1 %v18058_v14  ;;  %v14087_v3 = vpop.f32.mrf.mxu3 }
 0x559   : > { %6750 = vmatmul.f32.gmra.mxu3 %v18057_v44  ;;  %v3596_v22 = vsel %vm14010_vm6, %v3595_v16, %v3591_v46  ;;  %v3672_v48 = vand.u32 2147483647, %v13881_v39  ;;  %v3674_v32 = vand.u32 2147483648, %v13881_v39  ;;  %v3806_v50 = vmul.f32 %v3805_v4, %v13775_v57 }
 0x55a   : > { %v3667_v1 = vadd.f32 %v13960_v51, %v3666_v35  ;;  %vm3669_vm9 = vweird.f32 %v13960_v51  ;;  %v3745_v41 = vsub.f32 1.0, %v3744_v23  ;;  %v3900_v29 = vadd.f32 0.4994258, %v3899_v58  ;;  %7185 = vmatpush.xpose.msra.mxu2 %v14069_v55  ;;  %7908 = vmatpush.xpose.msrb.mxu1 %v14069_v55 }
 0x55b   : > { %v3730_v59 = vmul.f32 %v3729_v15, %v13671_v62  ;;  %v3977_v16 = vmul.f32 %v3976_v6, %v13934_v56  ;;  %v4055_v46 = vmul.f32 %v4054_v30, %v13996_v7  ;;  %v14085_v4 = vmul.f32 0.70710677, %v14055_v20  ;;  %6536 = vmatmul.f32.gmra.mxu2 %v17991_v8  ;;  %vm14099_vm10 = vmor %vm3668_vm8, %vm3669_vm9  ;;  %v14103_v30 = vpop.f32.mrf.mxu1 }
 0x55c   : > { %v3597_v35 = vmul.f32 %v3596_v22, %v13966_v52  ;;  %9044 = vrcp.f32 %v14066_v63  ;;  %v3884_v23 = vmul.f32 %v3883_v33, %v13838_v12  ;;  %v2817_v58 = vadd.f32 %v13968_v26, %v2618_v34  ;;  %v18061_v52 = vld [vmem:[#allocation133_spill] sm:$0xff]  ;;  %v14114_v34 = vpop.f32.mrf.mxu2 }
 0x55d   : > { %v3652_v62 = vmul.f32 %v3651_v61, %v13553_v40  ;;  %v3675_v6 = vor.u32 1.1754944e-38, %v3674_v32  ;;  %v3807_v8 = vadd.f32 0.05243302, %v3806_v50  ;;  %v3671_v26 = vsel %vm14099_vm10, %v13960_v51, %v3667_v1  ;;  %v14122_v51 = vpop.f32.mrf.mxu0 }
 0x55e   : > { %v3746_v40 = vmul.f32 %v14017_v36, %v3745_v41  ;;  %v3901_v61 = vmul.f32 %v3900_v29, %v13838_v12  ;;  %v14112_v39 = vadd.f32 %v13942_v31, %v2817_v58  ;;  %v18063_v10 = vand.u32 4294901760, %v13866_v42 }
 0x55f   : > { %v14118_v44 = vadd.f32 1.1283791, %v3730_v59  ;;  %v3978_v33 = vadd.f32 0.112945676, %v3977_v16  ;;  %v4056_v22 = vadd.f32 0.014752088, %v4055_v46  ;;  %v4120_v32 = vmul.f32 %v14085_v4, %v14085_v4 }
 0x560   : > { %18062 = vst [vmem:[#allocation115_spill] sm:$0xff] %v14112_v39  ;;  %6077 = vmatmul.f32.gmra.mxu0 %v18063_v10  ;;  %v18064_v50 = vand.u32 4294901760, %v18002_v43  ;;  %v8781_v1 = vclamps-f32 %v3597_v35, 1.0  ;;  %vm3673_vm11 = vcmp.eq.f32.partialorder %v3672_v48, 8.507059e+37  ;;  %v3885_v31 = vadd.f32 0.0036580483, %v3884_v23  ;;  %v14162_v11 = vpop.f32.mrf.mxu3 }
 0x561   : > { %v3962_v41 = vmul.f32 2.1237322e-06, %v13934_v56  ;;  %v3676_v29 = vsel %vm3673_vm11, %v3675_v6, %v3671_v26  ;;  %vm3748_vm12 = vweird.f32 %v13951_v54  ;;  %v3752_v42 = vand.u32 2147483647, %v13951_v54  ;;  %v18065_v16 = vld [vmem:[#allocation82_spill] sm:$0xff]  ;;  %v18067_v23 = vld [vmem:[#allocation67_spill] sm:$0xff] }
 0x562   : > { %6756 = vmatmul.f32.gmra.mxu3 %v18064_v50  ;;  %v3808_v59 = vmul.f32 %v3807_v8, %v13775_v57  ;;  %6338 = vmatmul.f32.gmra.mxu1 %v18065_v16  ;;  %v14131_v46 = vpop.eup %9044  ;;  %v3747_v58 = vadd.f32 %v14017_v36, %v3746_v40  ;;  %vm3749_vm13 = vweird.f32 %v14017_v36  ;;  %v14135_v35 = vadd.f32 1.0, %v3901_v61  ;;  %v18066_v48 = vld [vmem:[#allocation114_spill] sm:$0xff]  ;;  %v18075_v16 = vld [vmem:[#allocation140_spill] sm:$0xff] }
 0x563   : > { %v2321_v15 = vadd.f32 %v18067_v23, %v18066_v48  ;;  %v3979_v6 = vmul.f32 %v3978_v33, %v13934_v56  ;;  %v4057_v26 = vmul.f32 %v4056_v22, %v13996_v7  ;;  %v14141_v10 = vmin.f32 %v4120_v32, 16.0  ;;  %6541 = vmatmul.f32.gmra.mxu2 %v18002_v43  ;;  %vm14154_vm14 = vmor %vm3748_vm12, %vm3749_vm13  ;;  %v18070_v22 = vld [vmem:[#allocation69_spill] sm:$0xff]  ;;  %v18107_v39 = vld [vmem:[#allocation156_spill] sm:$0xff] }
 0x564   : > { %v14145_v8 = vsub.f32 %v14058_v47, %v14069_v55  ;;  %v3754_v40 = vand.u32 2147483648, %v13951_v54  ;;  %v3886_v61 = vmul.f32 %v3885_v31, %v13838_v12  ;;  %v3963_v50 = vadd.f32 0.00028619796, %v3962_v41 }
 0x565   : > { %v2624_v48 = vadd.f32 %v14022_v49, %v14043_v25  ;;  %v3677_v23 = vmul.f32 %v3676_v29, %v3652_v62  ;;  %v3824_v47 = vmul.f32 %v14131_v46, %v14066_v63  ;;  %v2528_v43 = vadd.f32 %v18070_v22, %v2321_v15  ;;  %v14173_v22 = vpop.f32.mrf.mxu1 }
 0x566   : > { %7705 = vmatpush.xpose.msrb.mxu0 %v14145_v8  ;;  %v5691_v31 = vadd.f32 1.0, %v8781_v1  ;;  %v3751_v54 = vsel %vm14154_vm14, %v14017_v36, %v3747_v58  ;;  %v3809_v49 = vadd.f32 0.18741608, %v3808_v59  ;;  %v18071_v62 = vand.u32 4294901760, %v13923_v0  ;;  %v14181_v59 = vpop.f32.mrf.mxu2 }
 0x567   : > { %v2821_v25 = vadd.f32 %v14036_v38, %v2624_v48  ;;  %9046 = vrcp.f32 %v14135_v35  ;;  %v3980_v41 = vadd.f32 0.4994258, %v3979_v6  ;;  %v4058_v29 = vadd.f32 0.112945676, %v4057_v26  ;;  %v18074_v26 = vld [vmem:[#allocation49_spill] sm:$0xff] }
 0x568   : > { %6085 = vmatmul.f32.gmra.mxu0 %v18071_v62  ;;  %v4133_v15 = vmul.f32 3.8918573e-05, %v14141_v10  ;;  %v18072_v1 = vand.u32 4294901760, %v18026_v21  ;;  %v3755_v32 = vor.u32 1.1754944e-38, %v3754_v40  ;;  %v3887_v33 = vadd.f32 0.05243302, %v3886_v61  ;;  %v14184_v62 = vpop.f32.mrf.mxu0 }
 0x569   : > { %v3964_v36 = vmul.f32 %v3963_v50, %v13934_v56  ;;  %v18073_v38 = vand.u32 4294901760, %v14145_v8  ;;  %v8783_v58 = vclamps-f32 %v3677_v23, 1.0  ;;  %vm3753_vm15 = vcmp.eq.f32.partialorder %v3752_v42, 8.507059e+37 }
 0x56a   : > { %6762 = vmatmul.f32.gmra.mxu3 %v18072_v1  ;;  %v3825_v6 = vsub.f32 1.0, %v3824_v47  ;;  %v2757_v48 = vadd.f32 %v18074_v26, %v2528_v43  ;;  %6342 = vmatmul.f32.gmra.mxu1 %v18075_v16  ;;  %v3756_v1 = vsel %vm3753_vm15, %v3755_v32, %v3751_v54  ;;  %v3810_v40 = vmul.f32 %v3809_v49, %v13775_v57 }
 0x56b   : > { %v7496_v0 = vsub.f32 %v14145_v8, %v18073_v38  ;;  %v4042_v61 = vmul.f32 2.1237322e-06, %v13996_v7  ;;  %v3981_v14 = vmul.f32 %v3980_v41, %v13934_v56  ;;  %v4059_v38 = vmul.f32 %v4058_v29, %v13996_v7  ;;  %6546 = vmatmul.f32.gmra.mxu2 %v18026_v21  ;;  %v18077_v21 = vld [vmem:[#allocation150_spill] sm:$0xff] }
 0x56c   : > { %v4134_v18 = vadd.f32 0.001143296, %v4133_v15  ;;  %v14192_v42 = vadd.f32 %v14007_v53, %v2821_v25  ;;  %v3732_v23 = vmul.f32 %v14118_v44, %v13613_v45  ;;  %v14198_v47 = vmul.f32 0.5, %v13754_v9 }
 0x56d   : > { %v7497_v50 = vand.u32 4294901760, %v7496_v0  ;;  %v3888_v57 = vmul.f32 %v3887_v33, %v13838_v12  ;;  %v3965_v43 = vadd.f32 0.0036580483, %v3964_v36  ;;  %v14201_v32 = vpop.eup %9046  ;;  %v14204_v54 = vmul.f32 %v5691_v31, %v13869_v28  ;;  %v14218_v33 = vld [vmem:[%s9538_s6 + $0x98] sm:$0xff]  ;;  %v14220_v36 = vpop.f32.mrf.mxu3 }
 0x56e   : > { %18076 = vst [vmem:[#allocation43_spill] sm:$0xff] %v14192_v42  ;;  %v5693_v53 = vadd.f32 1.0, %v8783_v58  ;;  %v3826_v49 = vmul.f32 %v14131_v46, %v3825_v6  ;;  %v14208_v25 = vadd.f32 %v18077_v21, %v2757_v48  ;;  %v3757_v45 = vmul.f32 %v3756_v1, %v3732_v23  ;;  %v18082_v23 = vld [vmem:[#allocation36_spill] sm:$0xff] }
 0x56f   : > { %7498 = vmatpush.xpose.msra.mxu3 %v7497_v50  ;;  %v3811_v44 = vadd.f32 1.1283791, %v3810_v40  ;;  %vm3828_vm0 = vweird.f32 %v14066_v63  ;;  %v4043_v9 = vadd.f32 0.00028619796, %v4042_v61  ;;  %v18078_v41 = vand.u32 4294901760, %v13931_v2  ;;  %18079 = vst [vmem:[#allocation58_spill] sm:$0xff] %v14220_v36  ;;  %v14238_v40 = vpop.f32.mrf.mxu1 }
 0x570   : > { %v3832_v29 = vand.u32 2147483647, %v14066_v63  ;;  %v14214_v15 = vadd.f32 1.0, %v3981_v14  ;;  %v4060_v28 = vadd.f32 0.4994258, %v4059_v38  ;;  %v4135_v31 = vmul.f32 %v4134_v18, %v14141_v10  ;;  %v14236_v1 = vpop.f32.mrf.mxu0  ;;  %v18081_v61 = vld [vmem:[#allocation145_spill] sm:$0xff] }
 0x571   : > { %6093 = vmatmul.f32.gmra.mxu0 %v18078_v41  ;;  %v18080_v0 = vand.u32 4294901760, %v18027_v13  ;;  %v3889_v58 = vadd.f32 0.18741608, %v3888_v57  ;;  %v3904_v6 = vmul.f32 %v14201_v32, %v14135_v35  ;;  %v3966_v2 = vmul.f32 %v3965_v43, %v13934_v56 }
 0x572   : > { %v14228_v26 = vand.u32 4294901760, %v14218_v33  ;;  %v3827_v14 = vadd.f32 %v14131_v46, %v3826_v49  ;;  %vm3829_vm1 = vweird.f32 %v14131_v46  ;;  %v3834_v18 = vand.u32 2147483648, %v14066_v63  ;;  %6346 = vmatmul.f32.gmra.mxu1 %v18081_v61  ;;  %v14247_v49 = vpop.f32.mrf.mxu2  ;;  %v18084_v61 = vld [vmem:[#allocation79_spill] sm:$0xff] }
 0x573   : > { %6768 = vmatmul.f32.gmra.mxu3 %v18080_v0  ;;  %v14234_v48 = vmul.f32 0.70710677, %v14208_v25  ;;  %v8785_v50 = vclamps-f32 %v3757_v45, 1.0  ;;  %v4044_v38 = vmul.f32 %v4043_v9, %v13996_v7  ;;  %v2411_v57 = vadd.f32 %v14122_v51, %v18082_v23  ;;  %v18083_v0 = vld [vmem:[#allocation119_spill] sm:$0xff]  ;;  %6551 = vmatmul.f32.gmra.mxu2 %v18027_v13  ;;  %vm14259_vm2 = vmor %vm3828_vm0, %vm3829_vm1 }
 0x574   : > { %7187 = vmatpush.xpose.msra.mxu2 %v14228_v26  ;;  %v2630_v43 = vadd.f32 %v14103_v30, %v14061_v24  ;;  %9048 = vrcp.f32 %v14214_v15  ;;  %v4061_v21 = vmul.f32 %v4060_v28, %v13996_v7  ;;  %v4136_v41 = vadd.f32 0.014752088, %v4135_v31  ;;  %7910 = vmatpush.xpose.msrb.mxu1 %v14228_v26 }
 0x575   : > { %v2326_v45 = vadd.f32 %v18084_v61, %v18083_v0  ;;  %v3890_v30 = vmul.f32 %v3889_v58, %v13838_v12  ;;  %v3905_v51 = vsub.f32 1.0, %v3904_v6  ;;  %v14265_v9 = vmul.f32 0.5, %v13842_v27  ;;  %v18087_v61 = vld [vmem:[#allocation41_spill] sm:$0xff]  ;;  %v14281_v6 = vpop.f32.mrf.mxu3 }
 0x576   : > { %v3967_v28 = vadd.f32 0.05243302, %v3966_v2  ;;  %v3831_v13 = vsel %vm14259_vm2, %v14131_v46, %v3827_v14  ;;  %v4200_v31 = vmul.f32 %v14234_v48, %v14234_v48  ;;  %v2825_v23 = vadd.f32 %v14114_v34, %v2630_v43  ;;  %18089 = vst [vmem:[#allocation55_spill] sm:$0xff] %v14281_v6  ;;  %v18091_v43 = vld [vmem:[#allocation151_spill] sm:$0xff] }
 0x577   : > { %v2534_v63 = vadd.f32 %v18087_v61, %v2326_v45  ;;  %v5695_v0 = vadd.f32 1.0, %v8785_v50  ;;  %v3835_v16 = vor.u32 1.1754944e-38, %v3834_v18  ;;  %v4045_v36 = vadd.f32 0.0036580483, %v4044_v38  ;;  %v14298_v45 = vpop.f32.mrf.mxu1 }
 0x578   : > { %v4122_v12 = vmul.f32 2.1237322e-06, %v14141_v10  ;;  %v14276_v27 = vmul.f32 %v5693_v53, %v13916_v37  ;;  %vm3833_vm3 = vcmp.eq.f32.partialorder %v3832_v29, 8.507059e+37  ;;  %v14278_v58 = vadd.f32 1.0, %v4061_v21 }
 0x579   : > { %v4137_v46 = vmul.f32 %v4136_v41, %v14141_v10  ;;  %v18090_v2 = vand.u32 4294901760, %v18061_v52  ;;  %v3812_v34 = vmul.f32 %v3811_v44, %v13717_v17  ;;  %v3836_v14 = vsel %vm3833_vm3, %v3835_v16, %v3831_v13  ;;  %v14296_v41 = vpop.f32.mrf.mxu0  ;;  %v18092_v17 = vld [vmem:[#allocation152_spill] sm:$0xff]  ;;  %v18093_v16 = vld [vmem:[#allocation107_spill] sm:$0xff] }
 0x57a   : > { %18088 = vst [vmem:[#allocation113_spill] sm:$0xff] %v14276_v27  ;;  %v3906_v18 = vmul.f32 %v14201_v32, %v3905_v51  ;;  %v3968_v50 = vmul.f32 %v3967_v28, %v13934_v56  ;;  %v14288_v38 = vpop.eup %9048  ;;  %v3891_v37 = vadd.f32 1.1283791, %v3890_v30  ;;  %v14291_v53 = vmul.f32 0.5, %v13907_v19  ;;  %6350 = vmatmul.f32.gmra.mxu1 %v18092_v17  ;;  %v14308_v19 = vpop.f32.mrf.mxu2 }
 0x57b   : > { %6774 = vmatmul.f32.gmra.mxu3 %v18090_v2  ;;  %v14293_v29 = vmin.f32 %v4200_v31, 16.0  ;;  %v2761_v21 = vadd.f32 %v18091_v43, %v2534_v63  ;;  %v14302_v44 = vmul.f32 %v5695_v0, %v18093_v16  ;;  %v4046_v24 = vmul.f32 %v4045_v36, %v13996_v7  ;;  %6556 = vmatmul.f32.gmra.mxu2 %v18061_v52  ;;  %v18097_v0 = vld [vmem:[#allocation149_spill] sm:$0xff] }
 0x57c   : > { %v4123_v51 = vadd.f32 0.00028619796, %v4122_v12  ;;  %v14306_v30 = vadd.f32 %v14087_v3, %v2825_v23  ;;  %v3837_v28 = vmul.f32 %v3836_v14, %v3812_v34  ;;  %9050 = vrcp.f32 %v14278_v58  ;;  %v18096_v23 = vld [vmem:[#allocation124_spill] sm:$0xff] }
 0x57d   : > { %18094 = vst [vmem:[#allocation125_spill] sm:$0xff] %v14302_v44  ;;  %v4138_v13 = vadd.f32 0.112945676, %v4137_v46  ;;  %v14313_v31 = vsub.f32 %v14218_v33, %v14228_v26  ;;  %v3907_v61 = vadd.f32 %v14201_v32, %v3906_v18  ;;  %vm3909_vm4 = vweird.f32 %v14201_v32  ;;  %v18098_v46 = vld [vmem:[#allocation86_spill] sm:$0xff] }
 0x57e   : > { %18095 = vst [vmem:[#allocation56_spill] sm:$0xff] %v14306_v30  ;;  %v3969_v36 = vadd.f32 0.18741608, %v3968_v50  ;;  %v3984_v3 = vmul.f32 %v14288_v38, %v14214_v15  ;;  %v4213_v63 = vmul.f32 3.8918573e-05, %v14293_v29  ;;  %v2331_v12 = vadd.f32 %v18097_v0, %v18096_v23  ;;  %v18099_v23 = vld [vmem:[#allocation137_spill] sm:$0xff]  ;;  %v14335_v0 = vpop.f32.mrf.mxu3 }
 0x57f   : > { %v14324_v2 = vadd.f32 %v18098_v46, %v2761_v21  ;;  %7708 = vmatpush.xpose.msrb.mxu0 %v14313_v31  ;;  %v3914_v34 = vand.u32 2147483648, %v14135_v35  ;;  %v4047_v14 = vadd.f32 0.05243302, %v4046_v24  ;;  %v4124_v18 = vmul.f32 %v4123_v51, %v14141_v10  ;;  %18100 = vst [vmem:[#allocation90_spill] sm:$0xff] %v14335_v0  ;;  %v18106_v30 = vld [vmem:[#allocation28_spill] sm:$0xff] }
 0x580   : > { %v2636_v50 = vadd.f32 %v14173_v22, %v2411_v57  ;;  %vm3908_vm5 = vweird.f32 %v14135_v35  ;;  %v3912_v43 = vand.u32 2147483647, %v14135_v35  ;;  %v4139_v16 = vmul.f32 %v4138_v13, %v14141_v10 }
 0x581   : > { %v2540_v21 = vadd.f32 %v18099_v23, %v2331_v12  ;;  %v8787_v46 = vclamps-f32 %v3837_v28, 1.0  ;;  %vm14339_vm6 = vmor %vm3908_vm5, %vm3909_vm4  ;;  %v3970_v24 = vmul.f32 %v3969_v36, %v13934_v56  ;;  %v3985_v22 = vsub.f32 1.0, %v3984_v3  ;;  %v14356_v17 = vpop.f32.mrf.mxu0  ;;  %v14358_v56 = vpop.f32.mrf.mxu1  ;;  %v18104_v36 = vld [vmem:[#allocation153_spill] sm:$0xff] }
 0x582   : > { %v18103_v57 = vand.u32 4294901760, %v14313_v31  ;;  %v14347_v51 = vpop.eup %9050  ;;  %v3911_v13 = vsel %vm14339_vm6, %v14201_v32, %v3907_v61  ;;  %v4202_v28 = vmul.f32 2.1237322e-06, %v14293_v29  ;;  %v4214_v12 = vadd.f32 0.001143296, %v4213_v63  ;;  %6354 = vmatmul.f32.gmra.mxu1 %v18104_v36  ;;  %v14362_v33 = vpop.f32.mrf.mxu2  ;;  %v18105_v32 = vld [vmem:[#allocation123_spill] sm:$0xff] }
 0x583   : > { %v14354_v23 = vmul.f32 0.70710677, %v14324_v2  ;;  %v3915_v3 = vor.u32 1.1754944e-38, %v3914_v34  ;;  %v4125_v0 = vadd.f32 0.0036580483, %v4124_v18  ;;  %v3892_v61 = vmul.f32 %v3891_v37, %v18105_v32  ;;  %6561 = vmatmul.f32.gmra.mxu2 %v18107_v39  ;;  %v18110_v36 = vld [vmem:[#allocation154_spill] sm:$0xff] }
 0x584   : > { %v7502_v35 = vsub.f32 %v14313_v31, %v18103_v57  ;;  %v4048_v57 = vmul.f32 %v4047_v14, %v13996_v7  ;;  %vm3913_vm7 = vcmp.eq.f32.partialorder %v3912_v43, 8.507059e+37  ;;  %v4140_v63 = vadd.f32 0.4994258, %v4139_v16  ;;  %v14374_v43 = vld [vmem:[%s9538_s6 + $0x88] sm:$0xff] }
 0x585   : > { %v2765_v42 = vadd.f32 %v18106_v30, %v2540_v21  ;;  %v5697_v60 = vadd.f32 1.0, %v8787_v46  ;;  %v3916_v44 = vsel %vm3913_vm7, %v3915_v3, %v3911_v13  ;;  %v3971_v27 = vadd.f32 1.1283791, %v3970_v24  ;;  %v18108_v13 = vld [vmem:[#allocation53_spill] sm:$0xff] }
 0x586   : > { %v7503_v6 = vand.u32 4294901760, %v7502_v35  ;;  %v4064_v34 = vmul.f32 %v14347_v51, %v14278_v58  ;;  %v3986_v14 = vmul.f32 %v14288_v38, %v3985_v22  ;;  %v4203_v18 = vadd.f32 0.00028619796, %v4202_v28 }
 0x587   : > { %v4215_v35 = vmul.f32 %v4214_v12, %v14293_v29  ;;  %v4280_v37 = vmul.f32 %v14354_v23, %v14354_v23  ;;  %v3992_v30 = vand.u32 2147483647, %v14214_v15  ;;  %v4049_v16 = vadd.f32 0.18741608, %v4048_v57  ;;  %v14388_v12 = vpop.f32.mrf.mxu3 }
 0x588   : > { %7504 = vmatpush.xpose.msra.mxu3 %v7503_v6  ;;  %v4126_v21 = vmul.f32 %v4125_v0, %v14141_v10  ;;  %v14379_v46 = vand.u32 4294901760, %v14374_v43  ;;  %v14381_v24 = vmul.f32 %v3916_v44, %v3892_v61  ;;  %v3994_v6 = vand.u32 2147483648, %v14214_v15  ;;  %18109 = vst [vmem:[#allocation129_spill] sm:$0xff] %v14388_v12 }
 0x589   : > { %v4141_v22 = vmul.f32 %v4140_v63, %v14141_v10  ;;  %v14386_v28 = vadd.f32 %v18108_v13, %v2765_v42  ;;  %vm3989_vm8 = vweird.f32 %v14288_v38  ;;  %v4065_v3 = vsub.f32 1.0, %v4064_v34  ;;  %v5942_v63 = vpop.f32.mrf.mxu0  ;;  %v6271_v13 = vpop.f32.mrf.mxu1 }
 0x58a   : > { %7189 = vmatpush.xpose.msra.mxu2 %v14379_v46  ;;  %v2829_v0 = vadd.f32 %v14181_v59, %v2636_v50  ;;  %v6260_v44 = vadd.f32 %v14238_v40, %v14184_v62  ;;  %7912 = vmatpush.xpose.msrb.mxu1 %v14379_v46  ;;  %v3987_v57 = vadd.f32 %v14288_v38, %v3986_v14  ;;  %v4216_v42 = vadd.f32 0.014752088, %v4215_v35  ;;  %v6452_v40 = vpop.f32.mrf.mxu2  ;;  %v18113_v35 = vld [vmem:[#allocation51_spill] sm:$0xff] }
 0x58b   : > { %v4204_v32 = vmul.f32 %v4203_v18, %v14293_v29  ;;  %v14398_v61 = vmin.f32 %v4280_v37, 16.0  ;;  %6358 = vmatmul.f32.gmra.mxu1 %v18110_v36  ;;  %v4127_v34 = vadd.f32 0.05243302, %v4126_v21  ;;  %v6264_v62 = vadd.f32 %v14298_v45, %v14236_v1  ;;  %6566 = vmatmul.f32.gmra.mxu2 %v18113_v35 }
 0x58c   : > { %v14402_v12 = vadd.f32 %v14162_v11, %v2829_v0  ;;  %v14405_v59 = vadd.f32 %v14247_v49, %v6260_v44  ;;  %vm3988_vm9 = vweird.f32 %v14214_v15  ;;  %v14411_v50 = vmul.f32 0.5, %v14055_v20  ;;  %v18115_v49 = vld [vmem:[#allocation102_spill] sm:$0xff] }
 0x58d   : > { %v14413_v14 = vadd.f32 1.0, %v4141_v22  ;;  %v14416_v18 = vmul.f32 0.70710677, %v14386_v28  ;;  %v14420_v11 = vmul.f32 %v5697_v60, %v14015_v5  ;;  %v3972_v37 = vmul.f32 %v3971_v27, %v18115_v49  ;;  %vm14425_vm10 = vmor %vm3988_vm9, %vm3989_vm8  ;;  %v18120_v49 = vld [vmem:[#allocation155_spill] sm:$0xff] }
 0x58e   : > { %18111 = vst [vmem:[#allocation70_spill] sm:$0xff] %v14402_v12  ;;  %v4050_v20 = vmul.f32 %v4049_v16, %v13996_v7  ;;  %v4066_v15 = vmul.f32 %v14347_v51, %v4065_v3  ;;  %v3991_v45 = vsel %vm14425_vm10, %v14288_v38, %v3987_v57  ;;  %v4205_v21 = vadd.f32 0.0036580483, %v4204_v32 }
 0x58f   : > { %18112 = vst [vmem:[#allocation68_spill] sm:$0xff] %v14405_v59  ;;  %v4217_v5 = vmul.f32 %v4216_v42, %v14293_v29  ;;  %v4293_v60 = vmul.f32 3.8918573e-05, %v14398_v61  ;;  %v8789_v27 = vclamps-f32 %v14381_v24, 1.0  ;;  %vm3993_vm11 = vcmp.eq.f32.partialorder %v3992_v30, 8.507059e+37  ;;  %v14443_v16 = vpop.f32.mrf.mxu3 }
 0x590   : > { %18114 = vst [vmem:[#allocation136_spill] sm:$0xff] %v14420_v11  ;;  %v3995_v22 = vor.u32 1.1754944e-38, %v3994_v6  ;;  %v4128_v0 = vmul.f32 %v4127_v34, %v14141_v10  ;;  %vm4068_vm12 = vweird.f32 %v14278_v58  ;;  %v4074_v7 = vand.u32 2147483648, %v14278_v58  ;;  %v18156_v11 = vld [vmem:[#allocation117_spill] sm:$0xff] }
 0x591   : > { %9052 = vrcp.f32 %v14413_v14  ;;  %v4360_v38 = vmul.f32 %v14416_v18, %v14416_v18  ;;  %18118 = vst [vmem:[#allocation128_spill] sm:$0xff] %v14443_v16  ;;  %v4067_v44 = vadd.f32 %v14347_v51, %v4066_v15  ;;  %vm4069_vm13 = vweird.f32 %v14347_v51  ;;  %v5950_v42 = vpop.f32.mrf.mxu0  ;;  %v6275_v34 = vpop.f32.mrf.mxu1 }
 0x592   : > { %v3996_v3 = vsel %vm3993_vm11, %v3995_v22, %v3991_v45  ;;  %v14448_v30 = vadd.f32 %v14308_v19, %v6264_v62  ;;  %v4206_v24 = vmul.f32 %v4205_v21, %v14293_v29  ;;  %v4218_v6 = vadd.f32 0.112945676, %v4217_v5  ;;  %v6457_v36 = vpop.f32.mrf.mxu2  ;;  %vm14460_vm14 = vmor %vm4068_vm12, %vm4069_vm13  ;;  %v18123_v5 = vld [vmem:[#allocation45_spill] sm:$0xff]  ;;  %v18129_v21 = vld [vmem:[#allocation26_spill] sm:$0xff] }
 0x593   : > { %v4294_v57 = vadd.f32 0.001143296, %v4293_v60  ;;  %v6268_v32 = vadd.f32 %v14358_v56, %v14296_v41  ;;  %6362 = vmatmul.f32.gmra.mxu1 %v18120_v49  ;;  %v4072_v1 = vand.u32 2147483647, %v14278_v58  ;;  %v4129_v45 = vadd.f32 0.18741608, %v4128_v0  ;;  %6571 = vmatmul.f32.gmra.mxu2 %v18123_v5 }
 0x594   : > { %18119 = vst [vmem:[#allocation99_spill] sm:$0xff] %v14448_v30  ;;  %v6272_v15 = vadd.f32 %v6271_v13, %v14356_v17  ;;  %v6276_v22 = vadd.f32 %v6275_v34, %v5942_v63  ;;  %v3997_v19 = vmul.f32 %v3996_v3, %v3972_v37  ;;  %v4051_v62 = vadd.f32 1.1283791, %v4050_v20 }
 0x595   : > { %v14464_v41 = vmin.f32 %v4360_v38, 16.0  ;;  %v14468_v56 = vsub.f32 %v14374_v43, %v14379_v46  ;;  %v5699_v17 = vadd.f32 1.0, %v8789_v27  ;;  %v4071_v63 = vsel %vm14460_vm14, %v14347_v51, %v4067_v44 }
 0x596   : > { %v4282_v13 = vmul.f32 2.1237322e-06, %v14398_v61  ;;  %v14476_v58 = vadd.f32 %v14362_v33, %v6268_v32  ;;  %v4075_v20 = vor.u32 1.1754944e-38, %v4074_v7  ;;  %v4207_v60 = vadd.f32 0.05243302, %v4206_v24  ;;  %v18126_v33 = vld [vmem:[#allocation100_spill] sm:$0xff] }
 0x597   : > { %v14478_v37 = vpop.eup %9052  ;;  %v4219_v0 = vmul.f32 %v4218_v6, %v14293_v29  ;;  %v4295_v43 = vmul.f32 %v4294_v57, %v14398_v61  ;;  %7711 = vmatpush.xpose.msrb.mxu0 %v14468_v56  ;;  %vm4073_vm15 = vcmp.eq.f32.partialorder %v4072_v1, 8.507059e+37  ;;  %v4130_v27 = vmul.f32 %v4129_v45, %v14141_v10  ;;  %v14489_v24 = vpop.f32.mrf.mxu3 }
 0x598   : > { %18124 = vst [vmem:[#allocation24_spill] sm:$0xff] %v14476_v58  ;;  %v17089_v51 = vand.u32 4294901760, %v14468_v56  ;;  %v14485_v38 = vadd.f32 %v6452_v40, %v6272_v15  ;;  %v8791_v3 = vclamps-f32 %v3997_v19, 1.0  ;;  %v4052_v44 = vmul.f32 %v4051_v62, %v18126_v33  ;;  %v5847_v58 = vld [vmem:[%s9538_s6 + $0x38] sm:$0xff] }
 0x599   : > { %v4076_v32 = vsel %vm4073_vm15, %v4075_v20, %v4071_v63  ;;  %v4373_v7 = vmul.f32 3.8918573e-05, %v14464_v41  ;;  %18127 = vst [vmem:[#allocation61_spill] sm:$0xff] %v14489_v24  ;;  %v4144_v6 = vmul.f32 %v14478_v37, %v14413_v14  ;;  %v4283_v57 = vadd.f32 0.00028619796, %v4282_v13  ;;  %v5958_v19 = vpop.f32.mrf.mxu0  ;;  %v6279_v62 = vpop.f32.mrf.mxu1 }
 0x59a   : > { %18125 = vst [vmem:[#allocation29_spill] sm:$0xff] %v14485_v38  ;;  %v7508_v10 = vsub.f32 %v14468_v56, %v17089_v51  ;;  %v14496_v34 = vadd.f32 %v6457_v36, %v6276_v22  ;;  %v14499_v40 = vmul.f32 0.5, %v14208_v25  ;;  %v4208_v1 = vmul.f32 %v4207_v60, %v14293_v29  ;;  %v6462_v33 = vpop.f32.mrf.mxu2 }
 0x59b   : > { %v4220_v45 = vadd.f32 0.4994258, %v4219_v0  ;;  %v4296_v15 = vadd.f32 0.014752088, %v4295_v43  ;;  %6366 = vmatmul.f32.gmra.mxu1 %v18129_v21  ;;  %v4131_v63 = vadd.f32 1.1283791, %v4130_v27  ;;  %v6280_v13 = vadd.f32 %v6279_v62, %v5950_v42 }
 0x59c   : > { %18128 = vst [vmem:[#allocation27_spill] sm:$0xff] %v14496_v34  ;;  %v7509_v20 = vand.u32 4294901760, %v7508_v10  ;;  %v18130_v49 = vand.u32 4294901760, %v18061_v52  ;;  %v14507_v22 = vmul.f32 %v5699_v17, %v14198_v47  ;;  %v5701_v25 = vadd.f32 1.0, %v8791_v3  ;;  %v18132_v0 = vld [vmem:[#allocation50_spill] sm:$0xff]  ;;  %v18133_v10 = vld [vmem:[#allocation127_spill] sm:$0xff] }
 0x59d   : > { %v4077_v51 = vmul.f32 %v4076_v32, %v4052_v44  ;;  %v4374_v60 = vadd.f32 0.001143296, %v4373_v7  ;;  %6576 = vmatmul.f32.gmra.mxu2 %v18132_v0  ;;  %v4145_v43 = vsub.f32 1.0, %v4144_v6  ;;  %v4154_v24 = vand.u32 2147483648, %v14413_v14  ;;  %v5849_v21 = vld [vmem:[%s9538_s6 + $0x48] sm:$0xff] }
 0x59e   : > { %v6099_v36 = vsub.f32 %v18061_v52, %v18130_v49  ;;  %18131 = vst [vmem:[#allocation143_spill] sm:$0xff] %v14507_v22  ;;  %v4284_v27 = vmul.f32 %v4283_v57, %v14398_v61  ;;  %v14513_v42 = vmul.f32 0.70710677, %v18133_v10  ;;  %7510 = vmatpush.xpose.msra.mxu3 %v7509_v20  ;;  %v4209_v62 = vadd.f32 0.18741608, %v4208_v1  ;;  %v18155_v22 = vld [vmem:[#allocation63_spill] sm:$0xff] }
 0x59f   : > { %v4221_v52 = vmul.f32 %v4220_v45, %v14293_v29  ;;  %v4297_v47 = vmul.f32 %v4296_v15, %v14398_v61  ;;  %v14517_v49 = vadd.f32 %v6462_v33, %v6280_v13  ;;  %v14520_v17 = vmul.f32 %v4131_v63, %v14085_v4  ;;  %v14530_v1 = vpop.f32.mrf.mxu3  ;;  %v5853_v33 = vld [vmem:[%s9538_s6 + $0x68] sm:$0xff] }
 0x5a0   : > { %v4152_v3 = vand.u32 2147483647, %v14413_v14  ;;  %v14524_v44 = vmul.f32 0.5, %v14324_v2  ;;  %v6100_v32 = vand.u32 4294901760, %v6099_v36  ;;  %v14527_v7 = vmul.f32 %v5701_v25, %v14265_v9  ;;  %18136 = vst [vmem:[#allocation142_spill] sm:$0xff] %v14530_v1  ;;  %v5851_v36 = vld [vmem:[%s9538_s6 + $0x58] sm:$0xff] }
 0x5a1   : > { %18134 = vst [vmem:[#allocation31_spill] sm:$0xff] %v14517_v49  ;;  %v8793_v6 = vclamps-f32 %v4077_v51, 1.0  ;;  %v4375_v57 = vmul.f32 %v4374_v60, %v14464_v41  ;;  %v6106_v4 = vand.u32 4294901760, %v18107_v39  ;;  %v14533_v45 = vor.u32 1.1754944e-38, %v4154_v24  ;;  %v5855_v24 = vld [vmem:[%s9538_s6 + $0x78] sm:$0xff]  ;;  %v14548_v25 = vpop.f32.mrf.mxu0  ;;  %v18137_v60 = vld [vmem:[#allocation57_spill] sm:$0xff] }
 0x5a2   : > { %18135 = vst [vmem:[#allocation80_spill] sm:$0xff] %v14527_v7  ;;  %v4285_v15 = vadd.f32 0.0036580483, %v4284_v27  ;;  %v14536_v2 = vmul.f32 0.5, %v14386_v28  ;;  %v4440_v63 = vmul.f32 %v14513_v42, %v14513_v42  ;;  %6101 = vmatmul.f32.gmra.mxu0 %v6100_v32  ;;  %v4146_v9 = vmul.f32 %v14478_v37, %v4145_v43  ;;  %v6283_v28 = vpop.f32.mrf.mxu1  ;;  %v18141_v49 = vld [vmem:[#allocation106_spill] sm:$0xff] }
 0x5a3   : > { %vm4148_vm0 = vweird.f32 %v14413_v14  ;;  %v4210_v51 = vmul.f32 %v4209_v62, %v14293_v29  ;;  %v14543_v20 = vadd.f32 1.0, %v4221_v52  ;;  %v4298_v13 = vadd.f32 0.112945676, %v4297_v47  ;;  %6780 = vmatmul.f32.gmra.mxu3 %v6106_v4  ;;  %6370 = vmatmul.f32.gmra.mxu1 %v18137_v60  ;;  %v6467_v62 = vpop.f32.mrf.mxu2 }
 0x5a4   : > { %v14551_v27 = vand.u32 4294901760, %v5855_v24  ;;  %v14553_v32 = vand.u32 4294901760, %v5853_v33  ;;  %v14555_v43 = vand.u32 4294901760, %v5851_v36  ;;  %v6284_v29 = vadd.f32 %v6283_v28, %v5958_v19 }
 0x5a5   : > { %v5703_v52 = vadd.f32 1.0, %v8793_v6  ;;  %vm4149_vm1 = vweird.f32 %v14478_v37  ;;  %v4362_v47 = vmul.f32 2.1237322e-06, %v14464_v41  ;;  %v4376_v1 = vadd.f32 0.014752088, %v4375_v57  ;;  %6581 = vmatmul.f32.gmra.mxu2 %v18141_v49 }
 0x5a6   : > { %18138 = vst [vmem:[#allocation139_spill] sm:$0xff] %v14551_v27  ;;  %v14561_v16 = vmin.f32 %v4440_v63, 16.0  ;;  %7191 = vmatpush.xpose.msra.mxu2 %v14551_v27  ;;  %v14565_v60 = vsub.f32 %v5855_v24, %v14551_v27  ;;  %v14568_v34 = vsub.f32 %v5853_v33, %v14553_v32  ;;  %v14571_v19 = vsub.f32 %v5851_v36, %v14555_v43  ;;  %v18150_v36 = vld [vmem:[#allocation72_spill] sm:$0xff]  ;;  %vm14620_vm3 = vmor %vm4148_vm0, %vm4149_vm1 }
 0x5a7   : > { %18139 = vst [vmem:[#allocation104_spill] sm:$0xff] %v14553_v32  ;;  %7914 = vmatpush.xpose.msrb.mxu1 %v14551_v27  ;;  %v4147_v6 = vadd.f32 %v14478_v37, %v4146_v9  ;;  %vm14575_vm2 = vcmp.eq.f32.partialorder %v4152_v3, 8.507059e+37  ;;  %v4211_v63 = vadd.f32 1.1283791, %v4210_v51  ;;  %v4286_v28 = vmul.f32 %v4285_v15, %v14398_v61  ;;  %v14591_v51 = vpop.f32.mrf.mxu3 }
 0x5a8   : > { %18140 = vst [vmem:[#allocation134_spill] sm:$0xff] %v14555_v43  ;;  %v14580_v38 = vand.u32 4294901760, %v5849_v21  ;;  %9054 = vrcp.f32 %v14543_v20  ;;  %v4299_v24 = vmul.f32 %v4298_v13, %v14398_v61  ;;  %v17091_v33 = vand.u32 4294901760, %v14565_v60  ;;  %7714 = vmatpush.xpose.msrb.mxu0 %v14565_v60 }
 0x5a9   : > { %v4363_v3 = vadd.f32 0.00028619796, %v4362_v47  ;;  %v4377_v9 = vmul.f32 %v4376_v1, %v14464_v41  ;;  %v14589_v30 = vadd.f32 %v6467_v62, %v6284_v29  ;;  %18146 = vst [vmem:[#allocation37_spill] sm:$0xff] %v14591_v51  ;;  %v6114_v15 = vand.u32 4294901760, %v18113_v35  ;;  %v5974_v51 = vpop.f32.mrf.mxu0 }
 0x5aa   : > { %18144 = vst [vmem:[#allocation59_spill] sm:$0xff] %v14580_v38  ;;  %v4453_v59 = vmul.f32 3.8918573e-05, %v14561_v16  ;;  %v7514_v13 = vsub.f32 %v14565_v60, %v17091_v33  ;;  %7193 = vmatpush.xpose.msra.mxu2 %v14553_v32  ;;  %v14601_v47 = vsub.f32 %v5849_v21, %v14580_v38  ;;  %v14604_v1 = vadd.f32 0.05243302, %v4286_v28 }
 0x5ab   : > { %18145 = vst [vmem:[#allocation135_spill] sm:$0xff] %v14589_v30  ;;  %7916 = vmatpush.xpose.msrb.mxu1 %v14553_v32  ;;  %v18148_v29 = vand.u32 4294901760, %v14568_v34  ;;  %v6287_v30 = vpop.f32.mrf.mxu1  ;;  %v14609_v12 = vand.u32 4294901760, %v5847_v58  ;;  %v6107_v33 = vsub.f32 %v18107_v39, %v6106_v4  ;;  %6786 = vmatmul.f32.gmra.mxu3 %v6114_v15  ;;  %v14614_v21 = vmul.f32 %v5703_v52, %v14291_v53  ;;  %v6472_v4 = vpop.f32.mrf.mxu2 }
 0x5ac   : > { %18147 = vst [vmem:[#allocation109_spill] sm:$0xff] %v14601_v47  ;;  %6374 = vmatmul.f32.gmra.mxu1 %v18150_v36  ;;  %v14625_v7 = vmul.f32 0.5, %v18133_v10  ;;  %v14628_v39 = vmul.f32 0.70710677, %v18155_v22  ;;  %7717 = vmatpush.xpose.msrb.mxu0 %v14568_v34  ;;  %v4151_v53 = vsel %vm14620_vm3, %v14478_v37, %v4147_v6  ;;  %v4364_v14 = vmul.f32 %v4363_v3, %v14464_v41 }
 0x5ad   : > { %v7520_v62 = vsub.f32 %v14568_v34, %v18148_v29  ;;  %18149 = vst [vmem:[#allocation141_spill] sm:$0xff] %v14609_v12  ;;  %v4300_v29 = vadd.f32 0.4994258, %v4299_v24  ;;  %v4378_v52 = vadd.f32 0.112945676, %v4377_v9  ;;  %v7515_v36 = vand.u32 4294901760, %v7514_v13  ;;  %6586 = vmatmul.f32.gmra.mxu2 %v18156_v11 }
 0x5ae   : > { %18151 = vst [vmem:[#allocation89_spill] sm:$0xff] %v14614_v21  ;;  %v5845_v21 = vld [vmem:[%s9538_s6 + $0x28] sm:$0xff]  ;;  %v14637_v24 = vpop.eup %9054  ;;  %v14640_v10 = vmul.f32 %v4211_v63, %v14234_v48  ;;  %7195 = vmatpush.xpose.msra.mxu2 %v14555_v43  ;;  %v18157_v32 = vand.u32 4294901760, %v14571_v19  ;;  %v17097_v37 = vand.u32 4294901760, %v14601_v47  ;;  %v6288_v3 = vadd.f32 %v6287_v30, %v14548_v25 }
 0x5af   : > { %18154 = vst [vmem:[#allocation47_spill] sm:$0xff] %v14625_v7  ;;  %v4454_v7 = vadd.f32 0.001143296, %v4453_v59  ;;  %7918 = vmatpush.xpose.msrb.mxu1 %v14555_v43  ;;  %7516 = vmatpush.xpose.msra.mxu3 %v7515_v36  ;;  %v7521_v6 = vand.u32 4294901760, %v7520_v62  ;;  %v14650_v9 = vsub.f32 %v5847_v58, %v14609_v12  ;;  %v6108_v48 = vand.u32 4294901760, %v6107_v33  ;;  %v14666_v36 = vpop.f32.mrf.mxu3 }
 0x5b0   : > { %v7526_v28 = vsub.f32 %v14571_v19, %v18157_v32  ;;  %v4156_v59 = vsel %vm14575_vm2, %v14533_v45, %v4151_v53  ;;  %v4301_v63 = vmul.f32 %v4300_v29, %v14398_v61  ;;  %v4520_v32 = vmul.f32 %v14628_v39, %v14628_v39  ;;  %7720 = vmatpush.xpose.msrb.mxu0 %v14571_v19  ;;  %v5843_v45 = vld [vmem:[%s9538_s6 + $0x18] sm:$0xff] }
 0x5b1   : > { %18158 = vst [vmem:[#allocation147_spill] sm:$0xff] %v14650_v9  ;;  %v14658_v13 = vand.u32 4294901760, %v5845_v21  ;;  %v4224_v30 = vmul.f32 %v14637_v24, %v14543_v20  ;;  %v4365_v25 = vadd.f32 0.0036580483, %v4364_v14  ;;  %v4379_v58 = vmul.f32 %v4378_v52, %v14464_v41  ;;  %6109 = vmatmul.f32.gmra.mxu0 %v6108_v48  ;;  %v18163_v48 = vld [vmem:[#allocation65_spill] sm:$0xff] }
 0x5b2   : > { %v14664_v33 = vadd.f32 %v6472_v4, %v6288_v3  ;;  %18161 = vst [vmem:[#allocation75_spill] sm:$0xff] %v14666_v36  ;;  %v4455_v57 = vmul.f32 %v4454_v7, %v14561_v16  ;;  %v7527_v62 = vand.u32 4294901760, %v7526_v28  ;;  %7197 = vmatpush.xpose.msra.mxu2 %v14580_v38  ;;  %v7532_v29 = vsub.f32 %v14601_v47, %v17097_v37  ;;  %v5982_v4 = vpop.f32.mrf.mxu0 }
 0x5b3   : > { %18159 = vst [vmem:[#allocation76_spill] sm:$0xff] %v14658_v13  ;;  %v6122_v53 = vand.u32 4294901760, %v18123_v5  ;;  %7920 = vmatpush.xpose.msrb.mxu1 %v14580_v38  ;;  %7522 = vmatpush.xpose.msra.mxu3 %v7521_v6  ;;  %v6291_v14 = vpop.f32.mrf.mxu1  ;;  %v6115_v3 = vsub.f32 %v18113_v35, %v6114_v15  ;;  %v14679_v7 = vsub.f32 %v5845_v21, %v14658_v13  ;;  %v14681_v28 = vand.u32 4294901760, %v5843_v45  ;;  %v6477_v43 = vpop.f32.mrf.mxu2 }
 0x5b4   : > { %18160 = vst [vmem:[#allocation33_spill] sm:$0xff] %v14664_v33  ;;  %6378 = vmatmul.f32.gmra.mxu1 %v18163_v48  ;;  %v14684_v36 = vadd.f32 1.0, %v4301_v63  ;;  %v14686_v37 = vmin.f32 %v4520_v32, 16.0  ;;  %v18164_v33 = vld [vmem:[#allocation71_spill] sm:$0xff]  ;;  %v6292_v6 = vadd.f32 %v6291_v14, %v5974_v51  ;;  %7723 = vmatpush.xpose.msrb.mxu0 %v14601_v47  ;;  %v4232_v35 = vand.u32 2147483647, %v14543_v20 }
 0x5b5   : > { %18162 = vst [vmem:[#allocation146_spill] sm:$0xff] %v14681_v28  ;;  %v14689_v38 = vmul.f32 0.70710677, %v18164_v33  ;;  %6792 = vmatmul.f32.gmra.mxu3 %v6122_v53  ;;  %v4288_v15 = vmul.f32 %v14604_v1, %v14398_v61  ;;  %v4366_v21 = vmul.f32 %v4365_v25, %v14464_v41  ;;  %v4380_v52 = vadd.f32 0.4994258, %v4379_v58  ;;  %v18166_v63 = vld [vmem:[#allocation78_spill] sm:$0xff] }
 0x5b6   : > { %6591 = vmatmul.f32.gmra.mxu2 %v18166_v63  ;;  %v4225_v32 = vsub.f32 1.0, %v4224_v30  ;;  %v4456_v48 = vadd.f32 0.014752088, %v4455_v57  ;;  %v7533_v27 = vand.u32 4294901760, %v7532_v29  ;;  %v14698_v51 = vadd.f32 %v6477_v43, %v6292_v6 }
 0x5b7   : > { %18165 = vst [vmem:[#allocation122_spill] sm:$0xff] %v14689_v38  ;;  %7199 = vmatpush.xpose.msra.mxu2 %v14609_v12  ;;  %7922 = vmatpush.xpose.msrb.mxu1 %v14609_v12  ;;  %v18168_v14 = vand.u32 4294901760, %v14650_v9  ;;  %v6116_v1 = vand.u32 4294901760, %v6115_v3  ;;  %v14706_v58 = vsub.f32 %v5843_v45, %v14681_v28  ;;  %v4157_v30 = vmul.f32 %v4156_v59, %v14520_v17  ;;  %v14717_v6 = vpop.f32.mrf.mxu3 }
 0x5b8   : > { %18167 = vst [vmem:[#allocation144_spill] sm:$0xff] %v14698_v51  ;;  %7528 = vmatpush.xpose.msra.mxu3 %v7527_v62  ;;  %vm4228_vm4 = vweird.f32 %v14543_v20  ;;  %9056 = vrcp.f32 %v14684_v36  ;;  %v4533_v43 = vmul.f32 3.8918573e-05, %v14686_v37  ;;  %v4600_v57 = vmul.f32 %v14689_v38, %v14689_v38  ;;  %7726 = vmatpush.xpose.msrb.mxu0 %v14650_v9  ;;  %v18171_v38 = vld [vmem:[#allocation25_spill] sm:$0xff] }
 0x5b9   : > { %v7538_v47 = vsub.f32 %v14650_v9, %v18168_v14  ;;  %v4234_v62 = vand.u32 2147483648, %v14543_v20  ;;  %v4289_v29 = vadd.f32 0.18741608, %v4288_v15  ;;  %v4367_v3 = vadd.f32 0.05243302, %v4366_v21  ;;  %18169 = vst [vmem:[#allocation83_spill] sm:$0xff] %v14717_v6  ;;  %6117 = vmatmul.f32.gmra.mxu0 %v6116_v1 }
 0x5ba   : > { %v4381_v45 = vmul.f32 %v4380_v52, %v14464_v41  ;;  %v4226_v17 = vmul.f32 %v14637_v24, %v4225_v32  ;;  %v4442_v59 = vmul.f32 2.1237322e-06, %v14561_v16  ;;  %v4457_v14 = vmul.f32 %v4456_v48, %v14561_v16  ;;  %v5990_v21 = vpop.f32.mrf.mxu0 }
 0x5bb   : > { %7201 = vmatpush.xpose.msra.mxu2 %v14658_v13  ;;  %v6130_v25 = vand.u32 4294901760, %v18132_v0  ;;  %7924 = vmatpush.xpose.msrb.mxu1 %v14658_v13  ;;  %v7539_v15 = vand.u32 4294901760, %v7538_v47  ;;  %v6295_v51 = vpop.f32.mrf.mxu1  ;;  %v18170_v52 = vand.u32 4294901760, %v14679_v7  ;;  %v6123_v32 = vsub.f32 %v18123_v5, %v6122_v53  ;;  %v6482_v9 = vpop.f32.mrf.mxu2 }
 0x5bc   : > { %7534 = vmatpush.xpose.msra.mxu3 %v7533_v27  ;;  %6382 = vmatmul.f32.gmra.mxu1 %v18171_v38  ;;  %v8795_v48 = vclamps-f32 %v4157_v30, 1.0  ;;  %vm14731_vm5 = vcmp.eq.f32.partialorder %v4232_v35, 8.507059e+37  ;;  %v4534_v13 = vadd.f32 0.001143296, %v4533_v43  ;;  %v14735_v27 = vmin.f32 %v4600_v57, 16.0 }
 0x5bd   : > { %v7544_v1 = vsub.f32 %v14679_v7, %v18170_v52  ;;  %v6296_v47 = vadd.f32 %v6295_v51, %v5982_v4  ;;  %6798 = vmatmul.f32.gmra.mxu3 %v6130_v25  ;;  %7729 = vmatpush.xpose.msrb.mxu0 %v14679_v7  ;;  %v4235_v52 = vor.u32 1.1754944e-38, %v4234_v62  ;;  %v4290_v5 = vmul.f32 %v4289_v29, %v14398_v61 }
 0x5be   : > { %v4368_v53 = vmul.f32 %v4367_v3, %v14464_v41  ;;  %v14740_v6 = vadd.f32 1.0, %v4381_v45  ;;  %v14742_v30 = vpop.eup %9056  ;;  %v4227_v35 = vadd.f32 %v14637_v24, %v4226_v17  ;;  %vm4229_vm6 = vweird.f32 %v14637_v24 }
 0x5bf   : > { %v4443_v43 = vadd.f32 0.00028619796, %v4442_v59  ;;  %v14746_v57 = vadd.f32 %v6482_v9, %v6296_v47  ;;  %7203 = vmatpush.xpose.msra.mxu2 %v14681_v28  ;;  %7926 = vmatpush.xpose.msrb.mxu1 %v14681_v28  ;;  %v4458_v4 = vadd.f32 0.112945676, %v4457_v14  ;;  %v7545_v61 = vand.u32 4294901760, %v7544_v1  ;;  %vm14763_vm7 = vmor %vm4228_vm4, %vm4229_vm6  ;;  %v5841_v1 = vld [vmem:[%s9538_s6 + $0x8] sm:$0xff] }
 0x5c0   : > { %7540 = vmatpush.xpose.msra.mxu3 %v7539_v15  ;;  %v6124_v51 = vand.u32 4294901760, %v6123_v32  ;;  %v18175_v62 = vand.u32 4294901760, %v14706_v58  ;;  %v5705_v3 = vadd.f32 1.0, %v8795_v48  ;;  %v14754_v45 = vmul.f32 0.5, %v18155_v22 }
 0x5c1   : > { %18174 = vst [vmem:[#allocation94_spill] sm:$0xff] %v14746_v57  ;;  %v4535_v9 = vmul.f32 %v4534_v13, %v14686_v37  ;;  %v4613_v17 = vmul.f32 3.8918573e-05, %v14735_v27  ;;  %7732 = vmatpush.xpose.msrb.mxu0 %v14706_v58  ;;  %v4291_v14 = vadd.f32 1.1283791, %v4290_v5  ;;  %v4304_v15 = vmul.f32 %v14742_v30, %v14684_v36  ;;  %v14770_v13 = vpop.f32.mrf.mxu3  ;;  %v18181_v57 = vld [vmem:[#allocation87_spill] sm:$0xff] }
 0x5c2   : > { %v7550_v29 = vsub.f32 %v14706_v58, %v18175_v62  ;;  %18176 = vst [vmem:[#allocation148_spill] sm:$0xff] %v14754_v45  ;;  %v4369_v22 = vadd.f32 0.18741608, %v4368_v53  ;;  %9058 = vrcp.f32 %v14740_v6  ;;  %6125 = vmatmul.f32.gmra.mxu0 %v6124_v51  ;;  %v4231_v32 = vsel %vm14763_vm7, %v14637_v24, %v4227_v35  ;;  %v5998_v62 = vpop.f32.mrf.mxu0 }
 0x5c3   : > { %18179 = vst [vmem:[#allocation91_spill] sm:$0xff] %v14770_v13  ;;  %v4314_v20 = vand.u32 2147483648, %v14684_v36  ;;  %v6138_v48 = vand.u32 4294901760, %v18141_v49  ;;  %v14778_v47 = vand.u32 4294901760, %v5841_v1  ;;  %v4444_v5 = vmul.f32 %v4443_v43, %v14561_v16  ;;  %v6299_v38 = vpop.f32.mrf.mxu1  ;;  %v6487_v28 = vpop.f32.mrf.mxu2 }
 0x5c4   : > { %v4459_v53 = vmul.f32 %v4458_v4, %v14561_v16  ;;  %7546 = vmatpush.xpose.msra.mxu3 %v7545_v61  ;;  %v6131_v51 = vsub.f32 %v18132_v0, %v6130_v25  ;;  %v7551_v13 = vand.u32 4294901760, %v7550_v29  ;;  %7046 = vmatmul.f32.vlgmr.msra.gmra.mxu1 %v18181_v57  ;;  %v14785_v24 = vmul.f32 %v5705_v3, %v14411_v50  ;;  %v18183_v25 = vld [vmem:[#allocation132_spill] sm:$0xff] }
 0x5c5   : > { %18180 = vst [vmem:[#allocation81_spill] sm:$0xff] %v14778_v47  ;;  %v4536_v35 = vadd.f32 0.014752088, %v4535_v9  ;;  %v4614_v59 = vadd.f32 0.001143296, %v4613_v17  ;;  %v6300_v45 = vadd.f32 %v6299_v38, %v5990_v21  ;;  %6804 = vmatmul.f32.gmra.mxu3 %v6138_v48  ;;  %7205 = vmatpush.xpose.msra.mxu2 %v14778_v47  ;;  %v4236_v43 = vsel %vm14731_vm5, %v4235_v52, %v4231_v32 }
 0x5c6   : > { %18182 = vst [vmem:[#allocation60_spill] sm:$0xff] %v14785_v24  ;;  %v4305_v4 = vsub.f32 1.0, %v4304_v15  ;;  %v4370_v61 = vmul.f32 %v4369_v22, %v14464_v41  ;;  %v4522_v0 = vmul.f32 2.1237322e-06, %v14686_v37  ;;  %v18184_v29 = vand.u32 4294901760, %v18183_v25  ;;  %7928 = vmatpush.xpose.msrb.mxu1 %v14778_v47 }
 0x5c7   : > { %v14796_v50 = vmul.f32 %v4291_v14, %v14354_v23  ;;  %v4312_v38 = vand.u32 2147483647, %v14684_v36  ;;  %v14799_v21 = vadd.f32 %v6487_v28, %v6300_v45  ;;  %v14802_v12 = vsub.f32 %v5841_v1, %v14778_v47 }
 0x5c8   : > { %v14804_v52 = vpop.eup %9058  ;;  %vm4308_vm8 = vweird.f32 %v14684_v36  ;;  %v14807_v41 = vor.u32 1.1754944e-38, %v4314_v20  ;;  %v4445_v3 = vadd.f32 0.0036580483, %v4444_v5  ;;  %v4460_v9 = vadd.f32 0.4994258, %v4459_v53  ;;  %7552 = vmatpush.xpose.msra.mxu3 %v7551_v13  ;;  %v18187_v20 = vld [vmem:[#allocation88_spill] sm:$0xff] }
 0x5c9   : > { %8125 = vmatpush.xpose.msrb.mxu2 %v18184_v29  ;;  %18185 = vst [vmem:[#allocation133_spill] sm:$0xff] %v14799_v21  ;;  %v6132_v17 = vand.u32 4294901760, %v6131_v51  ;;  %v14810_v23 = vmul.f32 %v4236_v43, %v14640_v10  ;;  %v4537_v14 = vmul.f32 %v4536_v35, %v14686_v37  ;;  %v4615_v28 = vmul.f32 %v4614_v59, %v14735_v27  ;;  %v14817_v32 = vpop.f32.mrf.mxu3  ;;  %v18189_v5 = vld [vmem:[#allocation73_spill] sm:$0xff] }
 0x5ca   : > { %v17109_v45 = vand.u32 4294901760, %v14802_v12  ;;  %7735 = vmatpush.xpose.msrb.mxu0 %v14802_v12  ;;  %v4306_v15 = vmul.f32 %v14742_v30, %v4305_v4  ;;  %v4371_v22 = vadd.f32 1.1283791, %v4370_v61  ;;  %v4523_v1 = vadd.f32 0.00028619796, %v4522_v0  ;;  %18186 = vst [vmem:[#allocation114_spill] sm:$0xff] %v14817_v32  ;;  %v6006_v0 = vpop.f32.mrf.mxu0 }
 0x5cb   : > { %6133 = vmatmul.f32.gmra.mxu0 %v6132_v17  ;;  %v18188_v13 = vand.u32 4294901760, %v18187_v20  ;;  %v18190_v53 = vand.u32 4294901760, %v18189_v5  ;;  %v4384_v51 = vmul.f32 %v14804_v52, %v14740_v6  ;;  %v18191_v35 = vld [vmem:[#allocation77_spill] sm:$0xff]  ;;  %v6146_v43 = vand.u32 4294901760, %v18156_v11  ;;  %v6303_v25 = vpop.f32.mrf.mxu1 }
 0x5cc   : > { %v14827_v59 = vmul.f32 0.70710677, %v18191_v35  ;;  %v7556_v4 = vsub.f32 %v14802_v12, %v17109_v45  ;;  %v4461_v61 = vmul.f32 %v4460_v9, %v14561_v16  ;;  %v6139_v29 = vsub.f32 %v18141_v49, %v6138_v48  ;;  %v6492_v45 = vpop.f32.mrf.mxu2 }
 0x5cd   : > { %v7209_v10 = vsub.f32 %v18187_v20, %v18188_v13  ;;  %8129 = vmatpush.xpose.msrb.mxu2 %v18190_v53  ;;  %v18193_v13 = vld [vmem:[#allocation110_spill] sm:$0xff]  ;;  %v18195_v53 = vld [vmem:[#allocation97_spill] sm:$0xff]  ;;  %vm14839_vm9 = vcmp.eq.f32.partialorder %v4312_v38, 8.507059e+37  ;;  %v4538_v32 = vadd.f32 0.112945676, %v4537_v14  ;;  %v6304_v24 = vadd.f32 %v6303_v25, %v5998_v62  ;;  %6810 = vmatmul.f32.gmra.mxu3 %v6146_v43 }
 0x5ce   : > { %18192 = vst [vmem:[#allocation67_spill] sm:$0xff] %v14827_v59  ;;  %v14836_v5 = vand.u32 4294901760, %v18193_v13  ;;  %7050 = vmatmul.f32.gmra.mxu1 %v18195_v53  ;;  %v4616_v21 = vadd.f32 0.014752088, %v4615_v28  ;;  %v7557_v9 = vand.u32 4294901760, %v7556_v4  ;;  %v4307_v47 = vadd.f32 %v14742_v30, %v4306_v15  ;;  %v18200_v28 = vld [vmem:[#allocation131_spill] sm:$0xff] }
 0x5cf   : > { %v7210_v17 = vand.u32 4294901760, %v7209_v10  ;;  %vm4309_vm10 = vweird.f32 %v14742_v30  ;;  %v4446_v49 = vmul.f32 %v4445_v3, %v14561_v16  ;;  %v4385_v38 = vsub.f32 1.0, %v4384_v51 }
 0x5d0   : > { %18194 = vst [vmem:[#allocation69_spill] sm:$0xff] %v14836_v5  ;;  %v14848_v48 = vsub.f32 %v18193_v13, %v14836_v5  ;;  %v4524_v10 = vmul.f32 %v4523_v1, %v14686_v37  ;;  %v4680_v62 = vmul.f32 %v14827_v59, %v14827_v59  ;;  %v14853_v14 = vadd.f32 %v6492_v45, %v6304_v24  ;;  %vm14867_vm11 = vmor %vm4308_vm8, %vm4309_vm10 }
 0x5d1   : > { %7211 = vmatmul.f32.vlgmr.msra.gmra.mxu2 %v7210_v17  ;;  %7558 = vmatpush.xpose.msra.mxu3 %v7557_v9  ;;  %v18201_v15 = vand.u32 4294901760, %v18200_v28  ;;  %v8797_v4 = vclamps-f32 %v14810_v23, 1.0  ;;  %v14859_v3 = vmul.f32 %v4371_v22, %v14416_v18  ;;  %v6140_v25 = vand.u32 4294901760, %v6139_v29  ;;  %v18202_v17 = vld [vmem:[#allocation35_spill] sm:$0xff]  ;;  %v14880_v36 = vpop.f32.mrf.mxu3 }
 0x5d2   : > { %18198 = vst [vmem:[#allocation49_spill] sm:$0xff] %v14848_v48  ;;  %v17111_v51 = vand.u32 4294901760, %v14848_v48  ;;  %v4392_v45 = vand.u32 2147483647, %v14740_v6  ;;  %v14872_v1 = vadd.f32 1.0, %v4461_v61  ;;  %v4539_v18 = vmul.f32 %v4538_v32, %v14686_v37 }
 0x5d3   : > { %18199 = vst [vmem:[#allocation150_spill] sm:$0xff] %v14853_v14  ;;  %8133 = vmatpush.xpose.msrb.mxu2 %v18201_v15  ;;  %v4617_v23 = vmul.f32 %v4616_v21, %v14735_v27  ;;  %v4311_v22 = vsel %vm14867_vm11, %v14742_v30, %v4307_v47  ;;  %v4394_v29 = vand.u32 2147483648, %v14740_v6  ;;  %v4447_v13 = vadd.f32 0.05243302, %v4446_v49  ;;  %6141 = vmatmul.f32.gmra.mxu0 %v6140_v25  ;;  %v18206_v15 = vld [vmem:[#allocation74_spill] sm:$0xff]  ;;  %v18208_v30 = vld [vmem:[#allocation95_spill] sm:$0xff]  ;;  %v6014_v49 = vpop.f32.mrf.mxu0  ;;  %v6307_v24 = vpop.f32.mrf.mxu1 }
 0x5d4   : > { %18205 = vst [vmem:[#allocation36_spill] sm:$0xff] %v14880_v36  ;;  %v7217_v9 = vsub.f32 %v14848_v48, %v17111_v51  ;;  %v4386_v61 = vmul.f32 %v14804_v52, %v4385_v38  ;;  %v4525_v28 = vadd.f32 0.0036580483, %v4524_v10  ;;  %v14886_v32 = vmin.f32 %v4680_v62, 16.0  ;;  %v18210_v14 = vld [vmem:[#allocation30_spill] sm:$0xff]  ;;  %v18213_v10 = vld [vmem:[#allocation52_spill] sm:$0xff]  ;;  %v6497_v48 = vpop.f32.mrf.mxu2 }
 0x5d5   : > { %8316 = vmatpush.xpose.msrb.mxu3 %v18202_v17  ;;  %v6154_v21 = vand.u32 4294901760, %v18166_v63  ;;  %v18207_v17 = vand.u32 4294901760, %v18206_v15  ;;  %v14892_v47 = vmul.f32 0.70710677, %v18208_v30  ;;  %v6147_v25 = vsub.f32 %v18156_v11, %v6146_v43  ;;  %v18212_v38 = vld [vmem:[#allocation34_spill] sm:$0xff] }
 0x5d6   : > { %v7218_v36 = vand.u32 4294901760, %v7217_v9  ;;  %v14896_v51 = vand.u32 4294901760, %v18210_v14  ;;  %7054 = vmatmul.f32.gmra.mxu1 %v18213_v10  ;;  %9060 = vrcp.f32 %v14872_v1  ;;  %v4540_v62 = vadd.f32 0.4994258, %v4539_v18 }
 0x5d7   : > { %8137 = vmatpush.xpose.msrb.mxu2 %v18207_v17  ;;  %18209 = vst [vmem:[#allocation119_spill] sm:$0xff] %v14892_v47  ;;  %v4618_v15 = vadd.f32 0.112945676, %v4617_v23  ;;  %v6308_v17 = vadd.f32 %v6307_v24, %v6006_v0  ;;  %6816 = vmatmul.f32.gmra.mxu3 %v6154_v21  ;;  %v4316_v59 = vsel %vm14839_vm9, %v14807_v41, %v4311_v22  ;;  %vm4389_vm12 = vweird.f32 %v14804_v52  ;;  %v18216_v24 = vld [vmem:[#allocation84_spill] sm:$0xff] }
 0x5d8   : > { %18211 = vst [vmem:[#allocation79_spill] sm:$0xff] %v14896_v51  ;;  %v4448_v11 = vmul.f32 %v4447_v13, %v14561_v16  ;;  %v14908_v43 = vsub.f32 %v18210_v14, %v14896_v51  ;;  %v4387_v9 = vadd.f32 %v14804_v52, %v4386_v61  ;;  %v4526_v18 = vmul.f32 %v4525_v28, %v14686_v37  ;;  %v18218_v13 = vld [vmem:[#allocation96_spill] sm:$0xff] }
 0x5d9   : > { %8318 = vmatpush.xpose.msrb.mxu3 %v18212_v38  ;;  %7219 = vmatmul.f32.gmra.mxu2 %v7218_v36  ;;  %v4693_v0 = vmul.f32 3.8918573e-05, %v14886_v32  ;;  %v14913_v23 = vadd.f32 %v6497_v48, %v6308_v17  ;;  %v18217_v20 = vand.u32 4294901760, %v18216_v24  ;;  %vm4388_vm13 = vweird.f32 %v14740_v6  ;;  %v18228_v6 = vld [vmem:[#allocation103_spill] sm:$0xff] }
 0x5da   : > { %18214 = vst [vmem:[#allocation41_spill] sm:$0xff] %v14908_v43  ;;  %v4760_v41 = vmul.f32 %v14892_v47, %v14892_v47  ;;  %v6148_v22 = vand.u32 4294901760, %v6147_v25  ;;  %v17115_v14 = vand.u32 4294901760, %v14908_v43  ;;  %v5707_v36 = vadd.f32 1.0, %v8797_v4  ;;  %vm14928_vm14 = vmor %vm4388_vm13, %vm4389_vm12  ;;  %v14936_v4 = vpop.f32.mrf.mxu3  ;;  %v18227_v47 = vld [vmem:[#allocation54_spill] sm:$0xff] }
 0x5db   : > { %18215 = vst [vmem:[#allocation151_spill] sm:$0xff] %v14913_v23  ;;  %8141 = vmatpush.xpose.msrb.mxu2 %v18217_v20  ;;  %v4541_v61 = vmul.f32 %v4540_v62, %v14686_v37  ;;  %v4602_v28 = vmul.f32 2.1237322e-06, %v14735_v27  ;;  %v4619_v48 = vmul.f32 %v4618_v15, %v14735_v27  ;;  %v4317_v38 = vmul.f32 %v4316_v59, %v14796_v50 }
 0x5dc   : > { %vm14932_vm15 = vcmp.eq.f32.partialorder %v4392_v45, 8.507059e+37  ;;  %v4449_v17 = vadd.f32 0.18741608, %v4448_v11  ;;  %18223 = vst [vmem:[#allocation107_spill] sm:$0xff] %v14936_v4  ;;  %6149 = vmatmul.f32.gmra.mxu0 %v6148_v22  ;;  %v7225_v62 = vsub.f32 %v14908_v43, %v17115_v14  ;;  %v14941_v15 = vpop.eup %9060  ;;  %v4391_v50 = vsel %vm14928_vm14, %v14804_v52, %v4387_v9  ;;  %v6311_v22 = vpop.f32.mrf.mxu1  ;;  %v18225_v14 = vld [vmem:[#allocation32_spill] sm:$0xff] }
 0x5dd   : > { %8320 = vmatpush.xpose.msrb.mxu3 %v18218_v13  ;;  %v4395_v59 = vor.u32 1.1754944e-38, %v4394_v29  ;;  %v4527_v24 = vadd.f32 0.05243302, %v4526_v18  ;;  %v4694_v45 = vadd.f32 0.001143296, %v4693_v0  ;;  %v18224_v20 = vand.u32 4294901760, %v14145_v8  ;;  %v6022_v13 = vpop.f32.mrf.mxu0  ;;  %v6502_v18 = vpop.f32.mrf.mxu2 }
 0x5de   : > { %v14948_v11 = vmin.f32 %v4760_v41, 16.0  ;;  %v6155_v4 = vsub.f32 %v18166_v63, %v6154_v21  ;;  %v7226_v23 = vand.u32 4294901760, %v7225_v62  ;;  %v14952_v43 = vand.u32 4294901760, %v18225_v14  ;;  %7058 = vmatmul.f32.gmra.mxu1 %v18227_v47  ;;  %v18229_v0 = vld [vmem:[#allocation138_spill] sm:$0xff] }
 0x5df   : > { %8145 = vmatpush.xpose.msrb.mxu2 %v18224_v20  ;;  %v14956_v52 = vadd.f32 1.0, %v4541_v61  ;;  %v4603_v29 = vadd.f32 0.00028619796, %v4602_v28  ;;  %v4620_v9 = vadd.f32 0.4994258, %v4619_v48  ;;  %v6312_v8 = vadd.f32 %v6311_v22, %v6014_v49  ;;  %7560 = vmatmul.f32.vlgmr.msra.gmra.mxu3 %v18229_v0  ;;  %v18231_v48 = vld [vmem:[#allocation111_spill] sm:$0xff] }
 0x5e0   : > { %18226 = vst [vmem:[#allocation124_spill] sm:$0xff] %v14952_v43  ;;  %v8799_v41 = vclamps-f32 %v4317_v38, 1.0  ;;  %v4450_v20 = vmul.f32 %v4449_v17, %v14561_v16  ;;  %v4464_v63 = vmul.f32 %v14941_v15, %v14872_v1  ;;  %v14964_v21 = vsub.f32 %v18225_v14, %v14952_v43  ;;  %v18234_v22 = vld [vmem:[#allocation42_spill] sm:$0xff] }
 0x5e1   : > { %8322 = vmatpush.xpose.msrb.mxu3 %v18228_v6  ;;  %7227 = vmatmul.f32.gmra.mxu2 %v7226_v23  ;;  %v4528_v61 = vmul.f32 %v4527_v24, %v14686_v37  ;;  %v4695_v28 = vmul.f32 %v4694_v45, %v14886_v32  ;;  %v14969_v49 = vmul.f32 0.70710677, %v18231_v48  ;;  %v14971_v62 = vadd.f32 %v6502_v18, %v6312_v8 }
 0x5e2   : > { %18230 = vst [vmem:[#allocation149_spill] sm:$0xff] %v14964_v21  ;;  %v18233_v38 = vand.u32 4294901760, %v14313_v31  ;;  %v4396_v16 = vsel %vm14932_vm15, %v4395_v59, %v4391_v50  ;;  %v4773_v23 = vmul.f32 3.8918573e-05, %v14948_v11  ;;  %v6156_v17 = vand.u32 4294901760, %v6155_v4  ;;  %v14989_v59 = vpop.f32.mrf.mxu3 }
 0x5e3   : > { %18232 = vst [vmem:[#allocation86_spill] sm:$0xff] %v14971_v62  ;;  %v17119_v14 = vand.u32 4294901760, %v14964_v21  ;;  %9062 = vrcp.f32 %v14956_v52  ;;  %v14982_v24 = vmul.f32 0.5, %v18164_v33  ;;  %v4604_v45 = vmul.f32 %v4603_v29, %v14735_v27 }
 0x5e4   : > { %8149 = vmatpush.xpose.msrb.mxu2 %v18233_v38  ;;  %v4621_v31 = vmul.f32 %v4620_v9, %v14735_v27  ;;  %v14987_v6 = vmul.f32 %v5707_v36, %v14499_v40  ;;  %v4451_v25 = vadd.f32 1.1283791, %v4450_v20  ;;  %v4465_v50 = vsub.f32 1.0, %v4464_v63  ;;  %18235 = vst [vmem:[#allocation137_spill] sm:$0xff] %v14989_v59  ;;  %6157 = vmatmul.f32.gmra.mxu0 %v6156_v17  ;;  %v6315_v63 = vpop.f32.mrf.mxu1  ;;  %v18237_v17 = vld [vmem:[#allocation48_spill] sm:$0xff]  ;;  %v18239_v59 = vld [vmem:[#allocation62_spill] sm:$0xff] }
 0x5e5   : > { %8324 = vmatpush.xpose.msrb.mxu3 %v18234_v22  ;;  %v7233_v4 = vsub.f32 %v14964_v21, %v17119_v14  ;;  %v5709_v8 = vadd.f32 1.0, %v8799_v41  ;;  %v4397_v33 = vmul.f32 %v4396_v16, %v14859_v3  ;;  %v4696_v18 = vadd.f32 0.014752088, %v4695_v28  ;;  %v6030_v20 = vpop.f32.mrf.mxu0  ;;  %v18246_v21 = vld [vmem:[#allocation64_spill] sm:$0xff] }
 0x5e6   : > { %v4840_v29 = vmul.f32 %v14969_v49, %v14969_v49  ;;  %v18236_v9 = vand.u32 4294901760, %v14468_v56  ;;  %v4529_v40 = vadd.f32 0.18741608, %v4528_v61  ;;  %v4774_v36 = vadd.f32 0.001143296, %v4773_v23  ;;  %7062 = vmatmul.f32.gmra.mxu1 %v18239_v59  ;;  %v6507_v56 = vpop.f32.mrf.mxu2 }
 0x5e7   : > { %v7234_v38 = vand.u32 4294901760, %v7233_v4  ;;  %v15000_v22 = vand.u32 4294901760, %v18237_v17  ;;  %v4605_v3 = vadd.f32 0.0036580483, %v4604_v45  ;;  %v15004_v41 = vadd.f32 1.0, %v4621_v31  ;;  %7564 = vmatmul.f32.gmra.mxu3 %v14836_v5  ;;  %v18320_v5 = vld [vmem:[#allocation44_spill] sm:$0xff] }
 0x5e8   : > { %8153 = vmatpush.xpose.msrb.mxu2 %v18236_v9  ;;  %v4682_v28 = vmul.f32 2.1237322e-06, %v14886_v32  ;;  %v6316_v16 = vadd.f32 %v6315_v63, %v6022_v13  ;;  %v15009_v61 = vmul.f32 %v4451_v25, %v14513_v42  ;;  %v4466_v23 = vmul.f32 %v14941_v15, %v4465_v50 }
 0x5e9   : > { %18238 = vst [vmem:[#allocation123_spill] sm:$0xff] %v15000_v22  ;;  %8326 = vmatpush.xpose.msrb.mxu3 %v14069_v55  ;;  %vm4468_vm0 = vweird.f32 %v14872_v1  ;;  %7235 = vmatmul.f32.gmra.mxu2 %v7234_v38  ;;  %v15015_v55 = vsub.f32 %v18237_v17, %v15000_v22  ;;  %v15017_v45 = vpop.eup %9062  ;;  %v8801_v31 = vclamps-f32 %v4397_v33, 1.0  ;;  %v4697_v13 = vmul.f32 %v4696_v18, %v14886_v32 }
 0x5ea   : > { %v15020_v4 = vmin.f32 %v4840_v29, 16.0  ;;  %v15022_v9 = vadd.f32 %v6507_v56, %v6316_v16  ;;  %v18242_v42 = vand.u32 4294901760, %v14565_v60  ;;  %v4472_v25 = vand.u32 2147483647, %v14872_v1 }
 0x5eb   : > { %18240 = vst [vmem:[#allocation28_spill] sm:$0xff] %v15015_v55  ;;  %v4530_v50 = vmul.f32 %v4529_v40, %v14686_v37  ;;  %v4775_v63 = vmul.f32 %v4774_v36, %v14948_v11  ;;  %v17123_v38 = vand.u32 4294901760, %v15015_v55  ;;  %v4474_v33 = vand.u32 2147483648, %v14872_v1  ;;  %v15038_v40 = vpop.f32.mrf.mxu3 }
 0x5ec   : > { %18241 = vst [vmem:[#allocation156_spill] sm:$0xff] %v15022_v9  ;;  %8157 = vmatpush.xpose.msrb.mxu2 %v18242_v42  ;;  %v4606_v18 = vmul.f32 %v4605_v3, %v14735_v27  ;;  %9064 = vrcp.f32 %v15004_v41  ;;  %v4683_v29 = vadd.f32 0.00028619796, %v4682_v28  ;;  %v4467_v60 = vadd.f32 %v14941_v15, %v4466_v23  ;;  %6885 = vmatmul.f32.vlgmr.msra.gmra.mxu0 %v18181_v57  ;;  %v6319_v14 = vpop.f32.mrf.mxu1  ;;  %v18318_v9 = vld [vmem:[#allocation89_spill] sm:$0xff] }
 0x5ed   : > { %8328 = vmatpush.xpose.msrb.mxu3 %v14228_v26  ;;  %vm4469_vm1 = vweird.f32 %v14941_v15  ;;  %v4544_v37 = vmul.f32 %v15017_v45, %v14956_v52  ;;  %18243 = vst [vmem:[#allocation53_spill] sm:$0xff] %v15038_v40  ;;  %v7241_v26 = vsub.f32 %v15015_v55, %v17123_v38  ;;  %v15045_v36 = vmul.f32 %v5709_v8, %v14524_v44  ;;  %v6038_v42 = vpop.f32.mrf.mxu0  ;;  %v18261_v38 = vld [vmem:[#allocation112_spill] sm:$0xff] }
 0x5ee   : > { %v5711_v17 = vadd.f32 1.0, %v8801_v31  ;;  %v4698_v3 = vadd.f32 0.112945676, %v4697_v13  ;;  %v4853_v28 = vmul.f32 3.8918573e-05, %v15020_v4  ;;  %v18244_v16 = vand.u32 4294901760, %v14568_v34  ;;  %7066 = vmatmul.f32.gmra.mxu1 %v18246_v21  ;;  %vm15059_vm2 = vmor %vm4468_vm0, %vm4469_vm1 }
 0x5ef   : > { %v4531_v56 = vadd.f32 1.1283791, %v4530_v50  ;;  %v4776_v23 = vadd.f32 0.014752088, %v4775_v63  ;;  %v7242_v40 = vand.u32 4294901760, %v7241_v26  ;;  %v15051_v57 = vand.u32 4294901760, %v14204_v54  ;;  %v6512_v50 = vpop.f32.mrf.mxu2  ;;  %7568 = vmatmul.f32.gmra.mxu3 %v14896_v51 }
 0x5f0   : > { %8161 = vmatpush.xpose.msrb.mxu2 %v18244_v16  ;;  %vm15063_vm3 = vcmp.eq.f32.partialorder %v4472_v25, 8.507059e+37  ;;  %v4607_v8 = vadd.f32 0.05243302, %v4606_v18  ;;  %v4684_v31 = vmul.f32 %v4683_v29, %v14886_v32  ;;  %v6320_v13 = vadd.f32 %v6319_v14, %v6030_v20 }
 0x5f1   : > { %18245 = vst [vmem:[#allocation51_spill] sm:$0xff] %v15051_v57  ;;  %8330 = vmatpush.xpose.msrb.mxu3 %v14379_v46  ;;  %v4471_v46 = vsel %vm15059_vm2, %v14941_v15, %v4467_v60  ;;  %v4475_v1 = vor.u32 1.1754944e-38, %v4474_v33  ;;  %v4545_v63 = vsub.f32 1.0, %v4544_v37  ;;  %7243 = vmatmul.f32.gmra.mxu2 %v7242_v40  ;;  %v15074_v25 = vsub.f32 %v14204_v54, %v15051_v57 }
 0x5f2   : > { %v15076_v26 = vpop.eup %9064  ;;  %v15079_v18 = vmul.f32 0.5, %v18191_v35  ;;  %v4699_v14 = vmul.f32 %v4698_v3, %v14886_v32  ;;  %v4854_v20 = vadd.f32 0.001143296, %v4853_v28  ;;  %v15082_v29 = vadd.f32 %v6512_v50, %v6320_v13  ;;  %v18254_v35 = vld [vmem:[#allocation139_spill] sm:$0xff]  ;;  %v18257_v13 = vld [vmem:[#allocation109_spill] sm:$0xff] }
 0x5f3   : > { %18251 = vst [vmem:[#allocation102_spill] sm:$0xff] %v15074_v25  ;;  %v18253_v16 = vand.u32 4294901760, %v14571_v19  ;;  %v15087_v15 = vmul.f32 %v5711_v17, %v14536_v2  ;;  %v15090_v33 = vmul.f32 %v4531_v56, %v14628_v39  ;;  %v4777_v54 = vmul.f32 %v4776_v23, %v14948_v11  ;;  %v15103_v28 = vpop.f32.mrf.mxu3 }
 0x5f4   : > { %18252 = vst [vmem:[#allocation45_spill] sm:$0xff] %v15082_v29  ;;  %v17122_v60 = vand.u32 4294901760, %v15074_v25  ;;  %v4476_v37 = vsel %vm15063_vm3, %v4475_v1, %v4471_v46  ;;  %v4552_v40 = vand.u32 2147483647, %v14956_v52  ;;  %v4608_v19 = vmul.f32 %v4607_v8, %v14735_v27  ;;  %6889 = vmatmul.f32.gmra.mxu0 %v18195_v53  ;;  %v18256_v8 = vld [vmem:[#allocation40_spill] sm:$0xff] }
 0x5f5   : > { %8165 = vmatpush.xpose.msrb.mxu2 %v18253_v16  ;;  %8332 = vmatpush.xpose.msrb.mxu3 %v18254_v35  ;;  %v4685_v3 = vadd.f32 0.0036580483, %v4684_v31  ;;  %v4546_v2 = vmul.f32 %v15017_v45, %v4545_v63  ;;  %v4624_v39 = vmul.f32 %v15076_v26, %v15004_v41  ;;  %v4762_v17 = vmul.f32 2.1237322e-06, %v14948_v11  ;;  %18255 = vst [vmem:[#allocation100_spill] sm:$0xff] %v15103_v28  ;;  %v6046_v53 = vpop.f32.mrf.mxu0  ;;  %v6323_v63 = vpop.f32.mrf.mxu1  ;;  %v18259_v35 = vld [vmem:[#allocation113_spill] sm:$0xff] }
 0x5f6   : > { %v7249_v56 = vsub.f32 %v15074_v25, %v17122_v60  ;;  %v4554_v23 = vand.u32 2147483648, %v14956_v52  ;;  %v4700_v44 = vadd.f32 0.4994258, %v4699_v14  ;;  %v4855_v34 = vmul.f32 %v4854_v20, %v15020_v4  ;;  %7070 = vmatmul.f32.gmra.mxu1 %v18261_v38  ;;  %v18262_v14 = vld [vmem:[#allocation104_spill] sm:$0xff] }
 0x5f7   : > { %v15112_v31 = vmul.f32 0.70710677, %v18256_v8  ;;  %v18258_v50 = vand.u32 4294901760, %v18257_v13  ;;  %v15117_v46 = vmul.f32 %v4476_v37, %v15009_v61  ;;  %v4778_v1 = vadd.f32 0.112945676, %v4777_v54  ;;  %v6517_v25 = vpop.f32.mrf.mxu2  ;;  %7572 = vmatmul.f32.gmra.mxu3 %v14952_v43 }
 0x5f8   : > { %v7250_v16 = vand.u32 4294901760, %v7249_v56  ;;  %v15120_v60 = vand.u32 4294901760, %v18259_v35  ;;  %vm4549_vm4 = vweird.f32 %v15017_v45  ;;  %v4609_v20 = vadd.f32 0.18741608, %v4608_v19 }
 0x5f9   : > { %8169 = vmatpush.xpose.msrb.mxu2 %v18258_v50  ;;  %8334 = vmatpush.xpose.msrb.mxu3 %v18262_v14  ;;  %v4686_v13 = vmul.f32 %v4685_v3, %v14886_v32  ;;  %v6324_v50 = vadd.f32 %v6323_v63, %v6038_v42  ;;  %v4547_v61 = vadd.f32 %v15017_v45, %v4546_v2  ;;  %v4625_v54 = vsub.f32 1.0, %v4624_v39  ;;  %v18265_v42 = vld [vmem:[#allocation147_spill] sm:$0xff] }
 0x5fa   : > { %18260 = vst [vmem:[#allocation50_spill] sm:$0xff] %v15120_v60  ;;  %v4763_v37 = vadd.f32 0.00028619796, %v4762_v17  ;;  %7251 = vmatmul.f32.gmra.mxu2 %v7250_v16  ;;  %v15130_v56 = vsub.f32 %v18259_v35, %v15120_v60  ;;  %v4701_v14 = vmul.f32 %v4700_v44, %v14886_v32  ;;  %v4856_v28 = vadd.f32 0.014752088, %v4855_v34  ;;  %v18269_v44 = vld [vmem:[#allocation134_spill] sm:$0xff] }
 0x5fb   : > { %v4920_v19 = vmul.f32 %v15112_v31, %v15112_v31  ;;  %v15135_v3 = vadd.f32 %v6517_v25, %v6324_v50  ;;  %v18266_v63 = vand.u32 4294901760, %v18265_v42  ;;  %vm4548_vm5 = vweird.f32 %v14956_v52  ;;  %v15160_v42 = vpop.f32.mrf.mxu3  ;;  %v18275_v25 = vld [vmem:[#allocation125_spill] sm:$0xff] }
 0x5fc   : > { %18263 = vst [vmem:[#allocation127_spill] sm:$0xff] %v15130_v56  ;;  %vm15140_vm6 = vcmp.eq.f32.partialorder %v4552_v40, 8.507059e+37  ;;  %v4779_v39 = vmul.f32 %v4778_v1, %v14948_v11  ;;  %v17126_v17 = vand.u32 4294901760, %v15130_v56  ;;  %v8803_v34 = vclamps-f32 %v15117_v46, 1.0  ;;  %vm15150_vm7 = vmor %vm4548_vm5, %vm4549_vm4  ;;  %6893 = vmatmul.f32.gmra.mxu0 %v18213_v10 }
 0x5fd   : > { %18264 = vst [vmem:[#allocation106_spill] sm:$0xff] %v15135_v3  ;;  %8173 = vmatpush.xpose.msrb.mxu2 %v18266_v63  ;;  %8336 = vmatpush.xpose.msrb.mxu3 %v18269_v44  ;;  %v4555_v16 = vor.u32 1.1754944e-38, %v4554_v23  ;;  %v4610_v52 = vmul.f32 %v4609_v20, %v14735_v27  ;;  %v4687_v40 = vadd.f32 0.05243302, %v4686_v13  ;;  %v4551_v1 = vsel %vm15150_vm7, %v15017_v45, %v4547_v61  ;;  %v6054_v10 = vpop.f32.mrf.mxu0  ;;  %v6327_v63 = vpop.f32.mrf.mxu1 }
 0x5fe   : > { %v4626_v35 = vmul.f32 %v15076_v26, %v4625_v54  ;;  %v4764_v50 = vmul.f32 %v4763_v37, %v14948_v11  ;;  %18272 = vst [vmem:[#allocation63_spill] sm:$0xff] %v15160_v42  ;;  %v7257_v46 = vsub.f32 %v15130_v56, %v17126_v17  ;;  %v4634_v23 = vand.u32 2147483648, %v15004_v41  ;;  %v18274_v54 = vld [vmem:[#allocation98_spill] sm:$0xff] }
 0x5ff   : > { %v15167_v27 = vadd.f32 1.0, %v4701_v14  ;;  %v4857_v20 = vmul.f32 %v4856_v28, %v15020_v4  ;;  %v15170_v13 = vmin.f32 %v4920_v19, 16.0  ;;  %v18273_v45 = vand.u32 4294901760, %v14679_v7  ;;  %v18277_v56 = vld [vmem:[#allocation66_spill] sm:$0xff]  ;;  %v18278_v14 = vld [vmem:[#allocation59_spill] sm:$0xff]  ;;  %7576 = vmatmul.f32.gmra.mxu3 %v15000_v22  ;;  %v18287_v22 = vld [vmem:[#allocation136_spill] sm:$0xff] }
 0x600   : > { %v4780_v61 = vadd.f32 0.4994258, %v4779_v39  ;;  %v15175_v37 = vmul.f32 0.70710677, %v18274_v54  ;;  %v7258_v44 = vand.u32 4294901760, %v7257_v46  ;;  %v15178_v17 = vand.u32 4294901760, %v18275_v25  ;;  %7074 = vmatmul.f32.gmra.mxu1 %v18277_v56  ;;  %v6522_v39 = vpop.f32.mrf.mxu2 }
 0x601   : > { %8177 = vmatpush.xpose.msrb.mxu2 %v18273_v45  ;;  %8338 = vmatpush.xpose.msrb.mxu3 %v18278_v14  ;;  %v4556_v28 = vsel %vm15140_vm6, %v4555_v16, %v4551_v1  ;;  %vm4629_vm8 = vweird.f32 %v15076_v26  ;;  %v4688_v7 = vmul.f32 %v4687_v40, %v14886_v32  ;;  %v6328_v19 = vadd.f32 %v6327_v63, %v6046_v53 }
 0x602   : > { %18276 = vst [vmem:[#allocation117_spill] sm:$0xff] %v15178_v17  ;;  %v4627_v46 = vadd.f32 %v15076_v26, %v4626_v35  ;;  %v4765_v45 = vadd.f32 0.0036580483, %v4764_v50  ;;  %v4842_v42 = vmul.f32 2.1237322e-06, %v15020_v4  ;;  %7259 = vmatmul.f32.gmra.mxu2 %v7258_v44  ;;  %v15191_v14 = vsub.f32 %v18275_v25, %v15178_v17  ;;  %v18282_v44 = vld [vmem:[#allocation141_spill] sm:$0xff] }
 0x603   : > { %9066 = vrcp.f32 %v15167_v27  ;;  %v4858_v2 = vadd.f32 0.112945676, %v4857_v20  ;;  %v4933_v16 = vmul.f32 3.8918573e-05, %v15170_v13  ;;  %v15195_v40 = vadd.f32 %v6522_v39, %v6328_v19 }
 0x604   : > { %18279 = vst [vmem:[#allocation71_spill] sm:$0xff] %v15191_v14  ;;  %v18281_v53 = vand.u32 4294901760, %v14706_v58  ;;  %v5713_v1 = vadd.f32 1.0, %v8803_v34  ;;  %v4781_v35 = vmul.f32 %v4780_v61, %v14948_v11  ;;  %v5000_v50 = vmul.f32 %v15175_v37, %v15175_v37  ;;  %6897 = vmatmul.f32.gmra.mxu0 %v18227_v47 }
 0x605   : > { %18280 = vst [vmem:[#allocation78_spill] sm:$0xff] %v15195_v40  ;;  %v17131_v63 = vand.u32 4294901760, %v15191_v14  ;;  %8340 = vmatpush.xpose.msrb.mxu3 %v18282_v44  ;;  %v4557_v25 = vmul.f32 %v4556_v28, %v15090_v33  ;;  %v4611_v20 = vadd.f32 1.1283791, %v4610_v52  ;;  %vm4628_vm9 = vweird.f32 %v15004_v41  ;;  %v6062_v47 = vpop.f32.mrf.mxu0 }
 0x606   : > { %8181 = vmatpush.xpose.msrb.mxu2 %v18281_v53  ;;  %v4632_v19 = vand.u32 2147483647, %v15004_v41  ;;  %vm15209_vm10 = vmor %vm4628_vm9, %vm4629_vm8  ;;  %v4635_v34 = vor.u32 1.1754944e-38, %v4634_v23  ;;  %v4689_v61 = vadd.f32 0.18741608, %v4688_v7  ;;  %v4766_v39 = vmul.f32 %v4765_v45, %v14948_v11  ;;  %v15214_v53 = vpop.f32.mrf.mxu3 }
 0x607   : > { %18285 = vst [vmem:[#allocation87_spill] sm:$0xff] %v15214_v53  ;;  %v7265_v33 = vsub.f32 %v15191_v14, %v17131_v63  ;;  %v4631_v41 = vsel %vm15209_vm10, %v15076_v26, %v4627_v46  ;;  %v4843_v52 = vadd.f32 0.00028619796, %v4842_v42  ;;  %v4859_v28 = vmul.f32 %v4858_v2, %v15020_v4  ;;  %v6331_v53 = vpop.f32.mrf.mxu1  ;;  %v18289_v14 = vld [vmem:[#allocation38_spill] sm:$0xff]  ;;  %v18290_v26 = vld [vmem:[#allocation76_spill] sm:$0xff]  ;;  %7580 = vmatmul.f32.gmra.mxu3 %v15051_v57 }
 0x608   : > { %v4934_v44 = vadd.f32 0.001143296, %v4933_v16  ;;  %v18286_v23 = vand.u32 4294901760, %v14802_v12  ;;  %v15226_v7 = vadd.f32 1.0, %v4781_v35  ;;  %v15228_v45 = vmin.f32 %v5000_v50, 16.0  ;;  %7078 = vmatmul.f32.gmra.mxu1 %v18289_v14  ;;  %v18291_v2 = vld [vmem:[#allocation122_spill] sm:$0xff]  ;;  %v6527_v35 = vpop.f32.mrf.mxu2 }
 0x609   : > { %v7266_v40 = vand.u32 4294901760, %v7265_v33  ;;  %v15231_v63 = vand.u32 4294901760, %v18287_v22  ;;  %8342 = vmatpush.xpose.msrb.mxu3 %v18290_v26  ;;  %v15235_v42 = vpop.eup %9066  ;;  %v8805_v46 = vclamps-f32 %v4557_v25, 1.0  ;;  %v4612_v12 = vmul.f32 %v4611_v20, %v18291_v2  ;;  %v18302_v57 = vld [vmem:[#allocation148_spill] sm:$0xff] }
 0x60a   : > { %8185 = vmatpush.xpose.msrb.mxu2 %v18286_v23  ;;  %vm4633_vm11 = vcmp.eq.f32.partialorder %v4632_v19, 8.507059e+37  ;;  %v6332_v16 = vadd.f32 %v6331_v53, %v6054_v10  ;;  %v4690_v58 = vmul.f32 %v4689_v61, %v14886_v32  ;;  %v4767_v33 = vadd.f32 0.05243302, %v4766_v39  ;;  %v18294_v19 = vld [vmem:[#allocation146_spill] sm:$0xff]  ;;  %v18296_v53 = vld [vmem:[#allocation93_spill] sm:$0xff] }
 0x60b   : > { %18288 = vst [vmem:[#allocation132_spill] sm:$0xff] %v15231_v63  ;;  %v4636_v50 = vsel %vm4633_vm11, %v4635_v34, %v4631_v41  ;;  %7267 = vmatmul.f32.gmra.mxu2 %v7266_v40  ;;  %v15242_v23 = vsub.f32 %v18287_v22, %v15231_v63  ;;  %v4844_v26 = vmul.f32 %v4843_v52, %v15020_v4  ;;  %v4860_v3 = vadd.f32 0.4994258, %v4859_v28  ;;  %v18295_v22 = vld [vmem:[#allocation47_spill] sm:$0xff] }
 0x60c   : > { %v4935_v25 = vmul.f32 %v4934_v44, %v15170_v13  ;;  %v15246_v20 = vadd.f32 %v6527_v35, %v6332_v16  ;;  %v4704_v10 = vmul.f32 %v15235_v42, %v15167_v27  ;;  %9068 = vrcp.f32 %v15226_v7  ;;  %6901 = vmatmul.f32.gmra.mxu0 %v18239_v59  ;;  %v18301_v59 = vld [vmem:[#allocation81_spill] sm:$0xff] }
 0x60d   : > { %18292 = vst [vmem:[#allocation73_spill] sm:$0xff] %v15242_v23  ;;  %v5013_v32 = vmul.f32 3.8918573e-05, %v15228_v45  ;;  %v17138_v40 = vand.u32 4294901760, %v15242_v23  ;;  %8344 = vmatpush.xpose.msrb.mxu3 %v18294_v19  ;;  %v15255_v34 = vmul.f32 %v5713_v1, %v18295_v22  ;;  %v5715_v61 = vadd.f32 1.0, %v8805_v46 }
 0x60e   : > { %18293 = vst [vmem:[#allocation77_spill] sm:$0xff] %v15246_v20  ;;  %v15258_v39 = vmul.f32 0.5, %v18208_v30  ;;  %v15261_v41 = vmul.f32 0.70710677, %v18296_v53  ;;  %v4637_v52 = vmul.f32 %v4636_v50, %v4612_v12  ;;  %v4768_v28 = vmul.f32 %v4767_v33, %v14948_v11  ;;  %v15267_v2 = vpop.f32.mrf.mxu3  ;;  %v6070_v50 = vpop.f32.mrf.mxu0 }
 0x60f   : > { %v15265_v44 = vmul.f32 0.5, %v18231_v48  ;;  %18297 = vst [vmem:[#allocation110_spill] sm:$0xff] %v15267_v2  ;;  %v7273_v1 = vsub.f32 %v15242_v23, %v17138_v40  ;;  %v4691_v46 = vadd.f32 1.1283791, %v4690_v58  ;;  %v4845_v30 = vadd.f32 0.0036580483, %v4844_v26  ;;  %v6335_v33 = vpop.f32.mrf.mxu1  ;;  %7584 = vmatmul.f32.gmra.mxu3 %v15120_v60 }
 0x610   : > { %v4861_v16 = vmul.f32 %v4860_v3, %v15020_v4  ;;  %v4936_v35 = vadd.f32 0.014752088, %v4935_v25  ;;  %v4705_v19 = vsub.f32 1.0, %v4704_v10  ;;  %v5014_v12 = vadd.f32 0.001143296, %v5013_v32  ;;  %v18298_v48 = vld [vmem:[#allocation143_spill] sm:$0xff]  ;;  %v6532_v25 = vpop.f32.mrf.mxu2 }
 0x611   : > { %v7274_v22 = vand.u32 4294901760, %v7273_v1  ;;  %v15275_v20 = vand.u32 4294901760, %v18298_v48  ;;  %v18300_v2 = vld [vmem:[#allocation101_spill] sm:$0xff]  ;;  %8346 = vmatpush.xpose.msrb.mxu3 %v18301_v59  ;;  %v15280_v43 = vmul.f32 %v5715_v61, %v18302_v57  ;;  %v4712_v58 = vand.u32 2147483647, %v15167_v27  ;;  %v18305_v23 = vld [vmem:[#allocation67_spill] sm:$0xff] }
 0x612   : > { %7082 = vmatmul.f32.gmra.mxu1 %v18300_v2  ;;  %v5080_v3 = vmul.f32 %v15261_v41, %v15261_v41  ;;  %v6336_v26 = vadd.f32 %v6335_v33, %v6062_v47  ;;  %v15286_v10 = vpop.eup %9068  ;;  %v8807_v32 = vclamps-f32 %v4637_v52, 1.0  ;;  %v4769_v1 = vadd.f32 0.18741608, %v4768_v28 }
 0x613   : > { %18299 = vst [vmem:[#allocation97_spill] sm:$0xff] %v15275_v20  ;;  %v4922_v40 = vmul.f32 2.1237322e-06, %v15170_v13  ;;  %7275 = vmatmul.f32.gmra.mxu2 %v7274_v22  ;;  %v15291_v57 = vsub.f32 %v18298_v48, %v15275_v20  ;;  %v4846_v61 = vmul.f32 %v4845_v30, %v15020_v4  ;;  %v15294_v59 = vadd.f32 1.0, %v4861_v16 }
 0x614   : > { %v4937_v47 = vmul.f32 %v4936_v35, %v15170_v13  ;;  %v15297_v33 = vadd.f32 %v6532_v25, %v6336_v26  ;;  %v15300_v60 = vmul.f32 %v4691_v46, %v18305_v23  ;;  %v4706_v52 = vmul.f32 %v15235_v42, %v4705_v19  ;;  %6905 = vmatmul.f32.gmra.mxu0 %v18246_v21  ;;  %v18311_v21 = vld [vmem:[#allocation85_spill] sm:$0xff] }
 0x615   : > { %18303 = vst [vmem:[#allocation131_spill] sm:$0xff] %v15291_v57  ;;  %v5015_v28 = vmul.f32 %v5014_v12, %v15228_v45  ;;  %v17145_v22 = vand.u32 4294901760, %v15291_v57  ;;  %vm4708_vm12 = vweird.f32 %v15167_v27  ;;  %v4714_v48 = vand.u32 2147483648, %v15167_v27 }
 0x616   : > { %18304 = vst [vmem:[#allocation35_spill] sm:$0xff] %v15297_v33  ;;  %v4784_v30 = vmul.f32 %v15286_v10, %v15226_v7  ;;  %v15309_v16 = vmin.f32 %v5080_v3, 16.0  ;;  %v5717_v35 = vadd.f32 1.0, %v8807_v32  ;;  %vm15311_vm13 = vcmp.eq.f32.partialorder %v4712_v58, 8.507059e+37  ;;  %v15316_v19 = vpop.f32.mrf.mxu3  ;;  %v6078_v33 = vpop.f32.mrf.mxu0 }
 0x617   : > { %v4770_v23 = vmul.f32 %v4769_v1, %v14948_v11  ;;  %v4923_v46 = vadd.f32 0.00028619796, %v4922_v40  ;;  %18308 = vst [vmem:[#allocation74_spill] sm:$0xff] %v15316_v19  ;;  %v7281_v12 = vsub.f32 %v15291_v57, %v17145_v22  ;;  %vm4709_vm14 = vweird.f32 %v15235_v42  ;;  %v6339_v11 = vpop.f32.mrf.mxu1  ;;  %v18309_v1 = vld [vmem:[#allocation80_spill] sm:$0xff]  ;;  %7588 = vmatmul.f32.gmra.mxu3 %v15178_v17 }
 0x618   : > { %v4847_v3 = vadd.f32 0.05243302, %v4846_v61  ;;  %9070 = vrcp.f32 %v15294_v59  ;;  %v4938_v58 = vadd.f32 0.112945676, %v4937_v47  ;;  %v4707_v25 = vadd.f32 %v15235_v42, %v4706_v52  ;;  %v6537_v61 = vpop.f32.mrf.mxu2  ;;  %vm15344_vm15 = vmor %vm4708_vm12, %vm4709_vm14 }
 0x619   : > { %v5016_v32 = vadd.f32 0.014752088, %v5015_v28  ;;  %v7282_v40 = vand.u32 4294901760, %v7281_v12  ;;  %v15326_v19 = vand.u32 4294901760, %v18309_v1  ;;  %v4715_v55 = vor.u32 1.1754944e-38, %v4714_v48 }
 0x61a   : > { %7086 = vmatmul.f32.gmra.mxu1 %v18311_v21  ;;  %v4785_v29 = vsub.f32 1.0, %v4784_v30  ;;  %v5093_v22 = vmul.f32 3.8918573e-05, %v15309_v16  ;;  %v6340_v57 = vadd.f32 %v6339_v11, %v6070_v50  ;;  %v15332_v47 = vmul.f32 0.5, %v18256_v8 }
 0x61b   : > { %18310 = vst [vmem:[#allocation95_spill] sm:$0xff] %v15326_v19  ;;  %v4924_v52 = vmul.f32 %v4923_v46, %v15170_v13  ;;  %v5002_v28 = vmul.f32 2.1237322e-06, %v15228_v45  ;;  %7283 = vmatmul.f32.gmra.mxu2 %v7282_v40  ;;  %v15338_v12 = vsub.f32 %v18309_v1, %v15326_v19  ;;  %v4771_v48 = vadd.f32 1.1283791, %v4770_v23 }
 0x61c   : > { %v4848_v8 = vmul.f32 %v4847_v3, %v15020_v4  ;;  %v4939_v30 = vmul.f32 %v4938_v58, %v15170_v13  ;;  %v15350_v46 = vadd.f32 %v6537_v61, %v6340_v57  ;;  %v15353_v11 = vmul.f32 %v5717_v35, %v14982_v24  ;;  %v18316_v35 = vld [vmem:[#allocation92_spill] sm:$0xff]  ;;  %6909 = vmatmul.f32.gmra.mxu0 %v18261_v38 }
 0x61d   : > { %18312 = vst [vmem:[#allocation30_spill] sm:$0xff] %v15338_v12  ;;  %v4711_v40 = vsel %vm15344_vm15, %v15235_v42, %v4707_v25  ;;  %v5017_v27 = vmul.f32 %v5016_v32, %v15228_v45  ;;  %v17154_v1 = vand.u32 4294901760, %v15338_v12  ;;  %v4786_v23 = vmul.f32 %v15286_v10, %v4785_v29 }
 0x61e   : > { %18315 = vst [vmem:[#allocation34_spill] sm:$0xff] %v15350_v46  ;;  %v15360_v17 = vpop.eup %9070  ;;  %vm4788_vm0 = vweird.f32 %v15226_v7  ;;  %v4792_v57 = vand.u32 2147483647, %v15226_v7  ;;  %v5094_v3 = vadd.f32 0.001143296, %v5093_v22  ;;  %v15368_v50 = vpop.f32.mrf.mxu3  ;;  %v4716_v29 = vsel %vm15311_vm13, %v4715_v55, %v4711_v40 }
 0x61f   : > { %v4925_v58 = vadd.f32 0.0036580483, %v4924_v52  ;;  %v5003_v24 = vadd.f32 0.00028619796, %v5002_v28  ;;  %v15366_v61 = vmul.f32 0.70710677, %v18316_v35  ;;  %v7289_v42 = vsub.f32 %v15338_v12, %v17154_v1  ;;  %v6086_v46 = vpop.f32.mrf.mxu0  ;;  %v6343_v51 = vpop.f32.mrf.mxu1  ;;  %7592 = vmatmul.f32.gmra.mxu3 %v15231_v63 }
 0x620   : > { %18317 = vst [vmem:[#allocation52_spill] sm:$0xff] %v15368_v50  ;;  %v4794_v25 = vand.u32 2147483648, %v15226_v7  ;;  %v4849_v32 = vadd.f32 0.18741608, %v4848_v8  ;;  %v4940_v22 = vadd.f32 0.4994258, %v4939_v30  ;;  %v4864_v52 = vmul.f32 %v15360_v17, %v15294_v59  ;;  %v6542_v8 = vpop.f32.mrf.mxu2 }
 0x621   : > { %v5018_v28 = vadd.f32 0.112945676, %v5017_v27  ;;  %v7290_v50 = vand.u32 4294901760, %v7289_v42  ;;  %v15380_v38 = vand.u32 4294901760, %v18318_v9  ;;  %v4787_v1 = vadd.f32 %v15286_v10, %v4786_v23  ;;  %v18323_v12 = vld [vmem:[#allocation119_spill] sm:$0xff] }
 0x622   : > { %7090 = vmatmul.f32.gmra.mxu1 %v18320_v5  ;;  %vm4789_vm1 = vweird.f32 %v15286_v10  ;;  %v5095_v55 = vmul.f32 %v5094_v3, %v15309_v16  ;;  %v6344_v26 = vadd.f32 %v6343_v51, %v6078_v33  ;;  %v4926_v30 = vmul.f32 %v4925_v58, %v15170_v13 }
 0x623   : > { %18319 = vst [vmem:[#allocation84_spill] sm:$0xff] %v15380_v38  ;;  %v5004_v40 = vmul.f32 %v5003_v24, %v15228_v45  ;;  %v5160_v27 = vmul.f32 %v15366_v61, %v15366_v61  ;;  %7291 = vmatmul.f32.gmra.mxu2 %v7290_v50  ;;  %v15393_v42 = vsub.f32 %v18318_v9, %v15380_v38  ;;  %vm15405_vm2 = vmor %vm4788_vm0, %vm4789_vm1  ;;  %v4865_v9 = vsub.f32 1.0, %v4864_v52 }
 0x624   : > { %v4717_v23 = vmul.f32 %v4716_v29, %v15300_v60  ;;  %v4850_v3 = vmul.f32 %v4849_v32, %v15020_v4  ;;  %v4941_v51 = vmul.f32 %v4940_v22, %v15170_v13  ;;  %v15398_v33 = vadd.f32 %v6542_v8, %v6344_v26  ;;  %6913 = vmatmul.f32.gmra.mxu0 %v18277_v56  ;;  %v18331_v56 = vld [vmem:[#allocation105_spill] sm:$0xff]  ;;  %v18333_v29 = vld [vmem:[#allocation39_spill] sm:$0xff] }
 0x625   : > { %18321 = vst [vmem:[#allocation96_spill] sm:$0xff] %v15393_v42  ;;  %v4772_v58 = vmul.f32 %v4771_v48, %v18323_v12  ;;  %v5019_v50 = vmul.f32 %v5018_v28, %v15228_v45  ;;  %v17157_v60 = vand.u32 4294901760, %v15393_v42  ;;  %v4791_v4 = vsel %vm15405_vm2, %v15286_v10, %v4787_v1 }
 0x626   : > { %18322 = vst [vmem:[#allocation32_spill] sm:$0xff] %v15398_v33  ;;  %vm15414_vm3 = vcmp.eq.f32.partialorder %v4792_v57, 8.507059e+37  ;;  %v4795_v12 = vor.u32 1.1754944e-38, %v4794_v25  ;;  %v5096_v48 = vadd.f32 0.014752088, %v5095_v55  ;;  %v15418_v22 = vmin.f32 %v5160_v27, 16.0  ;;  %v15420_v26 = vpop.f32.mrf.mxu3 }
 0x627   : > { %v4927_v7 = vadd.f32 0.05243302, %v4926_v30  ;;  %v5005_v32 = vadd.f32 0.0036580483, %v5004_v40  ;;  %18328 = vst [vmem:[#allocation54_spill] sm:$0xff] %v15420_v26  ;;  %v7297_v52 = vsub.f32 %v15393_v42, %v17157_v60  ;;  %v8809_v28 = vclamps-f32 %v4717_v23, 1.0  ;;  %v6094_v8 = vpop.f32.mrf.mxu0  ;;  %v6347_v30 = vpop.f32.mrf.mxu1  ;;  %7596 = vmatmul.f32.gmra.mxu3 %v15275_v20 }
 0x628   : > { %v15426_v10 = vadd.f32 1.1283791, %v4850_v3  ;;  %v15428_v1 = vadd.f32 1.0, %v4941_v51  ;;  %v5082_v57 = vmul.f32 2.1237322e-06, %v15309_v16  ;;  %v4866_v25 = vmul.f32 %v15360_v17, %v4865_v9  ;;  %v18329_v27 = vld [vmem:[#allocation60_spill] sm:$0xff]  ;;  %v6547_v42 = vpop.f32.mrf.mxu2 }
 0x629   : > { %v5020_v55 = vadd.f32 0.4994258, %v5019_v50  ;;  %v7298_v40 = vand.u32 4294901760, %v7297_v52  ;;  %v15433_v24 = vand.u32 4294901760, %v18329_v27  ;;  %v4796_v23 = vsel %vm15414_vm3, %v4795_v12, %v4791_v4 }
 0x62a   : > { %7094 = vmatmul.f32.gmra.mxu1 %v18331_v56  ;;  %v4872_v3 = vand.u32 2147483647, %v15294_v59  ;;  %v5097_v51 = vmul.f32 %v5096_v48, %v15309_v16  ;;  %v6348_v60 = vadd.f32 %v6347_v30, %v6086_v46  ;;  %v4928_v9 = vmul.f32 %v4927_v7, %v15170_v13 }
 0x62b   : > { %18330 = vst [vmem:[#allocation103_spill] sm:$0xff] %v15433_v24  ;;  %v5006_v50 = vmul.f32 %v5005_v32, %v15228_v45  ;;  %v5173_v52 = vmul.f32 3.8918573e-05, %v15418_v22  ;;  %7299 = vmatmul.f32.gmra.mxu2 %v7298_v40  ;;  %v15446_v26 = vsub.f32 %v18329_v27, %v15433_v24  ;;  %9072 = vrcp.f32 %v15428_v1 }
 0x62c   : > { %v5083_v4 = vadd.f32 0.00028619796, %v5082_v57  ;;  %v15450_v12 = vmul.f32 0.70710677, %v18333_v29  ;;  %v15452_v46 = vadd.f32 %v6547_v42, %v6348_v60  ;;  %v4867_v48 = vadd.f32 %v15360_v17, %v4866_v25  ;;  %6917 = vmatmul.f32.gmra.mxu0 %v18289_v14 }
 0x62d   : > { %18332 = vst [vmem:[#allocation111_spill] sm:$0xff] %v15446_v26  ;;  %vm4869_vm4 = vweird.f32 %v15360_v17  ;;  %v5021_v7 = vmul.f32 %v5020_v55, %v15228_v45  ;;  %v17164_v32 = vand.u32 4294901760, %v15446_v26  ;;  %v4797_v30 = vmul.f32 %v4796_v23, %v4772_v58 }
 0x62e   : > { %18334 = vst [vmem:[#allocation42_spill] sm:$0xff] %v15452_v46  ;;  %vm4868_vm5 = vweird.f32 %v15294_v59  ;;  %v4874_v40 = vand.u32 2147483648, %v15294_v59  ;;  %v5098_v27 = vadd.f32 0.112945676, %v5097_v51  ;;  %v4929_v57 = vadd.f32 0.18741608, %v4928_v9  ;;  %v15460_v63 = vpop.f32.mrf.mxu3 }
 0x62f   : > { %v5007_v20 = vadd.f32 0.05243302, %v5006_v50  ;;  %v5174_v33 = vadd.f32 0.001143296, %v5173_v52  ;;  %18335 = vst [vmem:[#allocation48_spill] sm:$0xff] %v15460_v63  ;;  %v7305_v42 = vsub.f32 %v15446_v26, %v17164_v32  ;;  %v5719_v60 = vadd.f32 1.0, %v8809_v28  ;;  %vm15466_vm6 = vmor %vm4868_vm5, %vm4869_vm4  ;;  %v6102_v28 = vpop.f32.mrf.mxu0  ;;  %v6351_v51 = vpop.f32.mrf.mxu1  ;;  %7600 = vmatmul.f32.gmra.mxu3 %v15326_v19 }
 0x630   : > { %vm15470_vm7 = vcmp.eq.f32.partialorder %v4872_v3, 8.507059e+37  ;;  %v5084_v59 = vmul.f32 %v5083_v4, %v15309_v16  ;;  %v5240_v55 = vmul.f32 %v15450_v12, %v15450_v12  ;;  %v4871_v14 = vsel %vm15466_vm6, %v15360_v17, %v4867_v48  ;;  %v18341_v3 = vld [vmem:[#allocation46_spill] sm:$0xff]  ;;  %v6552_v46 = vpop.f32.mrf.mxu2 }
 0x631   : > { %v15480_v23 = vadd.f32 1.0, %v5021_v7  ;;  %v7306_v9 = vand.u32 4294901760, %v7305_v42  ;;  %v15483_v50 = vand.u32 4294901760, %v14987_v6  ;;  %v15486_v52 = vpop.eup %9072  ;;  %v8811_v4 = vclamps-f32 %v4797_v30, 1.0 }
 0x632   : > { %7098 = vmatmul.f32.gmra.mxu1 %v18341_v3  ;;  %v4875_v32 = vor.u32 1.1754944e-38, %v4874_v40  ;;  %v5099_v26 = vmul.f32 %v5098_v27, %v15309_v16  ;;  %v6352_v63 = vadd.f32 %v6351_v51, %v6094_v8  ;;  %v4930_v17 = vmul.f32 %v4929_v57, %v15170_v13 }
 0x633   : > { %18340 = vst [vmem:[#allocation62_spill] sm:$0xff] %v15483_v50  ;;  %v5008_v48 = vmul.f32 %v5007_v20, %v15228_v45  ;;  %v5175_v7 = vmul.f32 %v5174_v33, %v15418_v22  ;;  %7307 = vmatmul.f32.gmra.mxu2 %v7306_v9  ;;  %v15495_v42 = vsub.f32 %v14987_v6, %v15483_v50  ;;  %v5085_v40 = vadd.f32 0.0036580483, %v5084_v59 }
 0x634   : > { %v4876_v30 = vsel %vm15470_vm7, %v4875_v32, %v4871_v14  ;;  %v15499_v27 = vmin.f32 %v5240_v55, 16.0  ;;  %v15501_v8 = vadd.f32 %v6552_v46, %v6352_v63  ;;  %v4852_v13 = vmul.f32 %v15426_v10, %v14969_v49  ;;  %6921 = vmatmul.f32.gmra.mxu0 %v18300_v2 }
 0x635   : > { %18342 = vst [vmem:[#allocation64_spill] sm:$0xff] %v15495_v42  ;;  %v4944_v20 = vmul.f32 %v15486_v52, %v15428_v1  ;;  %9074 = vrcp.f32 %v15480_v23  ;;  %v17167_v33 = vand.u32 4294901760, %v15495_v42  ;;  %v15510_v6 = vmul.f32 %v5719_v60, %v15079_v18 }
 0x636   : > { %18343 = vst [vmem:[#allocation139_spill] sm:$0xff] %v15501_v8  ;;  %v5721_v57 = vadd.f32 1.0, %v8811_v4  ;;  %v15513_v32 = vmul.f32 0.5, %v18274_v54  ;;  %v5100_v25 = vadd.f32 0.4994258, %v5099_v26  ;;  %v4877_v63 = vmul.f32 %v4876_v30, %v4852_v13  ;;  %v15515_v59 = vpop.f32.mrf.mxu3  ;;  %v18346_v4 = vld [vmem:[#allocation108_spill] sm:$0xff] }
 0x637   : > { %v4931_v46 = vadd.f32 1.1283791, %v4930_v17  ;;  %v5176_v58 = vadd.f32 0.014752088, %v5175_v7  ;;  %18344 = vst [vmem:[#allocation40_spill] sm:$0xff] %v15515_v59  ;;  %v7313_v49 = vsub.f32 %v15495_v42, %v17167_v33  ;;  %v15522_v18 = vmul.f32 0.5, %v18296_v53  ;;  %v6110_v14 = vpop.f32.mrf.mxu0  ;;  %v6355_v51 = vpop.f32.mrf.mxu1  ;;  %7604 = vmatmul.f32.gmra.mxu3 %v15380_v38 }
 0x638   : > { %v5009_v10 = vadd.f32 0.18741608, %v5008_v48  ;;  %v5086_v60 = vmul.f32 %v5085_v40, %v15309_v16  ;;  %v5253_v54 = vmul.f32 3.8918573e-05, %v15499_v27  ;;  %v4945_v26 = vsub.f32 1.0, %v4944_v20  ;;  %v18347_v48 = vld [vmem:[#allocation121_spill] sm:$0xff]  ;;  %v6557_v40 = vpop.f32.mrf.mxu2 }
 0x639   : > { %v5162_v55 = vmul.f32 2.1237322e-06, %v15418_v22  ;;  %v7314_v9 = vand.u32 4294901760, %v7313_v49  ;;  %v15528_v2 = vand.u32 4294901760, %v15045_v36  ;;  %v15532_v17 = vmul.f32 %v5721_v57, %v15258_v39 }
 0x63a   : > { %7102 = vmatmul.f32.gmra.mxu1 %v18346_v4  ;;  %v5101_v53 = vmul.f32 %v5100_v25, %v15309_v16  ;;  %v15536_v7 = vmul.f32 0.70710677, %v18347_v48  ;;  %v6356_v30 = vadd.f32 %v6355_v51, %v6102_v28  ;;  %v8813_v20 = vclamps-f32 %v4877_v63, 1.0 }
 0x63b   : > { %18345 = vst [vmem:[#allocation109_spill] sm:$0xff] %v15528_v2  ;;  %v15539_v13 = vpop.eup %9074  ;;  %v15542_v49 = vmul.f32 %v4931_v46, %v15112_v31  ;;  %v5177_v33 = vmul.f32 %v5176_v58, %v15418_v22  ;;  %7315 = vmatmul.f32.gmra.mxu2 %v7314_v9  ;;  %v15547_v39 = vsub.f32 %v15045_v36, %v15528_v2  ;;  %v5087_v25 = vadd.f32 0.05243302, %v5086_v60 }
 0x63c   : > { %v5010_v57 = vmul.f32 %v5009_v10, %v15228_v45  ;;  %v5254_v28 = vadd.f32 0.001143296, %v5253_v54  ;;  %v15550_v51 = vadd.f32 %v6557_v40, %v6356_v30  ;;  %v4946_v42 = vmul.f32 %v15486_v52, %v4945_v26  ;;  %6925 = vmatmul.f32.gmra.mxu0 %v18311_v21  ;;  %v18352_v21 = vld [vmem:[#allocation116_spill] sm:$0xff] }
 0x63d   : > { %18348 = vst [vmem:[#allocation113_spill] sm:$0xff] %v15547_v39  ;;  %vm4948_vm8 = vweird.f32 %v15428_v1  ;;  %v5163_v63 = vadd.f32 0.00028619796, %v5162_v55  ;;  %v17172_v31 = vand.u32 4294901760, %v15547_v39  ;;  %v4952_v46 = vand.u32 2147483647, %v15428_v1 }
 0x63e   : > { %18349 = vst [vmem:[#allocation112_spill] sm:$0xff] %v15550_v51  ;;  %v5024_v58 = vmul.f32 %v15539_v13, %v15480_v23  ;;  %v15558_v36 = vadd.f32 1.0, %v5101_v53  ;;  %v5320_v45 = vmul.f32 %v15536_v7, %v15536_v7  ;;  %vm4949_vm9 = vweird.f32 %v15486_v52  ;;  %v15564_v54 = vpop.f32.mrf.mxu3 }
 0x63f   : > { %v4954_v10 = vand.u32 2147483648, %v15428_v1  ;;  %v5178_v60 = vadd.f32 0.112945676, %v5177_v33  ;;  %18350 = vst [vmem:[#allocation104_spill] sm:$0xff] %v15564_v54  ;;  %v7321_v26 = vsub.f32 %v15547_v39, %v17172_v31  ;;  %v5723_v55 = vadd.f32 1.0, %v8813_v20  ;;  %v6118_v51 = vpop.f32.mrf.mxu0  ;;  %v6359_v33 = vpop.f32.mrf.mxu1  ;;  %7608 = vmatmul.f32.gmra.mxu3 %v15433_v24  ;;  %vm15603_vm11 = vmor %vm4948_vm8, %vm4949_vm9 }
 0x640   : > { %v5011_v9 = vadd.f32 1.1283791, %v5010_v57  ;;  %v5088_v53 = vmul.f32 %v5087_v25, %v15309_v16  ;;  %v5255_v30 = vmul.f32 %v5254_v28, %v15499_v27  ;;  %v4947_v40 = vadd.f32 %v15486_v52, %v4946_v42  ;;  %v6562_v25 = vpop.f32.mrf.mxu2 }
 0x641   : > { %v5164_v59 = vmul.f32 %v5163_v63, %v15418_v22  ;;  %v7322_v38 = vand.u32 4294901760, %v7321_v26  ;;  %v15575_v54 = vand.u32 4294901760, %v15087_v15  ;;  %v5025_v8 = vsub.f32 1.0, %v5024_v58  ;;  %v18355_v63 = vld [vmem:[#allocation115_spill] sm:$0xff] }
 0x642   : > { %7106 = vmatmul.f32.gmra.mxu1 %v18352_v21  ;;  %9076 = vrcp.f32 %v15558_v36  ;;  %v15579_v20 = vmin.f32 %v5320_v45, 16.0  ;;  %v6360_v57 = vadd.f32 %v6359_v33, %v6110_v14  ;;  %vm15582_vm10 = vcmp.eq.f32.partialorder %v4952_v46, 8.507059e+37 }
 0x643   : > { %18351 = vst [vmem:[#allocation147_spill] sm:$0xff] %v15575_v54  ;;  %v5179_v28 = vmul.f32 %v5178_v60, %v15418_v22  ;;  %v15588_v26 = vmul.f32 0.70710677, %v18355_v63  ;;  %7323 = vmatmul.f32.gmra.mxu2 %v7322_v38  ;;  %v15592_v58 = vsub.f32 %v15087_v15, %v15575_v54  ;;  %v4955_v45 = vor.u32 1.1754944e-38, %v4954_v10 }
 0x644   : > { %v5089_v31 = vadd.f32 0.18741608, %v5088_v53  ;;  %v5256_v14 = vadd.f32 0.014752088, %v5255_v30  ;;  %v15594_v33 = vadd.f32 %v6562_v25, %v6360_v57  ;;  %v15597_v46 = vmul.f32 %v5723_v55, %v15265_v44  ;;  %6929 = vmatmul.f32.gmra.mxu0 %v18320_v5 }
 0x645   : > { %18356 = vst [vmem:[#allocation134_spill] sm:$0xff] %v15592_v58  ;;  %v15608_v38 = vmul.f32 0.5, %v18316_v35  ;;  %v5165_v15 = vadd.f32 0.0036580483, %v5164_v59  ;;  %v17173_v10 = vand.u32 4294901760, %v15592_v58  ;;  %v4951_v53 = vsel %vm15603_vm11, %v15486_v52, %v4947_v40 }
 0x646   : > { %18357 = vst [vmem:[#allocation98_spill] sm:$0xff] %v15594_v33  ;;  %v15615_v44 = vmul.f32 %v5011_v9, %v15175_v37  ;;  %v5026_v55 = vmul.f32 %v15539_v13, %v5025_v8  ;;  %v5333_v1 = vmul.f32 3.8918573e-05, %v15579_v20  ;;  %vm5028_vm12 = vweird.f32 %v15480_v23  ;;  %v15622_v59 = vpop.f32.mrf.mxu3 }
 0x647   : > { %v5180_v30 = vadd.f32 0.4994258, %v5179_v28  ;;  %v5400_v35 = vmul.f32 %v15588_v26, %v15588_v26  ;;  %18360 = vst [vmem:[#allocation125_spill] sm:$0xff] %v15622_v59  ;;  %v7329_v52 = vsub.f32 %v15592_v58, %v17173_v10  ;;  %v5032_v8 = vand.u32 2147483647, %v15480_v23  ;;  %v6126_v5 = vpop.f32.mrf.mxu0  ;;  %v6363_v60 = vpop.f32.mrf.mxu1  ;;  %v18362_v58 = vld [vmem:[#allocation118_spill] sm:$0xff]  ;;  %7612 = vmatmul.f32.gmra.mxu3 %v15483_v50 }
 0x648   : > { %v15628_v37 = vpop.eup %9076  ;;  %v5034_v9 = vand.u32 2147483648, %v15480_v23  ;;  %v5090_v40 = vmul.f32 %v5089_v31, %v15309_v16  ;;  %v5257_v57 = vmul.f32 %v5256_v14, %v15499_v27  ;;  %v4956_v25 = vsel %vm15582_vm10, %v4955_v45, %v4951_v53  ;;  %v6567_v14 = vpop.f32.mrf.mxu2 }
 0x649   : > { %v5166_v28 = vmul.f32 %v5165_v15, %v15418_v22  ;;  %v7330_v59 = vand.u32 4294901760, %v7329_v52  ;;  %v15638_v10 = vand.u32 4294901760, %v15255_v34  ;;  %v5027_v39 = vadd.f32 %v15539_v13, %v5026_v55 }
 0x64a   : > { %7110 = vmatmul.f32.gmra.mxu1 %v18362_v58  ;;  %vm5029_vm13 = vweird.f32 %v15539_v13  ;;  %v5334_v16 = vadd.f32 0.001143296, %v5333_v1  ;;  %v6364_v31 = vadd.f32 %v6363_v60, %v6118_v51  ;;  %v5104_v42 = vmul.f32 %v15628_v37, %v15558_v36  ;;  %v18364_v1 = vld [vmem:[#allocation43_spill] sm:$0xff] }
 0x64b   : > { %18361 = vst [vmem:[#allocation66_spill] sm:$0xff] %v15638_v10  ;;  %v5181_v45 = vmul.f32 %v5180_v30, %v15418_v22  ;;  %v15647_v15 = vmin.f32 %v5400_v35, 16.0  ;;  %7331 = vmatmul.f32.gmra.mxu2 %v7330_v59  ;;  %v15651_v53 = vsub.f32 %v15255_v34, %v15638_v10  ;;  %v4957_v55 = vmul.f32 %v4956_v25, %v15542_v49  ;;  %vm15661_vm14 = vmor %vm5028_vm12, %vm5029_vm13 }
 0x64c   : > { %v5258_v52 = vadd.f32 0.112945676, %v5257_v57  ;;  %v15655_v51 = vmul.f32 0.70710677, %v18364_v1  ;;  %v15657_v60 = vadd.f32 %v6567_v14, %v6364_v31  ;;  %vm15665_vm15 = vcmp.eq.f32.partialorder %v5032_v8, 8.507059e+37  ;;  %6933 = vmatmul.f32.gmra.mxu0 %v18331_v56 }
 0x64d   : > { %18363 = vst [vmem:[#allocation59_spill] sm:$0xff] %v15651_v53  ;;  %v5091_v34 = vadd.f32 1.1283791, %v5090_v40  ;;  %v5167_v35 = vadd.f32 0.05243302, %v5166_v28  ;;  %v17180_v49 = vand.u32 4294901760, %v15651_v53  ;;  %v5031_v59 = vsel %vm15661_vm14, %v15539_v13, %v5027_v39 }
 0x64e   : > { %18365 = vst [vmem:[#allocation141_spill] sm:$0xff] %v15657_v60  ;;  %v5035_v57 = vor.u32 1.1754944e-38, %v5034_v9  ;;  %v5242_v25 = vmul.f32 2.1237322e-06, %v15499_v27  ;;  %v5335_v23 = vmul.f32 %v5334_v16, %v15579_v20  ;;  %v5105_v31 = vsub.f32 1.0, %v5104_v42  ;;  %v15678_v60 = vpop.f32.mrf.mxu3 }
 0x64f   : > { %v15675_v14 = vadd.f32 1.0, %v5181_v45  ;;  %v5413_v8 = vmul.f32 3.8918573e-05, %v15647_v15  ;;  %18370 = vst [vmem:[#allocation136_spill] sm:$0xff] %v15678_v60  ;;  %v7337_v40 = vsub.f32 %v15651_v53, %v17180_v49  ;;  %v8815_v50 = vclamps-f32 %v4957_v55, 1.0  ;;  %v6134_v42 = vpop.f32.mrf.mxu0  ;;  %v6367_v56 = vpop.f32.mrf.mxu1  ;;  %v18372_v55 = vld [vmem:[#allocation120_spill] sm:$0xff]  ;;  %7616 = vmatmul.f32.gmra.mxu3 %v15528_v2 }
 0x650   : > { %v15685_v13 = vmul.f32 0.5, %v18333_v29  ;;  %v5259_v39 = vmul.f32 %v5258_v52, %v15499_v27  ;;  %v5480_v9 = vmul.f32 %v15655_v51, %v15655_v51  ;;  %v15691_v28 = vmul.f32 %v5091_v34, %v15261_v41  ;;  %v6572_v33 = vpop.f32.mrf.mxu2 }
 0x651   : > { %v5168_v16 = vmul.f32 %v5167_v35, %v15418_v22  ;;  %v7338_v45 = vand.u32 4294901760, %v7337_v40  ;;  %v15695_v60 = vand.u32 4294901760, %v15280_v43  ;;  %v5036_v29 = vsel %vm15665_vm15, %v5035_v57, %v5031_v59 }
 0x652   : > { %7114 = vmatmul.f32.gmra.mxu1 %v18372_v55  ;;  %v5243_v52 = vadd.f32 0.00028619796, %v5242_v25  ;;  %v5336_v49 = vadd.f32 0.014752088, %v5335_v23  ;;  %v6368_v53 = vadd.f32 %v6367_v56, %v6126_v5  ;;  %v5106_v41 = vmul.f32 %v15628_v37, %v5105_v31 }
 0x653   : > { %18371 = vst [vmem:[#allocation38_spill] sm:$0xff] %v15695_v60  ;;  %9078 = vrcp.f32 %v15675_v14  ;;  %v5414_v34 = vadd.f32 0.001143296, %v5413_v8  ;;  %7339 = vmatmul.f32.gmra.mxu2 %v7338_v45  ;;  %v15705_v35 = vsub.f32 %v15280_v43, %v15695_v60  ;;  %v5725_v40 = vadd.f32 1.0, %v8815_v50  ;;  %v18375_v8 = vld [vmem:[#allocation56_spill] sm:$0xff] }
 0x654   : > { %v5260_v24 = vadd.f32 0.4994258, %v5259_v39  ;;  %v15707_v30 = vmin.f32 %v5480_v9, 16.0  ;;  %v15709_v59 = vadd.f32 %v6572_v33, %v6368_v53  ;;  %v5037_v5 = vmul.f32 %v5036_v29, %v15615_v44  ;;  %6937 = vmatmul.f32.gmra.mxu0 %v18341_v3 }
 0x655   : > { %18373 = vst [vmem:[#allocation76_spill] sm:$0xff] %v15705_v35  ;;  %vm5108_vm0 = vweird.f32 %v15558_v36  ;;  %v5169_v57 = vadd.f32 0.18741608, %v5168_v16  ;;  %v17185_v25 = vand.u32 4294901760, %v15705_v35  ;;  %v5112_v23 = vand.u32 2147483647, %v15558_v36 }
 0x656   : > { %18374 = vst [vmem:[#allocation122_spill] sm:$0xff] %v15709_v59  ;;  %v5244_v31 = vmul.f32 %v5243_v52, %v15499_v27  ;;  %v5337_v43 = vmul.f32 %v5336_v49, %v15579_v20  ;;  %v15718_v50 = vmul.f32 0.70710677, %v18375_v8  ;;  %v5107_v39 = vadd.f32 %v15628_v37, %v5106_v41  ;;  %v15723_v44 = vpop.f32.mrf.mxu3 }
 0x657   : > { %vm5109_vm1 = vweird.f32 %v15628_v37  ;;  %v5415_v33 = vmul.f32 %v5414_v34, %v15647_v15  ;;  %18376 = vst [vmem:[#allocation146_spill] sm:$0xff] %v15723_v44  ;;  %v7345_v53 = vsub.f32 %v15705_v35, %v17185_v25  ;;  %v15730_v9 = vmul.f32 %v5725_v40, %v15332_v47  ;;  %v6142_v41 = vpop.f32.mrf.mxu0  ;;  %v6371_v3 = vpop.f32.mrf.mxu1  ;;  %v18377_v25 = vld [vmem:[#allocation126_spill] sm:$0xff]  ;;  %7620 = vmatmul.f32.gmra.mxu3 %v15575_v54 }
 0x658   : > { %v5114_v49 = vand.u32 2147483648, %v15558_v36  ;;  %v5261_v16 = vmul.f32 %v5260_v24, %v15499_v27  ;;  %v5493_v56 = vmul.f32 3.8918573e-05, %v15707_v30  ;;  %v8817_v29 = vclamps-f32 %v5037_v5, 1.0  ;;  %vm15746_vm2 = vmor %vm5108_vm0, %vm5109_vm1 }
 0x659   : > { %v15735_v45 = vpop.eup %9078  ;;  %v5170_v52 = vmul.f32 %v5169_v57, %v15418_v22  ;;  %v7346_v34 = vand.u32 4294901760, %v7345_v53  ;;  %v15739_v44 = vand.u32 4294901760, %v15353_v11  ;;  %v5245_v24 = vadd.f32 0.0036580483, %v5244_v31  ;;  %v6577_v57 = vpop.f32.mrf.mxu2 }
 0x65a   : > { %7118 = vmatmul.f32.gmra.mxu1 %v18377_v25  ;;  %v5338_v40 = vadd.f32 0.112945676, %v5337_v43  ;;  %v5560_v22 = vmul.f32 %v15718_v50, %v15718_v50  ;;  %v6372_v5 = vadd.f32 %v6371_v3, %v6134_v42  ;;  %v5111_v53 = vsel %vm15746_vm2, %v15628_v37, %v5107_v39 }
 0x65b   : > { %v5322_v35 = vmul.f32 2.1237322e-06, %v15579_v20  ;;  %v5416_v36 = vadd.f32 0.014752088, %v5415_v33  ;;  %7347 = vmatmul.f32.gmra.mxu2 %v7346_v34  ;;  %v15759_v59 = vsub.f32 %v15353_v11, %v15739_v44  ;;  %v5184_v31 = vmul.f32 %v15735_v45, %v15675_v14  ;;  %v18382_v11 = vld [vmem:[#allocation70_spill] sm:$0xff] }
 0x65c   : > { %v15763_v43 = vadd.f32 1.0, %v5261_v16  ;;  %v5494_v42 = vadd.f32 0.001143296, %v5493_v56  ;;  %v15765_v3 = vadd.f32 %v6577_v57, %v6372_v5  ;;  %v5727_v54 = vadd.f32 1.0, %v8817_v29  ;;  %6941 = vmatmul.f32.gmra.mxu0 %v18346_v4 }
 0x65d   : > { %18380 = vst [vmem:[#allocation47_spill] sm:$0xff] %v15759_v59  ;;  %v5115_v2 = vor.u32 1.1754944e-38, %v5114_v49  ;;  %v5171_v47 = vadd.f32 1.1283791, %v5170_v52  ;;  %v17194_v37 = vand.u32 4294901760, %v15759_v59  ;;  %vm5113_vm3 = vcmp.eq.f32.partialorder %v5112_v23, 8.507059e+37 }
 0x65e   : > { %18381 = vst [vmem:[#allocation93_spill] sm:$0xff] %v15765_v3  ;;  %v5339_v39 = vmul.f32 %v5338_v40, %v15579_v20  ;;  %v15769_v33 = vmin.f32 %v5560_v22, 16.0  ;;  %v15772_v34 = vmul.f32 0.70710677, %v18382_v11  ;;  %v5246_v16 = vmul.f32 %v5245_v24, %v15499_v27  ;;  %v15776_v5 = vpop.f32.mrf.mxu3 }
 0x65f   : > { %v5116_v19 = vsel %vm5113_vm3, %v5115_v2, %v5111_v53  ;;  %v5417_v56 = vmul.f32 %v5416_v36, %v15647_v15  ;;  %18383 = vst [vmem:[#allocation143_spill] sm:$0xff] %v15776_v5  ;;  %v7353_v23 = vsub.f32 %v15759_v59, %v17194_v37  ;;  %v5185_v49 = vsub.f32 1.0, %v5184_v31  ;;  %v6150_v40 = vpop.f32.mrf.mxu0  ;;  %v6375_v22 = vpop.f32.mrf.mxu1  ;;  %v18384_v53 = vld [vmem:[#allocation130_spill] sm:$0xff]  ;;  %7624 = vmatmul.f32.gmra.mxu3 %v15638_v10 }
 0x660   : > { %9080 = vrcp.f32 %v15763_v43  ;;  %v5323_v29 = vadd.f32 0.00028619796, %v5322_v35  ;;  %v5495_v52 = vmul.f32 %v5494_v42, %v15707_v30  ;;  %v15785_v2 = vmul.f32 %v5727_v54, %v15513_v32  ;;  %v18388_v10 = vld [vmem:[#allocation82_spill] sm:$0xff] }
 0x661   : > { %v15788_v24 = vmul.f32 %v5171_v47, %v15366_v61  ;;  %v7354_v57 = vand.u32 4294901760, %v7353_v23  ;;  %v15791_v4 = vand.u32 4294901760, %v15510_v6  ;;  %v5340_v36 = vadd.f32 0.4994258, %v5339_v39  ;;  %v6582_v32 = vpop.f32.mrf.mxu2 }
 0x662   : > { %7122 = vmatmul.f32.gmra.mxu1 %v18384_v53  ;;  %v5573_v31 = vmul.f32 3.8918573e-05, %v15769_v33  ;;  %v5640_v35 = vmul.f32 %v15772_v34, %v15772_v34  ;;  %v6376_v42 = vadd.f32 %v6375_v22, %v6142_v41  ;;  %v5117_v61 = vmul.f32 %v5116_v19, %v15691_v28 }
 0x663   : > { %v5247_v54 = vadd.f32 0.05243302, %v5246_v16  ;;  %v5418_v47 = vadd.f32 0.112945676, %v5417_v56  ;;  %7355 = vmatmul.f32.gmra.mxu2 %v7354_v57  ;;  %v15801_v23 = vsub.f32 %v15510_v6, %v15791_v4  ;;  %v5186_v39 = vmul.f32 %v15735_v45, %v5185_v49 }
 0x664   : > { %v5324_v37 = vmul.f32 %v5323_v29, %v15579_v20  ;;  %v5496_v59 = vadd.f32 0.014752088, %v5495_v52  ;;  %v15805_v5 = vadd.f32 %v6582_v32, %v6376_v42  ;;  %vm5188_vm4 = vweird.f32 %v15675_v14  ;;  %6945 = vmatmul.f32.gmra.mxu0 %v18352_v21 }
 0x665   : > { %18385 = vst [vmem:[#allocation101_spill] sm:$0xff] %v15801_v23  ;;  %v5192_v41 = vand.u32 2147483647, %v15675_v14  ;;  %v5402_v19 = vmul.f32 2.1237322e-06, %v15647_v15  ;;  %v17199_v28 = vand.u32 4294901760, %v15801_v23  ;;  %v5341_v56 = vmul.f32 %v5340_v36, %v15579_v20 }
 0x666   : > { %18386 = vst [vmem:[#allocation81_spill] sm:$0xff] %v15805_v5  ;;  %v15811_v16 = vpop.eup %9080  ;;  %v5194_v6 = vand.u32 2147483648, %v15675_v14  ;;  %v5574_v49 = vadd.f32 0.001143296, %v5573_v31  ;;  %v15815_v22 = vmin.f32 %v5640_v35, 16.0  ;;  %v8819_v29 = vclamps-f32 %v5117_v61, 1.0  ;;  %v15819_v42 = vpop.f32.mrf.mxu3 }
 0x667   : > { %v5248_v52 = vmul.f32 %v5247_v54, %v15499_v27  ;;  %v5419_v57 = vmul.f32 %v5418_v47, %v15647_v15  ;;  %18387 = vst [vmem:[#allocation148_spill] sm:$0xff] %v15819_v42  ;;  %v7361_v32 = vsub.f32 %v15801_v23, %v17199_v28  ;;  %v5187_v5 = vadd.f32 %v15735_v45, %v5186_v39  ;;  %v6158_v54 = vpop.f32.mrf.mxu0  ;;  %v6379_v47 = vpop.f32.mrf.mxu1 }
 0x668   : > { %vm5189_vm5 = vweird.f32 %v15735_v45  ;;  %v5325_v36 = vadd.f32 0.0036580483, %v5324_v37  ;;  %v5497_v31 = vmul.f32 %v5496_v59, %v15707_v30  ;;  %v5264_v35 = vmul.f32 %v15811_v16, %v15763_v43  ;;  %7628 = vmatmul.f32.gmra.mxu3 %v15695_v60 }
 0x669   : > { %v5403_v61 = vadd.f32 0.00028619796, %v5402_v19  ;;  %v7362_v42 = vand.u32 4294901760, %v7361_v32  ;;  %v15831_v21 = vand.u32 4294901760, %v15532_v17  ;;  %v15834_v28 = vadd.f32 1.0, %v5341_v56  ;;  %v6587_v59 = vpop.f32.mrf.mxu2  ;;  %vm15847_vm6 = vmor %vm5188_vm4, %vm5189_vm5 }
 0x66a   : > { %7126 = vmatmul.f32.gmra.mxu1 %v18388_v10  ;;  %v5575_v39 = vmul.f32 %v5574_v49, %v15769_v33  ;;  %v5653_v37 = vmul.f32 3.8918573e-05, %v15815_v22  ;;  %v6380_v23 = vadd.f32 %v6379_v47, %v6150_v40  ;;  %v5729_v3 = vadd.f32 1.0, %v8819_v29 }
 0x66b   : > { %v5249_v19 = vadd.f32 0.18741608, %v5248_v52  ;;  %v5420_v62 = vadd.f32 0.4994258, %v5419_v57  ;;  %7363 = vmatmul.f32.gmra.mxu2 %v7362_v42  ;;  %v15841_v32 = vsub.f32 %v15532_v17, %v15831_v21  ;;  %vm15851_vm7 = vcmp.eq.f32.partialorder %v5192_v41, 8.507059e+37 }
 0x66c   : > { %v5326_v49 = vmul.f32 %v5325_v36, %v15579_v20  ;;  %v5498_v29 = vadd.f32 0.112945676, %v5497_v31  ;;  %v15856_v52 = vadd.f32 %v6587_v59, %v6380_v23  ;;  %v5191_v17 = vsel %vm15847_vm6, %v15735_v45, %v5187_v5  ;;  %6949 = vmatmul.f32.gmra.mxu0 %v18362_v58 }
 0x66d   : > { %18389 = vst [vmem:[#allocation67_spill] sm:$0xff] %v15841_v32  ;;  %v5265_v57 = vsub.f32 1.0, %v5264_v35  ;;  %v5404_v14 = vmul.f32 %v5403_v61, %v15647_v15  ;;  %v17204_v42 = vand.u32 4294901760, %v15841_v32  ;;  %v5195_v47 = vor.u32 1.1754944e-38, %v5194_v6 }
 0x66e   : > { %9082 = vrcp.f32 %v15834_v28  ;;  %v5576_v41 = vadd.f32 0.014752088, %v5575_v39  ;;  %v5654_v60 = vadd.f32 0.001143296, %v5653_v37  ;;  %v15865_v0 = vmul.f32 %v5729_v3, %v15522_v18  ;;  %v15869_v31 = vpop.f32.mrf.mxu3  ;;  %v18395_v18 = vld [vmem:[#allocation68_spill] sm:$0xff]  ;;  %v18396_v3 = vld [vmem:[#allocation58_spill] sm:$0xff] }
 0x66f   : > { %v5250_v23 = vmul.f32 %v5249_v19, %v15499_v27  ;;  %v5421_v36 = vmul.f32 %v5420_v62, %v15647_v15  ;;  %18394 = vst [vmem:[#allocation80_spill] sm:$0xff] %v15869_v31  ;;  %v7369_v45 = vsub.f32 %v15841_v32, %v17204_v42  ;;  %v5196_v5 = vsel %vm15851_vm7, %v5195_v47, %v5191_v17  ;;  %v6383_v39 = vpop.f32.mrf.mxu1  ;;  %v6886_v37 = vpop.f32.mrf.mxu0  ;;  %v18397_v19 = vld [vmem:[#allocation140_spill] sm:$0xff] }
 0x670   : > { %v5327_v6 = vadd.f32 0.05243302, %v5326_v49  ;;  %v5499_v35 = vmul.f32 %v5498_v29, %v15707_v30  ;;  %v6632_v61 = vadd.f32 %v18396_v3, %v18395_v18  ;;  %v5266_v27 = vmul.f32 %v15811_v16, %v5265_v57  ;;  %7632 = vmatmul.f32.gmra.mxu3 %v15739_v44 }
 0x671   : > { %v5405_v62 = vadd.f32 0.0036580483, %v5404_v14  ;;  %v7370_v59 = vand.u32 4294901760, %v7369_v45  ;;  %v15882_v58 = vand.u32 4294901760, %v15597_v46  ;;  %v5577_v56 = vmul.f32 %v5576_v41, %v15769_v33  ;;  %v6592_v29 = vpop.f32.mrf.mxu2 }
 0x672   : > { %7130 = vmatmul.f32.gmra.mxu1 %v18397_v19  ;;  %v5655_v40 = vmul.f32 %v5654_v60, %v15815_v22  ;;  %v6384_v49 = vadd.f32 %v6383_v39, %v6158_v54  ;;  %v6887_v17 = vadd.f32 %v6886_v37, %v6632_v61  ;;  %v5251_v47 = vadd.f32 1.1283791, %v5250_v23 }
 0x673   : > { %v15888_v57 = vadd.f32 1.0, %v5421_v36  ;;  %v5482_v14 = vmul.f32 2.1237322e-06, %v15707_v30  ;;  %7371 = vmatmul.f32.gmra.mxu2 %v7370_v59  ;;  %v15893_v45 = vsub.f32 %v15597_v46, %v15882_v58  ;;  %vm5268_vm8 = vweird.f32 %v15763_v43 }
 0x674   : > { %v15895_v18 = vpop.eup %9082  ;;  %v5328_v60 = vmul.f32 %v5327_v6, %v15579_v20  ;;  %v5500_v54 = vadd.f32 0.4994258, %v5499_v35  ;;  %v15899_v41 = vadd.f32 %v6592_v29, %v6384_v49  ;;  %v5197_v23 = vmul.f32 %v5196_v5, %v15788_v24  ;;  %6953 = vmatmul.f32.gmra.mxu0 %v18372_v55  ;;  %v18403_v55 = vld [vmem:[#allocation145_spill] sm:$0xff] }
 0x675   : > { %18398 = vst [vmem:[#allocation85_spill] sm:$0xff] %v15893_v45  ;;  %v5272_v36 = vand.u32 2147483647, %v15763_v43  ;;  %v5406_v3 = vmul.f32 %v5405_v62, %v15647_v15  ;;  %v17207_v61 = vand.u32 4294901760, %v15893_v45  ;;  %v5267_v46 = vadd.f32 %v15811_v16, %v5266_v27 }
 0x676   : > { %18399 = vst [vmem:[#allocation92_spill] sm:$0xff] %v15899_v41  ;;  %vm5269_vm9 = vweird.f32 %v15811_v16  ;;  %v5578_v39 = vadd.f32 0.112945676, %v5577_v56  ;;  %v5656_v37 = vadd.f32 0.014752088, %v5655_v40  ;;  %v5344_v6 = vmul.f32 %v15895_v18, %v15834_v28  ;;  %v15910_v59 = vpop.f32.mrf.mxu3  ;;  %v18401_v56 = vld [vmem:[#allocation99_spill] sm:$0xff] }
 0x677   : > { %9084 = vrcp.f32 %v15888_v57  ;;  %v5483_v35 = vadd.f32 0.00028619796, %v5482_v14  ;;  %18400 = vst [vmem:[#allocation89_spill] sm:$0xff] %v15910_v59  ;;  %v7377_v24 = vsub.f32 %v15893_v45, %v17207_v61  ;;  %v5274_v5 = vand.u32 2147483648, %v15763_v43  ;;  %v18402_v40 = vld [vmem:[#allocation55_spill] sm:$0xff]  ;;  %v6890_v32 = vpop.f32.mrf.mxu0  ;;  %v7047_v14 = vpop.f32.mrf.mxu1  ;;  %vm15928_vm10 = vmor %vm5268_vm8, %vm5269_vm9 }
 0x678   : > { %v5329_v27 = vadd.f32 0.18741608, %v5328_v60  ;;  %v5501_v62 = vmul.f32 %v5500_v54, %v15707_v30  ;;  %v6638_v49 = vadd.f32 %v18402_v40, %v18401_v56  ;;  %v8821_v29 = vclamps-f32 %v5197_v23, 1.0  ;;  %7636 = vmatmul.f32.gmra.mxu3 %v15791_v4 }
 0x679   : > { %v5407_v42 = vadd.f32 0.05243302, %v5406_v3  ;;  %v7378_v31 = vand.u32 4294901760, %v7377_v24  ;;  %v15921_v59 = vand.u32 4294901760, %v15730_v9  ;;  %v5579_v54 = vmul.f32 %v5578_v39, %v15769_v33  ;;  %v7212_v24 = vpop.f32.mrf.mxu2 }
 0x67a   : > { %7134 = vmatmul.f32.gmra.mxu1 %v18403_v55  ;;  %v5657_v23 = vmul.f32 %v5656_v37, %v15815_v22  ;;  %v6891_v3 = vadd.f32 %v6890_v32, %v6638_v49  ;;  %v7048_v56 = vadd.f32 %v7047_v14, %v6887_v17  ;;  %v5271_v40 = vsel %vm15928_vm10, %v15811_v16, %v5267_v46 }
 0x67b   : > { %v5345_v61 = vsub.f32 1.0, %v5344_v6  ;;  %v5484_v43 = vmul.f32 %v5483_v35, %v15707_v30  ;;  %7379 = vmatmul.f32.gmra.mxu2 %v7378_v31  ;;  %v15941_v45 = vsub.f32 %v15730_v9, %v15921_v59  ;;  %v5275_v39 = vor.u32 1.1754944e-38, %v5274_v5 }
 0x67c   : > { %v15943_v41 = vadd.f32 1.0, %v5501_v62  ;;  %v5562_v32 = vmul.f32 2.1237322e-06, %v15769_v33  ;;  %v15946_v17 = vadd.f32 %v7212_v24, %v7048_v56  ;;  %v5252_v49 = vmul.f32 %v5251_v47, %v15450_v12  ;;  %6957 = vmatmul.f32.gmra.mxu0 %v18377_v25  ;;  %v18409_v24 = vld [vmem:[#allocation152_spill] sm:$0xff] }
 0x67d   : > { %v15948_v37 = vpop.eup %9084  ;;  %vm5273_vm11 = vcmp.eq.f32.partialorder %v5272_v36, 8.507059e+37  ;;  %v5330_v16 = vmul.f32 %v5329_v27, %v15579_v20  ;;  %v17210_v31 = vand.u32 4294901760, %v15941_v45  ;;  %v15953_v46 = vadd.f32 1.0, %v8821_v29  ;;  %v18407_v36 = vld [vmem:[#allocation24_spill] sm:$0xff]  ;;  %v18408_v27 = vld [vmem:[#allocation90_spill] sm:$0xff] }
 0x67e   : > { %v5276_v9 = vsel %vm5273_vm11, %v5275_v39, %v5271_v40  ;;  %v5580_v6 = vadd.f32 0.4994258, %v5579_v54  ;;  %v5658_v35 = vadd.f32 0.112945676, %v5657_v23  ;;  %v5346_v5 = vmul.f32 %v15895_v18, %v5345_v61  ;;  %v15957_v60 = vpop.f32.mrf.mxu3 }
 0x67f   : > { %v5408_v62 = vmul.f32 %v5407_v42, %v15647_v15  ;;  %v5485_v14 = vadd.f32 0.0036580483, %v5484_v43  ;;  %18406 = vst [vmem:[#allocation44_spill] sm:$0xff] %v15957_v60  ;;  %v7385_v12 = vsub.f32 %v15941_v45, %v17210_v31  ;;  %v5424_v20 = vmul.f32 %v15948_v37, %v15888_v57  ;;  %v6894_v54 = vpop.f32.mrf.mxu0  ;;  %v7051_v23 = vpop.f32.mrf.mxu1 }
 0x680   : > { %9086 = vrcp.f32 %v15943_v41  ;;  %v5563_v47 = vadd.f32 0.00028619796, %v5562_v32  ;;  %v6644_v61 = vadd.f32 %v18408_v27, %v18407_v36  ;;  %v15968_v29 = vmul.f32 %v5276_v9, %v5252_v49  ;;  %7640 = vmatmul.f32.gmra.mxu3 %v15831_v21 }
 0x681   : > { %v5354_v42 = vand.u32 2147483648, %v15834_v28  ;;  %v7386_v25 = vand.u32 4294901760, %v7385_v12  ;;  %v15972_v56 = vand.u32 4294901760, %v15785_v2  ;;  %v5581_v40 = vmul.f32 %v5580_v6, %v15769_v33  ;;  %v7220_v31 = vpop.f32.mrf.mxu2 }
 0x682   : > { %7138 = vmatmul.f32.gmra.mxu1 %v18409_v24  ;;  %v5659_v43 = vmul.f32 %v5658_v35, %v15815_v22  ;;  %v6895_v39 = vadd.f32 %v6894_v54, %v6644_v61  ;;  %v7052_v32 = vadd.f32 %v7051_v23, %v6891_v3  ;;  %vm5349_vm12 = vweird.f32 %v15895_v18 }
 0x683   : > { %v5409_v49 = vadd.f32 0.18741608, %v5408_v62  ;;  %v5486_v9 = vmul.f32 %v5485_v14, %v15707_v30  ;;  %7387 = vmatmul.f32.gmra.mxu2 %v7386_v25  ;;  %v15982_v12 = vsub.f32 %v15785_v2, %v15972_v56  ;;  %v5347_v36 = vadd.f32 %v15895_v18, %v5346_v5 }
 0x684   : > { %v5425_v6 = vsub.f32 1.0, %v5424_v20  ;;  %v5564_v35 = vmul.f32 %v5563_v47, %v15769_v33  ;;  %v15986_v27 = vadd.f32 %v7220_v31, %v7052_v32  ;;  %v5331_v3 = vadd.f32 1.1283791, %v5330_v16  ;;  %6961 = vmatmul.f32.gmra.mxu0 %v18384_v53  ;;  %v18415_v32 = vld [vmem:[#allocation129_spill] sm:$0xff] }
 0x685   : > { %vm5348_vm13 = vweird.f32 %v15834_v28  ;;  %v5642_v61 = vmul.f32 2.1237322e-06, %v15815_v22  ;;  %v17211_v62 = vand.u32 4294901760, %v15982_v12  ;;  %v5352_v54 = vand.u32 2147483647, %v15834_v28 }
 0x686   : > { %18410 = vst [vmem:[#allocation119_spill] sm:$0xff] %v15986_v27  ;;  %v15991_v14 = vpop.eup %9086  ;;  %v5355_v2 = vor.u32 1.1754944e-38, %v5354_v42  ;;  %v15994_v23 = vadd.f32 1.0, %v5581_v40  ;;  %v5660_v5 = vadd.f32 0.4994258, %v5659_v43  ;;  %v8823_v20 = vclamps-f32 %v15968_v29, 1.0  ;;  %vm15999_vm14 = vmor %vm5348_vm13, %vm5349_vm12  ;;  %v16004_v25 = vpop.f32.mrf.mxu3 }
 0x687   : > { %v5410_v31 = vmul.f32 %v5409_v49, %v15647_v15  ;;  %v5487_v47 = vadd.f32 0.05243302, %v5486_v9  ;;  %18413 = vst [vmem:[#allocation60_spill] sm:$0xff] %v16004_v25  ;;  %v7393_v28 = vsub.f32 %v15982_v12, %v17211_v62  ;;  %v5351_v29 = vsel %vm15999_vm14, %v15895_v18, %v5347_v36  ;;  %v18414_v43 = vld [vmem:[#allocation29_spill] sm:$0xff]  ;;  %v6898_v9 = vpop.f32.mrf.mxu0  ;;  %v7055_v53 = vpop.f32.mrf.mxu1 }
 0x688   : > { %v5426_v42 = vmul.f32 %v15948_v37, %v5425_v6  ;;  %v5565_v40 = vadd.f32 0.0036580483, %v5564_v35  ;;  %v6650_v60 = vadd.f32 %v18415_v32, %v18414_v43  ;;  %v5504_v15 = vmul.f32 %v15991_v14, %v15943_v41  ;;  %v18416_v62 = vld [vmem:[#allocation153_spill] sm:$0xff]  ;;  %7644 = vmatmul.f32.gmra.mxu3 %v15882_v58 }
 0x689   : > { %v5643_v49 = vadd.f32 0.00028619796, %v5642_v61  ;;  %v7394_v25 = vand.u32 4294901760, %v7393_v28  ;;  %v16019_v27 = vand.u32 4294901760, %v15865_v0  ;;  %9088 = vrcp.f32 %v15994_v23  ;;  %v7228_v35 = vpop.f32.mrf.mxu2 }
 0x68a   : > { %7142 = vmatmul.f32.gmra.mxu1 %v18416_v62  ;;  %v5661_v18 = vmul.f32 %v5660_v5, %v15815_v22  ;;  %v6899_v36 = vadd.f32 %v6898_v9, %v6650_v60  ;;  %v7056_v6 = vadd.f32 %v7055_v53, %v6895_v39  ;;  %v5795_v61 = vmul.f32 %v15953_v46, %v15608_v38  ;;  %v18421_v9 = vld [vmem:[#allocation128_spill] sm:$0xff] }
 0x68b   : > { %vm5353_vm15 = vcmp.eq.f32.partialorder %v5352_v54, 8.507059e+37  ;;  %v5488_v16 = vmul.f32 %v5487_v47, %v15707_v30  ;;  %7395 = vmatmul.f32.gmra.mxu2 %v7394_v25  ;;  %v16030_v28 = vsub.f32 %v15865_v0, %v16019_v27  ;;  %v5332_v43 = vmul.f32 %v5331_v3, %v15536_v7 }
 0x68c   : > { %v5356_v32 = vsel %vm5353_vm15, %v5355_v2, %v5351_v29  ;;  %v5566_v60 = vmul.f32 %v5565_v40, %v15769_v33  ;;  %v16034_v39 = vadd.f32 %v7228_v35, %v7056_v6  ;;  %v5427_v5 = vadd.f32 %v15948_v37, %v5426_v42  ;;  %6965 = vmatmul.f32.gmra.mxu0 %v18388_v10 }
 0x68d   : > { %vm5429_vm0 = vweird.f32 %v15948_v37  ;;  %v5505_v38 = vsub.f32 1.0, %v5504_v15  ;;  %v17212_v46 = vand.u32 4294901760, %v16030_v28  ;;  %v5733_v54 = vadd.f32 1.0, %v8823_v20 }
 0x68e   : > { %v5411_v47 = vadd.f32 1.1283791, %v5410_v31  ;;  %v5644_v25 = vmul.f32 %v5643_v49, %v15815_v22  ;;  %v16040_v0 = vadd.f32 1.0, %v5661_v18  ;;  %vm5428_vm1 = vweird.f32 %v15888_v57  ;;  %v16044_v2 = vpop.f32.mrf.mxu3  ;;  %v18420_v49 = vld [vmem:[#allocation27_spill] sm:$0xff] }
 0x68f   : > { %v5434_v7 = vand.u32 2147483648, %v15888_v57  ;;  %v5489_v3 = vadd.f32 0.18741608, %v5488_v16  ;;  %18417 = vst [vmem:[#allocation105_spill] sm:$0xff] %v16044_v2  ;;  %v7401_v29 = vsub.f32 %v16030_v28, %v17212_v46  ;;  %v16050_v42 = vpop.eup %9088  ;;  %v5357_v20 = vmul.f32 %v5356_v32, %v5332_v43  ;;  %vm16054_vm2 = vmor %vm5428_vm1, %vm5429_vm0  ;;  %v6902_v6 = vpop.f32.mrf.mxu0  ;;  %v18422_v32 = vld [vmem:[#allocation154_spill] sm:$0xff] }
 0x690   : > { %v5432_v40 = vand.u32 2147483647, %v15888_v57  ;;  %v5567_v15 = vadd.f32 0.05243302, %v5566_v60  ;;  %v6656_v53 = vadd.f32 %v18421_v9, %v18420_v49  ;;  %v5431_v10 = vsel %vm16054_vm2, %v15948_v37, %v5427_v5  ;;  %v7059_v35 = vpop.f32.mrf.mxu1  ;;  %7648 = vmatmul.f32.gmra.mxu3 %v15921_v59 }
 0x691   : > { %v5506_v18 = vmul.f32 %v15991_v14, %v5505_v38  ;;  %v7402_v16 = vand.u32 4294901760, %v7401_v29  ;;  %v16065_v43 = vand.u32 4294901760, %v5795_v61  ;;  %v5645_v46 = vadd.f32 0.0036580483, %v5644_v25  ;;  %v7236_v2 = vpop.f32.mrf.mxu2 }
 0x692   : > { %7146 = vmatmul.f32.gmra.mxu1 %v18422_v32  ;;  %9090 = vrcp.f32 %v16040_v0  ;;  %v6903_v57 = vadd.f32 %v6902_v6, %v6656_v53  ;;  %v7060_v60 = vadd.f32 %v7059_v35, %v6899_v36  ;;  %v5435_v49 = vor.u32 1.1754944e-38, %v5434_v7 }
 0x693   : > { %v5490_v37 = vmul.f32 %v5489_v3, %v15707_v30  ;;  %v5584_v5 = vmul.f32 %v16050_v42, %v15994_v23  ;;  %7403 = vmatmul.f32.gmra.mxu2 %v7402_v16  ;;  %v16074_v38 = vsub.f32 %v5795_v61, %v16065_v43  ;;  %v5797_v29 = vmul.f32 %v5733_v54, %v15685_v13 }
 0x694   : > { %v3047_v25 = vmul.f32 0.5, %v18347_v48  ;;  %vm5433_vm3 = vcmp.eq.f32.partialorder %v5432_v40, 8.507059e+37  ;;  %v16078_v31 = vadd.f32 %v7236_v2, %v7060_v60  ;;  %v8825_v36 = vclamps-f32 %v5357_v20, 1.0  ;;  %6969 = vmatmul.f32.gmra.mxu0 %v18397_v19 }
 0x695   : > { %v5436_v9 = vsel %vm5433_vm3, %v5435_v49, %v5431_v10  ;;  %v5568_v7 = vmul.f32 %v5567_v15, %v15769_v33  ;;  %v17213_v30 = vand.u32 4294901760, %v16074_v38  ;;  %v5412_v3 = vmul.f32 %v5411_v47, %v15588_v26  ;;  %v18424_v15 = vld [vmem:[#allocation61_spill] sm:$0xff] }
 0x696   : > { %v5507_v53 = vadd.f32 %v15991_v14, %v5506_v18  ;;  %vm5509_vm4 = vweird.f32 %v15991_v14  ;;  %v5646_v61 = vmul.f32 %v5645_v46, %v15815_v22  ;;  %v5491_v13 = vadd.f32 1.1283791, %v5490_v37  ;;  %v16087_v2 = vpop.f32.mrf.mxu3  ;;  %v18423_v46 = vld [vmem:[#allocation31_spill] sm:$0xff] }
 0x697   : > { %v5514_v48 = vand.u32 2147483648, %v15943_v41  ;;  %v5585_v54 = vsub.f32 1.0, %v5584_v5  ;;  %v7409_v20 = vsub.f32 %v16074_v38, %v17213_v30  ;;  %v5437_v26 = vmul.f32 %v5436_v9, %v5412_v3  ;;  %v6906_v35 = vpop.f32.mrf.mxu0  ;;  %v18427_v37 = vld [vmem:[#allocation155_spill] sm:$0xff] }
 0x698   : > { %v16093_v40 = vpop.eup %9090  ;;  %vm5508_vm5 = vweird.f32 %v15943_v41  ;;  %v5512_v47 = vand.u32 2147483647, %v15943_v41  ;;  %v6662_v10 = vadd.f32 %v18424_v15, %v18423_v46  ;;  %v5735_v18 = vadd.f32 1.0, %v8825_v36  ;;  %v7063_v16 = vpop.f32.mrf.mxu1  ;;  %7652 = vmatmul.f32.gmra.mxu3 %v15972_v56 }
 0x699   : > { %vm16099_vm6 = vmor %vm5508_vm5, %vm5509_vm4  ;;  %v5569_v19 = vadd.f32 0.18741608, %v5568_v7  ;;  %v7410_v60 = vand.u32 4294901760, %v7409_v20  ;;  %v16103_v49 = vand.u32 4294901760, %v5797_v29  ;;  %v5647_v5 = vadd.f32 0.05243302, %v5646_v61  ;;  %v7244_v36 = vpop.f32.mrf.mxu2 }
 0x69a   : > { %7150 = vmatmul.f32.gmra.mxu1 %v18427_v37  ;;  %v5511_v41 = vsel %vm16099_vm6, %v15991_v14, %v5507_v53  ;;  %v6907_v9 = vadd.f32 %v6906_v35, %v6662_v10  ;;  %v7064_v3 = vadd.f32 %v7063_v16, %v6903_v57  ;;  %v5515_v46 = vor.u32 1.1754944e-38, %v5514_v48 }
 0x69b   : > { %v5586_v7 = vmul.f32 %v16050_v42, %v5585_v54  ;;  %v5664_v20 = vmul.f32 %v16093_v40, %v16040_v0  ;;  %7411 = vmatmul.f32.gmra.mxu2 %v7410_v60  ;;  %v16114_v15 = vsub.f32 %v5797_v29, %v16103_v49  ;;  %v8827_v30 = vclamps-f32 %v5437_v26, 1.0 }
 0x69c   : > { %vm5513_vm7 = vcmp.eq.f32.partialorder %v5512_v47, 8.507059e+37  ;;  %v16116_v6 = vadd.f32 %v7244_v36, %v7064_v3  ;;  %v5799_v14 = vmul.f32 %v5735_v18, %v3047_v25  ;;  %v5492_v61 = vmul.f32 %v5491_v13, %v15655_v51  ;;  %6973 = vmatmul.f32.gmra.mxu0 %v18403_v55  ;;  %v18429_v13 = vld [vmem:[#allocation142_spill] sm:$0xff] }
 0x69d   : > { %v5516_v53 = vsel %vm5513_vm7, %v5515_v46, %v5511_v41  ;;  %v17219_v57 = vand.u32 4294901760, %v16114_v15  ;;  %v5570_v48 = vmul.f32 %v5569_v19, %v15769_v33  ;;  %v5648_v54 = vmul.f32 %v5647_v5, %v15815_v22  ;;  %v18428_v33 = vld [vmem:[#allocation135_spill] sm:$0xff]  ;;  %v18430_v55 = vld [vmem:[#allocation26_spill] sm:$0xff] }
 0x69e   : > { %v5587_v10 = vadd.f32 %v16050_v42, %v5586_v7  ;;  %vm5589_vm8 = vweird.f32 %v16050_v42  ;;  %v5665_v29 = vsub.f32 1.0, %v5664_v20  ;;  %v16124_v35 = vpop.f32.mrf.mxu3  ;;  %v5737_v26 = vadd.f32 1.0, %v8827_v30 }
 0x69f   : > { %v7417_v25 = vsub.f32 %v16114_v15, %v17219_v57  ;;  %v5517_v47 = vmul.f32 %v5516_v53, %v5492_v61  ;;  %v5594_v51 = vand.u32 2147483648, %v15994_v23  ;;  %v6668_v18 = vadd.f32 %v18429_v13, %v18428_v33  ;;  %v6910_v16 = vpop.f32.mrf.mxu0 }
 0x6a0   : > { %vm5588_vm9 = vweird.f32 %v15994_v23  ;;  %v5592_v19 = vand.u32 2147483647, %v15994_v23  ;;  %v7067_v60 = vpop.f32.mrf.mxu1  ;;  %v16135_v5 = vand.u32 4294901760, %v5799_v14  ;;  %v3049_v3 = vmul.f32 0.5, %v18355_v63  ;;  %7656 = vmatmul.f32.gmra.mxu3 %v16019_v27 }
 0x6a1   : > { %v7418_v41 = vand.u32 4294901760, %v7417_v25  ;;  %v5571_v30 = vadd.f32 1.1283791, %v5570_v48  ;;  %vm16141_vm10 = vmor %vm5588_vm9, %vm5589_vm8  ;;  %v6911_v46 = vadd.f32 %v6910_v16, %v6668_v18  ;;  %v7068_v7 = vadd.f32 %v7067_v60, %v6907_v9  ;;  %v7252_v20 = vpop.f32.mrf.mxu2 }
 0x6a2   : > { %7154 = vmatmul.f32.gmra.mxu1 %v18430_v55  ;;  %v5591_v23 = vsel %vm16141_vm10, %v16050_v42, %v5587_v10  ;;  %v5649_v53 = vadd.f32 0.18741608, %v5648_v54  ;;  %v5666_v61 = vmul.f32 %v16093_v40, %v5665_v29  ;;  %v16151_v63 = vsub.f32 %v5799_v14, %v16135_v5 }
 0x6a3   : > { %7419 = vmatmul.f32.gmra.mxu2 %v7418_v41  ;;  %v8829_v48 = vclamps-f32 %v5517_v47, 1.0  ;;  %v5595_v25 = vor.u32 1.1754944e-38, %v5594_v51  ;;  %v16153_v33 = vadd.f32 %v7252_v20, %v7068_v7  ;;  %v5801_v13 = vmul.f32 %v5737_v26, %v3049_v3  ;;  %v18433_v26 = vld [vmem:[#allocation33_spill] sm:$0xff] }
 0x6a4   : > { %vm5593_vm11 = vcmp.eq.f32.partialorder %v5592_v19, 8.507059e+37  ;;  %v17218_v9 = vand.u32 4294901760, %v16151_v63  ;;  %v5572_v18 = vmul.f32 %v5571_v30, %v15718_v50  ;;  %v5650_v42 = vmul.f32 %v5649_v53, %v15815_v22  ;;  %6977 = vmatmul.f32.gmra.mxu0 %v18409_v24  ;;  %v18434_v47 = vld [vmem:[#allocation37_spill] sm:$0xff] }
 0x6a5   : > { %v5596_v16 = vsel %vm5593_vm11, %v5595_v25, %v5591_v23  ;;  %v5667_v54 = vadd.f32 %v16093_v40, %v5666_v61  ;;  %vm5669_vm12 = vweird.f32 %v16093_v40  ;;  %v5739_v29 = vadd.f32 1.0, %v8829_v48  ;;  %v18435_v24 = vld [vmem:[#allocation57_spill] sm:$0xff] }
 0x6a6   : > { %v16160_v10 = vpop.f32.mrf.mxu3  ;;  %v7425_v14 = vsub.f32 %v16151_v63, %v17218_v9  ;;  %vm5668_vm13 = vweird.f32 %v16040_v0  ;;  %v5674_v50 = vand.u32 2147483648, %v16040_v0  ;;  %v6674_v22 = vadd.f32 %v18434_v47, %v18433_v26  ;;  %v18456_v9 = vld [vmem:[#allocation49_spill] sm:$0xff] }
 0x6a7   : > { %v5597_v51 = vmul.f32 %v5596_v16, %v5572_v18  ;;  %v5672_v19 = vand.u32 2147483647, %v16040_v0  ;;  %v6914_v60 = vpop.f32.mrf.mxu0  ;;  %v16171_v30 = vand.u32 4294901760, %v5801_v13  ;;  %vm16176_vm14 = vmor %vm5668_vm13, %vm5669_vm12  ;;  %v3051_v0 = vmul.f32 0.5, %v18364_v1 }
 0x6a8   : > { %v7071_v41 = vpop.f32.mrf.mxu1  ;;  %v7426_v3 = vand.u32 4294901760, %v7425_v14  ;;  %v6915_v7 = vadd.f32 %v6914_v60, %v6674_v22  ;;  %7660 = vmatmul.f32.gmra.mxu3 %v16065_v43  ;;  %v5651_v53 = vadd.f32 1.1283791, %v5650_v42  ;;  %v5671_v61 = vsel %vm16176_vm14, %v16093_v40, %v5667_v54  ;;  %v18439_v54 = vld [vmem:[#allocation75_spill] sm:$0xff] }
 0x6a9   : > { %v7072_v20 = vadd.f32 %v7071_v41, %v6911_v46  ;;  %v7260_v23 = vpop.f32.mrf.mxu2  ;;  %v16186_v48 = vsub.f32 %v5801_v13, %v16171_v30  ;;  %v5675_v25 = vor.u32 1.1754944e-38, %v5674_v50  ;;  %v5803_v16 = vmul.f32 %v5739_v29, %v3051_v0  ;;  %v18438_v13 = vld [vmem:[#allocation144_spill] sm:$0xff] }
 0x6aa   : > { %7158 = vmatmul.f32.gmra.mxu1 %v18435_v24  ;;  %v8831_v14 = vclamps-f32 %v5597_v51, 1.0  ;;  %vm5673_vm15 = vcmp.eq.f32.partialorder %v5672_v19, 8.507059e+37  ;;  %v5652_v1 = vmul.f32 %v5651_v53, %v15772_v34  ;;  %v6680_v50 = vadd.f32 %v18439_v54, %v18438_v13  ;;  %v18440_v41 = vld [vmem:[#allocation72_spill] sm:$0xff] }
 0x6ab   : > { %7427 = vmatmul.f32.gmra.mxu2 %v7426_v3  ;;  %v16188_v18 = vadd.f32 %v7260_v23, %v7072_v20  ;;  %v17217_v46 = vand.u32 4294901760, %v16186_v48  ;;  %v5676_v26 = vsel %vm5673_vm15, %v5675_v25, %v5671_v61  ;;  %v16200_v60 = vand.u32 4294901760, %v5803_v16 }
 0x6ac   : > { %6981 = vmatmul.f32.gmra.mxu0 %v18416_v62  ;;  %v5741_v47 = vadd.f32 1.0, %v8831_v14  ;;  %v5677_v29 = vmul.f32 %v5676_v26, %v5652_v1  ;;  %v3053_v62 = vmul.f32 0.5, %v18375_v8  ;;  %v18441_v14 = vld [vmem:[#allocation94_spill] sm:$0xff]  ;;  %v18442_v8 = vld [vmem:[#allocation83_spill] sm:$0xff]  ;;  %v18457_v57 = vand.u32 4294901760, %v18456_v9 }
 0x6ad   : > { %v7433_v40 = vsub.f32 %v16186_v48, %v17217_v46  ;;  %v16206_v20 = vsub.f32 %v5803_v16, %v16200_v60  ;;  %v6686_v26 = vadd.f32 %v18442_v8, %v18441_v14 }
 0x6ae   : > { %v16192_v42 = vpop.f32.mrf.mxu3  ;;  %v5805_v0 = vmul.f32 %v5741_v47, %v3053_v62  ;;  %v8833_v53 = vclamps-f32 %v5677_v29, 1.0 }
 0x6af   : > { %v6918_v22 = vpop.f32.mrf.mxu0  ;;  %v7434_v19 = vand.u32 4294901760, %v7433_v40  ;;  %v17215_v61 = vand.u32 4294901760, %v16206_v20 }
 0x6b0   : > { %v7075_v51 = vpop.f32.mrf.mxu1  ;;  %v6919_v34 = vadd.f32 %v6918_v22, %v6680_v50  ;;  %7664 = vmatmul.f32.gmra.mxu3 %v16103_v49  ;;  %v5743_v1 = vadd.f32 1.0, %v8833_v53  ;;  %v16219_v54 = vand.u32 4294901760, %v5805_v0  ;;  %v18443_v50 = vld [vmem:[#allocation65_spill] sm:$0xff] }
 0x6b1   : > { %v7076_v3 = vadd.f32 %v7075_v51, %v6915_v7  ;;  %v7268_v36 = vpop.f32.mrf.mxu2  ;;  %v7441_v7 = vsub.f32 %v16206_v20, %v17215_v61  ;;  %v18444_v53 = vld [vmem:[#allocation133_spill] sm:$0xff] }
 0x6b2   : > { %7162 = vmatmul.f32.gmra.mxu1 %v18440_v41  ;;  %v16225_v51 = vsub.f32 %v5805_v0, %v16219_v54 }
 0x6b3   : > { %7435 = vmatmul.f32.gmra.mxu2 %v7434_v19  ;;  %v16208_v23 = vadd.f32 %v7268_v36, %v7076_v3  ;;  %v7442_v13 = vand.u32 4294901760, %v7441_v7  ;;  %v18445_v7 = vld [vmem:[#allocation91_spill] sm:$0xff] }
 0x6b4   : > { %6985 = vmatmul.f32.gmra.mxu0 %v18422_v32  ;;  %v3055_v32 = vmul.f32 0.5, %v18382_v11  ;;  %v17214_v36 = vand.u32 4294901760, %v16225_v51  ;;  %v6692_v11 = vadd.f32 %v18445_v7, %v18444_v53  ;;  %v18450_v53 = vld [vmem:[#allocation114_spill] sm:$0xff] }
 0x6b6   : > { %v16211_v25 = vpop.f32.mrf.mxu3  ;;  %v5807_v3 = vmul.f32 %v5743_v1, %v3055_v32 }
 0x6b7   : > { %v6922_v16 = vpop.f32.mrf.mxu0 }
 0x6b8   : > { %v7079_v40 = vpop.f32.mrf.mxu1  ;;  %v6923_v47 = vadd.f32 %v6922_v16, %v6686_v26  ;;  %7668 = vmatmul.f32.gmra.mxu3 %v16135_v5  ;;  %v16238_v26 = vand.u32 4294901760, %v5807_v3  ;;  %v18447_v16 = vld [vmem:[#allocation25_spill] sm:$0xff] }
 0x6b9   : > { %v7080_v29 = vadd.f32 %v7079_v40, %v6919_v34  ;;  %v7276_v22 = vpop.f32.mrf.mxu2  ;;  %v7449_v34 = vsub.f32 %v16225_v51, %v17214_v36 }
 0x6ba   : > { %7166 = vmatmul.f32.gmra.mxu1 %v18443_v50  ;;  %18446 = vst [vmem:[#allocation39_spill] sm:$0xff] %v16238_v26 }
 0x6bb   : > { %7443 = vmatmul.f32.gmra.mxu2 %v7442_v13  ;;  %v16227_v19 = vadd.f32 %v7276_v22, %v7080_v29  ;;  %v7450_v0 = vand.u32 4294901760, %v7449_v34 }
 0x6bc   : > { %6989 = vmatmul.f32.gmra.mxu0 %v18427_v37  ;;  %v16243_v37 = vsub.f32 %v5807_v3, %v16238_v26  ;;  %v18451_v3 = vld [vmem:[#allocation88_spill] sm:$0xff] }
 0x6be   : > { %v16230_v62 = vpop.f32.mrf.mxu3  ;;  %v17216_v22 = vand.u32 4294901760, %v16243_v37 }
 0x6bf   : > { %v6926_v14 = vpop.f32.mrf.mxu0 }
 0x6c0   : > { %v7083_v8 = vpop.f32.mrf.mxu1  ;;  %v6927_v1 = vadd.f32 %v6926_v14, %v6692_v11  ;;  %7672 = vmatmul.f32.gmra.mxu3 %v16171_v30  ;;  %v7457_v34 = vsub.f32 %v16243_v37, %v17216_v22  ;;  %v18454_v22 = vld [vmem:[#allocation151_spill] sm:$0xff] }
 0x6c1   : > { %v7084_v40 = vadd.f32 %v7083_v8, %v6923_v47  ;;  %v7284_v13 = vpop.f32.mrf.mxu2  ;;  %v18449_v47 = vld [vmem:[#allocation150_spill] sm:$0xff] }
 0x6c2   : > { %7170 = vmatmul.f32.gmra.mxu1 %v18447_v16  ;;  %v6698_v7 = vadd.f32 %v18450_v53, %v18449_v47  ;;  %v7458_v8 = vand.u32 4294901760, %v7457_v34  ;;  %v18455_v47 = vld [vmem:[#allocation36_spill] sm:$0xff] }
 0x6c3   : > { %7451 = vmatmul.f32.gmra.mxu2 %v7450_v0  ;;  %v16245_v29 = vadd.f32 %v7284_v13, %v7084_v40  ;;  %v18452_v0 = vand.u32 4294901760, %v18451_v3  ;;  %v6704_v53 = vadd.f32 %v18455_v47, %v18454_v22  ;;  %v18462_v22 = vld [vmem:[#allocation107_spill] sm:$0xff] }
 0x6c4   : > { %6993 = vmatmul.f32.gmra.mxu0 %v18430_v55 }
 0x6c6   : > { %v16248_v32 = vpop.f32.mrf.mxu3 }
 0x6c7   : > { %18448 = vst [vmem:[#allocation46_spill] sm:$0xff] %v16248_v32  ;;  %v6930_v11 = vpop.f32.mrf.mxu0  ;;  %v18470_v32 = vld [vmem:[#allocation149_spill] sm:$0xff] }
 0x6c8   : > { %v7087_v14 = vpop.f32.mrf.mxu1  ;;  %v6931_v40 = vadd.f32 %v6930_v11, %v6698_v7  ;;  %7676 = vmatmul.f32.gmra.mxu3 %v16200_v60 }
 0x6c9   : > { %v7088_v13 = vadd.f32 %v7087_v14, %v6927_v1  ;;  %v7292_v36 = vpop.f32.mrf.mxu2  ;;  %v18458_v14 = vld [vmem:[#allocation138_spill] sm:$0xff] }
 0x6ca   : > { %7932 = vmatmul.f32.vlgmr.msrb.gmra.mxu1 %v18452_v0 }
 0x6cb   : > { %7459 = vmatmul.f32.gmra.mxu2 %v7458_v8  ;;  %v16259_v55 = vadd.f32 %v7292_v36, %v7088_v13 }
 0x6cc   : > { %6997 = vmatmul.f32.gmra.mxu0 %v18435_v24  ;;  %v18461_v24 = vld [vmem:[#allocation86_spill] sm:$0xff] }
 0x6cd   : > { %v6710_v0 = vadd.f32 %v18462_v22, %v18461_v24  ;;  %v18469_v24 = vld [vmem:[#allocation137_spill] sm:$0xff] }
 0x6ce   : > { %v16261_v61 = vpop.f32.mrf.mxu3 }
 0x6cf   : > { %18453 = vst [vmem:[#allocation108_spill] sm:$0xff] %v16261_v61  ;;  %v6934_v46 = vpop.f32.mrf.mxu0  ;;  %v18463_v61 = vld [vmem:[#allocation41_spill] sm:$0xff] }
 0x6d0   : > { %v7091_v34 = vpop.f32.mrf.mxu1  ;;  %v6935_v7 = vadd.f32 %v6934_v46, %v6704_v53  ;;  %7680 = vmatmul.f32.gmra.mxu3 %v16219_v54 }
 0x6d1   : > { %v7092_v1 = vadd.f32 %v7091_v34, %v6931_v40  ;;  %v7300_v11 = vpop.f32.mrf.mxu2  ;;  %v18465_v34 = vld [vmem:[#allocation69_spill] sm:$0xff] }
 0x6d2   : > { %7938 = vmatmul.f32.gmra.mxu1 %v18457_v57  ;;  %v18464_v57 = vand.u32 4294901760, %v18463_v61 }
 0x6d3   : > { %8187 = vmatmul.f32.vlgmr.msrb.gmra.mxu2 %v18458_v14  ;;  %v16270_v36 = vadd.f32 %v7300_v11, %v7092_v1 }
 0x6d4   : > { %7001 = vmatmul.f32.gmra.mxu0 %v18440_v41  ;;  %v18468_v41 = vld [vmem:[#allocation156_spill] sm:$0xff] }
 0x6d5   : > { %18459 = vst [vmem:[#allocation121_spill] sm:$0xff] %v16270_v36  ;;  %v6716_v22 = vadd.f32 %v18469_v24, %v18468_v41  ;;  %v18476_v41 = vld [vmem:[#allocation53_spill] sm:$0xff] }
 0x6d6   : > { %v16272_v8 = vpop.f32.mrf.mxu3 }
 0x6d7   : > { %18460 = vst [vmem:[#allocation116_spill] sm:$0xff] %v16272_v8  ;;  %v6938_v13 = vpop.f32.mrf.mxu0 }
 0x6d8   : > { %v7095_v47 = vpop.f32.mrf.mxu1  ;;  %v6939_v46 = vadd.f32 %v6938_v13, %v6710_v0  ;;  %7684 = vmatmul.f32.gmra.mxu3 %v16238_v26  ;;  %v18477_v26 = vld [vmem:[#allocation28_spill] sm:$0xff] }
 0x6d9   : > { %v7096_v40 = vadd.f32 %v7095_v47, %v6935_v7  ;;  %v7308_v53 = vpop.f32.mrf.mxu2  ;;  %v18472_v47 = vld [vmem:[#allocation79_spill] sm:$0xff] }
 0x6da   : > { %7944 = vmatmul.f32.gmra.mxu1 %v18464_v57  ;;  %v18471_v57 = vand.u32 4294901760, %v18470_v32 }
 0x6db   : > { %8191 = vmatmul.f32.gmra.mxu2 %v18465_v34  ;;  %v16281_v1 = vadd.f32 %v7308_v53, %v7096_v40 }
 0x6dc   : > { %7005 = vmatmul.f32.gmra.mxu0 %v18443_v50  ;;  %v18475_v50 = vld [vmem:[#allocation45_spill] sm:$0xff] }
 0x6dd   : > { %18466 = vst [vmem:[#allocation115_spill] sm:$0xff] %v16281_v1  ;;  %v6722_v24 = vadd.f32 %v18476_v41, %v18475_v50 }
 0x6de   : > { %v16283_v11 = vpop.f32.mrf.mxu3 }
 0x6df   : > { %18467 = vst [vmem:[#allocation118_spill] sm:$0xff] %v16283_v11  ;;  %v6942_v8 = vpop.f32.mrf.mxu0 }
 0x6e0   : > { %v7099_v36 = vpop.f32.mrf.mxu1  ;;  %v6943_v7 = vadd.f32 %v6942_v8, %v6716_v22  ;;  %8348 = vmatmul.f32.vlgmr.msrb.gmra.mxu3 %v18458_v14  ;;  %v18479_v14 = vld [vmem:[#allocation124_spill] sm:$0xff] }
 0x6e1   : > { %v7100_v0 = vadd.f32 %v7099_v36, %v6939_v46  ;;  %v7316_v13 = vpop.f32.mrf.mxu2 }
 0x6e2   : > { %7950 = vmatmul.f32.gmra.mxu1 %v18471_v57  ;;  %v18478_v57 = vand.u32 4294901760, %v18477_v26 }
 0x6e3   : > { %8195 = vmatmul.f32.gmra.mxu2 %v18472_v47  ;;  %v16292_v40 = vadd.f32 %v7316_v13, %v7100_v0  ;;  %v18483_v13 = vld [vmem:[#allocation100_spill] sm:$0xff] }
 0x6e4   : > { %7009 = vmatmul.f32.gmra.mxu0 %v18447_v16  ;;  %v18482_v16 = vld [vmem:[#allocation106_spill] sm:$0xff] }
 0x6e5   : > { %18473 = vst [vmem:[#allocation43_spill] sm:$0xff] %v16292_v40  ;;  %v6728_v50 = vadd.f32 %v18483_v13, %v18482_v16  ;;  %v18484_v40 = vld [vmem:[#allocation102_spill] sm:$0xff] }
 0x6e6   : > { %v16294_v53 = vpop.f32.mrf.mxu3 }
 0x6e7   : > { %18474 = vst [vmem:[#allocation120_spill] sm:$0xff] %v16294_v53  ;;  %v6946_v11 = vpop.f32.mrf.mxu0 }
 0x6e8   : > { %v7103_v1 = vpop.f32.mrf.mxu1  ;;  %v6947_v36 = vadd.f32 %v6946_v11, %v6722_v24  ;;  %8352 = vmatmul.f32.gmra.mxu3 %v18465_v34  ;;  %v18486_v34 = vld [vmem:[#allocation123_spill] sm:$0xff] }
 0x6e9   : > { %v7104_v8 = vadd.f32 %v7103_v1, %v6943_v7  ;;  %v7324_v46 = vpop.f32.mrf.mxu2 }
 0x6ea   : > { %7956 = vmatmul.f32.gmra.mxu1 %v18478_v57  ;;  %v18485_v57 = vand.u32 4294901760, %v18484_v40 }
 0x6eb   : > { %8199 = vmatmul.f32.gmra.mxu2 %v18479_v14  ;;  %v16303_v22 = vadd.f32 %v7324_v46, %v7104_v8  ;;  %v18490_v46 = vld [vmem:[#allocation63_spill] sm:$0xff] }
 0x6ec   : > { %7738 = vmatmul.f32.vlgmr.msrb.gmra.mxu0 %v18451_v3  ;;  %v18489_v3 = vld [vmem:[#allocation78_spill] sm:$0xff] }
 0x6ed   : > { %18480 = vst [vmem:[#allocation56_spill] sm:$0xff] %v16303_v22  ;;  %v6734_v16 = vadd.f32 %v18490_v46, %v18489_v3  ;;  %v18491_v22 = vld [vmem:[#allocation127_spill] sm:$0xff] }
 0x6ee   : > { %v16305_v0 = vpop.f32.mrf.mxu3 }
 0x6ef   : > { %18481 = vst [vmem:[#allocation126_spill] sm:$0xff] %v16305_v0  ;;  %v6950_v41 = vpop.f32.mrf.mxu0 }
 0x6f0   : > { %v7107_v53 = vpop.f32.mrf.mxu1  ;;  %v6951_v1 = vadd.f32 %v6950_v41, %v6728_v50  ;;  %8356 = vmatmul.f32.gmra.mxu3 %v18472_v47  ;;  %v18493_v47 = vld [vmem:[#allocation51_spill] sm:$0xff] }
 0x6f1   : > { %v7108_v11 = vadd.f32 %v7107_v53, %v6947_v36  ;;  %v7332_v7 = vpop.f32.mrf.mxu2 }
 0x6f2   : > { %7962 = vmatmul.f32.gmra.mxu1 %v18485_v57  ;;  %v18492_v57 = vand.u32 4294901760, %v18491_v22 }
 0x6f3   : > { %8203 = vmatmul.f32.gmra.mxu2 %v18486_v34  ;;  %v16314_v24 = vadd.f32 %v7332_v7, %v7108_v11  ;;  %v18497_v7 = vld [vmem:[#allocation87_spill] sm:$0xff] }
 0x6f4   : > { %7743 = vmatmul.f32.gmra.mxu0 %v18456_v9  ;;  %v18496_v9 = vld [vmem:[#allocation77_spill] sm:$0xff] }
 0x6f5   : > { %18487 = vst [vmem:[#allocation70_spill] sm:$0xff] %v16314_v24  ;;  %v6740_v3 = vadd.f32 %v18497_v7, %v18496_v9  ;;  %v18498_v24 = vld [vmem:[#allocation71_spill] sm:$0xff] }
 0x6f6   : > { %v16316_v8 = vpop.f32.mrf.mxu3 }
 0x6f7   : > { %18488 = vst [vmem:[#allocation130_spill] sm:$0xff] %v16316_v8  ;;  %v6954_v13 = vpop.f32.mrf.mxu0 }
 0x6f8   : > { %v7111_v0 = vpop.f32.mrf.mxu1  ;;  %v6955_v53 = vadd.f32 %v6954_v13, %v6734_v16  ;;  %8360 = vmatmul.f32.gmra.mxu3 %v18479_v14  ;;  %v18500_v14 = vld [vmem:[#allocation50_spill] sm:$0xff] }
 0x6f9   : > { %v7112_v36 = vadd.f32 %v7111_v0, %v6951_v1  ;;  %v7340_v50 = vpop.f32.mrf.mxu2 }
 0x6fa   : > { %7968 = vmatmul.f32.gmra.mxu1 %v18492_v57  ;;  %v18499_v57 = vand.u32 4294901760, %v18498_v24 }
 0x6fb   : > { %8207 = vmatmul.f32.gmra.mxu2 %v18493_v47  ;;  %v16325_v41 = vadd.f32 %v7340_v50, %v7112_v36  ;;  %v18504_v50 = vld [vmem:[#allocation110_spill] sm:$0xff] }
 0x6fc   : > { %7748 = vmatmul.f32.gmra.mxu0 %v18463_v61  ;;  %v18503_v61 = vld [vmem:[#allocation35_spill] sm:$0xff] }
 0x6fd   : > { %18494 = vst [vmem:[#allocation82_spill] sm:$0xff] %v16325_v41  ;;  %v6746_v9 = vadd.f32 %v18504_v50, %v18503_v61  ;;  %v18505_v41 = vld [vmem:[#allocation73_spill] sm:$0xff] }
 0x6fe   : > { %v16327_v11 = vpop.f32.mrf.mxu3 }
 0x6ff   : > { %18495 = vst [vmem:[#allocation68_spill] sm:$0xff] %v16327_v11  ;;  %v6958_v46 = vpop.f32.mrf.mxu0 }
 0x700   : > { %v7115_v8 = vpop.f32.mrf.mxu1  ;;  %v6959_v0 = vadd.f32 %v6958_v46, %v6740_v3  ;;  %8364 = vmatmul.f32.gmra.mxu3 %v18486_v34  ;;  %v18507_v34 = vld [vmem:[#allocation117_spill] sm:$0xff] }
 0x701   : > { %v7116_v1 = vadd.f32 %v7115_v8, %v6955_v53  ;;  %v7348_v16 = vpop.f32.mrf.mxu2 }
 0x702   : > { %7974 = vmatmul.f32.gmra.mxu1 %v18499_v57  ;;  %v18506_v57 = vand.u32 4294901760, %v18505_v41 }
 0x703   : > { %8211 = vmatmul.f32.gmra.mxu2 %v18500_v14  ;;  %v16336_v13 = vadd.f32 %v7348_v16, %v7116_v1  ;;  %v18511_v16 = vld [vmem:[#allocation74_spill] sm:$0xff] }
 0x704   : > { %7753 = vmatmul.f32.gmra.mxu0 %v18470_v32  ;;  %v18510_v32 = vld [vmem:[#allocation34_spill] sm:$0xff] }
 0x705   : > { %18501 = vst [vmem:[#allocation58_spill] sm:$0xff] %v16336_v13  ;;  %v6752_v61 = vadd.f32 %v18511_v16, %v18510_v32  ;;  %v18512_v13 = vld [vmem:[#allocation131_spill] sm:$0xff] }
 0x706   : > { %v16338_v36 = vpop.f32.mrf.mxu3 }
 0x707   : > { %18502 = vst [vmem:[#allocation140_spill] sm:$0xff] %v16338_v36  ;;  %v6962_v7 = vpop.f32.mrf.mxu0 }
 0x708   : > { %v7119_v11 = vpop.f32.mrf.mxu1  ;;  %v6963_v8 = vadd.f32 %v6962_v7, %v6746_v9  ;;  %8368 = vmatmul.f32.gmra.mxu3 %v18493_v47  ;;  %v18514_v47 = vld [vmem:[#allocation132_spill] sm:$0xff] }
 0x709   : > { %v7120_v53 = vadd.f32 %v7119_v11, %v6959_v0  ;;  %v7356_v3 = vpop.f32.mrf.mxu2 }
 0x70a   : > { %7980 = vmatmul.f32.gmra.mxu1 %v18506_v57  ;;  %v18513_v57 = vand.u32 4294901760, %v18512_v13 }
 0x70b   : > { %8215 = vmatmul.f32.gmra.mxu2 %v18507_v34  ;;  %v16347_v46 = vadd.f32 %v7356_v3, %v7120_v53  ;;  %v18518_v3 = vld [vmem:[#allocation52_spill] sm:$0xff] }
 0x70c   : > { %7758 = vmatmul.f32.gmra.mxu0 %v18477_v26  ;;  %v18517_v26 = vld [vmem:[#allocation32_spill] sm:$0xff] }
 0x70d   : > { %18508 = vst [vmem:[#allocation99_spill] sm:$0xff] %v16347_v46  ;;  %v6758_v32 = vadd.f32 %v18518_v3, %v18517_v26  ;;  %v18519_v46 = vld [vmem:[#allocation30_spill] sm:$0xff] }
 0x70e   : > { %v16349_v1 = vpop.f32.mrf.mxu3 }
 0x70f   : > { %18509 = vst [vmem:[#allocation55_spill] sm:$0xff] %v16349_v1  ;;  %v6966_v50 = vpop.f32.mrf.mxu0 }
 0x710   : > { %v7123_v36 = vpop.f32.mrf.mxu1  ;;  %v6967_v11 = vadd.f32 %v6966_v50, %v6752_v61  ;;  %8372 = vmatmul.f32.gmra.mxu3 %v18500_v14  ;;  %v18521_v14 = vld [vmem:[#allocation97_spill] sm:$0xff] }
 0x711   : > { %v7124_v0 = vadd.f32 %v7123_v36, %v6963_v8  ;;  %v7364_v9 = vpop.f32.mrf.mxu2 }
 0x712   : > { %7986 = vmatmul.f32.gmra.mxu1 %v18513_v57  ;;  %v18520_v57 = vand.u32 4294901760, %v18519_v46 }
 0x713   : > { %8219 = vmatmul.f32.gmra.mxu2 %v18514_v47  ;;  %v16358_v7 = vadd.f32 %v7364_v9, %v7124_v0  ;;  %v18525_v9 = vld [vmem:[#allocation54_spill] sm:$0xff] }
 0x714   : > { %7763 = vmatmul.f32.gmra.mxu0 %v18484_v40  ;;  %v18524_v40 = vld [vmem:[#allocation42_spill] sm:$0xff] }
 0x715   : > { %18515 = vst [vmem:[#allocation145_spill] sm:$0xff] %v16358_v7  ;;  %v6764_v26 = vadd.f32 %v18525_v9, %v18524_v40  ;;  %v18526_v7 = vld [vmem:[#allocation96_spill] sm:$0xff] }
 0x716   : > { %v16360_v53 = vpop.f32.mrf.mxu3 }
 0x717   : > { %18516 = vst [vmem:[#allocation24_spill] sm:$0xff] %v16360_v53  ;;  %v6970_v16 = vpop.f32.mrf.mxu0 }
 0x718   : > { %v7127_v1 = vpop.f32.mrf.mxu1  ;;  %v6971_v36 = vadd.f32 %v6970_v16, %v6758_v32  ;;  %8376 = vmatmul.f32.gmra.mxu3 %v18507_v34  ;;  %v18528_v34 = vld [vmem:[#allocation95_spill] sm:$0xff] }
 0x719   : > { %v7128_v8 = vadd.f32 %v7127_v1, %v6967_v11  ;;  %v7372_v61 = vpop.f32.mrf.mxu2 }
 0x71a   : > { %7992 = vmatmul.f32.gmra.mxu1 %v18520_v57  ;;  %v18527_v57 = vand.u32 4294901760, %v18526_v7 }
 0x71b   : > { %8223 = vmatmul.f32.gmra.mxu2 %v18521_v14  ;;  %v16369_v50 = vadd.f32 %v7372_v61, %v7128_v8  ;;  %v18532_v61 = vld [vmem:[#allocation48_spill] sm:$0xff] }
 0x71c   : > { %7768 = vmatmul.f32.gmra.mxu0 %v18491_v22  ;;  %v18531_v22 = vld [vmem:[#allocation139_spill] sm:$0xff] }
 0x71d   : > { %18522 = vst [vmem:[#allocation90_spill] sm:$0xff] %v16369_v50  ;;  %v6770_v40 = vadd.f32 %v18532_v61, %v18531_v22  ;;  %v18533_v50 = vld [vmem:[#allocation111_spill] sm:$0xff] }
 0x71e   : > { %v16371_v0 = vpop.f32.mrf.mxu3 }
 0x71f   : > { %18523 = vst [vmem:[#allocation152_spill] sm:$0xff] %v16371_v0  ;;  %v6974_v3 = vpop.f32.mrf.mxu0 }
 0x720   : > { %v7131_v53 = vpop.f32.mrf.mxu1  ;;  %v6975_v1 = vadd.f32 %v6974_v3, %v6764_v26  ;;  %8380 = vmatmul.f32.gmra.mxu3 %v18514_v47  ;;  %v18535_v47 = vld [vmem:[#allocation84_spill] sm:$0xff] }
 0x721   : > { %v7132_v11 = vadd.f32 %v7131_v53, %v6971_v36  ;;  %v7380_v32 = vpop.f32.mrf.mxu2 }
 0x722   : > { %7998 = vmatmul.f32.gmra.mxu1 %v18527_v57  ;;  %v18534_v57 = vand.u32 4294901760, %v18533_v50 }
 0x723   : > { %8227 = vmatmul.f32.gmra.mxu2 %v18528_v34  ;;  %v16380_v16 = vadd.f32 %v7380_v32, %v7132_v11  ;;  %v18539_v32 = vld [vmem:[#allocation40_spill] sm:$0xff] }
 0x724   : > { %7773 = vmatmul.f32.gmra.mxu0 %v18498_v24  ;;  %v18538_v24 = vld [vmem:[#allocation112_spill] sm:$0xff] }
 0x725   : > { %18529 = vst [vmem:[#allocation29_spill] sm:$0xff] %v16380_v16  ;;  %v6776_v22 = vadd.f32 %v18539_v32, %v18538_v24  ;;  %v18540_v16 = vld [vmem:[#allocation64_spill] sm:$0xff] }
 0x726   : > { %v16382_v8 = vpop.f32.mrf.mxu3 }
 0x727   : > { %18530 = vst [vmem:[#allocation129_spill] sm:$0xff] %v16382_v8  ;;  %v6978_v9 = vpop.f32.mrf.mxu0 }
 0x728   : > { %v7135_v0 = vpop.f32.mrf.mxu1  ;;  %v6979_v53 = vadd.f32 %v6978_v9, %v6770_v40  ;;  %8384 = vmatmul.f32.gmra.mxu3 %v18521_v14  ;;  %v18542_v14 = vld [vmem:[#allocation103_spill] sm:$0xff] }
 0x729   : > { %v7136_v36 = vadd.f32 %v7135_v0, %v6975_v1  ;;  %v7388_v26 = vpop.f32.mrf.mxu2 }
 0x72a   : > { %8004 = vmatmul.f32.gmra.mxu1 %v18534_v57  ;;  %v18541_v57 = vand.u32 4294901760, %v18540_v16 }
 0x72b   : > { %8231 = vmatmul.f32.gmra.mxu2 %v18535_v47  ;;  %v16391_v3 = vadd.f32 %v7388_v26, %v7136_v36  ;;  %v18546_v26 = vld [vmem:[#allocation104_spill] sm:$0xff] }
 0x72c   : > { %7778 = vmatmul.f32.gmra.mxu0 %v18505_v41  ;;  %v18545_v41 = vld [vmem:[#allocation98_spill] sm:$0xff] }
 0x72d   : > { %18536 = vst [vmem:[#allocation153_spill] sm:$0xff] %v16391_v3  ;;  %v6782_v24 = vadd.f32 %v18546_v26, %v18545_v41  ;;  %v18547_v3 = vld [vmem:[#allocation113_spill] sm:$0xff] }
 0x72e   : > { %v16393_v11 = vpop.f32.mrf.mxu3 }
 0x72f   : > { %18537 = vst [vmem:[#allocation27_spill] sm:$0xff] %v16393_v11  ;;  %v6982_v61 = vpop.f32.mrf.mxu0 }
 0x730   : > { %v7139_v8 = vpop.f32.mrf.mxu1  ;;  %v6983_v0 = vadd.f32 %v6982_v61, %v6776_v22  ;;  %8388 = vmatmul.f32.gmra.mxu3 %v18528_v34  ;;  %v18549_v34 = vld [vmem:[#allocation62_spill] sm:$0xff] }
 0x731   : > { %v7140_v1 = vadd.f32 %v7139_v8, %v6979_v53  ;;  %v7396_v40 = vpop.f32.mrf.mxu2 }
 0x732   : > { %8010 = vmatmul.f32.gmra.mxu1 %v18541_v57  ;;  %v18548_v57 = vand.u32 4294901760, %v18547_v3 }
 0x733   : > { %8235 = vmatmul.f32.gmra.mxu2 %v18542_v14  ;;  %v16402_v9 = vadd.f32 %v7396_v40, %v7140_v1  ;;  %v18553_v40 = vld [vmem:[#allocation125_spill] sm:$0xff] }
 0x734   : > { %7783 = vmatmul.f32.gmra.mxu0 %v18512_v13  ;;  %v18552_v13 = vld [vmem:[#allocation141_spill] sm:$0xff] }
 0x735   : > { %18543 = vst [vmem:[#allocation128_spill] sm:$0xff] %v16402_v9  ;;  %v6788_v41 = vadd.f32 %v18553_v40, %v18552_v13  ;;  %v18554_v9 = vld [vmem:[#allocation134_spill] sm:$0xff] }
 0x736   : > { %v16404_v36 = vpop.f32.mrf.mxu3 }
 0x737   : > { %18544 = vst [vmem:[#allocation154_spill] sm:$0xff] %v16404_v36  ;;  %v6986_v32 = vpop.f32.mrf.mxu0 }
 0x738   : > { %v7143_v11 = vpop.f32.mrf.mxu1  ;;  %v6987_v8 = vadd.f32 %v6986_v32, %v6782_v24  ;;  %8392 = vmatmul.f32.gmra.mxu3 %v18535_v47  ;;  %v18556_v47 = vld [vmem:[#allocation109_spill] sm:$0xff] }
 0x739   : > { %v7144_v53 = vadd.f32 %v7143_v11, %v6983_v0  ;;  %v7404_v22 = vpop.f32.mrf.mxu2 }
 0x73a   : > { %8016 = vmatmul.f32.gmra.mxu1 %v18548_v57  ;;  %v18555_v57 = vand.u32 4294901760, %v18554_v9 }
 0x73b   : > { %8239 = vmatmul.f32.gmra.mxu2 %v18549_v34  ;;  %v16413_v61 = vadd.f32 %v7404_v22, %v7144_v53  ;;  %v18560_v22 = vld [vmem:[#allocation136_spill] sm:$0xff] }
 0x73c   : > { %7788 = vmatmul.f32.gmra.mxu0 %v18519_v46  ;;  %v18559_v46 = vld [vmem:[#allocation122_spill] sm:$0xff] }
 0x73d   : > { %18550 = vst [vmem:[#allocation31_spill] sm:$0xff] %v16413_v61  ;;  %v6794_v13 = vadd.f32 %v18560_v22, %v18559_v46  ;;  %v18561_v61 = vld [vmem:[#allocation59_spill] sm:$0xff] }
 0x73e   : > { %v16415_v1 = vpop.f32.mrf.mxu3 }
 0x73f   : > { %18551 = vst [vmem:[#allocation61_spill] sm:$0xff] %v16415_v1  ;;  %v6990_v26 = vpop.f32.mrf.mxu0 }
 0x740   : > { %v7147_v36 = vpop.f32.mrf.mxu1  ;;  %v6991_v11 = vadd.f32 %v6990_v26, %v6788_v41  ;;  %8396 = vmatmul.f32.gmra.mxu3 %v18542_v14  ;;  %v18563_v14 = vld [vmem:[#allocation147_spill] sm:$0xff] }
 0x741   : > { %v7148_v0 = vadd.f32 %v7147_v36, %v6987_v8  ;;  %v7412_v24 = vpop.f32.mrf.mxu2 }
 0x742   : > { %8022 = vmatmul.f32.gmra.mxu1 %v18555_v57  ;;  %v18562_v57 = vand.u32 4294901760, %v18561_v61 }
 0x743   : > { %8243 = vmatmul.f32.gmra.mxu2 %v18556_v47  ;;  %v16424_v32 = vadd.f32 %v7412_v24, %v7148_v0  ;;  %v18567_v24 = vld [vmem:[#allocation146_spill] sm:$0xff] }
 0x744   : > { %7793 = vmatmul.f32.gmra.mxu0 %v18526_v7  ;;  %v18566_v7 = vld [vmem:[#allocation93_spill] sm:$0xff] }
 0x745   : > { %18557 = vst [vmem:[#allocation155_spill] sm:$0xff] %v16424_v32  ;;  %v6800_v46 = vadd.f32 %v18567_v24, %v18566_v7  ;;  %v18568_v32 = vld [vmem:[#allocation76_spill] sm:$0xff] }
 0x746   : > { %v16426_v53 = vpop.f32.mrf.mxu3 }
 0x747   : > { %18558 = vst [vmem:[#allocation135_spill] sm:$0xff] %v16426_v53  ;;  %v6994_v40 = vpop.f32.mrf.mxu0 }
 0x748   : > { %v7151_v1 = vpop.f32.mrf.mxu1  ;;  %v6995_v36 = vadd.f32 %v6994_v40, %v6794_v13  ;;  %8400 = vmatmul.f32.gmra.mxu3 %v18549_v34  ;;  %v18570_v34 = vld [vmem:[#allocation66_spill] sm:$0xff] }
 0x749   : > { %v7152_v8 = vadd.f32 %v7151_v1, %v6991_v11  ;;  %v7420_v41 = vpop.f32.mrf.mxu2 }
 0x74a   : > { %8028 = vmatmul.f32.gmra.mxu1 %v18562_v57  ;;  %v18569_v57 = vand.u32 4294901760, %v18568_v32 }
 0x74b   : > { %8247 = vmatmul.f32.gmra.mxu2 %v18563_v14  ;;  %v16435_v26 = vadd.f32 %v7420_v41, %v7152_v8  ;;  %v18573_v41 = vld [vmem:[#allocation143_spill] sm:$0xff] }
 0x74c   : > { %7798 = vmatmul.f32.gmra.mxu0 %v18533_v50  ;;  %v18572_v50 = vld [vmem:[#allocation81_spill] sm:$0xff] }
 0x74d   : > { %18564 = vst [vmem:[#allocation142_spill] sm:$0xff] %v16435_v26  ;;  %v6806_v7 = vadd.f32 %v18573_v41, %v18572_v50  ;;  %v18574_v26 = vld [vmem:[#allocation47_spill] sm:$0xff] }
 0x74e   : > { %v16437_v0 = vpop.f32.mrf.mxu3 }
 0x74f   : > { %18565 = vst [vmem:[#allocation26_spill] sm:$0xff] %v16437_v0  ;;  %v6998_v22 = vpop.f32.mrf.mxu0 }
 0x750   : > { %v7155_v53 = vpop.f32.mrf.mxu1  ;;  %v6999_v1 = vadd.f32 %v6998_v22, %v6800_v46  ;;  %8404 = vmatmul.f32.gmra.mxu3 %v18556_v47  ;;  %v18576_v47 = vld [vmem:[#allocation38_spill] sm:$0xff] }
 0x751   : > { %v7156_v11 = vadd.f32 %v7155_v53, %v6995_v36  ;;  %v7428_v13 = vpop.f32.mrf.mxu2 }
 0x752   : > { %8034 = vmatmul.f32.gmra.mxu1 %v18569_v57  ;;  %v18575_v57 = vand.u32 4294901760, %v18574_v26 }
 0x753   : > { %8251 = vmatmul.f32.gmra.mxu2 %v18570_v34  ;;  %v16446_v40 = vadd.f32 %v7428_v13, %v7156_v11 }
 0x754   : > { %7803 = vmatmul.f32.gmra.mxu0 %v18540_v16  ;;  %v18578_v16 = vld [vmem:[#allocation148_spill] sm:$0xff] }
 0x755   : > { %v6812_v13 = vadd.f32 %v18578_v16, %v15856_v52  ;;  %v18582_v52 = vld [vmem:[#allocation80_spill] sm:$0xff] }
 0x756   : > { %v16448_v8 = vpop.f32.mrf.mxu3 }
 0x757   : > { %18571 = vst [vmem:[#allocation33_spill] sm:$0xff] %v16448_v8  ;;  %v7002_v24 = vpop.f32.mrf.mxu0  ;;  %v18579_v8 = vld [vmem:[#allocation101_spill] sm:$0xff] }
 0x758   : > { %v7159_v0 = vpop.f32.mrf.mxu1  ;;  %v7003_v53 = vadd.f32 %v7002_v24, %v6806_v7  ;;  %8408 = vmatmul.f32.gmra.mxu3 %v18563_v14 }
 0x759   : > { %v7160_v36 = vadd.f32 %v7159_v0, %v6999_v1  ;;  %v7436_v46 = vpop.f32.mrf.mxu2 }
 0x75a   : > { %8040 = vmatmul.f32.gmra.mxu1 %v18575_v57  ;;  %v18580_v57 = vand.u32 4294901760, %v18579_v8 }
 0x75b   : > { %8255 = vmatmul.f32.gmra.mxu2 %v18576_v47  ;;  %v16457_v22 = vadd.f32 %v7436_v46, %v7160_v36 }
 0x75c   : > { %7808 = vmatmul.f32.gmra.mxu0 %v18547_v3  ;;  %v18581_v3 = vld [vmem:[#allocation92_spill] sm:$0xff] }
 0x75d   : > { %v6818_v36 = vadd.f32 %v18582_v52, %v18581_v3 }
 0x75e   : > { %v16459_v11 = vpop.f32.mrf.mxu3 }
 0x75f   : > { %18577 = vst [vmem:[#allocation37_spill] sm:$0xff] %v16459_v11  ;;  %v7006_v50 = vpop.f32.mrf.mxu0  ;;  %v18583_v11 = vld [vmem:[#allocation67_spill] sm:$0xff] }
 0x760   : > { %v7163_v41 = vpop.f32.mrf.mxu1  ;;  %v7007_v0 = vadd.f32 %v7006_v50, %v6812_v13  ;;  %8412 = vmatmul.f32.gmra.mxu3 %v18570_v34 }
 0x761   : > { %v7164_v1 = vadd.f32 %v7163_v41, %v7003_v53  ;;  %v7444_v7 = vpop.f32.mrf.mxu2 }
 0x762   : > { %8046 = vmatmul.f32.gmra.mxu1 %v18580_v57  ;;  %v18584_v57 = vand.u32 4294901760, %v18583_v11 }
 0x763   : > { %8259 = vmatmul.f32.gmra.mxu2 %v15739_v44  ;;  %v16468_v14 = vadd.f32 %v7444_v7, %v7164_v1  ;;  %v18586_v7 = vld [vmem:[#allocation85_spill] sm:$0xff] }
 0x764   : > { %7813 = vmatmul.f32.gmra.mxu0 %v18554_v9  ;;  %v18587_v3 = vand.u32 4294901760, %v18586_v7 }
 0x766   : > { %v16470_v24 = vpop.f32.mrf.mxu3 }
 0x767   : > { %v7010_v46 = vpop.f32.mrf.mxu0 }
 0x768   : > { %v7167_v16 = vpop.f32.mrf.mxu1  ;;  %v7011_v53 = vadd.f32 %v7010_v46, %v6818_v36  ;;  %8416 = vmatmul.f32.gmra.mxu3 %v18576_v47 }
 0x769   : > { %v7168_v13 = vadd.f32 %v7167_v16, %v7007_v0  ;;  %v7452_v50 = vpop.f32.mrf.mxu2  ;;  %v18589_v0 = vld [vmem:[#allocation89_spill] sm:$0xff] }
 0x76a   : > { %8052 = vmatmul.f32.gmra.mxu1 %v18584_v57  ;;  %v7562_v36 = vadd.f32 %v18589_v0, %v15946_v17 }
 0x76b   : > { %8263 = vmatmul.f32.gmra.mxu2 %v15791_v4  ;;  %v16479_v34 = vadd.f32 %v7452_v50, %v7168_v13  ;;  %v18590_v50 = vand.u32 4294901760, %v15941_v45 }
 0x76c   : > { %7818 = vmatmul.f32.gmra.mxu0 %v18561_v61 }
 0x76e   : > { %v16481_v41 = vpop.f32.mrf.mxu3 }
 0x76f   : > { %18585 = vst [vmem:[#allocation57_spill] sm:$0xff] %v16481_v41  ;;  %v7739_v1 = vpop.f32.mrf.mxu0 }
 0x770   : > { %v7171_v9 = vpop.f32.mrf.mxu1  ;;  %8420 = vmatmul.f32.gmra.mxu3 %v15739_v44  ;;  %v7740_v61 = vadd.f32 %v7739_v1, %v7562_v36 }
 0x771   : > { %v7172_v52 = vadd.f32 %v7171_v9, %v7011_v53  ;;  %v7460_v57 = vpop.f32.mrf.mxu2 }
 0x772   : > { %8058 = vmatmul.f32.gmra.mxu1 %v18587_v3  ;;  %v5808_v3 = vld [vmem:[#allocation2 + $0xb0] sm:$0xff] }
 0x773   : > { %8267 = vmatmul.f32.gmra.mxu2 %v15831_v21  ;;  %v16488_v47 = vadd.f32 %v7460_v57, %v7172_v52  ;;  %v18591_v52 = vld [vmem:[#allocation119_spill] sm:$0xff]  ;;  %v18592_v57 = vld [vmem:[#allocation44_spill] sm:$0xff] }
 0x774   : > { %7823 = vmatmul.f32.gmra.mxu0 %v18568_v32  ;;  %v7566_v17 = vadd.f32 %v18592_v57, %v18591_v52 }
 0x775   : > { %18588 = vst [vmem:[#allocation144_spill] sm:$0xff] %v16488_v47 }
 0x776   : > { %v8349_v46 = vpop.f32.mrf.mxu3 }
 0x777   : > { %v7744_v16 = vpop.f32.mrf.mxu0 }
 0x778   : > { %v7933_v13 = vpop.f32.mrf.mxu1  ;;  %8424 = vmatmul.f32.gmra.mxu3 %v15791_v4  ;;  %v7745_v32 = vadd.f32 %v7744_v16, %v7566_v17 }
 0x779   : > { %v7934_v53 = vadd.f32 %v7933_v13, %v7740_v61  ;;  %v8188_v9 = vpop.f32.mrf.mxu2  ;;  %v18593_v61 = vand.u32 4294901760, %v15982_v12 }
 0x77a   : > { %8064 = vmatmul.f32.gmra.mxu1 %v18590_v50 }
 0x77b   : > { %8271 = vmatmul.f32.gmra.mxu2 %v15882_v58  ;;  %v8189_v44 = vadd.f32 %v8188_v9, %v7934_v53  ;;  %v5809_v53 = vld [vmem:[#allocation2] sm:$0xff] }
 0x77c   : > { %7828 = vmatmul.f32.gmra.mxu0 %v18574_v26 }
 0x77d   : > { %v8350_v0 = vadd.f32 %v8349_v46, %v8189_v44  ;;  %v18594_v46 = vld [vmem:[#allocation60_spill] sm:$0xff] }
 0x77e   : > { %v8353_v41 = vpop.f32.mrf.mxu3  ;;  %v7570_v9 = vadd.f32 %v18594_v46, %v16034_v39  ;;  %v5810_v39 = vld [vmem:[#allocation2 + $0xd8] sm:$0xff] }
 0x77f   : > { %v8476_v1 = vadd.f32 %v8350_v0, %v5808_v3  ;;  %v7749_v36 = vpop.f32.mrf.mxu0 }
 0x780   : > { %v7939_v47 = vpop.f32.mrf.mxu1  ;;  %8428 = vmatmul.f32.gmra.mxu3 %v15831_v21  ;;  %v7750_v44 = vadd.f32 %v7749_v36, %v7570_v9  ;;  %v7578_v9 = vadd.f32 %v16087_v2, %v16116_v6  ;;  %v5812_v2 = vld [vmem:[#allocation2 + $0x50] sm:$0xff]  ;;  %v7582_v6 = vadd.f32 %v16124_v35, %v16153_v33  ;;  %v5813_v35 = vld [vmem:[#allocation2 + $0x68] sm:$0xff]  ;;  %v7586_v33 = vadd.f32 %v16160_v10, %v16188_v18 }
 0x781   : > { %8508 = vst [vmem:[#allocation2 + $0xb0] sm:$0xff] %v8476_v1  ;;  %v7940_v4 = vadd.f32 %v7939_v47, %v7745_v32  ;;  %v8192_v13 = vpop.f32.mrf.mxu2  ;;  %v18595_v47 = vand.u32 4294901760, %v16030_v28  ;;  %v5814_v10 = vld [vmem:[#allocation2 + $0x30] sm:$0xff]  ;;  %v7590_v18 = vadd.f32 %v16192_v42, %v16208_v23  ;;  %v5815_v42 = vld [vmem:[#allocation2 + $0x48] sm:$0xff]  ;;  %v7594_v23 = vadd.f32 %v16211_v25, %v16227_v19  ;;  %v5816_v25 = vld [vmem:[#allocation2 + $0x80] sm:$0xff] }
 0x782   : > { %8070 = vmatmul.f32.gmra.mxu1 %v18593_v61  ;;  %v7598_v19 = vadd.f32 %v16230_v62, %v16245_v29  ;;  %v5817_v62 = vld [vmem:[#allocation2 + $0x88] sm:$0xff]  ;;  %v18604_v29 = vld [vmem:[#allocation46_spill] sm:$0xff] }
 0x783   : > { %8275 = vmatmul.f32.gmra.mxu2 %v15921_v59  ;;  %v8193_v50 = vadd.f32 %v8192_v13, %v7940_v4 }
 0x784   : > { %7833 = vmatmul.f32.gmra.mxu0 %v18579_v8 }
 0x785   : > { %v8354_v26 = vadd.f32 %v8353_v41, %v8193_v50  ;;  %v18596_v41 = vld [vmem:[#allocation105_spill] sm:$0xff]  ;;  %v18597_v50 = vand.u32 4294901760, %v16074_v38 }
 0x786   : > { %v8357_v16 = vpop.f32.mrf.mxu3  ;;  %v7574_v32 = vadd.f32 %v18596_v41, %v16078_v31  ;;  %v5811_v31 = vld [vmem:[#allocation2 + $0x18] sm:$0xff] }
 0x787   : > { %v8477_v3 = vadd.f32 %v8354_v26, %v5809_v53  ;;  %v7754_v52 = vpop.f32.mrf.mxu0 }
 0x788   : > { %v7945_v57 = vpop.f32.mrf.mxu1  ;;  %8432 = vmatmul.f32.gmra.mxu3 %v15882_v58  ;;  %v7755_v36 = vadd.f32 %v7754_v52, %v7574_v32 }
 0x789   : > { %8509 = vst [vmem:[#allocation2] sm:$0xff] %v8477_v3  ;;  %v7946_v21 = vadd.f32 %v7945_v57, %v7750_v44  ;;  %v8196_v17 = vpop.f32.mrf.mxu2  ;;  %v18598_v57 = vand.u32 4294901760, %v16114_v15 }
 0x78a   : > { %8076 = vmatmul.f32.gmra.mxu1 %v18595_v47 }
 0x78b   : > { %8279 = vmatmul.f32.gmra.mxu2 %v15972_v56  ;;  %v8197_v0 = vadd.f32 %v8196_v17, %v7946_v21 }
 0x78c   : > { %7838 = vmatmul.f32.gmra.mxu0 %v18583_v11 }
 0x78d   : > { %v8358_v8 = vadd.f32 %v8357_v16, %v8197_v0 }
 0x78e   : > { %v8361_v1 = vpop.f32.mrf.mxu3 }
 0x78f   : > { %v8478_v61 = vadd.f32 %v8358_v8, %v5810_v39  ;;  %v7759_v4 = vpop.f32.mrf.mxu0  ;;  %v18599_v8 = vand.u32 4294901760, %v16151_v63 }
 0x790   : > { %v7951_v13 = vpop.f32.mrf.mxu1  ;;  %8436 = vmatmul.f32.gmra.mxu3 %v15921_v59  ;;  %v7760_v16 = vadd.f32 %v7759_v4, %v7578_v9 }
 0x791   : > { %8510 = vst [vmem:[#allocation2 + $0xd8] sm:$0xff] %v8478_v61  ;;  %v7952_v58 = vadd.f32 %v7951_v13, %v7755_v36  ;;  %v8200_v53 = vpop.f32.mrf.mxu2 }
 0x792   : > { %8082 = vmatmul.f32.gmra.mxu1 %v18597_v50 }
 0x793   : > { %8283 = vmatmul.f32.gmra.mxu2 %v16019_v27  ;;  %v8201_v46 = vadd.f32 %v8200_v53, %v7952_v58  ;;  %v18600_v53 = vand.u32 4294901760, %v16186_v48 }
 0x794   : > { %7843 = vmatmul.f32.gmra.mxu0 %v18586_v7 }
 0x795   : > { %v8362_v11 = vadd.f32 %v8361_v1, %v8201_v46 }
 0x796   : > { %v8365_v26 = vpop.f32.mrf.mxu3 }
 0x797   : > { %v8479_v44 = vadd.f32 %v8362_v11, %v5811_v31  ;;  %v7764_v3 = vpop.f32.mrf.mxu0 }
 0x798   : > { %v7957_v52 = vpop.f32.mrf.mxu1  ;;  %8440 = vmatmul.f32.gmra.mxu3 %v15972_v56  ;;  %v7765_v0 = vadd.f32 %v7764_v3, %v7582_v6  ;;  %v18601_v3 = vand.u32 4294901760, %v16206_v20 }
 0x799   : > { %8511 = vst [vmem:[#allocation2 + $0x18] sm:$0xff] %v8479_v44  ;;  %v7958_v59 = vadd.f32 %v7957_v52, %v7760_v16  ;;  %v8204_v47 = vpop.f32.mrf.mxu2 }
 0x79a   : > { %8088 = vmatmul.f32.gmra.mxu1 %v18598_v57 }
 0x79b   : > { %8287 = vmatmul.f32.gmra.mxu2 %v16065_v43  ;;  %v8205_v21 = vadd.f32 %v8204_v47, %v7958_v59 }
 0x79c   : > { %7848 = vmatmul.f32.gmra.mxu0 %v15941_v45 }
 0x79d   : > { %v8366_v7 = vadd.f32 %v8365_v26, %v8205_v21 }
 0x79e   : > { %v8369_v17 = vpop.f32.mrf.mxu3 }
 0x79f   : > { %v8480_v39 = vadd.f32 %v8366_v7, %v5812_v2  ;;  %v7769_v41 = vpop.f32.mrf.mxu0  ;;  %v18602_v7 = vand.u32 4294901760, %v16225_v51 }
 0x7a0   : > { %v7963_v32 = vpop.f32.mrf.mxu1  ;;  %8444 = vmatmul.f32.gmra.mxu3 %v16019_v27  ;;  %v7770_v4 = vadd.f32 %v7769_v41, %v7586_v33  ;;  %v7602_v33 = vadd.f32 %v18604_v29, %v16259_v55 }
 0x7a1   : > { %8512 = vst [vmem:[#allocation2 + $0x50] sm:$0xff] %v8480_v39  ;;  %v7964_v56 = vadd.f32 %v7963_v32, %v7765_v0  ;;  %v8208_v1 = vpop.f32.mrf.mxu2 }
 0x7a2   : > { %8094 = vmatmul.f32.gmra.mxu1 %v18599_v8 }
 0x7a3   : > { %8291 = vmatmul.f32.gmra.mxu2 %v16103_v49  ;;  %v8209_v36 = vadd.f32 %v8208_v1, %v7964_v56  ;;  %v18603_v1 = vand.u32 4294901760, %v16243_v37 }
 0x7a4   : > { %7853 = vmatmul.f32.gmra.mxu0 %v15982_v12 }
 0x7a5   : > { %v8370_v45 = vadd.f32 %v8369_v17, %v8209_v36 }
 0x7a6   : > { %v8373_v61 = vpop.f32.mrf.mxu3 }
 0x7a7   : > { %v8481_v13 = vadd.f32 %v8370_v45, %v5813_v35  ;;  %v7774_v50 = vpop.f32.mrf.mxu0 }
 0x7a8   : > { %v7969_v58 = vpop.f32.mrf.mxu1  ;;  %8448 = vmatmul.f32.gmra.mxu3 %v16065_v43  ;;  %v7775_v11 = vadd.f32 %v7774_v50, %v7590_v18 }
 0x7a9   : > { %8513 = vst [vmem:[#allocation2 + $0x68] sm:$0xff] %v8481_v13  ;;  %v7970_v27 = vadd.f32 %v7969_v58, %v7770_v4  ;;  %v8212_v46 = vpop.f32.mrf.mxu2 }
 0x7aa   : > { %8100 = vmatmul.f32.gmra.mxu1 %v18600_v53 }
 0x7ab   : > { %8295 = vmatmul.f32.gmra.mxu2 %v16135_v5  ;;  %v8213_v31 = vadd.f32 %v8212_v46, %v7970_v27  ;;  %v5818_v46 = vld [vmem:[#allocation2 + $0xe8] sm:$0xff] }
 0x7ac   : > { %7858 = vmatmul.f32.gmra.mxu0 %v16030_v28 }
 0x7ad   : > { %v8374_v12 = vadd.f32 %v8373_v61, %v8213_v31  ;;  %v18606_v31 = vld [vmem:[#allocation121_spill] sm:$0xff] }
 0x7ae   : > { %v8377_v9 = vpop.f32.mrf.mxu3 }
 0x7af   : > { %v8482_v26 = vadd.f32 %v8374_v12, %v5814_v10  ;;  %v7779_v16 = vpop.f32.mrf.mxu0  ;;  %v18607_v10 = vld [vmem:[#allocation108_spill] sm:$0xff] }
 0x7b0   : > { %v7975_v44 = vpop.f32.mrf.mxu1  ;;  %8452 = vmatmul.f32.gmra.mxu3 %v16103_v49  ;;  %v7780_v47 = vadd.f32 %v7779_v16, %v7594_v23  ;;  %v7606_v55 = vadd.f32 %v18607_v10, %v18606_v31 }
 0x7b1   : > { %8514 = vst [vmem:[#allocation2 + $0x30] sm:$0xff] %v8482_v26  ;;  %v7976_v43 = vadd.f32 %v7975_v44, %v7775_v11  ;;  %v8216_v52 = vpop.f32.mrf.mxu2 }
 0x7b2   : > { %8106 = vmatmul.f32.gmra.mxu1 %v18601_v3  ;;  %v5819_v3 = vld [vmem:[#allocation2 + $0xb8] sm:$0xff] }
 0x7b3   : > { %8299 = vmatmul.f32.gmra.mxu2 %v16171_v30  ;;  %v8217_v57 = vadd.f32 %v8216_v52, %v7976_v43  ;;  %v18608_v43 = vld [vmem:[#allocation115_spill] sm:$0xff]  ;;  %v18609_v52 = vld [vmem:[#allocation116_spill] sm:$0xff] }
 0x7b4   : > { %7863 = vmatmul.f32.gmra.mxu0 %v16074_v38 }
 0x7b5   : > { %v8378_v28 = vadd.f32 %v8377_v9, %v8217_v57  ;;  %v7610_v57 = vadd.f32 %v18609_v52, %v18608_v43 }
 0x7b6   : > { %v8381_v59 = vpop.f32.mrf.mxu3 }
 0x7b7   : > { %v8483_v21 = vadd.f32 %v8378_v28, %v5815_v42  ;;  %v7784_v2 = vpop.f32.mrf.mxu0 }
 0x7b8   : > { %v7981_v6 = vpop.f32.mrf.mxu1  ;;  %8456 = vmatmul.f32.gmra.mxu3 %v16135_v5  ;;  %v7785_v41 = vadd.f32 %v7784_v2, %v7598_v19 }
 0x7b9   : > { %8515 = vst [vmem:[#allocation2 + $0x48] sm:$0xff] %v8483_v21  ;;  %v7982_v49 = vadd.f32 %v7981_v6, %v7780_v47  ;;  %v8220_v17 = vpop.f32.mrf.mxu2 }
 0x7ba   : > { %8112 = vmatmul.f32.gmra.mxu1 %v18602_v7  ;;  %v18610_v7 = vld [vmem:[#allocation43_spill] sm:$0xff] }
 0x7bb   : > { %8303 = vmatmul.f32.gmra.mxu2 %v16200_v60  ;;  %v8221_v0 = vadd.f32 %v8220_v17, %v7982_v49  ;;  %v18611_v49 = vld [vmem:[#allocation118_spill] sm:$0xff] }
 0x7bc   : > { %7868 = vmatmul.f32.gmra.mxu0 %v16114_v15  ;;  %v7614_v17 = vadd.f32 %v18611_v49, %v18610_v7 }
 0x7bd   : > { %v8382_v38 = vadd.f32 %v8381_v59, %v8221_v0 }
 0x7be   : > { %v8385_v39 = vpop.f32.mrf.mxu3 }
 0x7bf   : > { %v8484_v32 = vadd.f32 %v8382_v38, %v5816_v25  ;;  %v7789_v8 = vpop.f32.mrf.mxu0 }
 0x7c0   : > { %v7987_v56 = vpop.f32.mrf.mxu1  ;;  %8460 = vmatmul.f32.gmra.mxu3 %v16171_v30  ;;  %v7790_v61 = vadd.f32 %v7789_v8, %v7602_v33  ;;  %v18605_v30 = vld [vmem:[#allocation39_spill] sm:$0xff] }
 0x7c1   : > { %8516 = vst [vmem:[#allocation2 + $0x80] sm:$0xff] %v8484_v32  ;;  %v7988_v5 = vadd.f32 %v7987_v56, %v7785_v41  ;;  %v8224_v36 = vpop.f32.mrf.mxu2  ;;  %v5821_v56 = vld [vmem:[#allocation2 + $0xf0] sm:$0xff] }
 0x7c2   : > { %8118 = vmatmul.f32.gmra.mxu1 %v18603_v1  ;;  %v18612_v1 = vld [vmem:[#allocation56_spill] sm:$0xff] }
 0x7c3   : > { %8307 = vmatmul.f32.gmra.mxu2 %v16219_v54  ;;  %v8225_v35 = vadd.f32 %v8224_v36, %v7988_v5  ;;  %v18613_v5 = vld [vmem:[#allocation120_spill] sm:$0xff] }
 0x7c4   : > { %7873 = vmatmul.f32.gmra.mxu0 %v16151_v63  ;;  %v7618_v36 = vadd.f32 %v18613_v5, %v18612_v1 }
 0x7c5   : > { %v8386_v15 = vadd.f32 %v8385_v39, %v8225_v35 }
 0x7c6   : > { %v8389_v45 = vpop.f32.mrf.mxu3 }
 0x7c7   : > { %v8485_v4 = vadd.f32 %v8386_v15, %v5817_v62  ;;  %v7794_v13 = vpop.f32.mrf.mxu0 }
 0x7c8   : > { %v7993_v50 = vpop.f32.mrf.mxu1  ;;  %8464 = vmatmul.f32.gmra.mxu3 %v16200_v60  ;;  %v7795_v63 = vadd.f32 %v7794_v13, %v7606_v55  ;;  %v5822_v13 = vld [vmem:[#allocation2 + $0x8] sm:$0xff] }
 0x7c9   : > { %8517 = vst [vmem:[#allocation2 + $0x88] sm:$0xff] %v8485_v4  ;;  %v7994_v58 = vadd.f32 %v7993_v50, %v7790_v61  ;;  %v8228_v53 = vpop.f32.mrf.mxu2  ;;  %v18614_v50 = vld [vmem:[#allocation70_spill] sm:$0xff] }
 0x7cb   : > { %8311 = vmatmul.f32.gmra.mxu2 %v18605_v30  ;;  %v8229_v27 = vadd.f32 %v8228_v53, %v7994_v58  ;;  %v18615_v58 = vld [vmem:[#allocation126_spill] sm:$0xff] }
 0x7cc   : > { %7878 = vmatmul.f32.gmra.mxu0 %v16186_v48  ;;  %v7622_v53 = vadd.f32 %v18615_v58, %v18614_v50 }
 0x7cd   : > { %v8390_v18 = vadd.f32 %v8389_v45, %v8229_v27 }
 0x7ce   : > { %v8393_v12 = vpop.f32.mrf.mxu3 }
 0x7cf   : > { %v8486_v9 = vadd.f32 %v8390_v18, %v5818_v46  ;;  %v7799_v11 = vpop.f32.mrf.mxu0 }
 0x7d0   : > { %v7999_v26 = vpop.f32.mrf.mxu1  ;;  %8468 = vmatmul.f32.gmra.mxu3 %v16219_v54  ;;  %v7800_v28 = vadd.f32 %v7799_v11, %v7610_v57  ;;  %v5820_v54 = vld [vmem:[#allocation2 + $0x60] sm:$0xff]  ;;  %v18617_v11 = vld [vmem:[#allocation130_spill] sm:$0xff] }
 0x7d1   : > { %8518 = vst [vmem:[#allocation2 + $0xe8] sm:$0xff] %v8486_v9  ;;  %v8000_v16 = vadd.f32 %v7999_v26, %v7795_v63  ;;  %v8232_v44 = vpop.f32.mrf.mxu2  ;;  %v5823_v63 = vld [vmem:[#allocation2 + $0x78] sm:$0xff]  ;;  %v18616_v9 = vld [vmem:[#allocation82_spill] sm:$0xff] }
 0x7d2   : > { %v7626_v26 = vadd.f32 %v18617_v11, %v18616_v9 }
 0x7d3   : > { %v8233_v60 = vadd.f32 %v8232_v44, %v8000_v16 }
 0x7d4   : > { %7883 = vmatmul.f32.gmra.mxu0 %v16206_v20 }
 0x7d5   : > { %v8394_v42 = vadd.f32 %v8393_v12, %v8233_v60 }
 0x7d6   : > { %v8397_v23 = vpop.f32.mrf.mxu3 }
 0x7d7   : > { %v8487_v48 = vadd.f32 %v8394_v42, %v5819_v3  ;;  %v7804_v59 = vpop.f32.mrf.mxu0 }
 0x7d8   : > { %v8005_v47 = vpop.f32.mrf.mxu1  ;;  %8472 = vmatmul.f32.gmra.mxu3 %v18605_v30  ;;  %v7805_v19 = vadd.f32 %v7804_v59, %v7614_v17  ;;  %v18619_v59 = vld [vmem:[#allocation68_spill] sm:$0xff] }
 0x7d9   : > { %8519 = vst [vmem:[#allocation2 + $0xb8] sm:$0xff] %v8487_v48  ;;  %v8006_v21 = vadd.f32 %v8005_v47, %v7800_v28  ;;  %v8236_v2 = vpop.f32.mrf.mxu2  ;;  %v5824_v28 = vld [vmem:[#allocation2 + $0x38] sm:$0xff]  ;;  %v18618_v48 = vld [vmem:[#allocation58_spill] sm:$0xff] }
 0x7da   : > { %v7630_v47 = vadd.f32 %v18619_v59, %v18618_v48 }
 0x7db   : > { %v8237_v6 = vadd.f32 %v8236_v2, %v8006_v21 }
 0x7dc   : > { %7888 = vmatmul.f32.gmra.mxu0 %v16225_v51 }
 0x7dd   : > { %v8398_v0 = vadd.f32 %v8397_v23, %v8237_v6 }
 0x7de   : > { %v8401_v25 = vpop.f32.mrf.mxu3 }
 0x7df   : > { %v8488_v20 = vadd.f32 %v8398_v0, %v5820_v54  ;;  %v7809_v38 = vpop.f32.mrf.mxu0 }
 0x7e0   : > { %v8011_v39 = vpop.f32.mrf.mxu1  ;;  %v7810_v29 = vadd.f32 %v7809_v38, %v7618_v36  ;;  %v18621_v38 = vld [vmem:[#allocation140_spill] sm:$0xff] }
 0x7e1   : > { %8520 = vst [vmem:[#allocation2 + $0x60] sm:$0xff] %v8488_v20  ;;  %v8012_v41 = vadd.f32 %v8011_v39, %v7805_v19  ;;  %v8240_v32 = vpop.f32.mrf.mxu2  ;;  %v5825_v19 = vld [vmem:[#allocation2 + $0x58] sm:$0xff] }
 0x7e2   : > { %v18620_v20 = vld [vmem:[#allocation99_spill] sm:$0xff] }
 0x7e3   : > { %v8241_v8 = vadd.f32 %v8240_v32, %v8012_v41  ;;  %v7634_v39 = vadd.f32 %v18621_v38, %v18620_v20 }
 0x7e4   : > { %7893 = vmatmul.f32.gmra.mxu0 %v16243_v37 }
 0x7e5   : > { %v8402_v35 = vadd.f32 %v8401_v25, %v8241_v8 }
 0x7e6   : > { %v8405_v62 = vpop.f32.mrf.mxu3 }
 0x7e7   : > { %v8489_v33 = vadd.f32 %v8402_v35, %v5821_v56  ;;  %v7814_v15 = vpop.f32.mrf.mxu0 }
 0x7e8   : > { %v8017_v51 = vpop.f32.mrf.mxu1  ;;  %v7815_v46 = vadd.f32 %v7814_v15, %v7622_v53  ;;  %v18623_v15 = vld [vmem:[#allocation55_spill] sm:$0xff] }
 0x7e9   : > { %8521 = vst [vmem:[#allocation2 + $0xf0] sm:$0xff] %v8489_v33  ;;  %v8018_v45 = vadd.f32 %v8017_v51, %v7810_v29  ;;  %v8244_v61 = vpop.f32.mrf.mxu2  ;;  %v5826_v29 = vld [vmem:[#allocation2 + $0x40] sm:$0xff]  ;;  %v18622_v33 = vld [vmem:[#allocation145_spill] sm:$0xff] }
 0x7ea   : > { %v7638_v51 = vadd.f32 %v18623_v15, %v18622_v33 }
 0x7eb   : > { %v8245_v4 = vadd.f32 %v8244_v61, %v8018_v45 }
 0x7ed   : > { %v8406_v30 = vadd.f32 %v8405_v62, %v8245_v4 }
 0x7ee   : > { %v8409_v27 = vpop.f32.mrf.mxu3 }
 0x7ef   : > { %v8490_v31 = vadd.f32 %v8406_v30, %v5822_v13  ;;  %v7819_v10 = vpop.f32.mrf.mxu0 }
 0x7f0   : > { %v8023_v55 = vpop.f32.mrf.mxu1  ;;  %v7820_v60 = vadd.f32 %v7819_v10, %v7626_v26  ;;  %v18625_v10 = vld [vmem:[#allocation24_spill] sm:$0xff] }
 0x7f1   : > { %8522 = vst [vmem:[#allocation2 + $0x8] sm:$0xff] %v8490_v31  ;;  %v8024_v37 = vadd.f32 %v8023_v55, %v7815_v46  ;;  %v8248_v18 = vpop.f32.mrf.mxu2  ;;  %v5827_v46 = vld [vmem:[#allocation2 + $0xc8] sm:$0xff]  ;;  %v18624_v31 = vld [vmem:[#allocation90_spill] sm:$0xff] }
 0x7f2   : > { %v7642_v55 = vadd.f32 %v18625_v10, %v18624_v31 }
 0x7f3   : > { %v8249_v12 = vadd.f32 %v8248_v18, %v8024_v37 }
 0x7f5   : > { %v8410_v16 = vadd.f32 %v8409_v27, %v8249_v12 }
 0x7f6   : > { %v8413_v44 = vpop.f32.mrf.mxu3 }
 0x7f7   : > { %v8491_v3 = vadd.f32 %v8410_v16, %v5823_v63  ;;  %v7824_v43 = vpop.f32.mrf.mxu0 }
 0x7f8   : > { %v8029_v52 = vpop.f32.mrf.mxu1  ;;  %v7825_v6 = vadd.f32 %v7824_v43, %v7630_v47  ;;  %v18627_v43 = vld [vmem:[#allocation152_spill] sm:$0xff] }
 0x7f9   : > { %8523 = vst [vmem:[#allocation2 + $0x78] sm:$0xff] %v8491_v3  ;;  %v8030_v57 = vadd.f32 %v8029_v52, %v7820_v60  ;;  %v8252_v42 = vpop.f32.mrf.mxu2  ;;  %v5828_v60 = vld [vmem:[#allocation2 + $0xe0] sm:$0xff]  ;;  %v18626_v3 = vld [vmem:[#allocation29_spill] sm:$0xff] }
 0x7fa   : > { %v7646_v52 = vadd.f32 %v18627_v43, %v18626_v3 }
 0x7fb   : > { %v8253_v23 = vadd.f32 %v8252_v42, %v8030_v57 }
 0x7fd   : > { %v8414_v21 = vadd.f32 %v8413_v44, %v8253_v23 }
 0x7fe   : > { %v8417_v2 = vpop.f32.mrf.mxu3 }
 0x7ff   : > { %v8492_v54 = vadd.f32 %v8414_v21, %v5824_v28  ;;  %v7829_v7 = vpop.f32.mrf.mxu0 }
 0x800   : > { %v8035_v49 = vpop.f32.mrf.mxu1  ;;  %v7830_v8 = vadd.f32 %v7829_v7, %v7634_v39  ;;  %v18629_v7 = vld [vmem:[#allocation129_spill] sm:$0xff] }
 0x801   : > { %8524 = vst [vmem:[#allocation2 + $0x38] sm:$0xff] %v8492_v54  ;;  %v8036_v17 = vadd.f32 %v8035_v49, %v7825_v6  ;;  %v8256_v0 = vpop.f32.mrf.mxu2  ;;  %v5829_v6 = vld [vmem:[#allocation2 + $0x90] sm:$0xff]  ;;  %v18628_v54 = vld [vmem:[#allocation153_spill] sm:$0xff] }
 0x802   : > { %v7650_v49 = vadd.f32 %v18629_v7, %v18628_v54 }
 0x803   : > { %v8257_v25 = vadd.f32 %v8256_v0, %v8036_v17 }
 0x805   : > { %v8418_v41 = vadd.f32 %v8417_v2, %v8257_v25 }
 0x806   : > { %v8421_v32 = vpop.f32.mrf.mxu3 }
 0x807   : > { %v8493_v56 = vadd.f32 %v8418_v41, %v5825_v19  ;;  %v7834_v1 = vpop.f32.mrf.mxu0 }
 0x808   : > { %v8041_v5 = vpop.f32.mrf.mxu1  ;;  %v7835_v4 = vadd.f32 %v7834_v1, %v7638_v51  ;;  %v18631_v1 = vld [vmem:[#allocation27_spill] sm:$0xff] }
 0x809   : > { %8525 = vst [vmem:[#allocation2 + $0x58] sm:$0xff] %v8493_v56  ;;  %v8042_v36 = vadd.f32 %v8041_v5, %v7830_v8  ;;  %v8260_v35 = vpop.f32.mrf.mxu2  ;;  %v5830_v8 = vld [vmem:[#allocation2 + $0x70] sm:$0xff]  ;;  %v18630_v56 = vld [vmem:[#allocation128_spill] sm:$0xff] }
 0x80a   : > { %v7654_v5 = vadd.f32 %v18631_v1, %v18630_v56 }
 0x80b   : > { %v8261_v62 = vadd.f32 %v8260_v35, %v8042_v36 }
 0x80d   : > { %v8422_v45 = vadd.f32 %v8421_v32, %v8261_v62 }
 0x80e   : > { %v8425_v61 = vpop.f32.mrf.mxu3 }
 0x80f   : > { %v8494_v13 = vadd.f32 %v8422_v45, %v5826_v29  ;;  %v7839_v50 = vpop.f32.mrf.mxu0 }
 0x810   : > { %v8047_v58 = vpop.f32.mrf.mxu1  ;;  %v7840_v12 = vadd.f32 %v7839_v50, %v7642_v55  ;;  %v18633_v50 = vld [vmem:[#allocation154_spill] sm:$0xff] }
 0x811   : > { %8526 = vst [vmem:[#allocation2 + $0x40] sm:$0xff] %v8494_v13  ;;  %v8048_v53 = vadd.f32 %v8047_v58, %v7835_v4  ;;  %v8264_v30 = vpop.f32.mrf.mxu2  ;;  %v5831_v4 = vld [vmem:[#allocation2 + $0xc0] sm:$0xff]  ;;  %v18632_v13 = vld [vmem:[#allocation31_spill] sm:$0xff] }
 0x812   : > { %v7658_v58 = vadd.f32 %v18633_v50, %v18632_v13 }
 0x813   : > { %v8265_v27 = vadd.f32 %v8264_v30, %v8048_v53 }
 0x815   : > { %v8426_v37 = vadd.f32 %v8425_v61, %v8265_v27 }
 0x816   : > { %v8429_v18 = vpop.f32.mrf.mxu3 }
 0x817   : > { %v8495_v63 = vadd.f32 %v8426_v37, %v5827_v46  ;;  %v7844_v9 = vpop.f32.mrf.mxu0 }
 0x818   : > { %v8053_v11 = vpop.f32.mrf.mxu1  ;;  %v7845_v23 = vadd.f32 %v7844_v9, %v7646_v52  ;;  %v18635_v9 = vld [vmem:[#allocation61_spill] sm:$0xff] }
 0x819   : > { %8527 = vst [vmem:[#allocation2 + $0xc8] sm:$0xff] %v8495_v63  ;;  %v8054_v26 = vadd.f32 %v8053_v11, %v7840_v12  ;;  %v8268_v16 = vpop.f32.mrf.mxu2  ;;  %v5832_v12 = vld [vmem:[#allocation2 + $0xa8] sm:$0xff]  ;;  %v18634_v63 = vld [vmem:[#allocation155_spill] sm:$0xff] }
 0x81a   : > { %v7662_v11 = vadd.f32 %v18635_v9, %v18634_v63  ;;  %v5837_v63 = vld [vmem:[#allocation2 + $0xf8] sm:$0xff]  ;;  %v7682_v9 = vadd.f32 %v16470_v24, %v16479_v34 }
 0x81b   : > { %v8269_v44 = vadd.f32 %v8268_v16, %v8054_v26 }
 0x81d   : > { %v8430_v57 = vadd.f32 %v8429_v18, %v8269_v44 }
 0x81e   : > { %v8433_v42 = vpop.f32.mrf.mxu3 }
 0x81f   : > { %v8496_v28 = vadd.f32 %v8430_v57, %v5828_v60  ;;  %v7849_v48 = vpop.f32.mrf.mxu0 }
 0x820   : > { %v8059_v59 = vpop.f32.mrf.mxu1  ;;  %v7850_v25 = vadd.f32 %v7849_v48, %v7650_v49  ;;  %v18637_v48 = vld [vmem:[#allocation135_spill] sm:$0xff] }
 0x821   : > { %8528 = vst [vmem:[#allocation2 + $0xe0] sm:$0xff] %v8496_v28  ;;  %v8060_v47 = vadd.f32 %v8059_v59, %v7845_v23  ;;  %v8272_v21 = vpop.f32.mrf.mxu2  ;;  %v5833_v23 = vld [vmem:[#allocation2 + $0xd0] sm:$0xff] }
 0x822   : > { %v18636_v28 = vld [vmem:[#allocation142_spill] sm:$0xff] }
 0x823   : > { %v8273_v2 = vadd.f32 %v8272_v21, %v8060_v47  ;;  %v7666_v59 = vadd.f32 %v18637_v48, %v18636_v28 }
 0x825   : > { %v8434_v17 = vadd.f32 %v8433_v42, %v8273_v2 }
 0x826   : > { %v8437_v0 = vpop.f32.mrf.mxu3 }
 0x827   : > { %v8497_v19 = vadd.f32 %v8434_v17, %v5829_v6  ;;  %v7854_v20 = vpop.f32.mrf.mxu0 }
 0x828   : > { %v8065_v38 = vpop.f32.mrf.mxu1  ;;  %v7855_v62 = vadd.f32 %v7854_v20, %v7654_v5 }
 0x829   : > { %8529 = vst [vmem:[#allocation2 + $0x90] sm:$0xff] %v8497_v19  ;;  %v8066_v39 = vadd.f32 %v8065_v38, %v7850_v25  ;;  %v8276_v41 = vpop.f32.mrf.mxu2  ;;  %v5834_v25 = vld [vmem:[#allocation2 + $0x10] sm:$0xff] }
 0x82a   : > { %v18638_v19 = vld [vmem:[#allocation26_spill] sm:$0xff] }
 0x82b   : > { %v8277_v32 = vadd.f32 %v8276_v41, %v8066_v39  ;;  %v7670_v20 = vadd.f32 %v18638_v19, %v16446_v40 }
 0x82d   : > { %v8438_v36 = vadd.f32 %v8437_v0, %v8277_v32 }
 0x82e   : > { %v8441_v35 = vpop.f32.mrf.mxu3 }
 0x82f   : > { %v8498_v29 = vadd.f32 %v8438_v36, %v5830_v8  ;;  %v7859_v33 = vpop.f32.mrf.mxu0 }
 0x830   : > { %v8071_v15 = vpop.f32.mrf.mxu1  ;;  %v7860_v27 = vadd.f32 %v7859_v33, %v7658_v58  ;;  %v5836_v58 = vld [vmem:[#allocation2 + $0xa0] sm:$0xff] }
 0x831   : > { %8530 = vst [vmem:[#allocation2 + $0x70] sm:$0xff] %v8498_v29  ;;  %v8072_v51 = vadd.f32 %v8071_v15, %v7855_v62  ;;  %v8280_v45 = vpop.f32.mrf.mxu2  ;;  %v18639_v62 = vld [vmem:[#allocation33_spill] sm:$0xff] }
 0x832   : > { %v7674_v29 = vadd.f32 %v18639_v62, %v16457_v22 }
 0x833   : > { %v8281_v61 = vadd.f32 %v8280_v45, %v8072_v51 }
 0x835   : > { %v8442_v53 = vadd.f32 %v8441_v35, %v8281_v61  ;;  %v5835_v35 = vld [vmem:[#allocation2 + $0x28] sm:$0xff] }
 0x836   : > { %v8445_v30 = vpop.f32.mrf.mxu3 }
 0x837   : > { %v8499_v46 = vadd.f32 %v8442_v53, %v5831_v4  ;;  %v7864_v31 = vpop.f32.mrf.mxu0  ;;  %v18640_v53 = vld [vmem:[#allocation37_spill] sm:$0xff] }
 0x838   : > { %v8077_v10 = vpop.f32.mrf.mxu1  ;;  %v7865_v44 = vadd.f32 %v7864_v31, %v7662_v11 }
 0x839   : > { %8531 = vst [vmem:[#allocation2 + $0xc0] sm:$0xff] %v8499_v46  ;;  %v8078_v55 = vadd.f32 %v8077_v10, %v7860_v27  ;;  %v8284_v37 = vpop.f32.mrf.mxu2 }
 0x83b   : > { %v8285_v18 = vadd.f32 %v8284_v37, %v8078_v55 }
 0x83d   : > { %v8446_v26 = vadd.f32 %v8445_v30, %v8285_v18  ;;  %v7678_v30 = vadd.f32 %v18640_v53, %v16468_v14 }
 0x83e   : > { %v8449_v16 = vpop.f32.mrf.mxu3 }
 0x83f   : > { %v8500_v60 = vadd.f32 %v8446_v26, %v5832_v12  ;;  %v7869_v3 = vpop.f32.mrf.mxu0 }
 0x840   : > { %v8083_v43 = vpop.f32.mrf.mxu1  ;;  %v7870_v2 = vadd.f32 %v7869_v3, %v7666_v59 }
 0x841   : > { %8532 = vst [vmem:[#allocation2 + $0xa8] sm:$0xff] %v8500_v60  ;;  %v8084_v52 = vadd.f32 %v8083_v43, %v7865_v44  ;;  %v8288_v57 = vpop.f32.mrf.mxu2 }
 0x843   : > { %v8289_v42 = vadd.f32 %v8288_v57, %v8084_v52  ;;  %v5838_v57 = vld [vmem:[#allocation2 + $0x20] sm:$0xff] }
 0x845   : > { %v8450_v47 = vadd.f32 %v8449_v16, %v8289_v42  ;;  %v18641_v42 = vld [vmem:[#allocation144_spill] sm:$0xff] }
 0x846   : > { %v8453_v21 = vpop.f32.mrf.mxu3 }
 0x847   : > { %v8501_v6 = vadd.f32 %v8450_v47, %v5833_v23  ;;  %v7874_v54 = vpop.f32.mrf.mxu0  ;;  %v18642_v23 = vld [vmem:[#allocation57_spill] sm:$0xff] }
 0x848   : > { %v8089_v7 = vpop.f32.mrf.mxu1  ;;  %v7875_v41 = vadd.f32 %v7874_v54, %v7670_v20  ;;  %v7686_v28 = vadd.f32 %v18642_v23, %v18641_v42  ;;  %v5839_v54 = vld [vmem:[#allocation2 + $0x98] sm:$0xff] }
 0x849   : > { %8533 = vst [vmem:[#allocation2 + $0xd0] sm:$0xff] %v8501_v6  ;;  %v8090_v49 = vadd.f32 %v8089_v7, %v7870_v2  ;;  %v8292_v17 = vpop.f32.mrf.mxu2 }
 0x84b   : > { %v8293_v0 = vadd.f32 %v8292_v17, %v8090_v49 }
 0x84d   : > { %v8454_v38 = vadd.f32 %v8453_v21, %v8293_v0 }
 0x84e   : > { %v8457_v39 = vpop.f32.mrf.mxu3 }
 0x84f   : > { %v8502_v32 = vadd.f32 %v8454_v38, %v5834_v25  ;;  %v7879_v8 = vpop.f32.mrf.mxu0 }
 0x850   : > { %v8095_v56 = vpop.f32.mrf.mxu1  ;;  %v7880_v51 = vadd.f32 %v7879_v8, %v7674_v29 }
 0x851   : > { %8534 = vst [vmem:[#allocation2 + $0x10] sm:$0xff] %v8502_v32  ;;  %v8096_v1 = vadd.f32 %v8095_v56, %v7875_v41  ;;  %v8296_v5 = vpop.f32.mrf.mxu2 }
 0x853   : > { %v8297_v36 = vadd.f32 %v8296_v5, %v8096_v1 }
 0x855   : > { %v8458_v33 = vadd.f32 %v8457_v39, %v8297_v36 }
 0x856   : > { %v8461_v15 = vpop.f32.mrf.mxu3 }
 0x857   : > { %v8503_v45 = vadd.f32 %v8458_v33, %v5835_v35  ;;  %v7884_v61 = vpop.f32.mrf.mxu0 }
 0x858   : > { %v8101_v40 = vpop.f32.mrf.mxu1  ;;  %v7885_v46 = vadd.f32 %v7884_v61, %v7678_v30 }
 0x859   : > { %8535 = vst [vmem:[#allocation2 + $0x28] sm:$0xff] %v8503_v45  ;;  %v8102_v4 = vadd.f32 %v8101_v40, %v7880_v51  ;;  %v8300_v13 = vpop.f32.mrf.mxu2 }
 0x85b   : > { %v8301_v50 = vadd.f32 %v8300_v13, %v8102_v4 }
 0x85d   : > { %v8462_v27 = vadd.f32 %v8461_v15, %v8301_v50 }
 0x85e   : > { %v8465_v10 = vpop.f32.mrf.mxu3 }
 0x85f   : > { %v8504_v31 = vadd.f32 %v8462_v27, %v5836_v58  ;;  %v7889_v18 = vpop.f32.mrf.mxu0 }
 0x860   : > { %v8107_v55 = vpop.f32.mrf.mxu1  ;;  %v7890_v26 = vadd.f32 %v7889_v18, %v7682_v9 }
 0x861   : > { %8536 = vst [vmem:[#allocation2 + $0xa0] sm:$0xff] %v8504_v31  ;;  %v8108_v22 = vadd.f32 %v8107_v55, %v7885_v46  ;;  %v8304_v37 = vpop.f32.mrf.mxu2 }
 0x863   : > { %v8305_v12 = vadd.f32 %v8304_v37, %v8108_v22 }
 0x865   : > { %v8466_v11 = vadd.f32 %v8465_v10, %v8305_v12 }
 0x866   : > { %v8469_v3 = vpop.f32.mrf.mxu3 }
 0x867   : > { %v8505_v16 = vadd.f32 %v8466_v11, %v5837_v63  ;;  %v7894_v52 = vpop.f32.mrf.mxu0 }
 0x868   : > { %v8113_v44 = vpop.f32.mrf.mxu1  ;;  %v7895_v59 = vadd.f32 %v7894_v52, %v7686_v28 }
 0x869   : > { %8537 = vst [vmem:[#allocation2 + $0xf8] sm:$0xff] %v8505_v16  ;;  %v8114_v14 = vadd.f32 %v8113_v44, %v7890_v26  ;;  %v8308_v60 = vpop.f32.mrf.mxu2 }
 0x86b   : > { %v8309_v43 = vadd.f32 %v8308_v60, %v8114_v14 }
 0x86d   : > { %v8470_v48 = vadd.f32 %v8469_v3, %v8309_v43 }
 0x86e   : > { %v8473_v6 = vpop.f32.mrf.mxu3 }
 0x86f   : > { %v8506_v47 = vadd.f32 %v8470_v48, %v5838_v57 }
 0x870   : > { %v8119_v21 = vpop.f32.mrf.mxu1 }
 0x871   : > { %8538 = vst [vmem:[#allocation2 + $0x20] sm:$0xff] %v8506_v47  ;;  %v8120_v24 = vadd.f32 %v8119_v21, %v7895_v59  ;;  %v8312_v34 = vpop.f32.mrf.mxu2 }
 0x873   : > { %v8313_v2 = vadd.f32 %v8312_v34, %v8120_v24 }
 0x875   : > { %v8474_v7 = vadd.f32 %v8473_v6, %v8313_v2  ;;  %8543 = sbr.rel (%p8834_p7) target bundleno = 2203 (0x89b), region = 52 }
 0x877   : > { %v8507_v49 = vadd.f32 %v8474_v7, %v5839_v54 }
 0x879   : > { %8539 = vst [vmem:[#allocation2 + $0x98] sm:$0xff] %v8507_v49 }
 0x87a   : > { %v8544_v17 = vld [vmem:[#allocation2 + $0xb0] sm:$0xff]  ;;  %v8545_v0 = vld [vmem:[#allocation2] sm:$0xff]  ;;  %v8546_v25 = vld [vmem:[#allocation2 + $0xd8] sm:$0xff] }
 0x87b   : > { %8576 = vst [vmem:[%s9540_s4] sm:$0xff] %v8544_v17  ;;  %v8547_v19 = vld [vmem:[#allocation2 + $0x18] sm:$0xff]  ;;  %v8548_v20 = vld [vmem:[#allocation2 + $0x50] sm:$0xff]  ;;  %v8549_v38 = vld [vmem:[#allocation2 + $0x68] sm:$0xff] }
 0x87c   : > { %8577 = vst [vmem:[%s9540_s4 + $0x8] sm:$0xff] %v8545_v0  ;;  %v8550_v39 = vld [vmem:[#allocation2 + $0x30] sm:$0xff]  ;;  %v8551_v41 = vld [vmem:[#allocation2 + $0x48] sm:$0xff]  ;;  %v8552_v32 = vld [vmem:[#allocation2 + $0x80] sm:$0xff] }
 0x87d   : > { %8578 = vst [vmem:[%s9540_s4 + $0x10] sm:$0xff] %v8546_v25  ;;  %v8553_v8 = vld [vmem:[#allocation2 + $0x88] sm:$0xff]  ;;  %v8555_v1 = vld [vmem:[#allocation2 + $0xb8] sm:$0xff]  ;;  %v8556_v5 = vld [vmem:[#allocation2 + $0x60] sm:$0xff] }
 0x87e   : > { %8579 = vst [vmem:[%s9540_s4 + $0x18] sm:$0xff] %v8547_v19  ;;  %v8554_v56 = vld [vmem:[#allocation2 + $0xe8] sm:$0xff]  ;;  %v8557_v36 = vld [vmem:[#allocation2 + $0xf0] sm:$0xff]  ;;  %v8559_v62 = vld [vmem:[#allocation2 + $0x78] sm:$0xff] }
 0x87f   : > { %8580 = vst [vmem:[%s9540_s4 + $0x20] sm:$0xff] %v8548_v20  ;;  %v8558_v35 = vld [vmem:[#allocation2 + $0x8] sm:$0xff]  ;;  %v8560_v29 = vld [vmem:[#allocation2 + $0x38] sm:$0xff]  ;;  %v8562_v15 = vld [vmem:[#allocation2 + $0x40] sm:$0xff] }
 0x880   : > { %8581 = vst [vmem:[%s9540_s4 + $0x28] sm:$0xff] %v8549_v38  ;;  %v8561_v33 = vld [vmem:[#allocation2 + $0x58] sm:$0xff]  ;;  %v8563_v51 = vld [vmem:[#allocation2 + $0xc8] sm:$0xff]  ;;  %v8564_v45 = vld [vmem:[#allocation2 + $0xe0] sm:$0xff] }
 0x881   : > { %8582 = vst [vmem:[%s9540_s4 + $0x30] sm:$0xff] %v8550_v39  ;;  %v8565_v61 = vld [vmem:[#allocation2 + $0x90] sm:$0xff]  ;;  %v8567_v4 = vld [vmem:[#allocation2 + $0xc0] sm:$0xff]  ;;  %v8568_v13 = vld [vmem:[#allocation2 + $0xa8] sm:$0xff] }
 0x882   : > { %8583 = vst [vmem:[%s9540_s4 + $0x38] sm:$0xff] %v8551_v41  ;;  %v8566_v40 = vld [vmem:[#allocation2 + $0x70] sm:$0xff]  ;;  %v8571_v53 = vld [vmem:[#allocation2 + $0x28] sm:$0xff]  ;;  %v8572_v30 = vld [vmem:[#allocation2 + $0xa0] sm:$0xff] }
 0x883   : > { %8584 = vst [vmem:[%s9540_s4 + $0x40] sm:$0xff] %v8552_v32  ;;  %v8569_v50 = vld [vmem:[#allocation2 + $0xd0] sm:$0xff]  ;;  %v8573_v27 = vld [vmem:[#allocation2 + $0xf8] sm:$0xff]  ;;  %v8574_v46 = vld [vmem:[#allocation2 + $0x20] sm:$0xff] }
 0x884   : > { %8585 = vst [vmem:[%s9540_s4 + $0x48] sm:$0xff] %v8553_v8  ;;  %v8570_v58 = vld [vmem:[#allocation2 + $0x10] sm:$0xff]  ;;  %v8575_v31 = vld [vmem:[#allocation2 + $0x98] sm:$0xff] }
 0x885   : > { %8586 = vst [vmem:[%s9540_s4 + $0x50] sm:$0xff] %v8554_v56 }
 0x886   : > { %8587 = vst [vmem:[%s9540_s4 + $0x58] sm:$0xff] %v8555_v1 }
 0x887   : > { %8588 = vst [vmem:[%s9540_s4 + $0x60] sm:$0xff] %v8556_v5 }
 0x888   : > { %8589 = vst [vmem:[%s9540_s4 + $0x68] sm:$0xff] %v8557_v36 }
 0x889   : > { %8590 = vst [vmem:[%s9540_s4 + $0x70] sm:$0xff] %v8558_v35 }
 0x88a   : > { %8591 = vst [vmem:[%s9540_s4 + $0x78] sm:$0xff] %v8559_v62 }
 0x88b   : > { %8592 = vst [vmem:[%s9540_s4 + $0x80] sm:$0xff] %v8560_v29 }
 0x88c   : > { %8593 = vst [vmem:[%s9540_s4 + $0x88] sm:$0xff] %v8561_v33 }
 0x88d   : > { %8594 = vst [vmem:[%s9540_s4 + $0x90] sm:$0xff] %v8562_v15 }
 0x88e   : > { %8595 = vst [vmem:[%s9540_s4 + $0x98] sm:$0xff] %v8563_v51 }
 0x88f   : > { %8596 = vst [vmem:[%s9540_s4 + $0xa0] sm:$0xff] %v8564_v45 }
 0x890   : > { %8597 = vst [vmem:[%s9540_s4 + $0xa8] sm:$0xff] %v8565_v61 }
 0x891   : > { %8598 = vst [vmem:[%s9540_s4 + $0xb0] sm:$0xff] %v8566_v40 }
 0x892   : > { %8599 = vst [vmem:[%s9540_s4 + $0xb8] sm:$0xff] %v8567_v4 }
 0x893   : > { %8600 = vst [vmem:[%s9540_s4 + $0xc0] sm:$0xff] %v8568_v13 }
 0x894   : > { %8601 = vst [vmem:[%s9540_s4 + $0xc8] sm:$0xff] %v8569_v50 }
 0x895   : > { %8602 = vst [vmem:[%s9540_s4 + $0xd0] sm:$0xff] %v8570_v58 }
 0x896   : > { %8603 = vst [vmem:[%s9540_s4 + $0xd8] sm:$0xff] %v8571_v53 }
 0x897   : > { %8604 = vst [vmem:[%s9540_s4 + $0xe0] sm:$0xff] %v8572_v30 }
 0x898   : > { %8605 = vst [vmem:[%s9540_s4 + $0xe8] sm:$0xff] %v8573_v27 }
 0x899   : > { %8606 = vst [vmem:[%s9540_s4 + $0xf0] sm:$0xff] %v8574_v46 }
 0x89a   : > { %8607 = vst [vmem:[%s9540_s4 + $0xf8] sm:$0xff] %v8575_v31 }
 0x89b PF: > { %s8843_s23 = sshll.u32 %s9296_s19, 8  ;;  %s18644_s10 = sld [smem:[#allocation158_spill]] }
 0x89c   : > { %s8621_s11 = sshll.u32 %s9540_s4, 4  ;;  %s8609_s24 = scalar_lea.sflag [#allocation5], %s9520_s9  ;;  %s8622_s11 = int_to_ptr.vmem [resolvable:$true] %s8621_s11 }
 0x8a1   : > { %s8620_s5 = scalar_lea.hbm %s18644_s10, %s8843_s23  ;;  %s9202_s19 = scalar_lea.hbm %s18644_s10, 512 }
 0x8a2   : > { %s8623_s14 = sshll.u32 %s8620_s5, 4  ;;  %s8624_s14 = int_to_ptr.hbm [resolvable:$true] %s8623_s14 }
 0x8a3   : > { %s9196_s30 = sshra.s32 %s8624_s14, 4  ;;  %s9197_s30 = int_to_ptr.hbm [resolvable:$true] %s9196_s30 }
 0x8a4   : > { %s9198_s7 = scalar_lea.hbm %s9197_s30, 256  ;;  %p9203_p5 = scmp.lt.s32.totalorder %s9197_s30, %s18644_s10 }
 0x8a5   : > { %p9199_p12 = scmp.ne.s32.totalorder %s9197_s30, %s9198_s7  ;;  %p9204_p6 = scmp.lt.s32.totalorder %s9202_s19, %s9198_s7 }
 0x8a7   : > { %p9200_p3 = pnand %p9199_p12, %p9483_p0  ;;  %p9205_p10 = por %p9204_p6, %p9203_p5 }
 0x8a9   : > { %p9201_p4 = pneg %p9200_p3 }
 0x8ab   : > { %p9206_p11 = pnand %p9205_p10, %p9201_p4 }
 0x8ad   : > { %9209 = shalt.err (!%p9206_p11)
}
 0x8ae   : > { %s9316_s9 = smov 128   ;;  %s9317_s1 = smov 8  }
 0x8af   : > { %8850 = dma.vmem_to_hbm [thread:$0]  (%p9483_p0), %s8622_s11, 4096, %s8624_s14, %s8609_s24, %s9316_s9, %s9316_s9, %s9317_s1  }
 0x8b0 PF: > { %s18645_s3 = sld [smem:[#allocation14_spill]]  ;;  %p8867_p1 = scmp.ge.s32.totalorder %s9308_s22, 2 }
 0x8b2   : > { %p8863_p2 = pnand %p8867_p1, %p9490_p8 }
 0x8b4   : > { %p8864_p13 = pneg %p8863_p2 }
 0x8b6   : > { %s8638_s21 = sand.u32 1, %s18645_s3  }
 0x8b7   : > { %s8639_s26 = scalar_lea.sflag [#allocation5], %s8638_s21 }
 0x8b8   : > { %9263 = dma.done.wait (%p8864_p13), %s8639_s26, 4096  }
 0x8b9   : > { %9265 = vsyncadd (%p8864_p13), %s8639_s26, 4294963200  ;;  %s22_s22 = sadd.s32 1, %s9308_s22   ;;  %s18647_s8 = sld [smem:[#allocation13_spill]] }
 0x8ba   : > { %p19_p9 = scmp.ge.s32.totalorder %s22_s22, 6   ;;  %s18648_s14 = sld [smem:[#allocation18_spill]] }
 0x8bb   : > { %s18649_s6 = sld [smem:[#allocation15_spill]]  ;;  %s18654_s12 = smov %s9272_s13 }
 0x8bc   : > { %s18650_s17 = sld [smem:[#allocation23_spill]]  ;;  %s18656_s15 = smov %s9284_s16 }
 0x8bd   : > { %s18651_s19 = sld [smem:[#allocation16_spill]]  ;;  %s18658_s18 = smov %s9300_s20 }
 0x8be   : > { %s18652_s4 = sld [smem:[#allocation17_spill]] }
 0x8bf   : > { %s18653_s21 = sld [smem:[#allocation20_spill]]  ;;  %s18655_s13 = smov %s18647_s8 }
 0x8c0   :  { %21 = sbr.rel (!%p19_p9) target bundleno = 14 (0xe), region = 109 }
 0x8c1   : > { %s18657_s16 = smov %s18649_s6 }
 0x8c4   : > { %s18659_s20 = smov %s18652_s4 }
 0x8c5   :  { %8645 = vsyncpa [#allocation4], 1 }
 0x8c6   :  { %8647 = vsyncpa [#allocation4 + $0x1], 1 }
 0x8c7   :  { %8648 = vsyncpa [#allocation7], 1 }
 0x8c8   :  { %8650 = vsyncpa [#allocation7 + $0x1], 1 }
 0x8c9   :  { %8651 = vsyncpa [#allocation5], 1 }
 0x8ca   :  { %8653 = vsyncpa [#allocation5 + $0x1], 1 }

</bundles_post_ra>
